<compile_context>
chip_gen: v7x
topology: tpu7x:2x2x1
jax: 0.10.0
libtpu: 0.0.40
codegen_flags: <defaults>
</compile_context>

<pallas_src>
import functools

import jax
import jax.numpy as jnp
from jax import lax
from jax.experimental import pallas as pl
from jax.experimental.pallas import tpu as pltpu


def _self_attn_kernel(zq_ref, xk_ref, eb_ref, v_ref, ov_ref, attn_ref, *,
                      compute_dtype):
    """One (batch, query-tile) grid step.

    zq_ref  : (1, TQ, C) query-side projection (Wq^T Wk)^T x_i   [compute dtype]
    xk_ref  : (1, C, N)  raw features, channel-major (keys)      [compute dtype]
    eb_ref  : (1, 1, N)  key-side bias (Wk^T bq) . x_j           [f32]
    v_ref   : (1, N, C)  value projection Wv x_j + bv            [compute dtype]
    ov_ref  : (1, TQ, C) attn @ V^T, token-major                 [f32]
    attn_ref: (1, TQ, N) attention rows (lane-dense store)
    """
    cd = compute_dtype

    # energy[i, j] = x_i^T (Wq^T Wk) x_j + (Wk^T bq) . x_j
    # (query-only bias terms dropped: constant along the softmax axis)
    energy = lax.dot_general(zq_ref[0], xk_ref[0],
                             (((1,), (0,)), ((), ())),
                             preferred_element_type=jnp.float32)       # (TQ, N)
    energy = energy + eb_ref[0]          # (1, N) broadcast, f32 (deliberate)

    # numerically stable row softmax over the fully resident key axis (f32).
    p = jnp.exp(energy - jnp.max(energy, axis=-1, keepdims=True))
    denom = jnp.sum(p, axis=-1, keepdims=True)
    r = pl.reciprocal(denom, approx=True)        # EUP slot (otherwise idle)
    r = r * (2.0 - denom * r)                    # one Newton step -> ~f32 exact
    attn = p * r                                 # (TQ, N) f32

    # store the attention rows first so the f32 copy is dead before the matmul
    attn_ref[0] = attn.astype(attn_ref.dtype)

    # out_v[i, :] = sum_j attn[i, j] * (Wv x_j + bv)   (bv folded exactly via v_ref)
    ov_ref[0] = lax.dot_general(attn.astype(cd), v_ref[0],
                                (((1,), (0,)), ((), ())),
                                preferred_element_type=jnp.float32
                                ).astype(ov_ref.dtype)                 # (TQ, C)


def _pick_query_tile(N, C, cd_bytes, attn_bytes, vmem_cap):
    """Largest query tile whose per-step live VMEM fits comfortably."""
    def need(tq):
        blocks = 2 * (tq * C * cd_bytes        # zq tile (double-buffered)
                      + C * N * cd_bytes       # resident keys
                      + N * 4                  # resident key bias
                      + N * C * cd_bytes       # resident values
                      + tq * N * attn_bytes    # attention out tile
                      + tq * C * 4)            # ov out tile
        temps = int(2.5 * tq * N * 4)          # energy/p/attn f32 live set
        return blocks + temps

    cands = []
    if N <= 1024:
        cands.append(N)                        # single query step: kills step overhead
    cands += [c for c in (512, 256, 128) if c < N and N % c == 0]
    if not cands:
        # TODO(synk): pad & mask ragged query tiles when N % 128 != 0 and N is large
        cands = [N]

    budget = int(vmem_cap * 0.6)               # leave headroom for dbl-buffers/scratch
    for tq in cands:
        if need(tq) <= budget:
            return tq, need(tq)
    return cands[-1], need(cands[-1])


def self_attn_pallas(x_nchw, wq, bq, wk, bk, wv, bv, gamma, *,
                     compute_dtype=jnp.bfloat16, attn_dtype=jnp.float32):
    """x_nchw: (B, C, W, H). Returns (out (B, C, W, H), attention (B, N, N)).

    attn_dtype=jnp.bfloat16 halves the dominant (B,N,N) HBM writeback if the
    consumer tolerates it (default keeps the module's f32 semantics).
    """
    B, C, W, H = x_nchw.shape
    N = W * H
    cd = compute_dtype

    # channel-major glue: NCHW -> (B, C, N) is a pure reshape (no transpose)
    x_bcn = x_nchw.reshape(B, C, N).astype(jnp.float32)

    # ---- query-invariant projections, hoisted out of the kernel ----
    m = jnp.dot(wq.T, wk).astype(jnp.float32)                    # (C, C)  Wq^T Wk
    u = jnp.dot(bq, wk).astype(jnp.float32)                      # (C,)    Wk^T bq
    zq_bnc = jnp.einsum('co,bci->bio', m, x_bcn).astype(cd)      # (B, N, C)
    eb_b1n = jnp.einsum('c,bcn->bn', u, x_bcn)[:, None, :].astype(jnp.float32)
    v_bnc = (jnp.einsum('oc,bcn->bno', wv, x_bcn)
             + bv[None, None, :]).astype(cd)                     # (B, N, C)
    xk_bcn = x_bcn.astype(cd)                                    # keys (pre-cast once)

    # ---- generation-aware tile / VMEM-limit selection ----
    try:
        vmem_cap = int(pltpu.get_tpu_info().vmem_capacity_bytes)
    except Exception:
        vmem_cap = 128 * 1024 * 1024            # conservative v5e/v6e default
    cd_bytes = jnp.finfo(cd).bits // 8
    attn_bytes = jnp.finfo(attn_dtype).bits // 8
    tq, vmem_need = _pick_query_tile(N, C, cd_bytes, attn_bytes, vmem_cap)
    nq = N // tq
    vmem_limit = int(min(max(vmem_need * 1.5 + (4 << 20), 32 << 20),
                         0.9 * vmem_cap))

    kernel = functools.partial(_self_attn_kernel, compute_dtype=cd)

    ov_bnc, attn = pl.pallas_call(
        kernel,
        out_shape=(jax.ShapeDtypeStruct((B, N, C), jnp.float32),
                   jax.ShapeDtypeStruct((B, N, N), attn_dtype)),
        grid_spec=pltpu.PrefetchScalarGridSpec(
            num_scalar_prefetch=0,
            grid=(B, nq),
            in_specs=[
                pl.BlockSpec((1, tq, C), lambda b, q: (b, q, 0)),   # zq query tile
                # q-invariant resident blocks (constant block index -> DMA'd once per batch)
                pl.BlockSpec((1, C, N), lambda b, q: (b, 0, 0)),    # keys (channel-major)
                pl.BlockSpec((1, 1, N), lambda b, q: (b, 0, 0)),    # key-side bias
                pl.BlockSpec((1, N, C), lambda b, q: (b, 0, 0)),    # values (token-major)
            ],
            out_specs=[
                pl.BlockSpec((1, tq, C), lambda b, q: (b, q, 0)),   # attn @ V^T
                pl.BlockSpec((1, tq, N), lambda b, q: (b, q, 0)),   # attention, lane-dense
            ],
        ),
        compiler_params=pltpu.CompilerParams(
            dimension_semantics=("parallel", "parallel"),
            vmem_limit_bytes=vmem_limit),
    )(zq_bnc, xk_bcn, eb_b1n, v_bnc)

    # fused XLA epilogue over the small (B,C,N) tensors: out = gamma*(V attn^T) + x
    g = gamma.reshape(()).astype(jnp.float32)
    out_bcn = g * jnp.transpose(ov_bnc, (0, 2, 1)) + x_bcn
    return out_bcn.reshape(B, C, W, H), attn


def _reference(x_nchw, wq, bq, wk, bk, wv, bv, gamma):
    B, C, W, H = x_nchw.shape
    N = W * H
    xf = x_nchw.reshape(B, C, N)                               # (B, C, N)
    q = jnp.einsum('oc,bcn->bon', wq, xf) + bq[None, :, None]  # (B, C8, N)
    k = jnp.einsum('oc,bcn->bon', wk, xf) + bk[None, :, None]
    v = jnp.einsum('oc,bcn->bon', wv, xf) + bv[None, :, None]  # (B, C, N)
    energy = jnp.einsum('bci,bcj->bij', q, k)                  # (B, N, N)
    attn = jax.nn.softmax(energy, axis=-1)
    out = jnp.einsum('bcj,bij->bci', v, attn)                  # (B, C, N)
    out = out.reshape(B, C, W, H)
    return gamma.reshape(()) * out + x_nchw, attn


if __name__ == "__main__":
    key = jax.random.PRNGKey(0)
    B, C, W, H = 2, 32, 16, 32        # in_dim = 32 -> C//8 = 4 ; N = 512
    C8 = C // 8

    ks = jax.random.split(key, 8)
    x = jax.random.normal(ks[0], (B, C, W, H), dtype=jnp.float32)
    wq = jax.random.normal(ks[1], (C8, C), dtype=jnp.float32) * 0.1
    bq = jax.random.normal(ks[2], (C8,), dtype=jnp.float32) * 0.1
    wk = jax.random.normal(ks[3], (C8, C), dtype=jnp.float32) * 0.1
    bk = jax.random.normal(ks[4], (C8,), dtype=jnp.float32) * 0.1
    wv = jax.random.normal(ks[5], (C, C), dtype=jnp.float32) * 0.1
    bv = jax.random.normal(ks[6], (C,), dtype=jnp.float32) * 0.1
    gamma = jax.random.uniform(ks[7], (1,), dtype=jnp.float32)

    out_ref, attn_ref = _reference(x, wq, bq, wk, bk, wv, bv, gamma)

    # default path: bf16 MXU operands (fast tier on v5e/v6e/v7x) — loose check
    out_bf, attn_bf = self_attn_pallas(x, wq, bq, wk, bk, wv, bv, gamma)
    out_bf = jax.block_until_ready(out_bf)
    attn_bf = jax.block_until_ready(attn_bf)
    assert out_bf.shape == (B, C, W, H)
    assert attn_bf.shape == (B, W * H, W * H)
    assert jnp.allclose(out_bf, out_ref, atol=5e-2, rtol=5e-2)
    assert jnp.allclose(attn_bf, attn_ref, atol=5e-2, rtol=5e-2)

    # f32-operand path — tight correctness check against the reference
    out32, attn32 = self_attn_pallas(x, wq, bq, wk, bk, wv, bv, gamma,
                                     compute_dtype=jnp.float32)
    out32 = jax.block_until_ready(out32)
    attn32 = jax.block_until_ready(attn32)
    assert jnp.allclose(out32, out_ref, atol=1e-4, rtol=1e-4)
    assert jnp.allclose(attn32, attn_ref, atol=5e-5, rtol=1e-4)

    print("KERNEL_OK")
</pallas_src>

<mosaic_0001>
module attributes {stable_mosaic.version = 11 : i64} {
  func.func @_self_attn_kernel(%arg0: i32, %arg1: i32, %arg2: memref<1x512x32xbf16, #tpu.memory_space<vmem>>, %arg3: memref<1x32x512xbf16, #tpu.memory_space<vmem>>, %arg4: memref<1x1x512xf32, #tpu.memory_space<vmem>>, %arg5: memref<1x512x32xbf16, #tpu.memory_space<vmem>>, %arg6: memref<1x512x32xf32, #tpu.memory_space<vmem>>, %arg7: memref<1x512x512xf32, #tpu.memory_space<vmem>>) attributes {dimension_semantics = [#tpu.dimension_semantics<parallel>, #tpu.dimension_semantics<parallel>], iteration_bounds = array<i64: 2, 1>, scalar_prefetch = 0 : i64, scratch_operands = 0 : i64, tpu.core_type = #tpu.core_type<tc>, window_params = [{transform_indices = @transform_0, window_bounds = array<i64: 1, 512, 32>}, {transform_indices = @transform_1, window_bounds = array<i64: 1, 32, 512>}, {transform_indices = @transform_2, window_bounds = array<i64: 1, 1, 512>}, {transform_indices = @transform_3, window_bounds = array<i64: 1, 512, 32>}, {transform_indices = @transform_4, window_bounds = array<i64: 1, 512, 32>}, {transform_indices = @transform_5, window_bounds = array<i64: 1, 512, 512>}]} {
    %c0 = arith.constant 0 : index
    %c0_0 = arith.constant 0 : index
    %c0_1 = arith.constant 0 : index
    %0 = vector.load %arg2[%c0, %c0_0, %c0_1] : memref<1x512x32xbf16, #tpu.memory_space<vmem>>, vector<1x512x32xbf16>
    %1 = vector.shape_cast %0 : vector<1x512x32xbf16> to vector<512x32xbf16>
    %c0_2 = arith.constant 0 : index
    %c0_3 = arith.constant 0 : index
    %c0_4 = arith.constant 0 : index
    %2 = vector.load %arg3[%c0_2, %c0_3, %c0_4] : memref<1x32x512xbf16, #tpu.memory_space<vmem>>, vector<1x32x512xbf16>
    %3 = vector.shape_cast %2 : vector<1x32x512xbf16> to vector<32x512xbf16>
    %cst = arith.constant dense<0.000000e+00> : vector<512x512xf32>
    %4 = tpu.matmul %1, %3, %cst {dimension_numbers = #tpu.dot_dimension_numbers<[1], [0], [0], [1], [0, 0, 1, 1], [], []>} : vector<512x32xbf16>, vector<32x512xbf16>, vector<512x512xf32> -> vector<512x512xf32>
    %c0_5 = arith.constant 0 : index
    %c0_6 = arith.constant 0 : index
    %c0_7 = arith.constant 0 : index
    %5 = vector.load %arg4[%c0_5, %c0_6, %c0_7] : memref<1x1x512xf32, #tpu.memory_space<vmem>>, vector<1x1x512xf32>
    %6 = vector.shape_cast %5 : vector<1x1x512xf32> to vector<1x512xf32>
    %7 = vector.broadcast %6 : vector<1x512xf32> to vector<512x512xf32>
    %8 = arith.addf %4, %7 : vector<512x512xf32>
    %cst_8 = arith.constant dense<0xFF800000> : vector<512xf32>
    %9 = vector.multi_reduction <maximumf>, %8, %cst_8 [1] : vector<512x512xf32> to vector<512xf32>
    %10 = vector.shape_cast %9 : vector<512xf32> to vector<512x1xf32>
    %11 = vector.broadcast %10 : vector<512x1xf32> to vector<512x512xf32>
    %12 = arith.subf %8, %11 : vector<512x512xf32>
    %13 = math.exp %12 : vector<512x512xf32>
    %cst_9 = arith.constant dense<0.000000e+00> : vector<512xf32>
    %14 = vector.multi_reduction <add>, %13, %cst_9 [1] : vector<512x512xf32> to vector<512xf32>
    %15 = vector.shape_cast %14 : vector<512xf32> to vector<512x1xf32>
    %16 = tpu.reciprocal %15 {approx = true} : vector<512x1xf32> -> vector<512x1xf32>
    %17 = arith.mulf %15, %16 : vector<512x1xf32>
    %cst_10 = arith.constant 2.000000e+00 : f32
    %18 = vector.broadcast %cst_10 : f32 to vector<512x1xf32>
    %19 = arith.subf %18, %17 : vector<512x1xf32>
    %20 = arith.mulf %16, %19 : vector<512x1xf32>
    %21 = vector.broadcast %20 : vector<512x1xf32> to vector<512x512xf32>
    %22 = arith.mulf %13, %21 : vector<512x512xf32>
    %c0_11 = arith.constant 0 : index
    %c0_12 = arith.constant 0 : index
    %c0_13 = arith.constant 0 : index
    %23 = vector.load %arg7[%c0_11, %c0_12, %c0_13] : memref<1x512x512xf32, #tpu.memory_space<vmem>>, vector<1x512x512xf32>
    %24 = vector.shape_cast %23 : vector<1x512x512xf32> to vector<512x512xf32>
    %25 = vector.shape_cast %22 : vector<512x512xf32> to vector<1x512x512xf32>
    tpu.vector_store %arg7[%c0_11, %c0_12, %c0_13], %25 {strides = array<i32>} : memref<1x512x512xf32, #tpu.memory_space<vmem>>, vector<1x512x512xf32>,
    %26 = arith.truncf %22 : vector<512x512xf32> to vector<512x512xbf16>
    %c0_14 = arith.constant 0 : index
    %c0_15 = arith.constant 0 : index
    %c0_16 = arith.constant 0 : index
    %27 = vector.load %arg5[%c0_14, %c0_15, %c0_16] : memref<1x512x32xbf16, #tpu.memory_space<vmem>>, vector<1x512x32xbf16>
    %28 = vector.shape_cast %27 : vector<1x512x32xbf16> to vector<512x32xbf16>
    %cst_17 = arith.constant dense<0.000000e+00> : vector<512x32xf32>
    %29 = tpu.matmul %26, %28, %cst_17 {dimension_numbers = #tpu.dot_dimension_numbers<[1], [0], [0], [1], [0, 0, 1, 1], [], []>} : vector<512x512xbf16>, vector<512x32xbf16>, vector<512x32xf32> -> vector<512x32xf32>
    %c0_18 = arith.constant 0 : index
    %c0_19 = arith.constant 0 : index
    %c0_20 = arith.constant 0 : index
    %30 = vector.load %arg6[%c0_18, %c0_19, %c0_20] : memref<1x512x32xf32, #tpu.memory_space<vmem>>, vector<1x512x32xf32>
    %31 = vector.shape_cast %30 : vector<1x512x32xf32> to vector<512x32xf32>
    %32 = vector.shape_cast %29 : vector<512x32xf32> to vector<1x512x32xf32>
    tpu.vector_store %arg6[%c0_18, %c0_19, %c0_20], %32 {strides = array<i32>} : memref<1x512x32xf32, #tpu.memory_space<vmem>>, vector<1x512x32xf32>,
    return
  }
  func.func @transform_0(%arg0: i32, %arg1: i32) -> (i32, i32, i32) {
    %c0_i32 = arith.constant 0 : i32
    %c0_i32_0 = arith.constant 0 : i32
    return %arg0, %arg1, %c0_i32 : i32, i32, i32
  }
  func.func @transform_1(%arg0: i32, %arg1: i32) -> (i32, i32, i32) {
    %c0_i32 = arith.constant 0 : i32
    %c0_i32_0 = arith.constant 0 : i32
    %c0_i32_1 = arith.constant 0 : i32
    return %arg0, %c0_i32, %c0_i32_0 : i32, i32, i32
  }
  func.func @transform_2(%arg0: i32, %arg1: i32) -> (i32, i32, i32) {
    %c0_i32 = arith.constant 0 : i32
    %c0_i32_0 = arith.constant 0 : i32
    %c0_i32_1 = arith.constant 0 : i32
    return %arg0, %c0_i32, %c0_i32_0 : i32, i32, i32
  }
  func.func @transform_3(%arg0: i32, %arg1: i32) -> (i32, i32, i32) {
    %c0_i32 = arith.constant 0 : i32
    %c0_i32_0 = arith.constant 0 : i32
    %c0_i32_1 = arith.constant 0 : i32
    return %arg0, %c0_i32, %c0_i32_0 : i32, i32, i32
  }
  func.func @transform_4(%arg0: i32, %arg1: i32) -> (i32, i32, i32) {
    %c0_i32 = arith.constant 0 : i32
    %c0_i32_0 = arith.constant 0 : i32
    return %arg0, %arg1, %c0_i32 : i32, i32, i32
  }
  func.func @transform_5(%arg0: i32, %arg1: i32) -> (i32, i32, i32) {
    %c0_i32 = arith.constant 0 : i32
    %c0_i32_0 = arith.constant 0 : i32
    return %arg0, %arg1, %c0_i32 : i32, i32, i32
  }
}

</mosaic_0001>

<bundles_post_ra>
// kernel: tpu_custom_call.1
= control target key start
LH: loop header
LB: loop body
LE: loop exit
PB: predicated region body
PF: predicated region fallthrough
CT: control target
= control target key end

     0   :  { %s10179_s0 = inlined_call_operand.vmem [shape: bf16[2,512,32], index: 0, kind: input, shape index: {}]   ;;  %s10180_s1 = inlined_call_operand.hbm [shape: bf16[2,32,512], index: 1, kind: input, shape index: {}]   ;;  %s10181_s2 = inlined_call_operand.hbm [shape: f32[2,1,512], index: 2, kind: input, shape index: {}]   ;;  %s10182_s3 = inlined_call_operand.vmem [shape: bf16[2,512,32], index: 3, kind: input, shape index: {}]   ;;  %s10183_s4 = inlined_call_operand.vmem [shape: f32[2,512,32], index: 4, kind: output, shape index: {0}]   ;;  %s10184_s5 = inlined_call_operand.hbm [shape: f32[2,512,512], index: 5, kind: output, shape index: {1}]  }
   0x1   :  { %10639 = sst [smem:[#allocation253_spill]] %s10180_s1 }
   0x2   :  { %11 = vsyncpa [#allocation3], 0 }
   0x3   :  { %13 = vsyncpa [#allocation3 + $0x1], 0 }
   0x4   :  { %14 = vsyncpa [#allocation6], 0 }
   0x5   :  { %16 = vsyncpa [#allocation6 + $0x1], 0 }
   0x6   :  { %17 = vsyncpa [#allocation4], 0 }
   0x7   :  { %19 = vsyncpa [#allocation4 + $0x1], 0  ;;  %s6085_s18 = smov 0   ;;  %s6087_s19 = smov 0  }
   0x8   :  { %s6089_s20 = smov 0   ;;  %s6091_s21 = smov 0  }
   0x9   :  { %s6093_s22 = smov 0   ;;  %s6095_s23 = smov 0  }
   0xa LB: > { %s4880_s24 = sadd.s32 4294967295, %s6045_s23   ;;  %s4881_s25 = sadd.s32 4294967294, %s6045_s23   ;;  %s6045_s23 = sphi %s6095_s23, %s25_s23   ;;  %s6041_s22 = sphi %s6093_s22, %s11617_s22   ;;  %s6037_s21 = sphi %s6091_s21, %s11616_s21   ;;  %s6033_s20 = sphi %s6089_s20, %s11615_s20   ;;  %s6029_s19 = sphi %s6087_s19, %s11614_s19   ;;  %s6025_s18 = sphi %s6085_s18, %s11613_s18  }
   0xb   : > { %s37_s26 = sadd.s32 1, %s6041_s22  ;;  %s72_s27 = sadd.s32 1, %s6033_s20 }
   0xc   : > { %p39_p0 = scmp.ge.s32.totalorder %s37_s26, 2  ;;  %p79_p1 = scmp.ne.s32.totalorder %s6033_s20, %s6029_s19 }
   0xd   : > { %p80_p2 = scmp.eq.s32.totalorder %s6045_s23, 0  ;;  %p85_p3 = scmp.ne.s32.totalorder %s6029_s19, %s6025_s18 }
   0xe   : > { %s11619_s26 = smov (%p39_p0, %s37_s26), 0  ;;  %p86_p5 = scmp.eq.s32.totalorder %s4880_s24, 0 }
   0xf   : > { %p6126_p4 = por %p80_p2, %p79_p1  ;;  %s69_s29 = ssub.s32 %s6041_s22, %s11619_s26 }
  0x10   : > { %p191_p6 = scmp.eq.s32.totalorder %s4880_s24, 1  ;;  %p70_p7 = scmp.eq.s32.totalorder %s69_s29, 0 }
  0x11   : > { %p6132_p8 = por %p86_p5, %p85_p3  ;;  %p197_p10 = scmp.eq.s32.totalorder %s4881_s25, 1 }
  0x12   : > { %p6136_p9 = por %p191_p6, %p79_p1  ;;  %p5128_p13 = scmp.lt.s32.totalorder %s6045_s23, 2 }
  0x13   : > { %s10641_s30 = scalar_select %p6132_p8, 1, 0 }
  0x14   : > { %s10642_s6 = scalar_select %p6136_p9, 1, 0 }
  0x15   : > { %s6141_s7 = scalar_select %p70_p7, %s6033_s20, %s72_s27  }
  0x16   : > { %p6143_p11 = por %p197_p10, %p85_p3  ;;  %s6150_s9 = sand.u32 1, %s6033_s20  }
  0x17   : > { %s4884_s10 = sshll.u32 %s6150_s9, 6  ;;  %s5041_s11 = sshll.u32 %s6041_s22, 10 }
  0x18   : > { %s10643_s8 = scalar_select %p6143_p11, 1, 0 }
  0x19   : > { %s10644_s1 = sld [smem:[#allocation253_spill]]  ;;  %s234_s15 = scalar_lea.vmem [#allocation2], %s4884_s10 }
  0x1a   : > { %s241_s16 = sshll.u32 %s234_s15, 4  ;;  %p6163_p0 = pnand %p5128_p13, %p6126_p4  ;;  %s6159_s16 = int_to_ptr.vmem [resolvable:$true] %s241_s16 }
  0x1b   : > { %s231_s24 = scalar_lea.sflag [#allocation3], %s6150_s9 }
  0x1c   : > { %p5901_p3 = pneg %p6163_p0 }
  0x1f   : > { %s6157_s14 = scalar_lea.hbm %s10644_s1, %s5041_s11  ;;  %s5904_s28 = scalar_lea.hbm %s10644_s1, 2048 }
  0x20   : > { %s5899_s25 = scalar_lea.hbm %s6157_s14, 1024  ;;  %p5905_p4 = scmp.lt.u32.totalorder %s6157_s14, %s10644_s1 }
  0x21   : > { %p5900_p2 = scmp.ne.s32.totalorder %s6157_s14, %s5899_s25  ;;  %p5906_p7 = scmp.lt.u32.totalorder %s5904_s28, %s5899_s25 }
  0x22   : > { %p5908_p13 = scmp.lt.u32.totalorder %s5899_s25, %s6157_s14 }
  0x23   : > { %p5902_p5 = pnand %p5901_p3, %p5900_p2  ;;  %p5907_p10 = por %p5906_p7, %p5905_p4 }
  0x25   : > { %p5903_p6 = pneg %p5902_p5  ;;  %p5909_p12 = por %p5908_p13, %p5907_p10 }
  0x27   : > { %p5910_p1 = pnand %p5909_p12, %p5903_p6 }
  0x29   : > { %5913 = shalt.err (!%p5910_p1)
}
  0x2a   : > { %s5914_s12 = scalar_lea.vmem %s6159_s16, 1024  ;;  %s6047_s13 = smov [#allocation2]  }
  0x2b   : > { %p5915_p2 = scmp.ne.s32.totalorder %s6159_s16, %s5914_s12  ;;  %s5919_s15 = sshll.u32 %s6047_s13, 4  ;;  %s5920_s15 = int_to_ptr.vmem [resolvable:$false] %s5919_s15 }
  0x2c   : > { %s5921_s27 = scalar_lea.vmem %s5920_s15, 2048  ;;  %p5922_p9 = scmp.lt.s32.totalorder %s6159_s16, %s5920_s15 }
  0x2d   : > { %p5917_p5 = pnand %p5915_p2, %p5901_p3  ;;  %p5923_p4 = scmp.lt.s32.totalorder %s5921_s27, %s5914_s12 }
  0x2f   : > { %p5918_p11 = pneg %p5917_p5  ;;  %p5924_p7 = por %p5923_p4, %p5922_p9 }
  0x31   : > { %p5925_p10 = pnand %p5924_p7, %p5918_p11 }
  0x33   : > { %5928 = shalt.err (!%p5925_p10)
}
  0x34   : > { %s6048_s25 = smov 256   ;;  %s6049_s29 = smov 16  }
  0x35   : > { %5120 = dma.hbm_to_vmem [thread:$0]  (!%p6163_p0), %s6157_s14, 1024, %s6159_s16, %s231_s24, %s6048_s25, %s6048_s25, %s6049_s29  }
  0x36   : > { %p276_p12 = scmp.lt.s32.totalorder %s6045_s23, 3  ;;  %s4887_s28 = sshll.u32 %s6150_s9, 2 }
  0x37   : > { %s5042_s10 = sshll.u32 %s6041_s22, 6  ;;  %p10646_p9 = scmp.ge.s32.totalorder %s6045_s23, 1 }
  0x38   : > { %s6208_s15 = scalar_lea.hbm %s10181_s2, %s5042_s10  ;;  %s255_s27 = scalar_lea.vmem [#allocation5], %s4887_s28 }
  0x39   : > { %p6201_p11 = pnand %p10646_p9, %p276_p12  ;;  %s263_s1 = sshll.u32 %s255_s27, 4  ;;  %s264_s1 = int_to_ptr.vmem [resolvable:$true] %s263_s1 }
  0x3a   : > { %s252_s14 = scalar_lea.sflag [#allocation6], %s6150_s9  ;;  %s5929_s16 = scalar_lea.hbm %s6208_s15, 64 }
  0x3b   : > { %s10647_s11 = scalar_select %p6201_p11, 1, 0 }
  0x3c   : > { %p5930_p1 = scmp.ne.s32.totalorder %s6208_s15, %s5929_s16  ;;  %s5934_s29 = scalar_lea.hbm %s10181_s2, 128 }
  0x3d   : > { %p5935_p2 = scmp.lt.u32.totalorder %s6208_s15, %s10181_s2  ;;  %p5936_p5 = scmp.lt.u32.totalorder %s5934_s29, %s5929_s16 }
  0x3e   : > { %p5932_p6 = pnand %p5930_p1, %p5901_p3  ;;  %p5938_p7 = scmp.lt.u32.totalorder %s5929_s16, %s6208_s15 }
  0x3f   : > { %p5937_p4 = por %p5936_p5, %p5935_p2 }
  0x40   : > { %p5933_p13 = pneg %p5932_p6 }
  0x41   : > { %p5939_p10 = por %p5938_p7, %p5937_p4 }
  0x43   : > { %p5940_p12 = pnand %p5939_p10, %p5933_p13 }
  0x45   : > { %5943 = shalt.err (!%p5940_p12)
}
  0x46   : > { %s5944_s9 = scalar_lea.vmem %s264_s1, 64  ;;  %s6050_s28 = smov [#allocation5]  }
  0x47   : > { %p5945_p9 = scmp.ne.s32.totalorder %s264_s1, %s5944_s9  ;;  %s5949_s13 = sshll.u32 %s6050_s28, 4  ;;  %s5950_s13 = int_to_ptr.vmem [resolvable:$false] %s5949_s13 }
  0x48   : > { %s5951_s27 = scalar_lea.vmem %s5950_s13, 128  ;;  %p5952_p8 = scmp.lt.s32.totalorder %s264_s1, %s5950_s13 }
  0x49   : > { %p5947_p1 = pnand %p5945_p9, %p5901_p3  ;;  %p5953_p11 = scmp.lt.s32.totalorder %s5951_s27, %s5944_s9 }
  0x4b   : > { %p5948_p6 = pneg %p5947_p1  ;;  %p5954_p2 = por %p5953_p11, %p5952_p8 }
  0x4d   : > { %p5955_p5 = pnand %p5954_p2, %p5948_p6 }
  0x4f   : > { %5958 = shalt.err (!%p5955_p5)
}
  0x50   : > { %5123 = dma.hbm_to_vmem [thread:$0]  (!%p6163_p0), %s6208_s15, 64, %s264_s1, %s252_s14  }
  0x51   : > { %p10648_p13 = scmp.ne.s32.totalorder %s10647_s11, 0 }
  0x53   : > { %280 = sbr.rel (%p10648_p13) target bundleno = 1330 (0x532), region = 36 }
  0x5a   : > { %s6233_s16 = sand.u32 1, %s6029_s19   ;;  %p10649_p3 = scmp.ne.s32.totalorder %s10641_s30, 0 }
  0x5b   : > { %s4891_s24 = sshll.u32 %s6233_s16, 6  ;;  %s283_s25 = scalar_lea.sflag [#allocation3], %s6233_s16 }
  0x5c   : > { %s286_s29 = scalar_lea.vmem [#allocation2], %s4891_s24 }
  0x5d   : > { %6012 = dma.done.wait (%p10649_p3), %s283_s25, 1024  }
  0x5e   : > { %6014 = vsyncadd (%p10649_p3), %s283_s25, 4294966272  ;;  %s4892_s1 = sshll.u32 %s6233_s16, 2  ;;  %s292_s17 = scalar_lea.sflag [#allocation6], %s6233_s16 }
  0x5f   : > { %s6243_s11 = scalar_lea.vmem [#allocation5], %s4892_s1 }
  0x60   : > { %6016 = dma.done.wait (%p10649_p3), %s292_s17, 64  }
  0x61   : > { %6018 = vsyncadd (%p10649_p3), %s292_s17, 4294967232  ;;  %p351_p8 = scmp.lt.s32.totalorder %s6037_s21, 1  ;;  %v10188_v0 = vmov 0   ;;  %v5183_v1 = vld [vmem:[%s286_s29 + $0x4] ss:$16 sps:$4 sm:$0xff]   ;;  %vm671_vm0 = vcmask 261120   ;;  %v451_v34 = vlaneseq }
  0x62   : > { %800 = vmatprep.mubr.bf16.mxu0 %v10188_v0  ;;  %1153 = vmatprep.mubr.bf16.mxu1 %v10188_v0  ;;  %v5185_v2 = vld [vmem:[%s286_s29 + $0xc] ss:$16 sps:$4 sm:$0xff]   ;;  %v5187_v3 = vld [vmem:[%s286_s29] ss:$16 sps:$4 sm:$0xff]   ;;  %v5188_v4 = vld [vmem:[%s286_s29 + $0x8] ss:$16 sps:$4 sm:$0xff]  }
  0x63   : > { %s6253_s15 = scalar_select %p351_p8, %s6037_s21, 1  ;;  %768 = vmatprep.subr.bf16.mxu0 %v5183_v1  ;;  %1121 = vmatprep.subr.bf16.mxu1 %v5185_v2  ;;  %v5189_v5 = vld [vmem:[%s286_s29 + $0x24] ss:$16 sps:$4 sm:$0xff]   ;;  %v5191_v6 = vld [vmem:[%s286_s29 + $0x2c] ss:$16 sps:$4 sm:$0xff]   ;;  %v452_v36 = vshrl.u32 %v451_v34, 7 }
  0x64   : > { %769 = vmatpush1.bf16.msra.mxu0 %v5187_v3  ;;  %1122 = vmatpush1.bf16.msra.mxu1 %v5188_v4  ;;  %v5193_v7 = vld [vmem:[%s286_s29 + $0x20] ss:$16 sps:$4 sm:$0xff]   ;;  %v5194_v8 = vld [vmem:[%s286_s29 + $0x28] ss:$16 sps:$4 sm:$0xff]   ;;  %s4893_s27 = sshll.u32 %s6233_s16, 11  ;;  %p11610_p11 = scmp.ne.s32.totalorder %s10642_s6, 0 }
  0x65   : > { %s5043_s14 = sshll.u32 %s6253_s15, 8  ;;  %770 = vmatprep.subr.bf16.mxu0 %v5189_v5  ;;  %1123 = vmatprep.subr.bf16.mxu1 %v5191_v6  ;;  %v453_v37 = vsub.s32 0, %v452_v36  ;;  %v449_v39 = vld [vmem:[%s6243_s11] sm:$0xf]  ;;  %v461_v40 = vsub.s32 2, %v452_v36  ;;  %v457_v41 = vsub.s32 1, %v452_v36 }
  0x66   : > { %s6261_s12 = scalar_lea.vmem %s10179_s0, %s5043_s14  ;;  %v465_v43 = vsub.s32 3, %v452_v36  ;;  %s6827_s13 = scalar_lea.vmem %s10182_s3, %s5043_s14 }
  0x67   : > { %v5195_v9 = vld [vmem:[%s6261_s12] sm:$0xff]   ;;  %v5196_v10 = vld [vmem:[%s6261_s12 + $0x8] sm:$0xff]   ;;  %v5197_v11 = vld [vmem:[%s6261_s12 + $0x10] sm:$0xff]   ;;  %v6397_v42 = vrot.slane %v449_v39, %v453_v37  ;;  %v6401_v44 = vrot.slane %v449_v39, %v461_v40  ;;  %v6403_v45 = vrot.slane %v449_v39, %v457_v41  ;;  %s8425_s24 = scalar_lea.vmem [#allocation7], %s4893_s27  ;;  %s5045_s25 = sshll.u32 %s6253_s15, 9 }
  0x68   : > { %771 = vmatpush1.bf16.msra.mxu0 %v5193_v7  ;;  %1124 = vmatpush1.bf16.msra.mxu1 %v5194_v8  ;;  %v5198_v12 = vld [vmem:[%s6261_s12 + $0x18] sm:$0xff]   ;;  %v5199_v13 = vld [vmem:[%s6261_s12 + $0x20] sm:$0xff]   ;;  %v5200_v14 = vld [vmem:[%s6261_s12 + $0x28] sm:$0xff]   ;;  %v6410_v50 = vrot.slane %v449_v39, %v465_v43  ;;  %s9677_s17 = scalar_lea.vmem %s10183_s4, %s5045_s25  ;;  %s5046_s11 = sshll.u32 %s6037_s21, 15 }
  0x69   : > { %4034 = vmatprep.subr.bf16.mxu1 %v10188_v0  ;;  %4323 = vmatprep.subr.bf16.mxu0 %v10188_v0  ;;  %v5201_v15 = vld [vmem:[%s6261_s12 + $0x30] sm:$0xff]   ;;  %v5202_v16 = vld [vmem:[%s6261_s12 + $0x38] sm:$0xff]   ;;  %v5203_v17 = vld [vmem:[%s6261_s12 + $0x40] sm:$0xff]   ;;  %s10095_s30 = scalar_lea.hbm %s10184_s5, %s5046_s11  ;;  %s4706_s10 = sshll.u32 %s8425_s24, 4  ;;  %s10098_s10 = int_to_ptr.vmem [resolvable:$true] %s4706_s10 }
  0x6a   : > { %v5204_v18 = vld [vmem:[%s6261_s12 + $0x48] sm:$0xff]   ;;  %v5205_v19 = vld [vmem:[%s6261_s12 + $0x50] sm:$0xff]   ;;  %v5206_v20 = vld [vmem:[%s6261_s12 + $0x58] sm:$0xff]   ;;  %s5959_s9 = scalar_lea.vmem %s10098_s10, 32768  ;;  %s6052_s28 = smov [#allocation7]  }
  0x6b   : > { %4940 = vmatmul.mubr.msk.bf16.vlgmr.msra.gmra.mrb[0].mxu0 %vm671_vm0, %v5195_v9  ;;  %4972 = vmatmul.mubr.msk.bf16.vlgmr.msra.gmra.mrb[0].mxu1 %vm671_vm0, %v5195_v9  ;;  %v5207_v21 = vld [vmem:[%s6261_s12 + $0x60] sm:$0xff]   ;;  %v5208_v22 = vld [vmem:[%s6261_s12 + $0x68] sm:$0xff]   ;;  %v5209_v23 = vld [vmem:[%s6261_s12 + $0x70] sm:$0xff]   ;;  %p5960_p0 = scmp.ne.s32.totalorder %s10098_s10, %s5959_s9 }
  0x6c   : > { %810 = vmatprep.mubr.bf16.mxu0 %v10188_v0  ;;  %1163 = vmatprep.mubr.bf16.mxu1 %v10188_v0  ;;  %v5210_v24 = vld [vmem:[%s6261_s12 + $0x78] sm:$0xff]   ;;  %v5211_v25 = vld [vmem:[%s6261_s12 + $0x80] sm:$0xff]   ;;  %v5212_v26 = vld [vmem:[%s6261_s12 + $0x88] sm:$0xff]  }
  0x6d   : > { %v5213_v27 = vld [vmem:[%s6261_s12 + $0x90] sm:$0xff]   ;;  %v5214_v28 = vld [vmem:[%s6261_s12 + $0x98] sm:$0xff]   ;;  %v5215_v29 = vld [vmem:[%s6261_s12 + $0xa0] sm:$0xff]   ;;  %p5961_p4 = pnand %p5960_p0, %p11610_p11 }
  0x6e   : > { %v5216_v30 = vld [vmem:[%s6261_s12 + $0xa8] sm:$0xff]   ;;  %v5217_v31 = vld [vmem:[%s6261_s12 + $0xb0] sm:$0xff]   ;;  %v5218_v32 = vld [vmem:[%s6261_s12 + $0xb8] sm:$0xff]  }
  0x6f   : > { %v5219_v33 = vld [vmem:[%s6261_s12 + $0xc0] sm:$0xff]   ;;  %v5220_v35 = vld [vmem:[%s6261_s12 + $0xc8] sm:$0xff]   ;;  %v5221_v38 = vld [vmem:[%s6261_s12 + $0xd0] sm:$0xff]   ;;  %p5962_p7 = pneg %p5961_p4 }
  0x70   : > { %v5222_v52 = vld [vmem:[%s6261_s12 + $0xd8] sm:$0xff]  }
  0x73   : > { %4941 = vmatmul.mubr.msk.bf16.gmra.mrb[4].mxu0 %vm671_vm0, %v5196_v10  ;;  %4973 = vmatmul.mubr.msk.bf16.gmra.mrb[4].mxu1 %vm671_vm0, %v5196_v10 }
  0x74   : > { %820 = vmatprep.mubr.bf16.mxu0 %v10188_v0  ;;  %1173 = vmatprep.mubr.bf16.mxu1 %v10188_v0 }
  0x7b   : > { %4942 = vmatmul.mubr.msk.bf16.gmra.mrb[8].mxu0 %vm671_vm0, %v5197_v11  ;;  %4974 = vmatmul.mubr.msk.bf16.gmra.mrb[8].mxu1 %vm671_vm0, %v5197_v11 }
  0x7c   : > { %830 = vmatprep.mubr.bf16.mxu0 %v10188_v0  ;;  %1183 = vmatprep.mubr.bf16.mxu1 %v10188_v0 }
  0x83   : > { %4943 = vmatmul.mubr.msk.bf16.gmra.mrb[12].mxu0 %vm671_vm0, %v5198_v12  ;;  %4975 = vmatmul.mubr.msk.bf16.gmra.mrb[12].mxu1 %vm671_vm0, %v5198_v12 }
  0x84   : > { %840 = vmatprep.mubr.bf16.mxu0 %v10188_v0  ;;  %1193 = vmatprep.mubr.bf16.mxu1 %v10188_v0 }
  0x8b   : > { %4944 = vmatmul.mubr.msk.bf16.gmra.mrb[16].mxu0 %vm671_vm0, %v5199_v13  ;;  %4976 = vmatmul.mubr.msk.bf16.gmra.mrb[16].mxu1 %vm671_vm0, %v5199_v13 }
  0x8c   : > { %850 = vmatprep.mubr.bf16.mxu0 %v10188_v0  ;;  %1203 = vmatprep.mubr.bf16.mxu1 %v10188_v0 }
  0x93   : > { %4945 = vmatmul.mubr.msk.bf16.gmra.mrb[20].mxu0 %vm671_vm0, %v5200_v14  ;;  %4977 = vmatmul.mubr.msk.bf16.gmra.mrb[20].mxu1 %vm671_vm0, %v5200_v14 }
  0x94   : > { %860 = vmatprep.mubr.bf16.mxu0 %v10188_v0  ;;  %1213 = vmatprep.mubr.bf16.mxu1 %v10188_v0 }
  0x9b   : > { %4946 = vmatmul.mubr.msk.bf16.gmra.mrb[24].mxu0 %vm671_vm0, %v5201_v15  ;;  %4978 = vmatmul.mubr.msk.bf16.gmra.mrb[24].mxu1 %vm671_vm0, %v5201_v15 }
  0x9c   : > { %870 = vmatprep.mubr.bf16.mxu0 %v10188_v0  ;;  %1223 = vmatprep.mubr.bf16.mxu1 %v10188_v0 }
  0xa3   : > { %4947 = vmatmul.mubr.msk.bf16.gmra.mrb[28].mxu0 %vm671_vm0, %v5202_v16  ;;  %4979 = vmatmul.mubr.msk.bf16.gmra.mrb[28].mxu1 %vm671_vm0, %v5202_v16 }
  0xa4   : > { %880 = vmatprep.mubr.bf16.mxu0 %v10188_v0  ;;  %1233 = vmatprep.mubr.bf16.mxu1 %v10188_v0 }
  0xab   : > { %4948 = vmatmul.mubr.msk.bf16.gmra.mrb[32].mxu0 %vm671_vm0, %v5203_v17  ;;  %4980 = vmatmul.mubr.msk.bf16.gmra.mrb[32].mxu1 %vm671_vm0, %v5203_v17 }
  0xac   : > { %890 = vmatprep.mubr.bf16.mxu0 %v10188_v0  ;;  %1243 = vmatprep.mubr.bf16.mxu1 %v10188_v0 }
  0xb3   : > { %4949 = vmatmul.mubr.msk.bf16.gmra.mrb[36].mxu0 %vm671_vm0, %v5204_v18  ;;  %4981 = vmatmul.mubr.msk.bf16.gmra.mrb[36].mxu1 %vm671_vm0, %v5204_v18 }
  0xb4   : > { %900 = vmatprep.mubr.bf16.mxu0 %v10188_v0  ;;  %1253 = vmatprep.mubr.bf16.mxu1 %v10188_v0 }
  0xbb   : > { %4950 = vmatmul.mubr.msk.bf16.gmra.mrb[40].mxu0 %vm671_vm0, %v5205_v19  ;;  %4982 = vmatmul.mubr.msk.bf16.gmra.mrb[40].mxu1 %vm671_vm0, %v5205_v19 }
  0xbc   : > { %910 = vmatprep.mubr.bf16.mxu0 %v10188_v0  ;;  %1263 = vmatprep.mubr.bf16.mxu1 %v10188_v0 }
  0xc3   : > { %4951 = vmatmul.mubr.msk.bf16.gmra.mrb[44].mxu0 %vm671_vm0, %v5206_v20  ;;  %4983 = vmatmul.mubr.msk.bf16.gmra.mrb[44].mxu1 %vm671_vm0, %v5206_v20 }
  0xc4   : > { %920 = vmatprep.mubr.bf16.mxu0 %v10188_v0  ;;  %1273 = vmatprep.mubr.bf16.mxu1 %v10188_v0 }
  0xcb   : > { %4952 = vmatmul.mubr.msk.bf16.gmra.mrb[48].mxu0 %vm671_vm0, %v5207_v21  ;;  %4984 = vmatmul.mubr.msk.bf16.gmra.mrb[48].mxu1 %vm671_vm0, %v5207_v21 }
  0xcc   : > { %930 = vmatprep.mubr.bf16.mxu0 %v10188_v0  ;;  %1283 = vmatprep.mubr.bf16.mxu1 %v10188_v0 }
  0xd3   : > { %4953 = vmatmul.mubr.msk.bf16.gmra.mrb[52].mxu0 %vm671_vm0, %v5208_v22  ;;  %4985 = vmatmul.mubr.msk.bf16.gmra.mrb[52].mxu1 %vm671_vm0, %v5208_v22 }
  0xd4   : > { %940 = vmatprep.mubr.bf16.mxu0 %v10188_v0  ;;  %1293 = vmatprep.mubr.bf16.mxu1 %v10188_v0 }
  0xdb   : > { %4954 = vmatmul.mubr.msk.bf16.gmra.mrb[56].mxu0 %vm671_vm0, %v5209_v23  ;;  %4986 = vmatmul.mubr.msk.bf16.gmra.mrb[56].mxu1 %vm671_vm0, %v5209_v23 }
  0xdc   : > { %950 = vmatprep.mubr.bf16.mxu0 %v10188_v0  ;;  %1303 = vmatprep.mubr.bf16.mxu1 %v10188_v0 }
  0xe3   : > { %4955 = vmatmul.mubr.msk.bf16.gmra.mrb[60].mxu0 %vm671_vm0, %v5210_v24  ;;  %4987 = vmatmul.mubr.msk.bf16.gmra.mrb[60].mxu1 %vm671_vm0, %v5210_v24 }
  0xe4   : > { %960 = vmatprep.mubr.bf16.mxu0 %v10188_v0  ;;  %1313 = vmatprep.mubr.bf16.mxu1 %v10188_v0 }
  0xeb   : > { %4956 = vmatmul.mubr.msk.bf16.gmra.mrb[64].mxu0 %vm671_vm0, %v5211_v25  ;;  %4988 = vmatmul.mubr.msk.bf16.gmra.mrb[64].mxu1 %vm671_vm0, %v5211_v25 }
  0xec   : > { %970 = vmatprep.mubr.bf16.mxu0 %v10188_v0  ;;  %1323 = vmatprep.mubr.bf16.mxu1 %v10188_v0 }
  0xf3   : > { %4957 = vmatmul.mubr.msk.bf16.gmra.mrb[68].mxu0 %vm671_vm0, %v5212_v26  ;;  %4989 = vmatmul.mubr.msk.bf16.gmra.mrb[68].mxu1 %vm671_vm0, %v5212_v26 }
  0xf4   : > { %980 = vmatprep.mubr.bf16.mxu0 %v10188_v0  ;;  %1333 = vmatprep.mubr.bf16.mxu1 %v10188_v0 }
  0xfb   : > { %4958 = vmatmul.mubr.msk.bf16.gmra.mrb[72].mxu0 %vm671_vm0, %v5213_v27  ;;  %4990 = vmatmul.mubr.msk.bf16.gmra.mrb[72].mxu1 %vm671_vm0, %v5213_v27 }
  0xfc   : > { %990 = vmatprep.mubr.bf16.mxu0 %v10188_v0  ;;  %1343 = vmatprep.mubr.bf16.mxu1 %v10188_v0 }
 0x103   : > { %4959 = vmatmul.mubr.msk.bf16.gmra.mrb[76].mxu0 %vm671_vm0, %v5214_v28  ;;  %4991 = vmatmul.mubr.msk.bf16.gmra.mrb[76].mxu1 %vm671_vm0, %v5214_v28 }
 0x104   : > { %1000 = vmatprep.mubr.bf16.mxu0 %v10188_v0  ;;  %1353 = vmatprep.mubr.bf16.mxu1 %v10188_v0 }
 0x10b   : > { %4960 = vmatmul.mubr.msk.bf16.gmra.mrb[80].mxu0 %vm671_vm0, %v5215_v29  ;;  %4992 = vmatmul.mubr.msk.bf16.gmra.mrb[80].mxu1 %vm671_vm0, %v5215_v29 }
 0x10c   : > { %1010 = vmatprep.mubr.bf16.mxu0 %v10188_v0  ;;  %1363 = vmatprep.mubr.bf16.mxu1 %v10188_v0 }
 0x113   : > { %4961 = vmatmul.mubr.msk.bf16.gmra.mrb[84].mxu0 %vm671_vm0, %v5216_v30  ;;  %4993 = vmatmul.mubr.msk.bf16.gmra.mrb[84].mxu1 %vm671_vm0, %v5216_v30 }
 0x114   : > { %1020 = vmatprep.mubr.bf16.mxu0 %v10188_v0  ;;  %1373 = vmatprep.mubr.bf16.mxu1 %v10188_v0 }
 0x11b   : > { %4962 = vmatmul.mubr.msk.bf16.gmra.mrb[88].mxu0 %vm671_vm0, %v5217_v31  ;;  %4994 = vmatmul.mubr.msk.bf16.gmra.mrb[88].mxu1 %vm671_vm0, %v5217_v31 }
 0x11c   : > { %1030 = vmatprep.mubr.bf16.mxu0 %v10188_v0  ;;  %1383 = vmatprep.mubr.bf16.mxu1 %v10188_v0 }
 0x123   : > { %4963 = vmatmul.mubr.msk.bf16.gmra.mrb[92].mxu0 %vm671_vm0, %v5218_v32  ;;  %4995 = vmatmul.mubr.msk.bf16.gmra.mrb[92].mxu1 %vm671_vm0, %v5218_v32 }
 0x124   : > { %1040 = vmatprep.mubr.bf16.mxu0 %v10188_v0  ;;  %1393 = vmatprep.mubr.bf16.mxu1 %v10188_v0 }
 0x12b   : > { %4964 = vmatmul.mubr.msk.bf16.gmra.mrb[96].mxu0 %vm671_vm0, %v5219_v33  ;;  %4996 = vmatmul.mubr.msk.bf16.gmra.mrb[96].mxu1 %vm671_vm0, %v5219_v33 }
 0x12c   : > { %1050 = vmatprep.mubr.bf16.mxu0 %v10188_v0  ;;  %1403 = vmatprep.mubr.bf16.mxu1 %v10188_v0 }
 0x133   : > { %4965 = vmatmul.mubr.msk.bf16.gmra.mrb[100].mxu0 %vm671_vm0, %v5220_v35  ;;  %4997 = vmatmul.mubr.msk.bf16.gmra.mrb[100].mxu1 %vm671_vm0, %v5220_v35 }
 0x134   : > { %1060 = vmatprep.mubr.bf16.mxu0 %v10188_v0  ;;  %1413 = vmatprep.mubr.bf16.mxu1 %v10188_v0 }
 0x13b   : > { %4966 = vmatmul.mubr.msk.bf16.gmra.mrb[104].mxu0 %vm671_vm0, %v5221_v38  ;;  %4998 = vmatmul.mubr.msk.bf16.gmra.mrb[104].mxu1 %vm671_vm0, %v5221_v38 }
 0x13c   : > { %1070 = vmatprep.mubr.bf16.mxu0 %v10188_v0  ;;  %1423 = vmatprep.mubr.bf16.mxu1 %v10188_v0 }
 0x13e   : > { %v802_v46 = vpop.f32.mrb[0].mxu0  ;;  %v1155_v47 = vpop.f32.mrb[0].mxu1 }
 0x13f   : > { %v6408_v48 = vadd.f32 %v802_v46, %v6397_v42  ;;  %v804_v49 = vpop.f32.mrb[1].mxu0  ;;  %v1157_v51 = vpop.f32.mrb[1].mxu1  ;;  %v6414_v53 = vadd.f32 %v1155_v47, %v6401_v44 }
 0x140   : > { %v6417_v54 = vadd.f32 %v804_v49, %v6403_v45  ;;  %v806_v55 = vpop.f32.mrb[2].mxu0  ;;  %v1159_v56 = vpop.f32.mrb[2].mxu1  ;;  %v6428_v62 = vadd.f32 %v1157_v51, %v6410_v50 }
 0x141   : > { %v6420_v57 = vadd.f32 %v806_v55, %v6397_v42  ;;  %v808_v58 = vpop.f32.mrb[3].mxu0  ;;  %v1161_v59 = vpop.f32.mrb[3].mxu1  ;;  %v6433_v63 = vadd.f32 %v1159_v56, %v6401_v44 }
 0x142   : > { %v1474_v60 = vmax.f32 %v6408_v48, %v6417_v54  ;;  %v6425_v61 = vadd.f32 %v808_v58, %v6403_v45  ;;  %v6446_v10 = vadd.f32 %v1161_v59, %v6410_v50 }
 0x143   : > { %4967 = vmatmul.mubr.msk.bf16.gmra.mrb[108].mxu0 %vm671_vm0, %v5222_v52  ;;  %4999 = vmatmul.mubr.msk.bf16.gmra.mrb[108].mxu1 %vm671_vm0, %v5222_v52 }
 0x144   : > { %v1479_v1 = vmax.f32 %v6420_v57, %v6425_v61  ;;  %v1475_v2 = vmax.f32 %v1474_v60, %v6414_v53  ;;  %1080 = vmatprep.mubr.bf16.mxu0 %v10188_v0  ;;  %1433 = vmatprep.mubr.bf16.mxu1 %v10188_v0 }
 0x146   : > { %v812_v3 = vpop.f32.mrb[4].mxu0  ;;  %v1165_v4 = vpop.f32.mrb[4].mxu1  ;;  %v1476_v5 = vmax.f32 %v1475_v2, %v6428_v62  ;;  %v1480_v6 = vmax.f32 %v1479_v1, %v6433_v63 }
 0x147   : > { %v6443_v7 = vadd.f32 %v812_v3, %v6397_v42  ;;  %v814_v8 = vpop.f32.mrb[5].mxu0  ;;  %v1167_v9 = vpop.f32.mrb[5].mxu1  ;;  %v6449_v11 = vadd.f32 %v1165_v4, %v6401_v44 }
 0x148   : > { %v6452_v12 = vadd.f32 %v814_v8, %v6403_v45  ;;  %v816_v13 = vpop.f32.mrb[6].mxu0  ;;  %v1169_v14 = vpop.f32.mrb[6].mxu1  ;;  %1477 = vmax.xlane.f32.xlu0 %v1476_v5  ;;  %v1481_v20 = vmax.f32 %v1480_v6, %v6446_v10  ;;  %v6464_v21 = vadd.f32 %v1167_v9, %v6410_v50  ;;  %v5223_v9 = vld [vmem:[%s6261_s12 + $0xe0] sm:$0xff]  }
 0x149   : > { %v6455_v15 = vadd.f32 %v816_v13, %v6397_v42  ;;  %v818_v16 = vpop.f32.mrb[7].mxu0  ;;  %v1171_v17 = vpop.f32.mrb[7].mxu1  ;;  %v6467_v22 = vadd.f32 %v1169_v14, %v6401_v44 }
 0x14a   : > { %v1484_v18 = vmax.f32 %v6443_v7, %v6452_v12  ;;  %v6460_v19 = vadd.f32 %v818_v16, %v6403_v45  ;;  %v6478_v32 = vadd.f32 %v1171_v17, %v6410_v50 }
 0x14b   : > { %4968 = vmatmul.mubr.msk.bf16.gmra.mrb[112].mxu0 %vm671_vm0, %v5223_v9  ;;  %5000 = vmatmul.mubr.msk.bf16.gmra.mrb[112].mxu1 %vm671_vm0, %v5223_v9 }
 0x14c   : > { %v1489_v23 = vmax.f32 %v6455_v15, %v6460_v19  ;;  %1482 = vmax.xlane.f32.xlu0 %v1481_v20  ;;  %v1485_v24 = vmax.f32 %v1484_v18, %v6449_v11  ;;  %1090 = vmatprep.mubr.bf16.mxu0 %v10188_v0 }
 0x14d   : > { %1443 = vmatprep.mubr.bf16.mxu1 %v10188_v0 }
 0x14e   : > { %v822_v25 = vpop.f32.mrb[8].mxu0  ;;  %v1175_v26 = vpop.f32.mrb[8].mxu1  ;;  %v1486_v27 = vmax.f32 %v1485_v24, %v6464_v21  ;;  %v1490_v28 = vmax.f32 %v1489_v23, %v6467_v22 }
 0x14f   : > { %v6475_v29 = vadd.f32 %v822_v25, %v6397_v42  ;;  %v824_v30 = vpop.f32.mrb[9].mxu0  ;;  %v1177_v31 = vpop.f32.mrb[9].mxu1  ;;  %v6484_v35 = vadd.f32 %v1175_v26, %v6401_v44 }
 0x150   : > { %v6481_v33 = vadd.f32 %v824_v30, %v6403_v45  ;;  %v826_v34 = vpop.f32.mrb[10].mxu0  ;;  %1487 = vmax.xlane.f32.xlu1 %v1486_v27  ;;  %v1179_v36 = vpop.f32.mrb[10].mxu1  ;;  %v6490_v39 = vadd.f32 %v1177_v31, %v6410_v50  ;;  %v1491_v47 = vmax.f32 %v1490_v28, %v6478_v32 }
 0x151   : > { %10651 = vst [vmem:[#allocation12_spill] sm:$0xff] %v6484_v35  ;;  %v6487_v37 = vadd.f32 %v826_v34, %v6397_v42  ;;  %v828_v38 = vpop.f32.mrb[11].mxu0  ;;  %v1181_v40 = vpop.f32.mrb[11].mxu1  ;;  %v6498_v46 = vadd.f32 %v1179_v36, %v6401_v44 }
 0x152   : > { %10650 = vst [vmem:[#allocation11_spill] sm:$0xff] %v6481_v33  ;;  %10653 = vst [vmem:[#allocation14_spill] sm:$0xff] %v6490_v39  ;;  %v1494_v41 = vmax.f32 %v6475_v29, %v6481_v33  ;;  %v6495_v43 = vadd.f32 %v828_v38, %v6403_v45  ;;  %v6506_v55 = vadd.f32 %v1181_v40, %v6410_v50 }
 0x153   : > { %10652 = vst [vmem:[#allocation13_spill] sm:$0xff] %v6487_v37  ;;  %10655 = vst [vmem:[#allocation16_spill] sm:$0xff] %v6498_v46 }
 0x154   : > { %10654 = vst [vmem:[#allocation15_spill] sm:$0xff] %v6495_v43  ;;  %v1495_v49 = vmax.f32 %v1494_v41, %v6484_v35  ;;  %v1499_v51 = vmax.f32 %v6487_v37, %v6495_v43  ;;  %1492 = vmax.xlane.f32.xlu1 %v1491_v47  ;;  %10656 = vst [vmem:[#allocation17_spill] sm:$0xff] %v6506_v55  ;;  %v5230_v43 = vld [vmem:[%s6827_s13 + $0x88] sm:$0xff]  }
 0x156   : > { %v1500_v52 = vmax.f32 %v1499_v51, %v6498_v46  ;;  %v832_v56 = vpop.f32.mrb[12].mxu0  ;;  %v1185_v58 = vpop.f32.mrb[12].mxu1  ;;  %v1496_v59 = vmax.f32 %v1495_v49, %v6490_v39  ;;  %v5229_v46 = vld [vmem:[%s6827_s13 + $0x8] sm:$0xff]  }
 0x157   : > { %v6510_v60 = vadd.f32 %v832_v56, %v6397_v42  ;;  %v834_v1 = vpop.f32.mrb[13].mxu0  ;;  %v1187_v2 = vpop.f32.mrb[13].mxu1  ;;  %v6516_v5 = vadd.f32 %v1185_v58, %v6401_v44 }
 0x158   : > { %v6513_v3 = vadd.f32 %v834_v1, %v6403_v45  ;;  %v836_v4 = vpop.f32.mrb[14].mxu0  ;;  %1497 = vmax.xlane.f32.xlu0 %v1496_v59  ;;  %v1189_v6 = vpop.f32.mrb[14].mxu1  ;;  %v1501_v8 = vmax.f32 %v1500_v52, %v6506_v55  ;;  %v6524_v16 = vadd.f32 %v1187_v2, %v6410_v50  ;;  %v5224_v52 = vld [vmem:[%s6261_s12 + $0xe8] sm:$0xff]  }
 0x159   : > { %10657 = vst [vmem:[#allocation18_spill] sm:$0xff] %v6510_v60  ;;  %10659 = vst [vmem:[#allocation20_spill] sm:$0xff] %v6516_v5  ;;  %v6521_v13 = vadd.f32 %v836_v4, %v6397_v42  ;;  %v838_v14 = vpop.f32.mrb[15].mxu0  ;;  %v1191_v17 = vpop.f32.mrb[15].mxu1  ;;  %v6532_v23 = vadd.f32 %v1189_v6, %v6401_v44  ;;  %4969 = vmatmul.mubr.msk.bf16.gmra.mrb[116].mxu0 %vm671_vm0, %v5224_v52  ;;  %5001 = vmatmul.mubr.msk.bf16.gmra.mrb[116].mxu1 %vm671_vm0, %v5224_v52 }
 0x15a   : > { %10658 = vst [vmem:[#allocation19_spill] sm:$0xff] %v6513_v3  ;;  %10661 = vst [vmem:[#allocation22_spill] sm:$0xff] %v6524_v16  ;;  %v1504_v18 = vmax.f32 %v6510_v60, %v6513_v3  ;;  %v6529_v20 = vadd.f32 %v838_v14, %v6403_v45  ;;  %1502 = vmax.xlane.f32.xlu1 %v1501_v8  ;;  %v6543_v27 = vadd.f32 %v1191_v17, %v6410_v50 }
 0x15b   : > { %10660 = vst [vmem:[#allocation21_spill] sm:$0xff] %v6521_v13  ;;  %10663 = vst [vmem:[#allocation24_spill] sm:$0xff] %v6532_v23  ;;  %1100 = vmatprep.mubr.bf16.mxu0 %v10188_v0  ;;  %1453 = vmatprep.mubr.bf16.mxu1 %v10188_v0 }
 0x15c   : > { %10662 = vst [vmem:[#allocation23_spill] sm:$0xff] %v6529_v20  ;;  %v1505_v24 = vmax.f32 %v1504_v18, %v6516_v5  ;;  %v1509_v25 = vmax.f32 %v6521_v13, %v6529_v20  ;;  %10664 = vst [vmem:[#allocation25_spill] sm:$0xff] %v6543_v27 }
 0x15e   : > { %v1510_v26 = vmax.f32 %v1509_v25, %v6532_v23  ;;  %v842_v28 = vpop.f32.mrb[16].mxu0  ;;  %v1195_v30 = vpop.f32.mrb[16].mxu1  ;;  %v1506_v31 = vmax.f32 %v1505_v24, %v6524_v16 }
 0x15f   : > { %v6547_v34 = vadd.f32 %v842_v28, %v6397_v42  ;;  %v844_v36 = vpop.f32.mrb[17].mxu0  ;;  %v1197_v38 = vpop.f32.mrb[17].mxu1  ;;  %v6553_v47 = vadd.f32 %v1195_v30, %v6401_v44 }
 0x160   : > { %v6550_v40 = vadd.f32 %v844_v36, %v6403_v45  ;;  %v846_v41 = vpop.f32.mrb[18].mxu0  ;;  %1507 = vmax.xlane.f32.xlu0 %v1506_v31  ;;  %v1199_v49 = vpop.f32.mrb[18].mxu1  ;;  %v1511_v51 = vmax.f32 %v1510_v26, %v6543_v27  ;;  %v6561_v59 = vadd.f32 %v1197_v38, %v6410_v50 }
 0x161   : > { %10665 = vst [vmem:[#allocation26_spill] sm:$0xff] %v6547_v34  ;;  %10667 = vst [vmem:[#allocation28_spill] sm:$0xff] %v6553_v47  ;;  %v6558_v56 = vadd.f32 %v846_v41, %v6397_v42  ;;  %v848_v58 = vpop.f32.mrb[19].mxu0  ;;  %v1201_v1 = vpop.f32.mrb[19].mxu1  ;;  %v6569_v6 = vadd.f32 %v1199_v49, %v6401_v44 }
 0x162   : > { %10666 = vst [vmem:[#allocation27_spill] sm:$0xff] %v6550_v40  ;;  %10669 = vst [vmem:[#allocation30_spill] sm:$0xff] %v6561_v59  ;;  %v1514_v2 = vmax.f32 %v6547_v34, %v6550_v40  ;;  %v6566_v4 = vadd.f32 %v848_v58, %v6403_v45  ;;  %1512 = vmax.xlane.f32.xlu1 %v1511_v51  ;;  %v6580_v17 = vadd.f32 %v1201_v1, %v6410_v50  ;;  %v5225_v51 = vld [vmem:[%s6261_s12 + $0xf0] sm:$0xff]  }
 0x163   : > { %10668 = vst [vmem:[#allocation29_spill] sm:$0xff] %v6558_v56  ;;  %10671 = vst [vmem:[#allocation32_spill] sm:$0xff] %v6569_v6  ;;  %4970 = vmatmul.mubr.msk.bf16.gmra.mrb[120].mxu0 %vm671_vm0, %v5225_v51  ;;  %5002 = vmatmul.mubr.msk.bf16.gmra.mrb[120].mxu1 %vm671_vm0, %v5225_v51 }
 0x164   : > { %10670 = vst [vmem:[#allocation31_spill] sm:$0xff] %v6566_v4  ;;  %v1515_v8 = vmax.f32 %v1514_v2, %v6553_v47  ;;  %v1519_v9 = vmax.f32 %v6558_v56, %v6566_v4  ;;  %10672 = vst [vmem:[#allocation33_spill] sm:$0xff] %v6580_v17  ;;  %1110 = vmatprep.mubr.bf16.mxu0 %v10188_v0  ;;  %1463 = vmatprep.mubr.bf16.mxu1 %v10188_v0 }
 0x166   : > { %v1520_v14 = vmax.f32 %v1519_v9, %v6569_v6  ;;  %v852_v18 = vpop.f32.mrb[20].mxu0  ;;  %v1205_v24 = vpop.f32.mrb[20].mxu1  ;;  %v1516_v25 = vmax.f32 %v1515_v8, %v6561_v59 }
 0x167   : > { %v6584_v26 = vadd.f32 %v852_v18, %v6397_v42  ;;  %v854_v28 = vpop.f32.mrb[21].mxu0  ;;  %v1207_v30 = vpop.f32.mrb[21].mxu1  ;;  %v6590_v38 = vadd.f32 %v1205_v24, %v6401_v44 }
 0x168   : > { %v6587_v31 = vadd.f32 %v854_v28, %v6403_v45  ;;  %v856_v36 = vpop.f32.mrb[22].mxu0  ;;  %1517 = vmax.xlane.f32.xlu0 %v1516_v25  ;;  %v1209_v41 = vpop.f32.mrb[22].mxu1  ;;  %v1521_v49 = vmax.f32 %v1520_v14, %v6580_v17  ;;  %v6598_v1 = vadd.f32 %v1207_v30, %v6410_v50 }
 0x169   : > { %10673 = vst [vmem:[#allocation34_spill] sm:$0xff] %v6584_v26  ;;  %10675 = vst [vmem:[#allocation36_spill] sm:$0xff] %v6590_v38  ;;  %v6595_v52 = vadd.f32 %v856_v36, %v6397_v42  ;;  %v858_v58 = vpop.f32.mrb[23].mxu0  ;;  %v1211_v2 = vpop.f32.mrb[23].mxu1  ;;  %v6606_v18 = vadd.f32 %v1209_v41, %v6401_v44 }
 0x16a   : > { %10674 = vst [vmem:[#allocation35_spill] sm:$0xff] %v6587_v31  ;;  %10677 = vst [vmem:[#allocation38_spill] sm:$0xff] %v6598_v1  ;;  %v1524_v8 = vmax.f32 %v6584_v26, %v6587_v31  ;;  %v6603_v9 = vadd.f32 %v858_v58, %v6403_v45  ;;  %1522 = vmax.xlane.f32.xlu1 %v1521_v49  ;;  %v6617_v28 = vadd.f32 %v1211_v2, %v6410_v50 }
 0x16b   : > { %10676 = vst [vmem:[#allocation37_spill] sm:$0xff] %v6595_v52  ;;  %10679 = vst [vmem:[#allocation40_spill] sm:$0xff] %v6606_v18 }
 0x16c   : > { %10678 = vst [vmem:[#allocation39_spill] sm:$0xff] %v6603_v9  ;;  %v1525_v14 = vmax.f32 %v1524_v8, %v6590_v38  ;;  %v1529_v24 = vmax.f32 %v6595_v52, %v6603_v9  ;;  %10680 = vst [vmem:[#allocation41_spill] sm:$0xff] %v6617_v28 }
 0x16e   : > { %v1530_v25 = vmax.f32 %v1529_v24, %v6606_v18  ;;  %v862_v30 = vpop.f32.mrb[24].mxu0  ;;  %v1215_v36 = vpop.f32.mrb[24].mxu1  ;;  %v1526_v41 = vmax.f32 %v1525_v14, %v6598_v1 }
 0x16f   : > { %v6621_v49 = vadd.f32 %v862_v30, %v6397_v42  ;;  %v864_v51 = vpop.f32.mrb[25].mxu0  ;;  %v1217_v58 = vpop.f32.mrb[25].mxu1  ;;  %v6627_v0 = vadd.f32 %v1215_v36, %v6401_v44 }
 0x170   : > { %v6624_v8 = vadd.f32 %v864_v51, %v6403_v45  ;;  %v866_v9 = vpop.f32.mrb[26].mxu0  ;;  %1527 = vmax.xlane.f32.xlu0 %v1526_v41  ;;  %v1219_v2 = vpop.f32.mrb[26].mxu1  ;;  %v1531_v24 = vmax.f32 %v1530_v25, %v6617_v28  ;;  %v6639_v51 = vadd.f32 %v1217_v58, %v6410_v50  ;;  %v5226_v41 = vld [vmem:[%s6261_s12 + $0xf8] sm:$0xff]   ;;  %s4686_s12 = scalar_lea.sflag [#allocation4], %s6233_s16 }
 0x171   : > { %10681 = vst [vmem:[#allocation42_spill] sm:$0xff] %v6621_v49  ;;  %10683 = vst [vmem:[#allocation44_spill] sm:$0xff] %v6627_v0  ;;  %v6631_v18 = vadd.f32 %v866_v9, %v6397_v42  ;;  %v868_v14 = vpop.f32.mrb[27].mxu0  ;;  %v1221_v30 = vpop.f32.mrb[27].mxu1  ;;  %v6642_v36 = vadd.f32 %v1219_v2, %v6401_v44  ;;  %4971 = vmatmul.mubr.msk.bf16.gmra.mrb[124].mxu0 %vm671_vm0, %v5226_v41  ;;  %5003 = vmatmul.mubr.msk.bf16.gmra.mrb[124].mxu1 %vm671_vm0, %v5226_v41 }
 0x172   : > { %10682 = vst [vmem:[#allocation43_spill] sm:$0xff] %v6624_v8  ;;  %v1534_v52 = vmax.f32 %v6621_v49, %v6624_v8  ;;  %v6636_v1 = vadd.f32 %v868_v14, %v6403_v45  ;;  %10686 = vst [vmem:[#allocation47_spill] sm:$0xff] %v6639_v51  ;;  %1532 = vmax.xlane.f32.xlu1 %v1531_v24  ;;  %v6652_v8 = vadd.f32 %v1221_v30, %v6410_v50 }
 0x173   : > { %10684 = vst [vmem:[#allocation45_spill] sm:$0xff] %v6631_v18  ;;  %10687 = vst [vmem:[#allocation48_spill] sm:$0xff] %v6642_v36 }
 0x174   : > { %10685 = vst [vmem:[#allocation46_spill] sm:$0xff] %v6636_v1  ;;  %v1535_v25 = vmax.f32 %v1534_v52, %v6627_v0  ;;  %v1539_v9 = vmax.f32 %v6631_v18, %v6636_v1  ;;  %10688 = vst [vmem:[#allocation49_spill] sm:$0xff] %v6652_v8 }
 0x176   : > { %v1540_v14 = vmax.f32 %v1539_v9, %v6642_v36  ;;  %v872_v58 = vpop.f32.mrb[28].mxu0  ;;  %v1225_v49 = vpop.f32.mrb[28].mxu1  ;;  %v1536_v2 = vmax.f32 %v1535_v25, %v6639_v51 }
 0x177   : > { %v6656_v24 = vadd.f32 %v872_v58, %v6397_v42  ;;  %v874_v52 = vpop.f32.mrb[29].mxu0  ;;  %v1227_v0 = vpop.f32.mrb[29].mxu1  ;;  %v6662_v41 = vadd.f32 %v1225_v49, %v6401_v44 }
 0x178   : > { %v6659_v1 = vadd.f32 %v874_v52, %v6403_v45  ;;  %v876_v18 = vpop.f32.mrb[30].mxu0  ;;  %1537 = vmax.xlane.f32.xlu0 %v1536_v2  ;;  %v1229_v9 = vpop.f32.mrb[30].mxu1  ;;  %v1541_v30 = vmax.f32 %v1540_v14, %v6652_v8  ;;  %v6674_v52 = vadd.f32 %v1227_v0, %v6410_v50 }
 0x179   : > { %10689 = vst [vmem:[#allocation50_spill] sm:$0xff] %v6656_v24  ;;  %10691 = vst [vmem:[#allocation52_spill] sm:$0xff] %v6662_v41  ;;  %v6666_v36 = vadd.f32 %v876_v18, %v6397_v42  ;;  %v878_v25 = vpop.f32.mrb[31].mxu0  ;;  %v1231_v51 = vpop.f32.mrb[31].mxu1  ;;  %v6677_v49 = vadd.f32 %v1229_v9, %v6401_v44 }
 0x17a   : > { %10690 = vst [vmem:[#allocation51_spill] sm:$0xff] %v6659_v1  ;;  %v1544_v58 = vmax.f32 %v6656_v24, %v6659_v1  ;;  %v6671_v28 = vadd.f32 %v878_v25, %v6403_v45  ;;  %10694 = vst [vmem:[#allocation55_spill] sm:$0xff] %v6674_v52  ;;  %1542 = vmax.xlane.f32.xlu1 %v1541_v30  ;;  %v6684_v8 = vadd.f32 %v1231_v51, %v6410_v50 }
 0x17b   : > { %10692 = vst [vmem:[#allocation53_spill] sm:$0xff] %v6666_v36  ;;  %10695 = vst [vmem:[#allocation56_spill] sm:$0xff] %v6677_v49 }
 0x17c   : > { %10693 = vst [vmem:[#allocation54_spill] sm:$0xff] %v6671_v28  ;;  %v1545_v14 = vmax.f32 %v1544_v58, %v6662_v41  ;;  %v1549_v18 = vmax.f32 %v6666_v36, %v6671_v28  ;;  %10696 = vst [vmem:[#allocation57_spill] sm:$0xff] %v6684_v8 }
 0x17e   : > { %v1550_v2 = vmax.f32 %v1549_v18, %v6677_v49  ;;  %v882_v1 = vpop.f32.mrb[32].mxu0  ;;  %v1546_v25 = vmax.f32 %v1545_v14, %v6674_v52  ;;  %v1235_v24 = vpop.f32.mrb[32].mxu1 }
 0x17f   : > { %v6688_v0 = vadd.f32 %v882_v1, %v6397_v42  ;;  %v884_v9 = vpop.f32.mrb[33].mxu0  ;;  %v1237_v38 = vpop.f32.mrb[33].mxu1  ;;  %v6694_v28 = vadd.f32 %v1235_v24, %v6401_v44 }
 0x180   : > { %v6691_v30 = vadd.f32 %v884_v9, %v6403_v45  ;;  %v886_v58 = vpop.f32.mrb[34].mxu0  ;;  %1547 = vmax.xlane.f32.xlu0 %v1546_v25  ;;  %v1551_v51 = vmax.f32 %v1550_v2, %v6684_v8  ;;  %v1239_v18 = vpop.f32.mrb[34].mxu1  ;;  %v6706_v9 = vadd.f32 %v1237_v38, %v6410_v50 }
 0x181   : > { %10697 = vst [vmem:[#allocation58_spill] sm:$0xff] %v6688_v0  ;;  %10699 = vst [vmem:[#allocation60_spill] sm:$0xff] %v6694_v28  ;;  %v6698_v49 = vadd.f32 %v886_v58, %v6397_v42  ;;  %v888_v14 = vpop.f32.mrb[35].mxu0  ;;  %v1241_v36 = vpop.f32.mrb[35].mxu1  ;;  %v6709_v24 = vadd.f32 %v1239_v18, %v6401_v44 }
 0x182   : > { %10698 = vst [vmem:[#allocation59_spill] sm:$0xff] %v6691_v30  ;;  %v1554_v1 = vmax.f32 %v6688_v0, %v6691_v30  ;;  %v6703_v52 = vadd.f32 %v888_v14, %v6403_v45  ;;  %10702 = vst [vmem:[#allocation63_spill] sm:$0xff] %v6706_v9  ;;  %1552 = vmax.xlane.f32.xlu1 %v1551_v51  ;;  %v6715_v58 = vadd.f32 %v1241_v36, %v6410_v50 }
 0x183   : > { %10700 = vst [vmem:[#allocation61_spill] sm:$0xff] %v6698_v49  ;;  %10703 = vst [vmem:[#allocation64_spill] sm:$0xff] %v6709_v24 }
 0x184   : > { %10701 = vst [vmem:[#allocation62_spill] sm:$0xff] %v6703_v52  ;;  %v1559_v2 = vmax.f32 %v6698_v49, %v6703_v52  ;;  %v1555_v25 = vmax.f32 %v1554_v1, %v6694_v28  ;;  %10704 = vst [vmem:[#allocation65_spill] sm:$0xff] %v6715_v58 }
 0x186   : > { %v1560_v30 = vmax.f32 %v1559_v2, %v6709_v24  ;;  %v892_v0 = vpop.f32.mrb[36].mxu0  ;;  %v1556_v14 = vmax.f32 %v1555_v25, %v6706_v9  ;;  %v1245_v8 = vpop.f32.mrb[36].mxu1 }
 0x187   : > { %v6720_v38 = vadd.f32 %v892_v0, %v6397_v42  ;;  %v894_v51 = vpop.f32.mrb[37].mxu0  ;;  %v1247_v18 = vpop.f32.mrb[37].mxu1  ;;  %v6726_v1 = vadd.f32 %v1245_v8, %v6401_v44 }
 0x188   : > { %v6723_v41 = vadd.f32 %v894_v51, %v6403_v45  ;;  %v896_v52 = vpop.f32.mrb[38].mxu0  ;;  %1557 = vmax.xlane.f32.xlu0 %v1556_v14  ;;  %v1561_v36 = vmax.f32 %v1560_v30, %v6715_v58  ;;  %v1249_v2 = vpop.f32.mrb[38].mxu1  ;;  %v6738_v51 = vadd.f32 %v1247_v18, %v6410_v50 }
 0x189   : > { %10705 = vst [vmem:[#allocation66_spill] sm:$0xff] %v6720_v38  ;;  %10707 = vst [vmem:[#allocation68_spill] sm:$0xff] %v6726_v1  ;;  %v6730_v24 = vadd.f32 %v896_v52, %v6397_v42  ;;  %v898_v25 = vpop.f32.mrb[39].mxu0  ;;  %v1251_v49 = vpop.f32.mrb[39].mxu1  ;;  %v6741_v8 = vadd.f32 %v1249_v2, %v6401_v44 }
 0x18a   : > { %10706 = vst [vmem:[#allocation67_spill] sm:$0xff] %v6723_v41  ;;  %v1564_v0 = vmax.f32 %v6720_v38, %v6723_v41  ;;  %v6735_v9 = vadd.f32 %v898_v25, %v6403_v45  ;;  %10710 = vst [vmem:[#allocation71_spill] sm:$0xff] %v6738_v51  ;;  %1562 = vmax.xlane.f32.xlu1 %v1561_v36  ;;  %v6747_v14 = vadd.f32 %v1251_v49, %v6410_v50 }
 0x18b   : > { %10708 = vst [vmem:[#allocation69_spill] sm:$0xff] %v6730_v24  ;;  %10711 = vst [vmem:[#allocation72_spill] sm:$0xff] %v6741_v8 }
 0x18c   : > { %10709 = vst [vmem:[#allocation70_spill] sm:$0xff] %v6735_v9  ;;  %v1569_v30 = vmax.f32 %v6730_v24, %v6735_v9  ;;  %v1565_v52 = vmax.f32 %v1564_v0, %v6726_v1  ;;  %10712 = vst [vmem:[#allocation73_spill] sm:$0xff] %v6747_v14 }
 0x18e   : > { %v1570_v41 = vmax.f32 %v1569_v30, %v6741_v8  ;;  %v902_v38 = vpop.f32.mrb[40].mxu0  ;;  %v1566_v25 = vmax.f32 %v1565_v52, %v6738_v51  ;;  %v1255_v58 = vpop.f32.mrb[40].mxu1 }
 0x18f   : > { %v6752_v18 = vadd.f32 %v902_v38, %v6397_v42  ;;  %v904_v36 = vpop.f32.mrb[41].mxu0  ;;  %v1257_v2 = vpop.f32.mrb[41].mxu1  ;;  %v6758_v0 = vadd.f32 %v1255_v58, %v6401_v44 }
 0x190   : > { %v6755_v28 = vadd.f32 %v904_v36, %v6403_v45  ;;  %v906_v9 = vpop.f32.mrb[42].mxu0  ;;  %1567 = vmax.xlane.f32.xlu0 %v1566_v25  ;;  %v1571_v49 = vmax.f32 %v1570_v41, %v6747_v14  ;;  %v1259_v30 = vpop.f32.mrb[42].mxu1  ;;  %v6770_v36 = vadd.f32 %v1257_v2, %v6410_v50 }
 0x191   : > { %10713 = vst [vmem:[#allocation74_spill] sm:$0xff] %v6752_v18  ;;  %10715 = vst [vmem:[#allocation76_spill] sm:$0xff] %v6758_v0  ;;  %v6762_v8 = vadd.f32 %v906_v9, %v6397_v42  ;;  %v908_v52 = vpop.f32.mrb[43].mxu0  ;;  %v1261_v24 = vpop.f32.mrb[43].mxu1  ;;  %v6773_v58 = vadd.f32 %v1259_v30, %v6401_v44 }
 0x192   : > { %10714 = vst [vmem:[#allocation75_spill] sm:$0xff] %v6755_v28  ;;  %v1574_v38 = vmax.f32 %v6752_v18, %v6755_v28  ;;  %v6767_v51 = vadd.f32 %v908_v52, %v6403_v45  ;;  %10718 = vst [vmem:[#allocation79_spill] sm:$0xff] %v6770_v36  ;;  %1572 = vmax.xlane.f32.xlu1 %v1571_v49  ;;  %v6779_v25 = vadd.f32 %v1261_v24, %v6410_v50 }
 0x193   : > { %10716 = vst [vmem:[#allocation77_spill] sm:$0xff] %v6762_v8  ;;  %10719 = vst [vmem:[#allocation80_spill] sm:$0xff] %v6773_v58 }
 0x194   : > { %10717 = vst [vmem:[#allocation78_spill] sm:$0xff] %v6767_v51  ;;  %v1579_v41 = vmax.f32 %v6762_v8, %v6767_v51  ;;  %v1575_v9 = vmax.f32 %v1574_v38, %v6758_v0  ;;  %10720 = vst [vmem:[#allocation81_spill] sm:$0xff] %v6779_v25 }
 0x196   : > { %v1580_v28 = vmax.f32 %v1579_v41, %v6773_v58  ;;  %v912_v18 = vpop.f32.mrb[44].mxu0  ;;  %v1576_v52 = vmax.f32 %v1575_v9, %v6770_v36  ;;  %v1265_v14 = vpop.f32.mrb[44].mxu1 }
 0x197   : > { %v6784_v2 = vadd.f32 %v912_v18, %v6397_v42  ;;  %v914_v49 = vpop.f32.mrb[45].mxu0  ;;  %v1267_v30 = vpop.f32.mrb[45].mxu1  ;;  %v6790_v38 = vadd.f32 %v1265_v14, %v6401_v44 }
 0x198   : > { %v6787_v1 = vadd.f32 %v914_v49, %v6403_v45  ;;  %v916_v51 = vpop.f32.mrb[46].mxu0  ;;  %1577 = vmax.xlane.f32.xlu0 %v1576_v52  ;;  %v1581_v24 = vmax.f32 %v1580_v28, %v6779_v25  ;;  %v1269_v41 = vpop.f32.mrb[46].mxu1  ;;  %v6802_v49 = vadd.f32 %v1267_v30, %v6410_v50 }
 0x199   : > { %10721 = vst [vmem:[#allocation82_spill] sm:$0xff] %v6784_v2  ;;  %10723 = vst [vmem:[#allocation84_spill] sm:$0xff] %v6790_v38  ;;  %v6794_v58 = vadd.f32 %v916_v51, %v6397_v42  ;;  %v918_v9 = vpop.f32.mrb[47].mxu0  ;;  %v1271_v8 = vpop.f32.mrb[47].mxu1  ;;  %v6805_v14 = vadd.f32 %v1269_v41, %v6401_v44 }
 0x19a   : > { %10722 = vst [vmem:[#allocation83_spill] sm:$0xff] %v6787_v1  ;;  %v1584_v18 = vmax.f32 %v6784_v2, %v6787_v1  ;;  %v6799_v36 = vadd.f32 %v918_v9, %v6403_v45  ;;  %10726 = vst [vmem:[#allocation87_spill] sm:$0xff] %v6802_v49  ;;  %1582 = vmax.xlane.f32.xlu1 %v1581_v24  ;;  %v6811_v52 = vadd.f32 %v1271_v8, %v6410_v50 }
 0x19b   : > { %10724 = vst [vmem:[#allocation85_spill] sm:$0xff] %v6794_v58  ;;  %10727 = vst [vmem:[#allocation88_spill] sm:$0xff] %v6805_v14 }
 0x19c   : > { %10725 = vst [vmem:[#allocation86_spill] sm:$0xff] %v6799_v36  ;;  %v1589_v28 = vmax.f32 %v6794_v58, %v6799_v36  ;;  %v1585_v51 = vmax.f32 %v1584_v18, %v6790_v38  ;;  %10728 = vst [vmem:[#allocation89_spill] sm:$0xff] %v6811_v52 }
 0x19e   : > { %v1590_v1 = vmax.f32 %v1589_v28, %v6805_v14  ;;  %v1586_v9 = vmax.f32 %v1585_v51, %v6802_v49  ;;  %v922_v2 = vpop.f32.mrb[48].mxu0  ;;  %v1275_v25 = vpop.f32.mrb[48].mxu1 }
 0x19f   : > { %v924_v30 = vpop.f32.mrb[49].mxu0  ;;  %v6815_v0 = vpop.f32.mrb[49].mxu1  ;;  %v6844_v13 = vadd.f32 %v922_v2, %v6397_v42 }
 0x1a0   : > { %1587 = vmax.xlane.f32.xlu0 %v1586_v9  ;;  %v1591_v24 = vmax.f32 %v1590_v1, %v6811_v52  ;;  %v926_v41 = vpop.f32.mrb[50].mxu0  ;;  %v1279_v36 = vpop.f32.mrb[50].mxu1  ;;  %v5227_v1 = vld [vmem:[%s6827_s13] sm:$0xff]   ;;  %v6847_v16 = vadd.f32 %v924_v30, %v6403_v45  ;;  %v6866_v30 = vadd.f32 %v1275_v25, %v6401_v44 }
 0x1a1   : > { %v928_v58 = vpop.f32.mrb[51].mxu0  ;;  %v1281_v18 = vpop.f32.mrb[51].mxu1  ;;  %v5228_v9 = vld [vmem:[%s6827_s13 + $0x80] sm:$0xff]   ;;  %4035 = vmatpush1.bf16.msra.mxu1 %v5227_v1  ;;  %10730 = vst [vmem:[#allocation90_spill] sm:$0xff] %v6844_v13  ;;  %v6850_v5 = vadd.f32 %v926_v41, %v6397_v42  ;;  %v6869_v41 = vadd.f32 %v1279_v36, %v6401_v44 }
 0x1a2   : > { %1592 = vmax.xlane.f32.xlu1 %v1591_v24  ;;  %4324 = vmatpush1.bf16.msra.mxu0 %v5228_v9  ;;  %v10729_v24 = vmov 0   ;;  %10731 = vst [vmem:[#allocation91_spill] sm:$0xff] %v6847_v16  ;;  %v6853_v3 = vadd.f32 %v928_v58, %v6403_v45  ;;  %10736 = vst [vmem:[#allocation96_spill] sm:$0xff] %v6866_v30  ;;  %v1594_v58 = vmax.f32 %v6844_v13, %v6847_v16 }
 0x1a3   : > { %4036 = vmatprep.subr.bf16.mxu1 %v10729_v24  ;;  %4325 = vmatprep.subr.bf16.mxu0 %v10729_v24  ;;  %10732 = vst [vmem:[#allocation92_spill] sm:$0xff] %v6850_v5  ;;  %10737 = vst [vmem:[#allocation97_spill] sm:$0xff] %v6869_v41 }
 0x1a4   : > { %10733 = vst [vmem:[#allocation93_spill] sm:$0xff] %v6853_v3 }
 0x1a5   : > { %4037 = vmatpush1.bf16.msra.mxu1 %v5229_v46 }
 0x1a6   : > { %v932_v8 = vpop.f32.mrb[52].mxu0  ;;  %v1285_v38 = vpop.f32.mrb[52].mxu1  ;;  %4326 = vmatpush1.bf16.msra.mxu0 %v5230_v43  ;;  %4038 = vmatprep.subr.bf16.mxu1 %v10729_v24 }
 0x1a7   : > { %v934_v31 = vpop.f32.mrb[53].mxu0  ;;  %v6818_v28 = vpop.f32.mrb[53].mxu1  ;;  %v6860_v37 = vadd.f32 %v932_v8, %v6397_v42  ;;  %4327 = vmatprep.subr.bf16.mxu0 %v10729_v24  ;;  %v1599_v8 = vmax.f32 %v6850_v5, %v6853_v3  ;;  %v6886_v36 = vadd.f32 %v1285_v38, %v6401_v44  ;;  %v6894_v3 = vadd.f32 %v6815_v0, %v6410_v50 }
 0x1a8   : > { %v936_v51 = vpop.f32.mrb[54].mxu0  ;;  %v1289_v14 = vpop.f32.mrb[54].mxu1  ;;  %v6863_v2 = vadd.f32 %v934_v31, %v6403_v45 }
 0x1a9   : > { %v938_v49 = vpop.f32.mrb[55].mxu0  ;;  %v6820_v26 = vpop.f32.mrb[55].mxu1  ;;  %10734 = vst [vmem:[#allocation94_spill] sm:$0xff] %v6860_v37  ;;  %v6878_v31 = vadd.f32 %v936_v51, %v6397_v42  ;;  %10740 = vst [vmem:[#allocation100_spill] sm:$0xff] %v6886_v36  ;;  %v6897_v51 = vadd.f32 %v1281_v18, %v6410_v50  ;;  %v6903_v38 = vmax.f32 %v1599_v8, %v6869_v41 }
 0x1aa   : > { %10735 = vst [vmem:[#allocation95_spill] sm:$0xff] %v6863_v2  ;;  %v6881_v43 = vadd.f32 %v938_v49, %v6403_v45  ;;  %v1604_v46 = vmax.f32 %v6860_v37, %v6863_v2  ;;  %10741 = vst [vmem:[#allocation101_spill] sm:$0xff] %v6894_v3  ;;  %v6900_v2 = vmax.f32 %v1594_v58, %v6866_v30 }
 0x1ab   : > { %10738 = vst [vmem:[#allocation98_spill] sm:$0xff] %v6878_v31  ;;  %10742 = vst [vmem:[#allocation102_spill] sm:$0xff] %v6897_v51  ;;  %v6908_v13 = vadd.f32 %v1289_v14, %v6401_v44  ;;  %v6917_v58 = vadd.f32 %v6818_v28, %v6410_v50  ;;  %v6938_v28 = vadd.f32 %v6820_v26, %v6410_v50 }
 0x1ac   : > { %10739 = vst [vmem:[#allocation99_spill] sm:$0xff] %v6881_v43  ;;  %v1609_v37 = vmax.f32 %v6878_v31, %v6881_v43  ;;  %v6913_v18 = vmax.f32 %v1604_v46, %v6886_v36  ;;  %v5232_v36 = vld [vmem:[%s6827_s13 + $0x90] sm:$0xff]  }
 0x1ad   : > { %10743 = vst [vmem:[#allocation103_spill] sm:$0xff] %v6908_v13  ;;  %10745 = vst [vmem:[#allocation105_spill] sm:$0xff] %v6917_v58  ;;  %4328 = vmatpush1.bf16.msra.mxu0 %v5232_v36 }
 0x1ae   : > { %v942_v52 = vpop.f32.mrb[56].mxu0  ;;  %v1295_v17 = vpop.f32.mrb[56].mxu1  ;;  %10744 = vst [vmem:[#allocation104_spill] sm:$0xff] %v6913_v18  ;;  %v6934_v31 = vmax.f32 %v1609_v37, %v6908_v13  ;;  %10750 = vst [vmem:[#allocation110_spill] sm:$0xff] %v6938_v28  ;;  %4329 = vmatprep.subr.bf16.mxu0 %v10729_v24 }
 0x1af   : > { %v944_v6 = vpop.f32.mrb[57].mxu0  ;;  %v1297_v4 = vpop.f32.mrb[57].mxu1  ;;  %v6920_v8 = vadd.f32 %v942_v52, %v6397_v42  ;;  %v5231_v52 = vld [vmem:[%s6827_s13 + $0x10] sm:$0xff]  }
 0x1b0   : > { %v946_v56 = vpop.f32.mrb[58].mxu0  ;;  %v1299_v59 = vpop.f32.mrb[58].mxu1  ;;  %v6923_v41 = vadd.f32 %v944_v6, %v6403_v45  ;;  %4039 = vmatpush1.bf16.msra.mxu1 %v5231_v52 }
 0x1b1   : > { %v948_v47 = vpop.f32.mrb[59].mxu0  ;;  %v6833_v40 = vpop.f32.mrb[59].mxu1  ;;  %10746 = vst [vmem:[#allocation106_spill] sm:$0xff] %v6920_v8  ;;  %v6926_v43 = vadd.f32 %v946_v56, %v6397_v42  ;;  %v6945_v56 = vadd.f32 %v1295_v17, %v6401_v44  ;;  %v6953_v37 = vadd.f32 %v1299_v59, %v6401_v44  ;;  %4040 = vmatprep.subr.bf16.mxu1 %v10729_v24 }
 0x1b2   : > { %10747 = vst [vmem:[#allocation107_spill] sm:$0xff] %v6923_v41  ;;  %v6929_v14 = vadd.f32 %v948_v47, %v6403_v45  ;;  %v6948_v47 = vadd.f32 %v1297_v4, %v6410_v50  ;;  %v1614_v30 = vmax.f32 %v6920_v8, %v6923_v41 }
 0x1b3   : > { %10748 = vst [vmem:[#allocation108_spill] sm:$0xff] %v6926_v43  ;;  %10751 = vst [vmem:[#allocation111_spill] sm:$0xff] %v6945_v56 }
 0x1b4   : > { %10749 = vst [vmem:[#allocation109_spill] sm:$0xff] %v6929_v14  ;;  %10752 = vst [vmem:[#allocation112_spill] sm:$0xff] %v6948_v47  ;;  %v1619_v46 = vmax.f32 %v6926_v43, %v6929_v14  ;;  %v6988_v43 = vadd.f32 %v6833_v40, %v6410_v50  ;;  %v7011_v8 = vmax.f32 %v1614_v30, %v6945_v56 }
 0x1b5   : > { %10753 = vst [vmem:[#allocation113_spill] sm:$0xff] %v6953_v37 }
 0x1b6   : > { %v952_v34 = vpop.f32.mrb[60].mxu0  ;;  %v6835_v27 = vpop.f32.mrb[60].mxu1  ;;  %10762 = vst [vmem:[#allocation122_spill] sm:$0xff] %v6988_v43 }
 0x1b7   : > { %v954_v1 = vpop.f32.mrb[61].mxu0  ;;  %v6837_v9 = vpop.f32.mrb[61].mxu1  ;;  %v6958_v6 = vadd.f32 %v952_v34, %v6397_v42 }
 0x1b8   : > { %v6839_v23 = vpop.f32.mrb[62].mxu0  ;;  %v6841_v20 = vpop.f32.mrb[62].mxu1  ;;  %v6961_v17 = vadd.f32 %v954_v1, %v6403_v45 }
 0x1b9   : > { %v958_v60 = vpop.f32.mrb[63].mxu0  ;;  %v6855_v55 = vpop.f32.mrb[63].mxu1  ;;  %10754 = vst [vmem:[#allocation114_spill] sm:$0xff] %v6958_v6  ;;  %v6967_v59 = vadd.f32 %v6839_v23, %v6397_v42 }
 0x1ba   : > { %10755 = vst [vmem:[#allocation115_spill] sm:$0xff] %v6961_v17  ;;  %v6970_v58 = vadd.f32 %v958_v60, %v6403_v45 }
 0x1bb   : > { %10756 = vst [vmem:[#allocation116_spill] sm:$0xff] %v6967_v59 }
 0x1bc   : > { %10757 = vst [vmem:[#allocation117_spill] sm:$0xff] %v6970_v58 }
 0x1be   : > { %v962_v25 = vpop.f32.mrb[64].mxu0  ;;  %v6888_v39 = vpop.f32.mrb[64].mxu1 }
 0x1bf   : > { %v964_v35 = vpop.f32.mrb[65].mxu0  ;;  %v6890_v16 = vpop.f32.mrb[65].mxu1  ;;  %v6975_v1 = vadd.f32 %v962_v25, %v6397_v42  ;;  %v7028_v30 = vadd.f32 %v6888_v39, %v6401_v44 }
 0x1c0   : > { %v966_v49 = vpop.f32.mrb[66].mxu0  ;;  %v1319_v5 = vpop.f32.mrb[66].mxu1  ;;  %v6978_v36 = vadd.f32 %v964_v35, %v6403_v45 }
 0x1c1   : > { %v968_v0 = vpop.f32.mrb[67].mxu0  ;;  %v6910_v33 = vpop.f32.mrb[67].mxu1  ;;  %10758 = vst [vmem:[#allocation118_spill] sm:$0xff] %v6975_v1  ;;  %v6981_v52 = vadd.f32 %v966_v49, %v6397_v42  ;;  %v1624_v49 = vmax.f32 %v6958_v6, %v6961_v17  ;;  %v7020_v17 = vadd.f32 %v6841_v20, %v6401_v44  ;;  %10769 = vst [vmem:[#allocation129_spill] sm:$0xff] %v7028_v30 }
 0x1c2   : > { %10759 = vst [vmem:[#allocation119_spill] sm:$0xff] %v6978_v36  ;;  %v6984_v23 = vadd.f32 %v968_v0, %v6403_v45  ;;  %v7002_v0 = vadd.f32 %v6835_v27, %v6401_v44  ;;  %v1634_v27 = vmax.f32 %v6975_v1, %v6978_v36  ;;  %v7039_v20 = vadd.f32 %v6855_v55, %v6410_v50 }
 0x1c3   : > { %10760 = vst [vmem:[#allocation120_spill] sm:$0xff] %v6981_v52  ;;  %10768 = vst [vmem:[#allocation128_spill] sm:$0xff] %v7020_v17 }
 0x1c4   : > { %10761 = vst [vmem:[#allocation121_spill] sm:$0xff] %v6984_v23  ;;  %10765 = vst [vmem:[#allocation125_spill] sm:$0xff] %v7002_v0 }
 0x1c5   : > { %10772 = vst [vmem:[#allocation132_spill] sm:$0xff] %v7039_v20 }
 0x1c6   : > { %v972_v13 = vpop.f32.mrb[68].mxu0  ;;  %v1325_v26 = vpop.f32.mrb[68].mxu1 }
 0x1c7   : > { %v974_v51 = vpop.f32.mrb[69].mxu0  ;;  %v1327_v4 = vpop.f32.mrb[69].mxu1  ;;  %v6993_v25 = vadd.f32 %v972_v13, %v6397_v42  ;;  %v7014_v13 = vmax.f32 %v1619_v46, %v6953_v37  ;;  %v7031_v46 = vadd.f32 %v1319_v5, %v6401_v44  ;;  %v7047_v5 = vmax.f32 %v1624_v49, %v7002_v0 }
 0x1c8   : > { %v976_v41 = vpop.f32.mrb[70].mxu0  ;;  %v1329_v34 = vpop.f32.mrb[70].mxu1  ;;  %v6996_v35 = vadd.f32 %v974_v51, %v6403_v45  ;;  %v1629_v51 = vmax.f32 %v6967_v59, %v6970_v58  ;;  %v7062_v58 = vadd.f32 %v6890_v16, %v6410_v50  ;;  %v7066_v49 = vadd.f32 %v6910_v33, %v6410_v50  ;;  %v5234_v59 = vld [vmem:[%s6827_s13 + $0x98] sm:$0xff]  }
 0x1c9   : > { %v978_v60 = vpop.f32.mrb[71].mxu0  ;;  %v1331_v14 = vpop.f32.mrb[71].mxu1  ;;  %10763 = vst [vmem:[#allocation123_spill] sm:$0xff] %v6993_v25  ;;  %v7005_v18 = vadd.f32 %v976_v41, %v6397_v42  ;;  %v1639_v41 = vmax.f32 %v6981_v52, %v6984_v23  ;;  %10770 = vst [vmem:[#allocation130_spill] sm:$0xff] %v7031_v46  ;;  %v7044_v23 = vadd.f32 %v1325_v26, %v6401_v44  ;;  %4330 = vmatpush1.bf16.msra.mxu0 %v5234_v59 }
 0x1ca   : > { %10764 = vst [vmem:[#allocation124_spill] sm:$0xff] %v6996_v35  ;;  %v7008_v40 = vadd.f32 %v978_v60, %v6403_v45  ;;  %v7035_v60 = vadd.f32 %v6837_v9, %v6410_v50  ;;  %v1644_v36 = vmax.f32 %v6993_v25, %v6996_v35  ;;  %v7052_v1 = vadd.f32 %v1329_v34, %v6401_v44 }
 0x1cb   : > { %10766 = vst [vmem:[#allocation126_spill] sm:$0xff] %v7005_v18  ;;  %10773 = vst [vmem:[#allocation133_spill] sm:$0xff] %v7044_v23  ;;  %v7058_v26 = vmax.f32 %v1629_v51, %v7020_v17  ;;  %v7074_v0 = vmax.f32 %v1634_v27, %v7028_v30  ;;  %v7077_v51 = vmax.f32 %v1639_v41, %v7031_v46  ;;  %v5235_v41 = vld [vmem:[%s6827_s13 + $0x20] sm:$0xff]   ;;  %4331 = vmatprep.subr.bf16.mxu0 %v10729_v24  ;;  %v5237_v30 = vld [vmem:[%s6827_s13 + $0x28] sm:$0xff]  }
 0x1cc   : > { %10767 = vst [vmem:[#allocation127_spill] sm:$0xff] %v7008_v40  ;;  %10771 = vst [vmem:[#allocation131_spill] sm:$0xff] %v7035_v60  ;;  %v1649_v9 = vmax.f32 %v7005_v18, %v7008_v40  ;;  %v5233_v18 = vld [vmem:[%s6827_s13 + $0x18] sm:$0xff]   ;;  %v7080_v16 = vadd.f32 %v1327_v4, %v6410_v50  ;;  %v7086_v6 = vmax.f32 %v1644_v36, %v7044_v23 }
 0x1cd   : > { %10774 = vst [vmem:[#allocation134_spill] sm:$0xff] %v7052_v1  ;;  %10776 = vst [vmem:[#allocation136_spill] sm:$0xff] %v7062_v58  ;;  %v7089_v37 = vadd.f32 %v1331_v14, %v6410_v50  ;;  %4041 = vmatpush1.bf16.msra.mxu1 %v5233_v18  ;;  %v5236_v14 = vld [vmem:[%s6827_s13 + $0xa0] sm:$0xff]  }
 0x1ce   : > { %v982_v39 = vpop.f32.mrb[72].mxu0  ;;  %v1335_v52 = vpop.f32.mrb[72].mxu1  ;;  %10777 = vst [vmem:[#allocation137_spill] sm:$0xff] %v7066_v49  ;;  %10779 = vst [vmem:[#allocation139_spill] sm:$0xff] %v7080_v16  ;;  %v7096_v4 = vmax.f32 %v1649_v9, %v7052_v1  ;;  %4042 = vmatprep.subr.bf16.mxu1 %v10729_v24  ;;  %4332 = vmatpush1.bf16.msra.mxu0 %v5236_v14 }
 0x1cf   : > { %v7055_v55 = vadd.f32 %v982_v39, %v6397_v42  ;;  %v984_v35 = vpop.f32.mrb[73].mxu0  ;;  %v1337_v25 = vpop.f32.mrb[73].mxu1  ;;  %10781 = vst [vmem:[#allocation141_spill] sm:$0xff] %v7089_v37  ;;  %v7101_v46 = vadd.f32 %v1335_v52, %v6401_v44  ;;  %4333 = vmatprep.subr.bf16.mxu0 %v10729_v24 }
 0x1d0   : > { %v7069_v40 = vadd.f32 %v984_v35, %v6403_v45  ;;  %v986_v34 = vpop.f32.mrb[74].mxu0  ;;  %v1339_v39 = vpop.f32.mrb[74].mxu1 }
 0x1d1   : > { %10775 = vst [vmem:[#allocation135_spill] sm:$0xff] %v7055_v55  ;;  %v7083_v33 = vadd.f32 %v986_v34, %v6397_v42  ;;  %v988_v35 = vpop.f32.mrb[75].mxu0  ;;  %v1341_v17 = vpop.f32.mrb[75].mxu1  ;;  %10783 = vst [vmem:[#allocation143_spill] sm:$0xff] %v7101_v46  ;;  %4043 = vmatpush1.bf16.msra.mxu1 %v5235_v41 }
 0x1d2   : > { %10778 = vst [vmem:[#allocation138_spill] sm:$0xff] %v7069_v40  ;;  %v7092_v27 = vadd.f32 %v988_v35, %v6403_v45  ;;  %v1654_v34 = vmax.f32 %v7055_v55, %v7069_v40  ;;  %v7121_v55 = vadd.f32 %v1339_v39, %v6401_v44  ;;  %v7140_v56 = vadd.f32 %v1341_v17, %v6410_v50 }
 0x1d3   : > { %10780 = vst [vmem:[#allocation140_spill] sm:$0xff] %v7083_v33  ;;  %4044 = vmatprep.subr.bf16.mxu1 %v10729_v24 }
 0x1d4   : > { %10782 = vst [vmem:[#allocation142_spill] sm:$0xff] %v7092_v27  ;;  %v1659_v36 = vmax.f32 %v7083_v33, %v7092_v27  ;;  %10784 = vst [vmem:[#allocation144_spill] sm:$0xff] %v7121_v55  ;;  %v7129_v40 = vmax.f32 %v1654_v34, %v7101_v46  ;;  %v7132_v27 = vadd.f32 %v1337_v25, %v6410_v50 }
 0x1d5   : > { %v1478_v52 = vpop.xlane.xlu0 %1477  ;;  %10787 = vst [vmem:[#allocation147_spill] sm:$0xff] %v7140_v56  ;;  %4045 = vmatpush1.bf16.msra.mxu1 %v5237_v30 }
 0x1d6   : > { %v1794_v18 = vsub.f32 %v6408_v48, %v1478_v52  ;;  %v1795_v59 = vsub.f32 %v6417_v54, %v1478_v52  ;;  %v1796_v9 = vsub.f32 %v6414_v53, %v1478_v52  ;;  %v1797_v1 = vsub.f32 %v6428_v62, %v1478_v52  ;;  %v992_v23 = vpop.f32.mrb[76].mxu0  ;;  %v1345_v35 = vpop.f32.mrb[76].mxu1  ;;  %10785 = vst [vmem:[#allocation145_spill] sm:$0xff] %v7129_v40  ;;  %v5238_v62 = vld [vmem:[%s6827_s13 + $0xa8] sm:$0xff]  }
 0x1d7   : > { %10786 = vst [vmem:[#allocation146_spill] sm:$0xff] %v7132_v27  ;;  %v994_v54 = vpop.f32.mrb[77].mxu0  ;;  %v1347_v53 = vpop.f32.mrb[77].mxu1  ;;  %v7145_v39 = vmax.f32 %v1659_v36, %v7121_v55  ;;  %v7148_v48 = vadd.f32 %v992_v23, %v6397_v42  ;;  %v5239_v36 = vld [vmem:[%s6827_s13 + $0x30] sm:$0xff]   ;;  %4334 = vmatpush1.bf16.msra.mxu0 %v5238_v62  ;;  %4046 = vmatprep.subr.bf16.mxu1 %v10729_v24 }
 0x1d8   : > { %v2050_v52 = vmul.f32 1.442695, %v1794_v18  ;;  %v2052_v33 = vmul.f32 1.442695, %v1795_v59  ;;  %v2054_v41 = vmul.f32 1.442695, %v1796_v9  ;;  %v7151_v18 = vadd.f32 %v1345_v35, %v6401_v44  ;;  %4335 = vmatprep.subr.bf16.mxu0 %v10729_v24 }
 0x1d9   : > { %v2056_v25 = vmul.f32 1.442695, %v1797_v1  ;;  %v1483_v34 = vpop.xlane.xlu0 %1482  ;;  %10788 = vst [vmem:[#allocation148_spill] sm:$0xff] %v7145_v39  ;;  %10789 = vst [vmem:[#allocation149_spill] sm:$0xff] %v7148_v48  ;;  %v996_v14 = vpop.f32.mrb[78].mxu0  ;;  %v7159_v55 = vadd.f32 %v994_v54, %v6403_v45  ;;  %4047 = vmatpush1.bf16.msra.mxu1 %v5239_v36 }
 0x1da   : > { %10790 = vst [vmem:[#allocation150_spill] sm:$0xff] %v7151_v18  ;;  %5259 = vpow2.f32 %v2050_v52  ;;  %v1798_v17 = vsub.f32 %v6420_v57, %v1483_v34  ;;  %v1799_v59 = vsub.f32 %v6425_v61, %v1483_v34  ;;  %v1800_v9 = vsub.f32 %v6433_v63, %v1483_v34  ;;  %v998_v1 = vpop.f32.mrb[79].mxu0  ;;  %v1349_v46 = vpop.f32.mrb[78].mxu1  ;;  %v5240_v57 = vld [vmem:[%s6827_s13 + $0xb0] sm:$0xff]   ;;  %4048 = vmatprep.subr.bf16.mxu1 %v10729_v24 }
 0x1db   : > { %5261 = vpow2.f32 %v2052_v33  ;;  %v1801_v23 = vsub.f32 %v6446_v10, %v1483_v34  ;;  %10791 = vst [vmem:[#allocation151_spill] sm:$0xff] %v7159_v55  ;;  %v7163_v52 = vpop.f32.mrb[79].mxu1  ;;  %v7169_v54 = vadd.f32 %v996_v14, %v6397_v42  ;;  %v7172_v34 = vadd.f32 %v998_v1, %v6403_v45  ;;  %4336 = vmatpush1.bf16.msra.mxu0 %v5240_v57 }
 0x1dc   : > { %5263 = vpow2.f32 %v2054_v41  ;;  %v2058_v61 = vmul.f32 1.442695, %v1798_v17  ;;  %v2060_v63 = vmul.f32 1.442695, %v1799_v59  ;;  %v2062_v30 = vmul.f32 1.442695, %v1800_v9  ;;  %4337 = vmatprep.subr.bf16.mxu0 %v10729_v24 }
 0x1dd   : > { %5265 = vpow2.f32 %v2056_v25  ;;  %v2064_v10 = vmul.f32 1.442695, %v1801_v23  ;;  %v1488_v33 = vpop.xlane.xlu1 %1487  ;;  %10792 = vst [vmem:[#allocation152_spill] sm:$0xff] %v7169_v54  ;;  %10793 = vst [vmem:[#allocation153_spill] sm:$0xff] %v7172_v34  ;;  %v5241_v25 = vld [vmem:[%s6827_s13 + $0x38] sm:$0xff]   ;;  %v1664_v1 = vmax.f32 %v7148_v48, %v7159_v55  ;;  %v7184_v23 = vadd.f32 %v1347_v53, %v6410_v50 }
 0x1de   : > { %5267 = vpow2.f32 %v2058_v61  ;;  %v1802_v62 = vsub.f32 %v6443_v7, %v1488_v33  ;;  %v1803_v41 = vsub.f32 %v6452_v12, %v1488_v33  ;;  %v1804_v17 = vsub.f32 %v6449_v11, %v1488_v33  ;;  %v1002_v59 = vpop.f32.mrb[80].mxu0  ;;  %v7177_v9 = vpop.f32.mrb[80].mxu1  ;;  %v5242_v11 = vld [vmem:[%s6827_s13 + $0xb8] sm:$0xff]   ;;  %4049 = vmatpush1.bf16.msra.mxu1 %v5241_v25 }
 0x1df   : > { %5269 = vpow2.f32 %v2060_v63  ;;  %v1805_v14 = vsub.f32 %v6464_v21, %v1488_v33  ;;  %10794 = vst [vmem:[#allocation154_spill] sm:$0xff] %v7184_v23  ;;  %v1004_v61 = vpop.f32.mrb[81].mxu0  ;;  %v7186_v7 = vpop.f32.mrb[81].mxu1  ;;  %v1669_v53 = vmax.f32 %v7169_v54, %v7172_v34  ;;  %v7194_v35 = vadd.f32 %v1349_v46, %v6401_v44  ;;  %4338 = vmatpush1.bf16.msra.mxu0 %v5242_v11 }
 0x1e0   : > { %5271 = vpow2.f32 %v2062_v30  ;;  %v2066_v12 = vmul.f32 1.442695, %v1802_v62  ;;  %v2068_v36 = vmul.f32 1.442695, %v1803_v41  ;;  %v2070_v63 = vmul.f32 1.442695, %v1804_v17  ;;  %4050 = vmatprep.subr.bf16.mxu1 %v10729_v24  ;;  %4339 = vmatprep.subr.bf16.mxu0 %v10729_v24 }
 0x1e1   : > { %5273 = vpow2.f32 %v2064_v10  ;;  %v2072_v21 = vmul.f32 1.442695, %v1805_v14  ;;  %v1493_v33 = vpop.xlane.xlu1 %1492  ;;  %10795 = vst [vmem:[#allocation155_spill] sm:$0xff] %v7194_v35  ;;  %v7196_v57 = vpop.f32.mrb[82].mxu0  ;;  %v5243_v14 = vld [vmem:[%s6827_s13 + $0x40] sm:$0xff]   ;;  %v7208_v34 = vmax.f32 %v1664_v1, %v7151_v18  ;;  %v7225_v11 = vadd.f32 %v1002_v59, %v6397_v42 }
 0x1e2   : > { %5275 = vpow2.f32 %v2066_v12  ;;  %v1806_v30 = vsub.f32 %v6455_v15, %v1493_v33  ;;  %v1807_v62 = vsub.f32 %v6460_v19, %v1493_v33  ;;  %v1808_v41 = vsub.f32 %v6467_v22, %v1493_v33  ;;  %v7201_v17 = vpop.f32.mrb[83].mxu0  ;;  %v7203_v10 = vpop.f32.mrb[82].mxu1  ;;  %v5244_v19 = vld [vmem:[%s6827_s13 + $0xc0] sm:$0xff]   ;;  %4051 = vmatpush1.bf16.msra.mxu1 %v5243_v14 }
 0x1e3   : > { %5277 = vpow2.f32 %v2068_v36  ;;  %v1809_v46 = vsub.f32 %v6478_v32, %v1493_v33  ;;  %v7212_v15 = vpop.f32.mrb[83].mxu1  ;;  %v7222_v12 = vmax.f32 %v1669_v53, %v7194_v35  ;;  %10799 = vst [vmem:[#allocation159_spill] sm:$0xff] %v7225_v11  ;;  %v5245_v53 = vld [vmem:[%s6827_s13 + $0x48] sm:$0xff]   ;;  %v10805_v59 = vld [vmem:[#allocation14_spill] sm:$0xff]  ;;  %4340 = vmatpush1.bf16.msra.mxu0 %v5244_v19  ;;  %4052 = vmatprep.subr.bf16.mxu1 %v10729_v24 }
 0x1e4   : > { %10796 = vst [vmem:[#allocation156_spill] sm:$0xff] %v7212_v15  ;;  %v7216_v22 = vpop.eup %5259  ;;  %5279 = vpow2.f32 %v2070_v63  ;;  %v2074_v25 = vmul.f32 1.442695, %v1806_v30  ;;  %v2076_v54 = vmul.f32 1.442695, %v1807_v62  ;;  %v10801_v30 = vld [vmem:[#allocation11_spill] sm:$0xff]  ;;  %4341 = vmatprep.subr.bf16.mxu0 %v10729_v24 }
 0x1e5   : > { %10797 = vst [vmem:[#allocation157_spill] sm:$0xff] %v7216_v22  ;;  %v2078_v36 = vmul.f32 1.442695, %v1808_v41  ;;  %v7219_v32 = vpop.eup %5261  ;;  %5281 = vpow2.f32 %v2072_v21  ;;  %v2080_v1 = vmul.f32 1.442695, %v1809_v46  ;;  %v1498_v33 = vpop.xlane.xlu0 %1497  ;;  %v10802_v41 = vld [vmem:[#allocation12_spill] sm:$0xff] }
 0x1e6   : > { %10798 = vst [vmem:[#allocation158_spill] sm:$0xff] %v7219_v32  ;;  %v7227_v18 = vpop.eup %5263  ;;  %5283 = vpow2.f32 %v2074_v25  ;;  %v1810_v63 = vsub.f32 %v6475_v29, %v1498_v33  ;;  %v1811_v62 = vsub.f32 %v10801_v30, %v1498_v33  ;;  %v1812_v55 = vsub.f32 %v10802_v41, %v1498_v33  ;;  %v7232_v48 = vpop.f32.mrb[84].mxu0  ;;  %v5246_v41 = vld [vmem:[%s6827_s13 + $0xc8] sm:$0xff]   ;;  %4053 = vmatpush1.bf16.msra.mxu1 %v5245_v53 }
 0x1e7   : > { %10800 = vst [vmem:[#allocation160_spill] sm:$0xff] %v7227_v18  ;;  %v7234_v21 = vpop.f32.mrb[84].mxu1  ;;  %v7237_v46 = vpop.eup %5265  ;;  %5285 = vpow2.f32 %v2076_v54  ;;  %v1813_v35 = vsub.f32 %v10805_v59, %v1498_v33  ;;  %v2562_v29 = vadd.f32 %v7219_v32, %v7216_v22  ;;  %v7243_v25 = vadd.f32 %v1004_v61, %v6403_v45  ;;  %v10810_v61 = vld [vmem:[#allocation13_spill] sm:$0xff]  ;;  %v10811_v32 = vld [vmem:[#allocation15_spill] sm:$0xff]  ;;  %4342 = vmatpush1.bf16.msra.mxu0 %v5246_v41 }
 0x1e8   : > { %10803 = vst [vmem:[#allocation11_spill] sm:$0xff] %v7234_v21  ;;  %10804 = vst [vmem:[#allocation12_spill] sm:$0xff] %v7237_v46  ;;  %v1503_v15 = vpop.xlane.xlu1 %1502  ;;  %v7245_v30 = vpop.f32.mrb[85].mxu0  ;;  %5287 = vpow2.f32 %v2078_v36  ;;  %v2082_v21 = vmul.f32 1.442695, %v1810_v63  ;;  %v10814_v36 = vld [vmem:[#allocation16_spill] sm:$0xff]  ;;  %4054 = vmatprep.subr.bf16.mxu1 %v10729_v24  ;;  %v7281_v53 = vadd.f32 %v7163_v52, %v6410_v50  ;;  %4343 = vmatprep.subr.bf16.mxu0 %v10729_v24 }
 0x1e9   : > { %10806 = vst [vmem:[#allocation14_spill] sm:$0xff] %v7243_v25  ;;  %10807 = vst [vmem:[#allocation161_spill] sm:$0xff] %v7245_v30  ;;  %v7249_v14 = vpop.eup %5267  ;;  %v2084_v54 = vmul.f32 1.442695, %v1811_v62  ;;  %v2086_v56 = vmul.f32 1.442695, %v1812_v55  ;;  %5289 = vpow2.f32 %v2080_v1  ;;  %v1814_v22 = vsub.f32 %v10810_v61, %v1503_v15 }
 0x1ea   : > { %10808 = vst [vmem:[#allocation162_spill] sm:$0xff] %v7249_v14  ;;  %v7252_v33 = vpop.eup %5269  ;;  %v2088_v59 = vmul.f32 1.442695, %v1813_v35  ;;  %v1815_v39 = vsub.f32 %v10811_v32, %v1503_v15  ;;  %v7256_v19 = vpop.f32.mrb[86].mxu0  ;;  %5291 = vpow2.f32 %v2082_v21  ;;  %v1816_v63 = vsub.f32 %v10814_v36, %v1503_v15  ;;  %v10815_v55 = vld [vmem:[#allocation17_spill] sm:$0xff]  ;;  %10821 = vst [vmem:[#allocation167_spill] sm:$0xff] %v7281_v53 }
 0x1eb   : > { %10809 = vst [vmem:[#allocation163_spill] sm:$0xff] %v7252_v33  ;;  %v7258_v27 = vpop.f32.mrb[85].mxu1  ;;  %v7260_v40 = vpop.eup %5271  ;;  %v1817_v62 = vsub.f32 %v10815_v55, %v1503_v15  ;;  %v2563_v30 = vadd.f32 %v7227_v18, %v2562_v29  ;;  %5293 = vpow2.f32 %v2084_v54  ;;  %v2090_v32 = vmul.f32 1.442695, %v1814_v22  ;;  %v10825_v52 = vld [vmem:[#allocation19_spill] sm:$0xff] }
 0x1ec   : > { %10812 = vst [vmem:[#allocation13_spill] sm:$0xff] %v7258_v27  ;;  %10813 = vst [vmem:[#allocation15_spill] sm:$0xff] %v7260_v40  ;;  %v7265_v37 = vpop.f32.mrb[87].mxu0  ;;  %v7267_v35 = vpop.f32.mrb[86].mxu1  ;;  %v2092_v61 = vmul.f32 1.442695, %v1815_v39  ;;  %v2567_v27 = vadd.f32 %v7252_v33, %v7249_v14  ;;  %5295 = vpow2.f32 %v2086_v56 }
 0x1ed   : > { %10816 = vst [vmem:[#allocation16_spill] sm:$0xff] %v7265_v37  ;;  %10817 = vst [vmem:[#allocation17_spill] sm:$0xff] %v7267_v35  ;;  %v7269_v1 = vpop.eup %5273  ;;  %v7273_v21 = vpop.f32.mrb[87].mxu1  ;;  %v2094_v29 = vmul.f32 1.442695, %v1816_v63  ;;  %v2564_v36 = vadd.f32 %v7237_v46, %v2563_v30  ;;  %5297 = vpow2.f32 %v2088_v59  ;;  %v10824_v30 = vld [vmem:[#allocation18_spill] sm:$0xff] }
 0x1ee   : > { %10818 = vst [vmem:[#allocation164_spill] sm:$0xff] %v7269_v1  ;;  %10819 = vst [vmem:[#allocation165_spill] sm:$0xff] %v7273_v21  ;;  %v7276_v15 = vpop.eup %5275  ;;  %v2096_v22 = vmul.f32 1.442695, %v1817_v62  ;;  %v1508_v54 = vpop.xlane.xlu0 %1507  ;;  %v2568_v41 = vadd.f32 %v7260_v40, %v2567_v27  ;;  %5299 = vpow2.f32 %v2090_v32  ;;  %v10826_v14 = vld [vmem:[#allocation20_spill] sm:$0xff]  ;;  %v10830_v27 = vld [vmem:[#allocation22_spill] sm:$0xff] }
 0x1ef   : > { %10820 = vst [vmem:[#allocation166_spill] sm:$0xff] %v7276_v15  ;;  %v7284_v39 = vpop.eup %5277  ;;  %2565 = vadd.xlane.f32.xlu0 %v2564_v36  ;;  %v1818_v63 = vsub.f32 %v10824_v30, %v1508_v54  ;;  %v1819_v18 = vsub.f32 %v10825_v52, %v1508_v54  ;;  %v1820_v33 = vsub.f32 %v10826_v14, %v1508_v54  ;;  %v7294_v46 = vpop.f32.mrb[88].mxu0  ;;  %5301 = vpow2.f32 %v2092_v61  ;;  %v10833_v35 = vld [vmem:[#allocation21_spill] sm:$0xff] }
 0x1f0   : > { %10822 = vst [vmem:[#allocation168_spill] sm:$0xff] %v7284_v39  ;;  %v7289_v56 = vpop.eup %5279  ;;  %10827 = vst [vmem:[#allocation18_spill] sm:$0xff] %v7294_v46  ;;  %v7296_v59 = vpop.f32.mrb[88].mxu1  ;;  %v1821_v40 = vsub.f32 %v10830_v27, %v1508_v54  ;;  %v2569_v21 = vadd.f32 %v7269_v1, %v2568_v41  ;;  %v2572_v32 = vadd.f32 %v7284_v39, %v7276_v15  ;;  %5303 = vpow2.f32 %v2094_v29  ;;  %v10834_v27 = vld [vmem:[#allocation23_spill] sm:$0xff]  ;;  %v10837_v29 = vld [vmem:[#allocation24_spill] sm:$0xff] }
 0x1f1   : > { %10823 = vst [vmem:[#allocation169_spill] sm:$0xff] %v7289_v56  ;;  %10828 = vst [vmem:[#allocation19_spill] sm:$0xff] %v7296_v59  ;;  %v7298_v62 = vpop.eup %5281  ;;  %v1513_v55 = vpop.xlane.xlu1 %1512  ;;  %v2098_v14 = vmul.f32 1.442695, %v1818_v63  ;;  %v2100_v52 = vmul.f32 1.442695, %v1819_v18  ;;  %5305 = vpow2.f32 %v2096_v22  ;;  %v10839_v22 = vmax.f32 %v6900_v2, %v6894_v3 }
 0x1f2   : > { %10829 = vst [vmem:[#allocation20_spill] sm:$0xff] %v7298_v62  ;;  %v7304_v36 = vpop.f32.mrb[89].mxu0  ;;  %v7306_v30 = vpop.eup %5283  ;;  %v2102_v46 = vmul.f32 1.442695, %v1820_v33  ;;  %v2104_v61 = vmul.f32 1.442695, %v1821_v40  ;;  %v1822_v54 = vsub.f32 %v10833_v35, %v1513_v55  ;;  %v1823_v37 = vsub.f32 %v10834_v27, %v1513_v55  ;;  %2570 = vadd.xlane.f32.xlu1 %v2569_v21 }
 0x1f3   : > { %10831 = vst [vmem:[#allocation22_spill] sm:$0xff] %v7306_v30  ;;  %v7308_v59 = vpop.eup %5285  ;;  %v7312_v41 = vpop.f32.mrb[90].mxu0  ;;  %5307 = vpow2.f32 %v2098_v14  ;;  %v1824_v63 = vsub.f32 %v10837_v29, %v1513_v55  ;;  %v10838_v18 = vld [vmem:[#allocation25_spill] sm:$0xff]  ;;  %1597 = vmax.xlane.f32.xlu0 %v10839_v22  ;;  %v2573_v40 = vadd.f32 %v7289_v56, %v2572_v32 }
 0x1f4   : > { %10832 = vst [vmem:[#allocation170_spill] sm:$0xff] %v7308_v59  ;;  %v7314_v15 = vpop.f32.mrb[89].mxu1  ;;  %v7316_v39 = vpop.eup %5287  ;;  %v1825_v33 = vsub.f32 %v10838_v18, %v1513_v55  ;;  %5309 = vpow2.f32 %v2100_v52  ;;  %v2106_v1 = vmul.f32 1.442695, %v1822_v54  ;;  %v2577_v14 = vadd.f32 %v7308_v59, %v7306_v30 }
 0x1f5   : > { %10835 = vst [vmem:[#allocation21_spill] sm:$0xff] %v7314_v15  ;;  %10836 = vst [vmem:[#allocation23_spill] sm:$0xff] %v7316_v39  ;;  %v7324_v35 = vpop.f32.mrb[91].mxu0  ;;  %v7326_v21 = vpop.f32.mrb[90].mxu1  ;;  %v2108_v15 = vmul.f32 1.442695, %v1823_v37  ;;  %5311 = vpow2.f32 %v2102_v46  ;;  %v2574_v32 = vadd.f32 %v7298_v62, %v2573_v40  ;;  %v7347_v46 = vadd.f32 %v7177_v9, %v6401_v44 }
 0x1f6   : > { %10840 = vst [vmem:[#allocation24_spill] sm:$0xff] %v7326_v21  ;;  %v7328_v27 = vpop.eup %5289  ;;  %v7332_v29 = vpop.f32.mrb[91].mxu1  ;;  %v2110_v2 = vmul.f32 1.442695, %v1824_v63  ;;  %5313 = vpow2.f32 %v2104_v61  ;;  %v2112_v52 = vmul.f32 1.442695, %v1825_v33  ;;  %v2578_v30 = vadd.f32 %v7316_v39, %v2577_v14 }
 0x1f7   : > { %10841 = vst [vmem:[#allocation25_spill] sm:$0xff] %v7328_v27  ;;  %10842 = vst [vmem:[#allocation171_spill] sm:$0xff] %v7332_v29  ;;  %v7334_v55 = vpop.eup %5291  ;;  %v10845_v37 = vld [vmem:[#allocation102_spill] sm:$0xff]  ;;  %v1518_v56 = vpop.xlane.xlu0 %1517  ;;  %5315 = vpow2.f32 %v2106_v1  ;;  %2575 = vadd.xlane.f32.xlu0 %v2574_v32  ;;  %v10850_v62 = vld [vmem:[#allocation27_spill] sm:$0xff] }
 0x1f8   : > { %10843 = vst [vmem:[#allocation172_spill] sm:$0xff] %v7334_v55  ;;  %v7339_v22 = vpop.eup %5293  ;;  %v10846_v54 = vmax.f32 %v6903_v38, %v10845_v37  ;;  %10847 = vst [vmem:[#allocation174_spill] sm:$0xff] %v7347_v46  ;;  %v10849_v40 = vld [vmem:[#allocation26_spill] sm:$0xff]  ;;  %v1827_v61 = vsub.f32 %v10850_v62, %v1518_v56  ;;  %v10851_v33 = vld [vmem:[#allocation28_spill] sm:$0xff]  ;;  %v7354_v3 = vpop.f32.mrb[92].mxu0  ;;  %5317 = vpow2.f32 %v2108_v15  ;;  %v2579_v37 = vadd.f32 %v7328_v27, %v2578_v30 }
 0x1f9   : > { %10844 = vst [vmem:[#allocation173_spill] sm:$0xff] %v7339_v22  ;;  %v7349_v63 = vpop.eup %5295  ;;  %v1826_v18 = vsub.f32 %v10849_v40, %v1518_v56  ;;  %v1828_v59 = vsub.f32 %v10851_v33, %v1518_v56  ;;  %10852 = vst [vmem:[#allocation26_spill] sm:$0xff] %v7354_v3  ;;  %v7356_v38 = vpop.f32.mrb[92].mxu1  ;;  %v10855_v14 = vld [vmem:[#allocation30_spill] sm:$0xff]  ;;  %v2582_v1 = vadd.f32 %v7339_v22, %v7334_v55  ;;  %5319 = vpow2.f32 %v2110_v2  ;;  %v10859_v3 = vld [vmem:[#allocation29_spill] sm:$0xff] }
 0x1fa   : > { %1602 = vmax.xlane.f32.xlu1 %v10846_v54  ;;  %10848 = vst [vmem:[#allocation175_spill] sm:$0xff] %v7349_v63  ;;  %10853 = vst [vmem:[#allocation27_spill] sm:$0xff] %v7356_v38  ;;  %v7358_v54 = vpop.eup %5297  ;;  %v1829_v9 = vsub.f32 %v10855_v14, %v1518_v56  ;;  %v1523_v39 = vpop.xlane.xlu1 %1522  ;;  %v2116_v33 = vmul.f32 1.442695, %v1827_v61  ;;  %5321 = vpow2.f32 %v2112_v52  ;;  %v10860_v14 = vld [vmem:[#allocation31_spill] sm:$0xff]  ;;  %v10864_v2 = vld [vmem:[#allocation32_spill] sm:$0xff] }
 0x1fb   : > { %10854 = vst [vmem:[#allocation28_spill] sm:$0xff] %v7358_v54  ;;  %v7364_v32 = vpop.f32.mrb[93].mxu0  ;;  %v7366_v62 = vpop.eup %5299  ;;  %v2114_v40 = vmul.f32 1.442695, %v1826_v18  ;;  %v2118_v29 = vmul.f32 1.442695, %v1828_v59  ;;  %v1830_v56 = vsub.f32 %v10859_v3, %v1523_v39  ;;  %v1831_v21 = vsub.f32 %v10860_v14, %v1523_v39 }
 0x1fc   : > { %10856 = vst [vmem:[#allocation30_spill] sm:$0xff] %v7364_v32  ;;  %10857 = vst [vmem:[#allocation176_spill] sm:$0xff] %v7366_v62  ;;  %v7368_v38 = vpop.eup %5301  ;;  %v2120_v15 = vmul.f32 1.442695, %v1829_v9  ;;  %v7372_v30 = vpop.f32.mrb[94].mxu0  ;;  %v1832_v18 = vsub.f32 %v10864_v2, %v1523_v39  ;;  %v10865_v61 = vld [vmem:[#allocation33_spill] sm:$0xff]  ;;  %v2583_v3 = vadd.f32 %v7349_v63, %v2582_v1 }
 0x1fd   : > { %10858 = vst [vmem:[#allocation177_spill] sm:$0xff] %v7368_v38  ;;  %10861 = vst [vmem:[#allocation29_spill] sm:$0xff] %v7372_v30  ;;  %v7374_v55 = vpop.f32.mrb[93].mxu1  ;;  %v7376_v22 = vpop.eup %5303  ;;  %5323 = vpow2.f32 %v2114_v40  ;;  %v1833_v59 = vsub.f32 %v10865_v61, %v1523_v39  ;;  %v10866_v27 = vld [vmem:[#allocation104_spill] sm:$0xff]  ;;  %v10867_v32 = vld [vmem:[#allocation105_spill] sm:$0xff]  ;;  %v2587_v40 = vadd.f32 %v7368_v38, %v7366_v62  ;;  %v10871_v61 = vmax.f32 %v7225_v11, %v7243_v25 }
 0x1fe   : > { %2580 = vadd.xlane.f32.xlu1 %v2579_v37  ;;  %10862 = vst [vmem:[#allocation31_spill] sm:$0xff] %v7374_v55  ;;  %10863 = vst [vmem:[#allocation178_spill] sm:$0xff] %v7376_v22  ;;  %v10868_v52 = vmax.f32 %v10866_v27, %v10867_v32  ;;  %v7384_v9 = vpop.f32.mrb[95].mxu0  ;;  %v7386_v37 = vpop.f32.mrb[94].mxu1  ;;  %5325 = vpow2.f32 %v2116_v33  ;;  %v2122_v55 = vmul.f32 1.442695, %v1830_v56  ;;  %v2584_v1 = vadd.f32 %v7358_v54, %v2583_v3 }
 0x1ff   : > { %v7388_v14 = vpop.eup %5305  ;;  %v2124_v30 = vmul.f32 1.442695, %v1831_v21  ;;  %v7392_v2 = vpop.f32.mrb[95].mxu1  ;;  %5327 = vpow2.f32 %v2118_v29  ;;  %v2126_v27 = vmul.f32 1.442695, %v1832_v18  ;;  %v10873_v56 = vmax.f32 %v6934_v31, %v6938_v28  ;;  %v10877_v25 = vld [vmem:[#allocation35_spill] sm:$0xff] }
 0x200   : > { %1607 = vmax.xlane.f32.xlu0 %v10868_v52  ;;  %10869 = vst [vmem:[#allocation32_spill] sm:$0xff] %v7388_v14  ;;  %v7394_v39 = vpop.eup %5307  ;;  %v7401_v52 = vmax.f32 %v10871_v61, %v7347_v46  ;;  %5329 = vpow2.f32 %v2120_v15  ;;  %v2128_v21 = vmul.f32 1.442695, %v1833_v59  ;;  %v1528_v63 = vpop.xlane.xlu0 %1527  ;;  %v2588_v29 = vadd.f32 %v7376_v22, %v2587_v40  ;;  %v10876_v61 = vld [vmem:[#allocation34_spill] sm:$0xff]  ;;  %v10878_v59 = vld [vmem:[#allocation36_spill] sm:$0xff]  ;;  %v10883_v54 = vld [vmem:[#allocation37_spill] sm:$0xff] }
 0x201   : > { %10870 = vst [vmem:[#allocation33_spill] sm:$0xff] %v7394_v39  ;;  %v7403_v33 = vpop.eup %5309  ;;  %v7411_v18 = vadd.f32 %v7196_v57, %v6397_v42  ;;  %5331 = vpow2.f32 %v2122_v55  ;;  %v1834_v46 = vsub.f32 %v10876_v61, %v1528_v63  ;;  %v1835_v15 = vsub.f32 %v10877_v25, %v1528_v63  ;;  %v10880_v31 = vld [vmem:[#allocation38_spill] sm:$0xff]  ;;  %v5247_v28 = vld [vmem:[%s6827_s13 + $0x50] sm:$0xff]  }
 0x202   : > { %10872 = vst [vmem:[#allocation104_spill] sm:$0xff] %v7403_v33  ;;  %1612 = vmax.xlane.f32.xlu1 %v10873_v56  ;;  %v7413_v3 = vpop.eup %5311  ;;  %v1836_v11 = vsub.f32 %v10878_v59, %v1528_v63  ;;  %5333 = vpow2.f32 %v2124_v30  ;;  %v1837_v40 = vsub.f32 %v10880_v31, %v1528_v63  ;;  %v1533_v56 = vpop.xlane.xlu1 %1532  ;;  %v2589_v57 = vadd.f32 %v7388_v14, %v2588_v29  ;;  %v10884_v63 = vld [vmem:[#allocation39_spill] sm:$0xff]  ;;  %v5248_v29 = vld [vmem:[%s6827_s13 + $0xd0] sm:$0xff]  }
 0x203   : > { %10874 = vst [vmem:[#allocation179_spill] sm:$0xff] %v7411_v18  ;;  %10875 = vst [vmem:[#allocation180_spill] sm:$0xff] %v7413_v3  ;;  %v7418_v62 = vpop.eup %5313  ;;  %v2592_v55 = vadd.f32 %v7403_v33, %v7394_v39  ;;  %5335 = vpow2.f32 %v2126_v27  ;;  %v2130_v61 = vmul.f32 1.442695, %v1834_v46  ;;  %v2132_v25 = vmul.f32 1.442695, %v1835_v15  ;;  %4055 = vmatpush1.bf16.msra.mxu1 %v5247_v28  ;;  %4344 = vmatpush1.bf16.msra.mxu0 %v5248_v29 }
 0x204   : > { %2585 = vadd.xlane.f32.xlu0 %v2584_v1  ;;  %10879 = vst [vmem:[#allocation34_spill] sm:$0xff] %v7418_v62  ;;  %v7424_v1 = vpop.eup %5315  ;;  %v2134_v22 = vmul.f32 1.442695, %v1836_v11  ;;  %5337 = vpow2.f32 %v2128_v21  ;;  %v2136_v30 = vmul.f32 1.442695, %v1837_v40  ;;  %v1838_v38 = vsub.f32 %v10883_v54, %v1533_v56  ;;  %v10886_v39 = vld [vmem:[#allocation40_spill] sm:$0xff]  ;;  %4056 = vmatprep.subr.bf16.mxu1 %v10729_v24 }
 0x205   : > { %10881 = vst [vmem:[#allocation35_spill] sm:$0xff] %v7424_v1  ;;  %v7426_v59 = vpop.eup %5317  ;;  %v1839_v31 = vsub.f32 %v10884_v63, %v1533_v56  ;;  %5339 = vpow2.f32 %v2130_v61  ;;  %v1840_v33 = vsub.f32 %v10886_v39, %v1533_v56  ;;  %v10887_v27 = vld [vmem:[#allocation41_spill] sm:$0xff]  ;;  %v10888_v11 = vmax.f32 %v7011_v8, %v6948_v47  ;;  %4345 = vmatprep.subr.bf16.mxu0 %v10729_v24  ;;  %v10896_v29 = vld [vmem:[#allocation42_spill] sm:$0xff] }
 0x206   : > { %10882 = vst [vmem:[#allocation36_spill] sm:$0xff] %v7426_v59  ;;  %2590 = vadd.xlane.f32.xlu1 %v2589_v57  ;;  %v7432_v14 = vpop.eup %5319  ;;  %v1841_v46 = vsub.f32 %v10887_v27, %v1533_v56  ;;  %v2593_v21 = vadd.f32 %v7413_v3, %v2592_v55  ;;  %5341 = vpow2.f32 %v2132_v25  ;;  %v2138_v54 = vmul.f32 1.442695, %v1838_v38  ;;  %v5250_v63 = vld [vmem:[%s6827_s13 + $0xd8] sm:$0xff]   ;;  %v10897_v27 = vld [vmem:[#allocation43_spill] sm:$0xff] }
 0x207   : > { %10885 = vst [vmem:[#allocation38_spill] sm:$0xff] %v7432_v14  ;;  %v7440_v15 = vpop.eup %5321  ;;  %v2140_v40 = vmul.f32 1.442695, %v1839_v31  ;;  %v2597_v57 = vadd.f32 %v7426_v59, %v7424_v1  ;;  %5343 = vpow2.f32 %v2134_v22  ;;  %v2142_v56 = vmul.f32 1.442695, %v1840_v33  ;;  %v1538_v22 = vpop.xlane.xlu0 %1537  ;;  %4346 = vmatpush1.bf16.msra.mxu0 %v5250_v63 }
 0x208   : > { %1617 = vmax.xlane.f32.xlu0 %v10888_v11  ;;  %10889 = vst [vmem:[#allocation37_spill] sm:$0xff] %v7440_v15  ;;  %v7444_v39 = vpop.eup %5323  ;;  %v2594_v8 = vadd.f32 %v7418_v62, %v2593_v21  ;;  %v7449_v55 = vadd.f32 %v7201_v17, %v6403_v45  ;;  %5345 = vpow2.f32 %v2136_v30  ;;  %v2144_v28 = vmul.f32 1.442695, %v1841_v46  ;;  %v5249_v17 = vld [vmem:[%s6827_s13 + $0x58] sm:$0xff]   ;;  %v10898_v11 = vld [vmem:[#allocation44_spill] sm:$0xff]  ;;  %4347 = vmatprep.subr.bf16.mxu0 %v10729_v24 }
 0x209   : > { %10890 = vst [vmem:[#allocation39_spill] sm:$0xff] %v7444_v39  ;;  %v7453_v38 = vpop.eup %5325  ;;  %v10893_v61 = vmax.f32 %v7014_v13, %v6988_v43  ;;  %v2598_v33 = vadd.f32 %v7432_v14, %v2597_v57  ;;  %v7461_v25 = vadd.f32 %v7186_v7, %v6410_v50  ;;  %5347 = vpow2.f32 %v2138_v54  ;;  %v10900_v57 = vld [vmem:[#allocation47_spill] sm:$0xff]  ;;  %v1543_v14 = vpop.xlane.xlu1 %1542  ;;  %4057 = vmatpush1.bf16.msra.mxu1 %v5249_v17 }
 0x20a   : > { %10891 = vst [vmem:[#allocation40_spill] sm:$0xff] %v7449_v55  ;;  %10892 = vst [vmem:[#allocation41_spill] sm:$0xff] %v7453_v38  ;;  %v7465_v31 = vpop.eup %5327  ;;  %v1842_v30 = vsub.f32 %v10896_v29, %v1538_v22  ;;  %v1843_v46 = vsub.f32 %v10897_v27, %v1538_v22  ;;  %v1844_v13 = vsub.f32 %v10898_v11, %v1538_v22  ;;  %5349 = vpow2.f32 %v2140_v40 }
 0x20b   : > { %1622 = vmax.xlane.f32.xlu1 %v10893_v61  ;;  %10894 = vst [vmem:[#allocation181_spill] sm:$0xff] %v7461_v25  ;;  %10895 = vst [vmem:[#allocation182_spill] sm:$0xff] %v7465_v31  ;;  %v7470_v21 = vpop.eup %5329  ;;  %v1845_v61 = vsub.f32 %v10900_v57, %v1538_v22  ;;  %v2599_v7 = vadd.f32 %v7440_v15, %v2598_v33  ;;  %v2602_v3 = vadd.f32 %v7453_v38, %v7444_v39  ;;  %v10903_v33 = vld [vmem:[#allocation45_spill] sm:$0xff]  ;;  %v10904_v57 = vld [vmem:[#allocation46_spill] sm:$0xff] }
 0x20c   : > { %2595 = vadd.xlane.f32.xlu0 %v2594_v8  ;;  %10899 = vst [vmem:[#allocation42_spill] sm:$0xff] %v7470_v21  ;;  %v7476_v54 = vpop.eup %5331  ;;  %5351 = vpow2.f32 %v2142_v56  ;;  %v2146_v8 = vmul.f32 1.442695, %v1842_v30  ;;  %v2148_v29 = vmul.f32 1.442695, %v1843_v46  ;;  %4058 = vmatprep.subr.bf16.mxu1 %v10729_v24  ;;  %v1846_v11 = vsub.f32 %v10903_v33, %v1543_v14  ;;  %v10906_v56 = vld [vmem:[#allocation48_spill] sm:$0xff] }
 0x20d   : > { %10901 = vst [vmem:[#allocation43_spill] sm:$0xff] %v7476_v54  ;;  %v2150_v27 = vmul.f32 1.442695, %v1844_v13  ;;  %v7480_v40 = vpop.eup %5333  ;;  %5353 = vpow2.f32 %v2144_v28  ;;  %v2152_v22 = vmul.f32 1.442695, %v1845_v61  ;;  %v1847_v39 = vsub.f32 %v10904_v57, %v1543_v14  ;;  %v10907_v30 = vld [vmem:[#allocation49_spill] sm:$0xff] }
 0x20e   : > { %10902 = vst [vmem:[#allocation44_spill] sm:$0xff] %v7480_v40  ;;  %v7484_v17 = vpop.eup %5335  ;;  %5355 = vpow2.f32 %v2146_v8  ;;  %v1848_v63 = vsub.f32 %v10906_v56, %v1543_v14  ;;  %v1849_v46 = vsub.f32 %v10907_v30, %v1543_v14  ;;  %v10908_v13 = vmax.f32 %v7047_v5, %v7035_v60  ;;  %v5252_v30 = vld [vmem:[%s6827_s13 + $0xe0] sm:$0xff]  }
 0x20f   : > { %2600 = vadd.xlane.f32.xlu1 %v2599_v7  ;;  %10905 = vst [vmem:[#allocation47_spill] sm:$0xff] %v7484_v17  ;;  %v2603_v38 = vadd.f32 %v7465_v31, %v2602_v3  ;;  %v7492_v28 = vpop.eup %5337  ;;  %5357 = vpow2.f32 %v2148_v29  ;;  %v2154_v61 = vmul.f32 1.442695, %v1846_v11  ;;  %v2156_v7 = vmul.f32 1.442695, %v1847_v39  ;;  %v1548_v39 = vpop.xlane.xlu0 %1547  ;;  %v10916_v31 = vld [vmem:[#allocation52_spill] sm:$0xff]  ;;  %4348 = vmatpush1.bf16.msra.mxu0 %v5252_v30 }
 0x210   : > { %1627 = vmax.xlane.f32.xlu0 %v10908_v13  ;;  %10909 = vst [vmem:[#allocation45_spill] sm:$0xff] %v7492_v28  ;;  %v2607_v8 = vadd.f32 %v7480_v40, %v7476_v54  ;;  %v7496_v33 = vpop.eup %5339  ;;  %5359 = vpow2.f32 %v2150_v27  ;;  %v2158_v14 = vmul.f32 1.442695, %v1848_v63  ;;  %v2160_v29 = vmul.f32 1.442695, %v1849_v46  ;;  %v5251_v63 = vld [vmem:[%s6827_s13 + $0x60] sm:$0xff]   ;;  %4349 = vmatprep.subr.bf16.mxu0 %v10729_v24 }
 0x211   : > { %10910 = vst [vmem:[#allocation46_spill] sm:$0xff] %v7496_v33  ;;  %v2604_v57 = vadd.f32 %v7470_v21, %v2603_v38  ;;  %v7501_v3 = vpop.eup %5341  ;;  %5361 = vpow2.f32 %v2152_v22  ;;  %v10912_v11 = vmax.f32 %v7058_v26, %v7039_v20  ;;  %v10914_v13 = vld [vmem:[#allocation50_spill] sm:$0xff]  ;;  %v10915_v22 = vld [vmem:[#allocation51_spill] sm:$0xff]  ;;  %v1852_v54 = vsub.f32 %v10916_v31, %v1548_v39  ;;  %4059 = vmatpush1.bf16.msra.mxu1 %v5251_v63  ;;  %v10987_v20 = vld [vmem:[#allocation77_spill] sm:$0xff] }
 0x212   : > { %10911 = vst [vmem:[#allocation48_spill] sm:$0xff] %v7501_v3  ;;  %v2608_v56 = vadd.f32 %v7484_v17, %v2607_v8  ;;  %v7511_v38 = vpop.eup %5343  ;;  %5363 = vpow2.f32 %v2154_v61  ;;  %v1850_v5 = vsub.f32 %v10914_v13, %v1548_v39  ;;  %v1851_v46 = vsub.f32 %v10915_v22, %v1548_v39  ;;  %v1553_v17 = vpop.xlane.xlu1 %1552  ;;  %4060 = vmatprep.subr.bf16.mxu1 %v10729_v24  ;;  %v5253_v30 = vld [vmem:[%s6827_s13 + $0x68] sm:$0xff]  }
 0x213   : > { %1632 = vmax.xlane.f32.xlu1 %v10912_v11  ;;  %10913 = vst [vmem:[#allocation49_spill] sm:$0xff] %v7511_v38  ;;  %v7516_v26 = vpop.eup %5345  ;;  %5365 = vpow2.f32 %v2156_v7  ;;  %v10918_v11 = vld [vmem:[#allocation55_spill] sm:$0xff]  ;;  %v2612_v21 = vadd.f32 %v7501_v3, %v7496_v33  ;;  %v2166_v13 = vmul.f32 1.442695, %v1852_v54 }
 0x214   : > { %2605 = vadd.xlane.f32.xlu0 %v2604_v57  ;;  %10917 = vst [vmem:[#allocation50_spill] sm:$0xff] %v7516_v26  ;;  %v1853_v8 = vsub.f32 %v10918_v11, %v1548_v39  ;;  %v2609_v27 = vadd.f32 %v7492_v28, %v2608_v56  ;;  %v7522_v61 = vpop.eup %5347  ;;  %5367 = vpow2.f32 %v2158_v14  ;;  %v2162_v57 = vmul.f32 1.442695, %v1850_v5  ;;  %v10921_v56 = vld [vmem:[#allocation53_spill] sm:$0xff]  ;;  %v10922_v11 = vld [vmem:[#allocation54_spill] sm:$0xff]  ;;  %v5254_v33 = vld [vmem:[%s6827_s13 + $0xe8] sm:$0xff]  }
 0x215   : > { %10919 = vst [vmem:[#allocation51_spill] sm:$0xff] %v7522_v61  ;;  %v2164_v31 = vmul.f32 1.442695, %v1851_v46  ;;  %v7526_v7 = vpop.eup %5349  ;;  %5369 = vpow2.f32 %v2160_v29  ;;  %v1854_v22 = vsub.f32 %v10921_v56, %v1553_v17  ;;  %v1855_v63 = vsub.f32 %v10922_v11, %v1553_v17  ;;  %v10924_v14 = vld [vmem:[#allocation56_spill] sm:$0xff]  ;;  %v10925_v5 = vld [vmem:[#allocation57_spill] sm:$0xff]  ;;  %4061 = vmatpush1.bf16.msra.mxu1 %v5253_v30  ;;  %4350 = vmatpush1.bf16.msra.mxu0 %v5254_v33  ;;  %v10935_v30 = vld [vmem:[#allocation59_spill] sm:$0xff] }
 0x216   : > { %10920 = vst [vmem:[#allocation52_spill] sm:$0xff] %v7526_v7  ;;  %v2168_v39 = vmul.f32 1.442695, %v1853_v8  ;;  %v7532_v3 = vpop.eup %5351  ;;  %5371 = vpow2.f32 %v2162_v57  ;;  %v1856_v54 = vsub.f32 %v10924_v14, %v1553_v17  ;;  %v1857_v46 = vsub.f32 %v10925_v5, %v1553_v17  ;;  %4062 = vmatprep.subr.bf16.mxu1 %v10729_v24  ;;  %4351 = vmatprep.subr.bf16.mxu0 %v10729_v24  ;;  %v10936_v5 = vld [vmem:[#allocation60_spill] sm:$0xff] }
 0x217   : > { %2610 = vadd.xlane.f32.xlu1 %v2609_v27  ;;  %10923 = vst [vmem:[#allocation55_spill] sm:$0xff] %v7532_v3  ;;  %v10926_v28 = vmax.f32 %v7074_v0, %v7062_v58  ;;  %v2613_v29 = vadd.f32 %v7511_v38, %v2612_v21  ;;  %v7540_v8 = vpop.eup %5353  ;;  %5373 = vpow2.f32 %v2164_v31  ;;  %v2170_v56 = vmul.f32 1.442695, %v1854_v22  ;;  %v1558_v31 = vpop.xlane.xlu0 %1557 }
 0x218   : > { %10927 = vst [vmem:[#allocation53_spill] sm:$0xff] %v7540_v8  ;;  %v2172_v27 = vmul.f32 1.442695, %v1855_v63  ;;  %v2617_v11 = vadd.f32 %v7526_v7, %v7522_v61  ;;  %v7544_v57 = vpop.eup %5355  ;;  %5375 = vpow2.f32 %v2166_v13  ;;  %v2174_v17 = vmul.f32 1.442695, %v1856_v54  ;;  %v10934_v63 = vld [vmem:[#allocation58_spill] sm:$0xff] }
 0x219   : > { %1637 = vmax.xlane.f32.xlu0 %v10926_v28  ;;  %10928 = vst [vmem:[#allocation54_spill] sm:$0xff] %v7544_v57  ;;  %v2614_v14 = vadd.f32 %v7516_v26, %v2613_v29  ;;  %v7549_v0 = vadd.f32 %v7203_v10, %v6401_v44  ;;  %v7553_v21 = vpop.eup %5357  ;;  %5377 = vpow2.f32 %v2168_v39  ;;  %v2176_v28 = vmul.f32 1.442695, %v1857_v46  ;;  %v10938_v29 = vld [vmem:[#allocation63_spill] sm:$0xff]  ;;  %v7574_v38 = vpop.f32.mrb[96].mxu0  ;;  %v10944_v7 = vld [vmem:[#allocation64_spill] sm:$0xff] }
 0x21a   : > { %10930 = vst [vmem:[#allocation57_spill] sm:$0xff] %v7553_v21  ;;  %v10931_v33 = vmax.f32 %v7077_v51, %v7066_v49  ;;  %v2618_v13 = vadd.f32 %v7532_v3, %v2617_v11  ;;  %v7561_v10 = vadd.f32 %v7232_v48, %v6397_v42  ;;  %v7563_v22 = vpop.eup %5359  ;;  %5379 = vpow2.f32 %v2170_v56  ;;  %v5255_v56 = vld [vmem:[%s6827_s13 + $0x70] sm:$0xff]  }
 0x21b   : > { %10929 = vst [vmem:[#allocation56_spill] sm:$0xff] %v7549_v0  ;;  %10933 = vst [vmem:[#allocation184_spill] sm:$0xff] %v7563_v22  ;;  %v1858_v39 = vsub.f32 %v10934_v63, %v1558_v31  ;;  %v1859_v54 = vsub.f32 %v10935_v30, %v1558_v31  ;;  %v1860_v51 = vsub.f32 %v10936_v5, %v1558_v31  ;;  %v7568_v46 = vpop.eup %5361  ;;  %5381 = vpow2.f32 %v2172_v27 }
 0x21c   : > { %1642 = vmax.xlane.f32.xlu1 %v10931_v33  ;;  %10932 = vst [vmem:[#allocation183_spill] sm:$0xff] %v7561_v10  ;;  %10937 = vst [vmem:[#allocation58_spill] sm:$0xff] %v7568_v46  ;;  %v1861_v11 = vsub.f32 %v10938_v29, %v1558_v31  ;;  %v1563_v33 = vpop.xlane.xlu1 %1562  ;;  %v2619_v3 = vadd.f32 %v7540_v8, %v2618_v13  ;;  %v2622_v48 = vadd.f32 %v7553_v21, %v7544_v57  ;;  %v7578_v63 = vpop.eup %5363  ;;  %v10941_v31 = vld [vmem:[#allocation61_spill] sm:$0xff]  ;;  %v10942_v13 = vld [vmem:[#allocation62_spill] sm:$0xff] }
 0x21d   : > { %2615 = vadd.xlane.f32.xlu0 %v2614_v14  ;;  %v5256_v14 = vld [vmem:[%s6827_s13 + $0xf0] sm:$0xff]   ;;  %10939 = vst [vmem:[#allocation59_spill] sm:$0xff] %v7578_v63  ;;  %5383 = vpow2.f32 %v2174_v17  ;;  %v2178_v30 = vmul.f32 1.442695, %v1858_v39  ;;  %v2180_v5 = vmul.f32 1.442695, %v1859_v54  ;;  %v7580_v26 = vpop.eup %5365  ;;  %v1862_v29 = vsub.f32 %v10941_v31, %v1563_v33  ;;  %4063 = vmatpush1.bf16.msra.mxu1 %v5255_v56 }
 0x21e   : > { %v2182_v61 = vmul.f32 1.442695, %v1860_v51  ;;  %10940 = vst [vmem:[#allocation60_spill] sm:$0xff] %v7580_v26  ;;  %5385 = vpow2.f32 %v2176_v28  ;;  %v2184_v27 = vmul.f32 1.442695, %v1861_v11  ;;  %v1863_v8 = vsub.f32 %v10942_v13, %v1563_v33  ;;  %v7584_v57 = vpop.f32.mrb[97].mxu0  ;;  %v7586_v21 = vpop.eup %5367  ;;  %4352 = vmatpush1.bf16.msra.mxu0 %v5256_v14  ;;  %4064 = vmatprep.subr.bf16.mxu1 %v10729_v24 }
 0x21f   : > { %10943 = vst [vmem:[#allocation63_spill] sm:$0xff] %v7586_v21  ;;  %5387 = vpow2.f32 %v2178_v30  ;;  %v1864_v17 = vsub.f32 %v10944_v7, %v1563_v33  ;;  %v10945_v39 = vld [vmem:[#allocation65_spill] sm:$0xff]  ;;  %v10946_v51 = vmax.f32 %v7086_v6, %v7080_v16  ;;  %v2623_v28 = vadd.f32 %v7563_v22, %v2622_v48  ;;  %v7594_v11 = vpop.f32.mrb[98].mxu0  ;;  %v7598_v56 = vpop.eup %5369  ;;  %4353 = vmatprep.subr.bf16.mxu0 %v10729_v24  ;;  %v10982_v16 = vld [vmem:[#allocation76_spill] sm:$0xff] }
 0x220   : > { %2620 = vadd.xlane.f32.xlu1 %v2619_v3  ;;  %v1865_v54 = vsub.f32 %v10945_v39, %v1563_v33  ;;  %v7596_v3 = vpop.f32.mrb[96].mxu1  ;;  %10947 = vst [vmem:[#allocation61_spill] sm:$0xff] %v7598_v56  ;;  %5389 = vpow2.f32 %v2180_v5  ;;  %v2186_v30 = vmul.f32 1.442695, %v1862_v29  ;;  %v2188_v31 = vmul.f32 1.442695, %v1863_v8  ;;  %v7608_v48 = vpop.eup %5371 }
 0x221   : > { %1647 = vmax.xlane.f32.xlu0 %v10946_v51  ;;  %v2627_v7 = vadd.f32 %v7580_v26, %v7578_v63  ;;  %v7602_v33 = vpop.f32.mrb[99].mxu0  ;;  %v7604_v6 = vpop.f32.mrb[97].mxu1  ;;  %10948 = vst [vmem:[#allocation62_spill] sm:$0xff] %v7608_v48  ;;  %5391 = vpow2.f32 %v2182_v61  ;;  %v2190_v14 = vmul.f32 1.442695, %v1864_v17  ;;  %v2624_v5 = vadd.f32 %v7568_v46, %v2623_v28  ;;  %v5257_v39 = vld [vmem:[%s6827_s13 + $0x78] sm:$0xff]  }
 0x222   : > { %v10949_v8 = vmax.f32 %v7411_v18, %v7449_v55  ;;  %v7617_v13 = vpop.f32.mrb[98].mxu1  ;;  %v7620_v51 = vpop.eup %5373  ;;  %5393 = vpow2.f32 %v2184_v27  ;;  %v2192_v22 = vmul.f32 1.442695, %v1865_v54  ;;  %v10951_v24 = vld [vmem:[#allocation141_spill] sm:$0xff]  ;;  %v10957_v27 = vld [vmem:[#allocation67_spill] sm:$0xff]  ;;  %v10958_v18 = vld [vmem:[#allocation68_spill] sm:$0xff]  ;;  %4065 = vmatpush1.bf16.msra.mxu1 %v5257_v39 }
 0x223   : > { %10950 = vst [vmem:[#allocation64_spill] sm:$0xff] %v7620_v51  ;;  %v10952_v63 = vmax.f32 %v7096_v4, %v10951_v24  ;;  %v1568_v61 = vpop.xlane.xlu0 %1567  ;;  %v2628_v17 = vadd.f32 %v7586_v21, %v2627_v7  ;;  %v10953_v28 = vld [vmem:[#allocation161_spill] sm:$0xff]  ;;  %v7631_v26 = vpop.eup %5375  ;;  %5395 = vpow2.f32 %v2186_v30  ;;  %v2632_v1 = vadd.f32 %v7620_v51, %v7608_v48  ;;  %v10969_v51 = vld [vmem:[#allocation146_spill] sm:$0xff] }
 0x224   : > { %v7615_v29 = vmax.f32 %v10949_v8, %v7549_v0  ;;  %v7628_v46 = vadd.f32 %v10953_v28, %v6403_v45  ;;  %v5258_v8 = vld [vmem:[%s6827_s13 + $0xf8] sm:$0xff]   ;;  %10955 = vst [vmem:[#allocation161_spill] sm:$0xff] %v7631_v26  ;;  %v10956_v0 = vld [vmem:[#allocation66_spill] sm:$0xff]  ;;  %v1867_v54 = vsub.f32 %v10957_v27, %v1568_v61  ;;  %v1868_v40 = vsub.f32 %v10958_v18, %v1568_v61  ;;  %v7636_v4 = vpop.eup %5377  ;;  %v1573_v21 = vpop.xlane.xlu1 %1572  ;;  %s5963_s13 = sshll.u32 %s6052_s28, 4  ;;  %s5964_s13 = int_to_ptr.vmem [resolvable:$false] %s5963_s13 }
 0x225   : > { %1652 = vmax.xlane.f32.xlu1 %v10952_v63  ;;  %2625 = vadd.xlane.f32.xlu0 %v2624_v5  ;;  %v1866_v55 = vsub.f32 %v10956_v0, %v1568_v61  ;;  %10959 = vst [vmem:[#allocation66_spill] sm:$0xff] %v7636_v4  ;;  %5397 = vpow2.f32 %v2188_v31  ;;  %v10960_v63 = vld [vmem:[#allocation71_spill] sm:$0xff]  ;;  %v2629_v28 = vadd.f32 %v7598_v56, %v2628_v17  ;;  %v7642_v30 = vpop.eup %5379  ;;  %v10963_v31 = vld [vmem:[#allocation69_spill] sm:$0xff]  ;;  %v7648_v17 = vpop.f32.mrb[99].mxu1  ;;  %s5965_s21 = scalar_lea.vmem %s5964_s13, 65536  ;;  %p5966_p10 = scmp.lt.s32.totalorder %s10098_s10, %s5964_s13 }
 0x226   : > { %10954 = vst [vmem:[#allocation65_spill] sm:$0xff] %v7628_v46  ;;  %v1869_v7 = vsub.f32 %v10960_v63, %v1568_v61  ;;  %4354 = vmatpush1.bf16.msra.mxu0 %v5258_v8  ;;  %10961 = vst [vmem:[#allocation67_spill] sm:$0xff] %v7642_v30  ;;  %5399 = vpow2.f32 %v2190_v14  ;;  %v2196_v5 = vmul.f32 1.442695, %v1867_v54  ;;  %v2198_v27 = vmul.f32 1.442695, %v1868_v40  ;;  %v7644_v18 = vpop.eup %5381  ;;  %p5967_p12 = scmp.lt.s32.totalorder %s5965_s21, %s5959_s9 }
 0x227   : > { %v2194_v0 = vmul.f32 1.442695, %v1866_v55  ;;  %10962 = vst [vmem:[#allocation68_spill] sm:$0xff] %v7644_v18  ;;  %5401 = vpow2.f32 %v2192_v22  ;;  %v1870_v15 = vsub.f32 %v10963_v31, %v1573_v21  ;;  %v10964_v61 = vld [vmem:[#allocation70_spill] sm:$0xff]  ;;  %v7650_v56 = vpop.f32.mrb[100].mxu0  ;;  %v7652_v8 = vpop.eup %5383  ;;  %v10966_v14 = vld [vmem:[#allocation72_spill] sm:$0xff] }
 0x228   : > { %v2200_v39 = vmul.f32 1.442695, %v1869_v7  ;;  %v1871_v63 = vsub.f32 %v10964_v61, %v1573_v21  ;;  %10965 = vst [vmem:[#allocation71_spill] sm:$0xff] %v7652_v8  ;;  %v1872_v55 = vsub.f32 %v10966_v14, %v1573_v21  ;;  %v10967_v54 = vld [vmem:[#allocation73_spill] sm:$0xff]  ;;  %v2633_v7 = vadd.f32 %v7631_v26, %v2632_v1  ;;  %v7660_v31 = vpop.f32.mrb[101].mxu0  ;;  %v10975_v26 = vld [vmem:[#allocation147_spill] sm:$0xff]  ;;  %p5968_p9 = por %p5967_p12, %p5966_p10 }
 0x229   : > { %2630 = vadd.xlane.f32.xlu1 %v2629_v28  ;;  %5403 = vpow2.f32 %v2194_v0  ;;  %v1873_v40 = vsub.f32 %v10967_v54, %v1573_v21  ;;  %v10968_v48 = vld [vmem:[#allocation145_spill] sm:$0xff]  ;;  %v7662_v28 = vpop.eup %5385  ;;  %v2202_v61 = vmul.f32 1.442695, %v1870_v15  ;;  %v2637_v0 = vadd.f32 %v7644_v18, %v7642_v30  ;;  %v7666_v59 = vpop.f32.mrb[102].mxu0 }
 0x22a   : > { %v10970_v22 = vmax.f32 %v10968_v48, %v10969_v51  ;;  %10971 = vst [vmem:[#allocation69_spill] sm:$0xff] %v7662_v28  ;;  %5405 = vpow2.f32 %v2196_v5  ;;  %v2204_v62 = vmul.f32 1.442695, %v1871_v63  ;;  %v7668_v14 = vpop.eup %5387  ;;  %v2206_v21 = vmul.f32 1.442695, %v1872_v55  ;;  %v7673_v54 = vpop.f32.mrb[103].mxu0  ;;  %p5969_p1 = pnand %p5968_p9, %p5962_p7 }
 0x22b   : > { %10972 = vst [vmem:[#allocation70_spill] sm:$0xff] %v7668_v14  ;;  %5407 = vpow2.f32 %v2198_v27  ;;  %v2634_v48 = vadd.f32 %v7636_v4, %v2633_v7  ;;  %v7677_v15 = vpop.eup %5389  ;;  %v2208_v5 = vmul.f32 1.442695, %v1873_v40  ;;  %v10974_v63 = vld [vmem:[#allocation148_spill] sm:$0xff]  ;;  %v1578_v18 = vpop.xlane.xlu0 %1577  ;;  %v2638_v27 = vadd.f32 %v7652_v8, %v2637_v0  ;;  %v10980_v51 = vld [vmem:[#allocation74_spill] sm:$0xff]  ;;  %v10981_v40 = vld [vmem:[#allocation75_spill] sm:$0xff] }
 0x22c   : > { %1657 = vmax.xlane.f32.xlu0 %v10970_v22  ;;  %v7675_v22 = vpop.f32.mrb[100].mxu1  ;;  %10973 = vst [vmem:[#allocation72_spill] sm:$0xff] %v7677_v15  ;;  %5409 = vpow2.f32 %v2200_v39  ;;  %v10976_v30 = vmax.f32 %v10974_v63, %v10975_v26  ;;  %v10977_v55 = vld [vmem:[#allocation156_spill] sm:$0xff]  ;;  %v7689_v4 = vpop.eup %5391  ;;  %v1874_v39 = vsub.f32 %v10980_v51, %v1578_v18  ;;  %v1875_v24 = vsub.f32 %v10981_v40, %v1578_v18  ;;  %v10985_v51 = vld [vmem:[#allocation79_spill] sm:$0xff] }
 0x22d   : > { %v7685_v7 = vadd.f32 %v10977_v55, %v6410_v50  ;;  %v7687_v1 = vpop.f32.mrb[101].mxu1  ;;  %10979 = vst [vmem:[#allocation145_spill] sm:$0xff] %v7689_v4  ;;  %5411 = vpow2.f32 %v2202_v61  ;;  %v1876_v63 = vsub.f32 %v10982_v16, %v1578_v18  ;;  %v7696_v26 = vpop.eup %5393  ;;  %v2639_v55 = vadd.f32 %v7662_v28, %v2638_v27  ;;  %v10988_v27 = vld [vmem:[#allocation78_spill] sm:$0xff]  ;;  %v10990_v61 = vld [vmem:[#allocation80_spill] sm:$0xff] }
 0x22e   : > { %1662 = vmax.xlane.f32.xlu1 %v10976_v30  ;;  %v7694_v30 = vpop.f32.mrb[102].mxu1  ;;  %10983 = vst [vmem:[#allocation148_spill] sm:$0xff] %v7696_v26  ;;  %5413 = vpow2.f32 %v2204_v62  ;;  %v1583_v0 = vpop.xlane.xlu1 %1582  ;;  %v2642_v8 = vadd.f32 %v7677_v15, %v7668_v14  ;;  %v1877_v40 = vsub.f32 %v10985_v51, %v1578_v18  ;;  %v2210_v16 = vmul.f32 1.442695, %v1874_v39  ;;  %v10992_v18 = vld [vmem:[#allocation11_spill] sm:$0xff] }
 0x22f   : > { %10978 = vst [vmem:[#allocation73_spill] sm:$0xff] %v7685_v7  ;;  %5415 = vpow2.f32 %v2206_v21  ;;  %v2212_v49 = vmul.f32 1.442695, %v1875_v24  ;;  %v2214_v62 = vmul.f32 1.442695, %v1876_v63  ;;  %v1878_v60 = vsub.f32 %v10987_v20, %v1583_v0  ;;  %v7721_v39 = vpop.f32.mrb[103].mxu1 }
 0x230   : > { %2635 = vadd.xlane.f32.xlu0 %v2634_v48  ;;  %v7703_v48 = vpop.eup %5395  ;;  %5417 = vpow2.f32 %v2208_v5  ;;  %v1879_v28 = vsub.f32 %v10988_v27, %v1583_v0  ;;  %v1880_v15 = vsub.f32 %v10990_v61, %v1583_v0  ;;  %v10991_v21 = vmax.f32 %v7208_v34, %v7184_v23  ;;  %v10995_v63 = vld [vmem:[#allocation81_spill] sm:$0xff]  ;;  %v7728_v27 = vpop.f32.mrb[104].mxu0 }
 0x231   : > { %10984 = vst [vmem:[#allocation156_spill] sm:$0xff] %v7703_v48  ;;  %v7706_v58 = vpop.eup %5397  ;;  %5419 = vpow2.f32 %v2210_v16  ;;  %v2643_v24 = vadd.f32 %v7689_v4, %v2642_v8  ;;  %v7719_v5 = vadd.f32 %v10992_v18, %v6401_v44  ;;  %v2218_v51 = vmul.f32 1.442695, %v1878_v60  ;;  %v7737_v4 = vpop.f32.mrb[105].mxu0 }
 0x232   : > { %10986 = vst [vmem:[#allocation74_spill] sm:$0xff] %v7706_v58  ;;  %2640 = vadd.xlane.f32.xlu1 %v2639_v55  ;;  %v7710_v14 = vpop.eup %5399  ;;  %v1881_v55 = vsub.f32 %v10995_v63, %v1583_v0  ;;  %v2220_v16 = vmul.f32 1.442695, %v1879_v28  ;;  %v2647_v61 = vadd.f32 %v7706_v58, %v7703_v48  ;;  %5421 = vpow2.f32 %v2212_v49  ;;  %v1588_v63 = vpop.xlane.xlu0 %1587  ;;  %v11004_v58 = vld [vmem:[#allocation83_spill] sm:$0xff] }
 0x233   : > { %10989 = vst [vmem:[#allocation75_spill] sm:$0xff] %v7710_v14  ;;  %10993 = vst [vmem:[#allocation76_spill] sm:$0xff] %v7719_v5  ;;  %v7723_v20 = vpop.eup %5401  ;;  %v2216_v8 = vmul.f32 1.442695, %v1877_v40  ;;  %v7735_v18 = vadd.f32 %v7256_v19, %v6397_v42  ;;  %5423 = vpow2.f32 %v2214_v62  ;;  %v2222_v60 = vmul.f32 1.442695, %v1880_v15 }
 0x234   : > { %1667 = vmax.xlane.f32.xlu0 %v10991_v21  ;;  %10994 = vst [vmem:[#allocation79_spill] sm:$0xff] %v7723_v20  ;;  %v7730_v34 = vpop.eup %5403  ;;  %v2644_v21 = vadd.f32 %v7696_v26, %v2643_v24  ;;  %v10999_v28 = vmax.f32 %v7222_v12, %v7281_v53  ;;  %v2648_v49 = vadd.f32 %v7710_v14, %v2647_v61  ;;  %v11000_v40 = vld [vmem:[#allocation16_spill] sm:$0xff]  ;;  %5425 = vpow2.f32 %v2218_v51  ;;  %v11003_v19 = vld [vmem:[#allocation82_spill] sm:$0xff] }
 0x235   : > { %10996 = vst [vmem:[#allocation77_spill] sm:$0xff] %v7730_v34  ;;  %10997 = vst [vmem:[#allocation78_spill] sm:$0xff] %v7735_v18  ;;  %v7739_v0 = vpop.eup %5405  ;;  %v7747_v24 = vadd.f32 %v11000_v40, %v6403_v45  ;;  %v1882_v26 = vsub.f32 %v11003_v19, %v1588_v63  ;;  %v1883_v62 = vsub.f32 %v11004_v58, %v1588_v63  ;;  %v11005_v15 = vld [vmem:[#allocation84_spill] sm:$0xff]  ;;  %5427 = vpow2.f32 %v2220_v16  ;;  %v11009_v58 = vld [vmem:[#allocation87_spill] sm:$0xff] }
 0x236   : > { %10998 = vst [vmem:[#allocation80_spill] sm:$0xff] %v7739_v0  ;;  %1672 = vmax.xlane.f32.xlu1 %v10999_v28  ;;  %v7749_v48 = vpop.eup %5407  ;;  %v1884_v23 = vsub.f32 %v11005_v15, %v1588_v63  ;;  %v2224_v12 = vmul.f32 1.442695, %v1881_v55  ;;  %v7756_v28 = vpop.xlane.xlu1 %1592  ;;  %v2649_v61 = vadd.f32 %v7723_v20, %v2648_v49  ;;  %v11007_v40 = vmax.f32 %v7561_v10, %v7628_v46  ;;  %v11011_v16 = vld [vmem:[#allocation85_spill] sm:$0xff]  ;;  %v11012_v20 = vld [vmem:[#allocation86_spill] sm:$0xff] }
 0x237   : > { %11001 = vst [vmem:[#allocation11_spill] sm:$0xff] %v7747_v24  ;;  %11002 = vst [vmem:[#allocation81_spill] sm:$0xff] %v7749_v48  ;;  %v7754_v43 = vpop.eup %5409  ;;  %5429 = vpow2.f32 %v2216_v8  ;;  %v1885_v19 = vsub.f32 %v11009_v58, %v1588_v63  ;;  %v2226_v15 = vmul.f32 1.442695, %v1882_v26  ;;  %v2228_v14 = vmul.f32 1.442695, %v1883_v62 }
 0x238   : > { %2645 = vadd.xlane.f32.xlu0 %v2644_v21  ;;  %11006 = vst [vmem:[#allocation16_spill] sm:$0xff] %v7754_v43  ;;  %v7763_v51 = vmax.f32 %v11007_v40, %v7719_v5  ;;  %v7765_v21 = vpop.eup %5411  ;;  %5431 = vpow2.f32 %v2222_v60  ;;  %v2230_v55 = vmul.f32 1.442695, %v1884_v23  ;;  %v1886_v49 = vsub.f32 %v11011_v16, %v7756_v28  ;;  %v7774_v40 = vpop.f32.mrb[106].mxu0  ;;  %v11014_v8 = vld [vmem:[#allocation88_spill] sm:$0xff] }
 0x239   : > { %11008 = vst [vmem:[#allocation82_spill] sm:$0xff] %v7765_v21  ;;  %v7768_v53 = vpop.eup %5413  ;;  %v1887_v47 = vsub.f32 %v11012_v20, %v7756_v28  ;;  %5433 = vpow2.f32 %v2226_v15  ;;  %v1888_v26 = vsub.f32 %v11014_v8, %v7756_v28  ;;  %v11015_v63 = vmax.f32 %v7401_v52, %v7461_v25  ;;  %v7787_v20 = vpop.f32.mrb[107].mxu0 }
 0x23a   : > { %11010 = vst [vmem:[#allocation83_spill] sm:$0xff] %v7768_v53  ;;  %2650 = vadd.xlane.f32.xlu1 %v2649_v61  ;;  %v7776_v5 = vpop.eup %5415  ;;  %v1689_v23 = vmax.f32 %v7735_v18, %v7747_v24  ;;  %v1681_v60 = vmax.f32 %v7615_v29, %v7685_v7  ;;  %v7789_v62 = vpop.f32.mrb[104].mxu1  ;;  %5435 = vpow2.f32 %v2228_v14  ;;  %v2234_v58 = vmul.f32 1.442695, %v1886_v49  ;;  %v11018_v29 = vld [vmem:[#allocation13_spill] sm:$0xff]  ;;  %v11022_v49 = vld [vmem:[#allocation18_spill] sm:$0xff] }
 0x23b   : > { %11013 = vst [vmem:[#allocation84_spill] sm:$0xff] %v7776_v5  ;;  %v7791_v61 = vpop.eup %5417  ;;  %v2236_v15 = vmul.f32 1.442695, %v1887_v47  ;;  %v2652_v16 = vadd.f32 %v7739_v0, %v7730_v34  ;;  %v7795_v52 = vpop.f32.mrb[105].mxu1  ;;  %5437 = vpow2.f32 %v2224_v12  ;;  %v7801_v24 = vadd.f32 %v11018_v29, %v6410_v50  ;;  %v11020_v18 = vld [vmem:[#allocation17_spill] sm:$0xff] }
 0x23c   : > { %1677 = vmax.xlane.f32.xlu0 %v11015_v63  ;;  %11016 = vst [vmem:[#allocation87_spill] sm:$0xff] %v7791_v61  ;;  %v7797_v8 = vpop.eup %5419  ;;  %v2232_v63 = vmul.f32 1.442695, %v1885_v19  ;;  %v7805_v46 = vadd.f32 %v11020_v18, %v6401_v44  ;;  %v7807_v14 = vpop.f32.mrb[106].mxu1  ;;  %5439 = vpow2.f32 %v2230_v55  ;;  %v7812_v34 = vadd.f32 %v11022_v49, %v6397_v42  ;;  %v11026_v29 = vld [vmem:[#allocation89_spill] sm:$0xff] }
 0x23d   : > { %11017 = vst [vmem:[#allocation85_spill] sm:$0xff] %v7797_v8  ;;  %11019 = vst [vmem:[#allocation86_spill] sm:$0xff] %v7801_v24  ;;  %v2653_v47 = vadd.f32 %v7749_v48, %v2652_v16  ;;  %v7816_v12 = vadd.f32 %v7304_v36, %v6403_v45  ;;  %v7818_v19 = vpop.eup %5421  ;;  %v1889_v18 = vsub.f32 %v11026_v29, %v7756_v28  ;;  %5441 = vpow2.f32 %v2234_v58  ;;  %v11028_v48 = vld [vmem:[#allocation165_spill] sm:$0xff]  ;;  %v7834_v7 = vpop.f32.mrb[108].mxu0 }
 0x23e   : > { %11021 = vst [vmem:[#allocation88_spill] sm:$0xff] %v7805_v46  ;;  %1682 = vmax.xlane.f32.xlu1 %v1681_v60  ;;  %11023 = vst [vmem:[#allocation13_spill] sm:$0xff] %v7812_v34  ;;  %v2238_v0 = vmul.f32 1.442695, %v1888_v26  ;;  %v2657_v55 = vadd.f32 %v7768_v53, %v7765_v21  ;;  %v7824_v60 = vpop.f32.mrb[107].mxu1  ;;  %v7826_v16 = vpop.eup %5423  ;;  %5443 = vpow2.f32 %v2236_v15  ;;  %v1690_v36 = vmax.f32 %v1689_v23, %v7805_v46  ;;  %v11033_v15 = vld [vmem:[#allocation19_spill] sm:$0xff] }
 0x23f   : > { %11024 = vst [vmem:[#allocation17_spill] sm:$0xff] %v7816_v12  ;;  %11025 = vst [vmem:[#allocation18_spill] sm:$0xff] %v7818_v19  ;;  %v2654_v49 = vadd.f32 %v7754_v43, %v2653_v47  ;;  %v7832_v10 = vadd.f32 %v11028_v48, %v6410_v50  ;;  %v7836_v28 = vpop.eup %5425  ;;  %v7841_v58 = vadd.f32 %v7312_v41, %v6397_v42  ;;  %5445 = vpow2.f32 %v2232_v63  ;;  %v7862_v21 = vpop.f32.mrb[109].mxu0 }
 0x240   : > { %11027 = vst [vmem:[#allocation89_spill] sm:$0xff] %v7826_v16  ;;  %11030 = vst [vmem:[#allocation185_spill] sm:$0xff] %v7836_v28  ;;  %v2658_v26 = vadd.f32 %v7776_v5, %v2657_v55  ;;  %v7843_v29 = vpop.eup %5427  ;;  %v1694_v23 = vmax.f32 %v7812_v34, %v7816_v12  ;;  %v1686_v48 = vmax.f32 %v7763_v51, %v7801_v24  ;;  %5447 = vpow2.f32 %v2238_v0 }
 0x241   : > { %11029 = vst [vmem:[#allocation165_spill] sm:$0xff] %v7832_v10  ;;  %11031 = vst [vmem:[#allocation186_spill] sm:$0xff] %v7841_v58  ;;  %2655 = vadd.xlane.f32.xlu0 %v2654_v49  ;;  %v7851_v47 = vadd.f32 %v11033_v15, %v6401_v44  ;;  %v7855_v55 = vadd.f32 %v7324_v35, %v6403_v45  ;;  %v7857_v5 = vpop.eup %5429  ;;  %v2662_v49 = vadd.f32 %v7818_v19, %v7797_v8 }
 0x242   : > { %11032 = vst [vmem:[#allocation187_spill] sm:$0xff] %v7843_v29  ;;  %11036 = vst [vmem:[#allocation189_spill] sm:$0xff] %v7857_v5  ;;  %v2659_v41 = vadd.f32 %v7791_v61, %v2658_v26  ;;  %v7864_v43 = vpop.eup %5431  ;;  %v2240_v51 = vmul.f32 1.442695, %v1889_v18  ;;  %v1691_v15 = vmax.f32 %v1690_v36, %v7832_v10  ;;  %v11039_v26 = vld [vmem:[#allocation24_spill] sm:$0xff]  ;;  %v2667_v8 = vadd.f32 %v7843_v29, %v7836_v28  ;;  %v11042_v18 = vld [vmem:[#allocation21_spill] sm:$0xff] }
 0x243   : > { %11034 = vst [vmem:[#allocation19_spill] sm:$0xff] %v7851_v47  ;;  %11035 = vst [vmem:[#allocation188_spill] sm:$0xff] %v7855_v55  ;;  %v7867_v53 = vpop.eup %5433  ;;  %v1699_v35 = vmax.f32 %v7841_v58, %v7855_v55  ;;  %v2663_v63 = vadd.f32 %v7826_v16, %v2662_v49  ;;  %v7874_v61 = vadd.f32 %v11039_v26, %v6401_v44  ;;  %v11046_v49 = vld [vmem:[#allocation30_spill] sm:$0xff]  ;;  %v7893_v16 = vpop.f32.mrb[110].mxu0 }
 0x244   : > { %11037 = vst [vmem:[#allocation190_spill] sm:$0xff] %v7864_v43  ;;  %11038 = vst [vmem:[#allocation191_spill] sm:$0xff] %v7867_v53  ;;  %2660 = vadd.xlane.f32.xlu1 %v2659_v41  ;;  %v7878_v19 = vpop.eup %5435  ;;  %v1695_v0 = vmax.f32 %v1694_v23, %v7851_v47  ;;  %v7883_v36 = vadd.f32 %v11042_v18, %v6410_v50  ;;  %v11044_v41 = vld [vmem:[#allocation26_spill] sm:$0xff]  ;;  %v7891_v26 = vadd.f32 %v11046_v49, %v6403_v45  ;;  %v7901_v29 = vpop.f32.mrb[111].mxu0 }
 0x245   : > { %11040 = vst [vmem:[#allocation24_spill] sm:$0xff] %v7874_v61  ;;  %11041 = vst [vmem:[#allocation192_spill] sm:$0xff] %v7878_v19  ;;  %1687 = vmax.xlane.f32.xlu0 %v1686_v48  ;;  %v7887_v55 = vadd.f32 %v11044_v41, %v6397_v42  ;;  %v7895_v28 = vpop.eup %5437  ;;  %v2664_v48 = vadd.f32 %v7857_v5, %v2663_v63  ;;  %v2668_v23 = vadd.f32 %v7864_v43, %v2667_v8  ;;  %v7903_v58 = vpop.f32.mrb[108].mxu1  ;;  %v11051_v63 = vld [vmem:[#allocation171_spill] sm:$0xff] }
 0x246   : > { %11043 = vst [vmem:[#allocation21_spill] sm:$0xff] %v7883_v36  ;;  %11047 = vst [vmem:[#allocation30_spill] sm:$0xff] %v7891_v26  ;;  %v2672_v18 = vadd.f32 %v7878_v19, %v7867_v53  ;;  %v7905_v41 = vpop.eup %5439  ;;  %5449 = vpow2.f32 %v2240_v51  ;;  %v7907_v49 = vpop.f32.mrb[109].mxu1  ;;  %v1700_v12 = vmax.f32 %v1699_v35, %v7874_v61  ;;  %v7914_v8 = vadd.f32 %v11051_v63, %v6410_v50  ;;  %v11053_v53 = vld [vmem:[#allocation29_spill] sm:$0xff]  ;;  %v11057_v63 = vld [vmem:[#allocation27_spill] sm:$0xff] }
 0x247   : > { %11045 = vst [vmem:[#allocation26_spill] sm:$0xff] %v7887_v55  ;;  %11048 = vst [vmem:[#allocation193_spill] sm:$0xff] %v7895_v28  ;;  %v7909_v47 = vpop.eup %5441  ;;  %v7918_v19 = vadd.f32 %v11053_v53, %v6397_v42  ;;  %v7922_v43 = vadd.f32 %v7384_v9, %v6403_v45  ;;  %v7924_v51 = vpop.f32.mrb[110].mxu1  ;;  %v1696_v35 = vmax.f32 %v1695_v0, %v7883_v36 }
 0x248   : > { %11049 = vst [vmem:[#allocation194_spill] sm:$0xff] %v7905_v41  ;;  %11050 = vst [vmem:[#allocation195_spill] sm:$0xff] %v7909_v47  ;;  %1692 = vmax.xlane.f32.xlu1 %v1691_v15  ;;  %v7926_v5 = vpop.eup %5443  ;;  %v1704_v15 = vmax.f32 %v7887_v55, %v7891_v26  ;;  %v7933_v61 = vadd.f32 %v11057_v63, %v6401_v44  ;;  %v2673_v53 = vadd.f32 %v7905_v41, %v2672_v18  ;;  %v7939_v10 = vpop.f32.mrb[111].mxu1 }
 0x249   : > { %11052 = vst [vmem:[#allocation171_spill] sm:$0xff] %v7914_v8  ;;  %11054 = vst [vmem:[#allocation29_spill] sm:$0xff] %v7918_v19  ;;  %2665 = vadd.xlane.f32.xlu0 %v2664_v48  ;;  %v2669_v34 = vadd.f32 %v7895_v28, %v2668_v23  ;;  %v2677_v9 = vadd.f32 %v7926_v5, %v7909_v47  ;;  %v7941_v46 = vpop.f32.mrb[112].mxu0  ;;  %v7943_v48 = vpop.eup %5445  ;;  %v1709_v0 = vmax.f32 %v7918_v19, %v7922_v43  ;;  %v11062_v47 = vld [vmem:[#allocation31_spill] sm:$0xff] }
 0x24a   : > { %11055 = vst [vmem:[#allocation196_spill] sm:$0xff] %v7922_v43  ;;  %11056 = vst [vmem:[#allocation197_spill] sm:$0xff] %v7926_v5  ;;  %v1701_v63 = vmax.f32 %v1700_v12, %v7914_v8  ;;  %v7950_v18 = vadd.f32 %v7386_v37, %v6401_v44  ;;  %v7952_v23 = vpop.eup %5447  ;;  %v1705_v41 = vmax.f32 %v1704_v15, %v7933_v61  ;;  %v7961_v43 = vpop.f32.mrb[113].mxu0 }
 0x24b   : > { %11058 = vst [vmem:[#allocation27_spill] sm:$0xff] %v7933_v61  ;;  %11059 = vst [vmem:[#allocation198_spill] sm:$0xff] %v7943_v48  ;;  %v7957_v5 = vadd.f32 %v11062_v47, %v6410_v50  ;;  %v2678_v28 = vadd.f32 %v7952_v23, %v2677_v9  ;;  %v7966_v37 = vadd.f32 %v7392_v2, %v6410_v50  ;;  %v7972_v19 = vpop.f32.mrb[114].mxu0 }
 0x24c   : > { %2670 = vadd.xlane.f32.xlu1 %v2669_v34  ;;  %11060 = vst [vmem:[#allocation199_spill] sm:$0xff] %v7950_v18  ;;  %11061 = vst [vmem:[#allocation200_spill] sm:$0xff] %v7952_v23  ;;  %v2674_v34 = vadd.f32 %v7943_v48, %v2673_v53  ;;  %v1710_v12 = vmax.f32 %v1709_v0, %v7950_v18  ;;  %v7975_v9 = vpop.f32.mrb[115].mxu0  ;;  %v8009_v18 = vadd.f32 %v7584_v57, %v6403_v45 }
 0x24d   : > { %1697 = vmax.xlane.f32.xlu0 %v1696_v35  ;;  %11063 = vst [vmem:[#allocation31_spill] sm:$0xff] %v7957_v5  ;;  %11064 = vst [vmem:[#allocation201_spill] sm:$0xff] %v7966_v37  ;;  %v1706_v15 = vmax.f32 %v1705_v41, %v7957_v5  ;;  %v7985_v41 = vpop.f32.mrb[116].mxu0  ;;  %v8013_v5 = vadd.f32 %v7594_v11, %v6397_v42  ;;  %v8017_v61 = vadd.f32 %v7602_v33, %v6403_v45 }
 0x24e   : > { %v1711_v53 = vmax.f32 %v1710_v12, %v7966_v37  ;;  %11067 = vst [vmem:[#allocation204_spill] sm:$0xff] %v8009_v18  ;;  %v8029_v57 = vadd.f32 %v7596_v3, %v6401_v44  ;;  %v8033_v11 = vadd.f32 %v7617_v13, %v6401_v44  ;;  %v8051_v3 = vadd.f32 %v7666_v59, %v6397_v42 }
 0x24f   : > { %11068 = vst [vmem:[#allocation205_spill] sm:$0xff] %v8013_v5  ;;  %11069 = vst [vmem:[#allocation206_spill] sm:$0xff] %v8017_v61  ;;  %v1719_v8 = vmax.f32 %v8013_v5, %v8017_v61  ;;  %v8047_v61 = vadd.f32 %v7660_v31, %v6403_v45  ;;  %v8055_v13 = vadd.f32 %v7673_v54, %v6403_v45 }
 0x250   : > { %1702 = vmax.xlane.f32.xlu1 %v1701_v63  ;;  %v7968_v35 = vpop.eup %5449  ;;  %v7977_v63 = vpop.f32.mrb[112].mxu1  ;;  %11070 = vst [vmem:[#allocation207_spill] sm:$0xff] %v8029_v57  ;;  %11071 = vst [vmem:[#allocation208_spill] sm:$0xff] %v8033_v11  ;;  %v8071_v59 = vadd.f32 %v7648_v17, %v6410_v50  ;;  %v8077_v54 = vadd.f32 %v7728_v27, %v6397_v42 }
 0x251   : > { %11065 = vst [vmem:[#allocation202_spill] sm:$0xff] %v7968_v35  ;;  %2675 = vadd.xlane.f32.xlu0 %v2674_v34  ;;  %v2679_v47 = vadd.f32 %v7968_v35, %v2678_v28  ;;  %v7979_v0 = vpop.f32.mrb[113].mxu1  ;;  %v7987_v28 = vpop.f32.mrb[117].mxu0  ;;  %11073 = vst [vmem:[#allocation210_spill] sm:$0xff] %v8047_v61  ;;  %v8067_v31 = vmax.f32 %v1719_v8, %v8033_v11  ;;  %v8089_v8 = vadd.f32 %v7787_v20, %v6403_v45 }
 0x252   : > { %v7981_v2 = vpop.f32.mrb[114].mxu1  ;;  %v7989_v23 = vpop.f32.mrb[118].mxu0  ;;  %11074 = vst [vmem:[#allocation211_spill] sm:$0xff] %v8051_v3  ;;  %11075 = vst [vmem:[#allocation212_spill] sm:$0xff] %v8055_v13  ;;  %v1729_v27 = vmax.f32 %v8051_v3, %v8055_v13  ;;  %v8107_v20 = vadd.f32 %v7687_v1, %v6410_v50 }
 0x253   : > { %v7983_v34 = vpop.f32.mrb[115].mxu1  ;;  %11076 = vst [vmem:[#allocation213_spill] sm:$0xff] %v8077_v54  ;;  %11079 = vst [vmem:[#allocation216_spill] sm:$0xff] %v8089_v8 }
 0x254   : > { %2680 = vadd.xlane.f32.xlu1 %v2679_v47  ;;  %v7991_v47 = vpop.f32.mrb[119].mxu0  ;;  %v7993_v12 = vpop.f32.mrb[116].mxu1 }
 0x255   : > { %1707 = vmax.xlane.f32.xlu0 %v1706_v15  ;;  %v7995_v35 = vpop.f32.mrb[117].mxu1  ;;  %v8001_v37 = vpop.f32.mrb[120].mxu0 }
 0x256   : > { %v7997_v15 = vpop.f32.mrb[118].mxu1  ;;  %v8019_v26 = vpop.f32.mrb[121].mxu0 }
 0x257   : > { %v7999_v48 = vpop.f32.mrb[119].mxu1  ;;  %v8021_v55 = vpop.f32.mrb[122].mxu0 }
 0x258   : > { %1712 = vmax.xlane.f32.xlu1 %v1711_v53  ;;  %v8005_v53 = vadd.f32 %v7574_v38, %v6397_v42  ;;  %v8035_v33 = vpop.f32.mrb[123].mxu0  ;;  %v8037_v36 = vpop.f32.mrb[120].mxu1 }
 0x259   : > { %v8039_v24 = vpop.f32.mrb[121].mxu1  ;;  %v8091_v17 = vpop.f32.mrb[124].mxu0 }
 0x25a   : > { %11066 = vst [vmem:[#allocation203_spill] sm:$0xff] %v8005_v53  ;;  %v1714_v38 = vmax.f32 %v8005_v53, %v8009_v18  ;;  %v8043_v18 = vadd.f32 %v7650_v56, %v6397_v42  ;;  %v8057_v5 = vpop.f32.mrb[122].mxu1  ;;  %v8064_v56 = vadd.f32 %v7604_v6, %v6410_v50  ;;  %v8085_v6 = vadd.f32 %v7774_v40, %v6397_v42  ;;  %v1114_v32 = vpop.f32.mrb[125].mxu0 }
 0x25b   : > { %v8073_v25 = vpop.f32.mrb[123].mxu1  ;;  %v8103_v40 = vadd.f32 %v7694_v30, %v6401_v44  ;;  %v8121_v30 = vadd.f32 %v7807_v14, %v6401_v44  ;;  %v8141_v14 = vadd.f32 %v7862_v21, %v6403_v45  ;;  %v8161_v21 = vadd.f32 %v7972_v19, %v6397_v42 }
 0x25c   : > { %11072 = vst [vmem:[#allocation209_spill] sm:$0xff] %v8043_v18  ;;  %v8060_v53 = vmax.f32 %v1714_v38, %v8029_v57  ;;  %v8081_v38 = vadd.f32 %v7737_v4, %v6403_v45  ;;  %11078 = vst [vmem:[#allocation215_spill] sm:$0xff] %v8085_v6  ;;  %v1724_v11 = vmax.f32 %v8043_v18, %v8047_v61 }
 0x25d   : > { %v8099_v4 = vadd.f32 %v7675_v22, %v6401_v44  ;;  %11081 = vst [vmem:[#allocation218_spill] sm:$0xff] %v8103_v40  ;;  %v1739_v13 = vmax.f32 %v8085_v6, %v8089_v8  ;;  %v8117_v22 = vadd.f32 %v7789_v62, %v6401_v44  ;;  %11083 = vst [vmem:[#allocation220_spill] sm:$0xff] %v8121_v30 }
 0x25e   : > { %11077 = vst [vmem:[#allocation214_spill] sm:$0xff] %v8081_v38  ;;  %v1734_v61 = vmax.f32 %v8077_v54, %v8081_v38  ;;  %v8127_v57 = vmax.f32 %v1729_v27, %v8103_v40  ;;  %v8131_v38 = vadd.f32 %v7721_v39, %v6410_v50  ;;  %v8137_v62 = vadd.f32 %v7834_v7, %v6397_v42  ;;  %v1116_v39 = vpop.f32.mrb[126].mxu0 }
 0x25f   : > { %11080 = vst [vmem:[#allocation217_spill] sm:$0xff] %v8099_v4  ;;  %11082 = vst [vmem:[#allocation219_spill] sm:$0xff] %v8117_v22  ;;  %v8124_v1 = vmax.f32 %v1724_v11, %v8099_v4  ;;  %v8145_v11 = vadd.f32 %v7893_v16, %v6397_v42  ;;  %v8149_v27 = vadd.f32 %v7901_v29, %v6403_v45  ;;  %v1118_v6 = vpop.f32.mrb[127].mxu0  ;;  %v1465_v29 = vpop.f32.mrb[124].mxu1 }
 0x260   : > { %11084 = vst [vmem:[#allocation221_spill] sm:$0xff] %v8137_v62  ;;  %11085 = vst [vmem:[#allocation222_spill] sm:$0xff] %v8141_v14  ;;  %v8153_v8 = vadd.f32 %v7941_v46, %v6397_v42  ;;  %v8157_v7 = vadd.f32 %v7961_v43, %v6403_v45  ;;  %v8165_v16 = vadd.f32 %v7975_v9, %v6403_v45  ;;  %v8181_v40 = vpop.f32.mrb[125].mxu1 }
 0x261   : > { %11086 = vst [vmem:[#allocation223_spill] sm:$0xff] %v8145_v11  ;;  %11087 = vst [vmem:[#allocation224_spill] sm:$0xff] %v8149_v27  ;;  %v8168_v54 = vmax.f32 %v1734_v61, %v8117_v22  ;;  %v8172_v46 = vadd.f32 %v7795_v52, %v6410_v50  ;;  %v8175_v43 = vmax.f32 %v1739_v13, %v8121_v30  ;;  %v1469_v13 = vpop.f32.mrb[126].mxu1 }
 0x262   : > { %11088 = vst [vmem:[#allocation225_spill] sm:$0xff] %v8153_v8  ;;  %11089 = vst [vmem:[#allocation226_spill] sm:$0xff] %v8157_v7  ;;  %v8179_v19 = vadd.f32 %v7824_v60, %v6410_v50  ;;  %v8189_v22 = vadd.f32 %v7985_v41, %v6397_v42  ;;  %v8193_v52 = vadd.f32 %v7987_v28, %v6403_v45 }
 0x263   : > { %11090 = vst [vmem:[#allocation227_spill] sm:$0xff] %v8161_v21  ;;  %11091 = vst [vmem:[#allocation228_spill] sm:$0xff] %v8165_v16  ;;  %v1744_v60 = vmax.f32 %v8137_v62, %v8141_v14  ;;  %v1749_v30 = vmax.f32 %v8145_v11, %v8149_v27  ;;  %v8201_v9 = vadd.f32 %v7903_v58, %v6401_v44  ;;  %v8219_v58 = vpop.f32.mrb[127].mxu1  ;;  %v11147_v62 = vld [vmem:[#allocation163_spill] sm:$0xff] }
 0x264   : > { %11092 = vst [vmem:[#allocation229_spill] sm:$0xff] %v8189_v22  ;;  %11093 = vst [vmem:[#allocation230_spill] sm:$0xff] %v8193_v52  ;;  %v8205_v61 = vadd.f32 %v7924_v51, %v6401_v44  ;;  %v1754_v41 = vmax.f32 %v8153_v8, %v8157_v7  ;;  %v1759_v28 = vmax.f32 %v8161_v21, %v8165_v16 }
 0x265   : > { %11094 = vst [vmem:[#allocation231_spill] sm:$0xff] %v8201_v9  ;;  %v8213_v14 = vadd.f32 %v7977_v63, %v6401_v44  ;;  %v8217_v27 = vadd.f32 %v7981_v2, %v6401_v44  ;;  %v8223_v51 = vadd.f32 %v7907_v49, %v6410_v50  ;;  %v8229_v16 = vadd.f32 %v7939_v10, %v6410_v50 }
 0x266   : > { %11095 = vst [vmem:[#allocation232_spill] sm:$0xff] %v8205_v61  ;;  %v1764_v2 = vmax.f32 %v8189_v22, %v8193_v52  ;;  %v8237_v21 = vadd.f32 %v7989_v23, %v6397_v42  ;;  %v8241_v49 = vadd.f32 %v7991_v47, %v6403_v45  ;;  %v8245_v7 = vadd.f32 %v7993_v12, %v6401_v44 }
 0x267   : > { %11096 = vst [vmem:[#allocation233_spill] sm:$0xff] %v8213_v14  ;;  %11097 = vst [vmem:[#allocation234_spill] sm:$0xff] %v8217_v27  ;;  %v8248_v10 = vmax.f32 %v1744_v60, %v8201_v9  ;;  %v8251_v63 = vmax.f32 %v1749_v30, %v8205_v61  ;;  %v8255_v52 = vadd.f32 %v8001_v37, %v6397_v42 }
 0x268   : > { %11098 = vst [vmem:[#allocation235_spill] sm:$0xff] %v8237_v21  ;;  %11099 = vst [vmem:[#allocation236_spill] sm:$0xff] %v8241_v49  ;;  %v8259_v23 = vadd.f32 %v8019_v26, %v6403_v45  ;;  %v8262_v47 = vmax.f32 %v1754_v41, %v8213_v14  ;;  %v8266_v12 = vadd.f32 %v7979_v0, %v6410_v50 }
 0x269   : > { %11100 = vst [vmem:[#allocation237_spill] sm:$0xff] %v8245_v7  ;;  %11101 = vst [vmem:[#allocation238_spill] sm:$0xff] %v8255_v52  ;;  %v8269_v60 = vmax.f32 %v1759_v28, %v8217_v27  ;;  %v8273_v30 = vadd.f32 %v7983_v34, %v6410_v50  ;;  %v8277_v37 = vadd.f32 %v8021_v55, %v6397_v42 }
 0x26a   : > { %11102 = vst [vmem:[#allocation239_spill] sm:$0xff] %v8259_v23  ;;  %v8281_v26 = vadd.f32 %v8035_v33, %v6403_v45  ;;  %v8285_v41 = vadd.f32 %v8091_v17, %v6397_v42  ;;  %v8288_v0 = vadd.f32 %v1114_v32, %v6403_v45  ;;  %v1769_v28 = vmax.f32 %v8237_v21, %v8241_v49  ;;  %v11118_v21 = vld [vmem:[#allocation101_spill] sm:$0xff] }
 0x26b   : > { %11103 = vst [vmem:[#allocation240_spill] sm:$0xff] %v8277_v37  ;;  %v8293_v34 = vmax.f32 %v1764_v2, %v8245_v7  ;;  %v8297_v55 = vadd.f32 %v7995_v35, %v6410_v50  ;;  %v8301_v33 = vadd.f32 %v7997_v15, %v6401_v44  ;;  %v1774_v17 = vmax.f32 %v8255_v52, %v8259_v23 }
 0x26c   : > { %11104 = vst [vmem:[#allocation241_spill] sm:$0xff] %v8281_v26  ;;  %11105 = vst [vmem:[#allocation242_spill] sm:$0xff] %v8285_v41  ;;  %v8307_v32 = vadd.f32 %v8037_v36, %v6401_v44  ;;  %v8310_v49 = vadd.f32 %v1116_v39, %v6397_v42  ;;  %v8313_v2 = vadd.f32 %v1118_v6, %v6403_v45 }
 0x26d   : > { %11106 = vst [vmem:[#allocation243_spill] sm:$0xff] %v8288_v0  ;;  %11107 = vst [vmem:[#allocation244_spill] sm:$0xff] %v8301_v33  ;;  %v1779_v36 = vmax.f32 %v8277_v37, %v8281_v26  ;;  %v8325_v42 = vadd.f32 %v8057_v5, %v6401_v44  ;;  %v1784_v45 = vmax.f32 %v8285_v41, %v8288_v0  ;;  %v11115_v41 = vld [vmem:[#allocation90_spill] sm:$0xff]  ;;  %v11116_v37 = vld [vmem:[#allocation91_spill] sm:$0xff] }
 0x26e   : > { %11108 = vst [vmem:[#allocation245_spill] sm:$0xff] %v8307_v32  ;;  %11109 = vst [vmem:[#allocation246_spill] sm:$0xff] %v8310_v49  ;;  %v8330_v6 = vadd.f32 %v1465_v29, %v6401_v44  ;;  %v8333_v35 = vmax.f32 %v1769_v28, %v8301_v33  ;;  %v8337_v23 = vadd.f32 %v7999_v48, %v6410_v50  ;;  %v11117_v33 = vld [vmem:[#allocation96_spill] sm:$0xff] }
 0x26f   : > { %11110 = vst [vmem:[#allocation247_spill] sm:$0xff] %v8313_v2  ;;  %11111 = vst [vmem:[#allocation248_spill] sm:$0xff] %v8325_v42  ;;  %v8344_v0 = vmax.f32 %v1774_v17, %v8307_v32  ;;  %v1789_v29 = vmax.f32 %v8310_v49, %v8313_v2  ;;  %v8349_v28 = vadd.f32 %v1469_v13, %v6401_v44  ;;  %v11126_v32 = vld [vmem:[#allocation97_spill] sm:$0xff] }
 0x270   : > { %11112 = vst [vmem:[#allocation249_spill] sm:$0xff] %v8330_v6  ;;  %v8357_v5 = vadd.f32 %v8039_v24, %v6410_v50  ;;  %v8360_v17 = vmax.f32 %v1779_v36, %v8325_v42  ;;  %v8364_v2 = vadd.f32 %v8073_v25, %v6410_v50  ;;  %v8367_v44 = vmax.f32 %v1784_v45, %v8330_v6  ;;  %v11125_v36 = vld [vmem:[#allocation93_spill] sm:$0xff]  ;;  %v11127_v45 = vld [vmem:[#allocation102_spill] sm:$0xff] }
 0x271   : > { %11113 = vst [vmem:[#allocation250_spill] sm:$0xff] %v8344_v0  ;;  %11114 = vst [vmem:[#allocation251_spill] sm:$0xff] %v8349_v28 }
 0x272   : > { %11119 = vst [vmem:[#allocation90_spill] sm:$0xff] %v8357_v5  ;;  %11120 = vst [vmem:[#allocation91_spill] sm:$0xff] %v8360_v17 }
 0x273   : > { %11121 = vst [vmem:[#allocation96_spill] sm:$0xff] %v8364_v2  ;;  %11122 = vst [vmem:[#allocation101_spill] sm:$0xff] %v8367_v44 }
 0x27c   : > { %v2566_v22 = vpop.xlane.xlu0 %2565 }
 0x27d   : > { %5451 = vrcp.f32 %v2566_v22 }
 0x27f   : > { %v2571_v39 = vpop.xlane.xlu1 %2570 }
 0x280   : > { %5453 = vrcp.f32 %v2571_v39  ;;  %v1598_v26 = vpop.xlane.xlu0 %1597 }
 0x281   : > { %v1890_v48 = vsub.f32 %v11115_v41, %v1598_v26  ;;  %v1891_v52 = vsub.f32 %v11116_v37, %v1598_v26  ;;  %v1892_v15 = vsub.f32 %v11117_v33, %v1598_v26  ;;  %v1893_v7 = vsub.f32 %v11118_v21, %v1598_v26  ;;  %v11124_v26 = vld [vmem:[#allocation92_spill] sm:$0xff] }
 0x282   : > { %v8371_v21 = vadd.f32 %v8181_v40, %v6410_v50 }
 0x283   : > { %v2242_v13 = vmul.f32 1.442695, %v1890_v48  ;;  %v2244_v37 = vmul.f32 1.442695, %v1891_v52  ;;  %v2246_v41 = vmul.f32 1.442695, %v1892_v15  ;;  %v8382_v15 = vmax.f32 %v1789_v29, %v8349_v28 }
 0x284   : > { %11123 = vst [vmem:[#allocation252_spill] sm:$0xff] %v8371_v21  ;;  %v2248_v24 = vmul.f32 1.442695, %v1893_v7  ;;  %v8376_v25 = vpop.xlane.xlu0 %2575  ;;  %v8386_v48 = vadd.f32 %v8219_v58, %v6410_v50  ;;  %v11130_v58 = vld [vmem:[#allocation94_spill] sm:$0xff] }
 0x285   : > { %5455 = vpow2.f32 %v2242_v13  ;;  %11128 = vst [vmem:[#allocation92_spill] sm:$0xff] %v8382_v15  ;;  %v11133_v13 = vld [vmem:[#allocation105_spill] sm:$0xff] }
 0x286   : > { %5457 = vpow2.f32 %v2244_v37  ;;  %11129 = vst [vmem:[#allocation93_spill] sm:$0xff] %v8386_v48  ;;  %v11152_v15 = vld [vmem:[#allocation109_spill] sm:$0xff] }
 0x287   : > { %v1603_v33 = vpop.xlane.xlu1 %1602  ;;  %5459 = vpow2.f32 %v2246_v41 }
 0x288   : > { %v1894_v49 = vsub.f32 %v11124_v26, %v1603_v33  ;;  %v1895_v42 = vsub.f32 %v11125_v36, %v1603_v33  ;;  %v1896_v27 = vsub.f32 %v11126_v32, %v1603_v33  ;;  %v1897_v6 = vsub.f32 %v11127_v45, %v1603_v33  ;;  %v5452_v26 = vpop.eup %5451  ;;  %v11132_v45 = vld [vmem:[#allocation100_spill] sm:$0xff] }
 0x289   : > { %v2946_v33 = vmul.f32 %v5452_v26, %v2566_v22  ;;  %5461 = vpow2.f32 %v2248_v24 }
 0x28a   : > { %v2250_v40 = vmul.f32 1.442695, %v1894_v49  ;;  %v2252_v7 = vmul.f32 1.442695, %v1895_v42  ;;  %v2254_v32 = vmul.f32 1.442695, %v1896_v27  ;;  %v5454_v28 = vpop.eup %5453 }
 0x28b   : > { %v8388_v36 = vpop.xlane.xlu1 %2580  ;;  %v2256_v49 = vmul.f32 1.442695, %v1897_v6  ;;  %v11131_v27 = vld [vmem:[#allocation95_spill] sm:$0xff]  ;;  %v3010_v14 = vsub.f32 2.0, %v2946_v33  ;;  %v2947_v6 = vmul.f32 %v5454_v28, %v2571_v39 }
 0x28c   : > { %5463 = vpow2.f32 %v2250_v40  ;;  %v11136_v39 = vld [vmem:[#allocation103_spill] sm:$0xff] }
 0x28d   : > { %v1608_v42 = vpop.xlane.xlu0 %1607  ;;  %5465 = vpow2.f32 %v2252_v7  ;;  %v8403_v29 = vmul.f32 %v5452_v26, %v3010_v14  ;;  %v3011_v33 = vsub.f32 2.0, %v2947_v6  ;;  %v11134_v7 = vld [vmem:[#allocation98_spill] sm:$0xff] }
 0x28e   : > { %v1898_v37 = vsub.f32 %v11130_v58, %v1608_v42  ;;  %v1899_v41 = vsub.f32 %v11131_v27, %v1608_v42  ;;  %v1900_v52 = vsub.f32 %v11132_v45, %v1608_v42  ;;  %v1901_v8 = vsub.f32 %v11133_v13, %v1608_v42  ;;  %v11135_v42 = vld [vmem:[#allocation99_spill] sm:$0xff]  ;;  %v11138_v26 = vld [vmem:[#allocation158_spill] sm:$0xff] }
 0x28f   : > { %5467 = vpow2.f32 %v2254_v32  ;;  %v1613_v40 = vpop.xlane.xlu1 %1612 }
 0x290   : > { %v2258_v24 = vmul.f32 1.442695, %v1898_v37  ;;  %v2260_v50 = vmul.f32 1.442695, %v1899_v41  ;;  %5469 = vpow2.f32 %v2256_v49  ;;  %v2262_v58 = vmul.f32 1.442695, %v1900_v52 }
 0x291   : > { %v2264_v27 = vmul.f32 1.442695, %v1901_v8  ;;  %v8405_v45 = vpop.xlane.xlu0 %2585  ;;  %5471 = vrcp.f32 %v8376_v25  ;;  %v1902_v13 = vsub.f32 %v11134_v7, %v1613_v40  ;;  %v1903_v61 = vsub.f32 %v11135_v42, %v1613_v40  ;;  %v11137_v37 = vld [vmem:[#allocation110_spill] sm:$0xff]  ;;  %v8415_v8 = vpop.eup %5455 }
 0x292   : > { %5473 = vrcp.f32 %v8388_v36  ;;  %v1904_v32 = vsub.f32 %v11136_v39, %v1613_v40  ;;  %v1905_v14 = vsub.f32 %v11137_v37, %v1613_v40  ;;  %v3139_v52 = vmul.f32 %v11138_v26, %v8403_v29  ;;  %11139 = vst [vmem:[#allocation97_spill] sm:$0xff] %v8415_v8  ;;  %v8421_v42 = vpop.eup %5457  ;;  %v11146_v26 = vld [vmem:[#allocation112_spill] sm:$0xff] }
 0x293   : > { %v8417_v49 = vmul.f32 %v5454_v28, %v3011_v33  ;;  %5475 = vpow2.f32 %v2258_v24  ;;  %v2266_v41 = vmul.f32 1.442695, %v1902_v13  ;;  %v2268_v6 = vmul.f32 1.442695, %v1903_v61  ;;  %v8419_v7 = vpop.xlane.xlu1 %2590  ;;  %v11140_v28 = vld [vmem:[#allocation12_spill] sm:$0xff]  ;;  %v8430_v24 = vpop.eup %5459  ;;  %v11142_v61 = vld [vmem:[#allocation106_spill] sm:$0xff] }
 0x294   : > { %5477 = vpow2.f32 %v2260_v50  ;;  %v2270_v22 = vmul.f32 1.442695, %v1904_v32  ;;  %v2272_v11 = vmul.f32 1.442695, %v1905_v14  ;;  %3395 = vst [vmem:[%s8425_s24 + $0x8] sm:$0xff] %v3139_v52  ;;  %v3141_v40 = vmul.f32 %v11140_v28, %v8403_v29  ;;  %11141 = vst [vmem:[#allocation102_spill] sm:$0xff] %v8430_v24  ;;  %v8435_v14 = vpop.eup %5461 }
 0x295   : > { %v1618_v39 = vpop.xlane.xlu0 %1617  ;;  %5479 = vpow2.f32 %v2262_v58  ;;  %v11143_v13 = vld [vmem:[#allocation107_spill] sm:$0xff]  ;;  %11145 = vst [vmem:[#allocation94_spill] sm:$0xff] %v8435_v14  ;;  %v3143_v3 = vmul.f32 %v11147_v62, %v8417_v49  ;;  %v11148_v28 = vld [vmem:[#allocation164_spill] sm:$0xff] }
 0x296   : > { %v1906_v33 = vsub.f32 %v11142_v61, %v1618_v39  ;;  %v1907_v37 = vsub.f32 %v11143_v13, %v1618_v39  ;;  %v11144_v50 = vld [vmem:[#allocation111_spill] sm:$0xff]  ;;  %5481 = vpow2.f32 %v2264_v27  ;;  %v1909_v9 = vsub.f32 %v11146_v26, %v1618_v39  ;;  %3397 = vst [vmem:[%s8425_s24 + $0x18] sm:$0xff] %v3141_v40  ;;  %v8443_v58 = vpop.eup %5463 }
 0x297   : > { %v1908_v32 = vsub.f32 %v11144_v50, %v1618_v39  ;;  %v3145_v4 = vmul.f32 %v11148_v28, %v8417_v49  ;;  %11149 = vst [vmem:[#allocation95_spill] sm:$0xff] %v8443_v58  ;;  %5483 = vpow2.f32 %v2266_v41  ;;  %v8445_v48 = vpop.eup %5465  ;;  %v11151_v39 = vld [vmem:[#allocation108_spill] sm:$0xff]  ;;  %3399 = vst [vmem:[%s8425_s24 + $0x28] sm:$0xff] %v3143_v3  ;;  %v11154_v41 = vld [vmem:[#allocation113_spill] sm:$0xff]  ;;  %v3651_v44 = vpack.c.bf16 %v3143_v3, %v3139_v52 }
 0x298   : > { %v2274_v61 = vmul.f32 1.442695, %v1906_v33  ;;  %v2276_v13 = vmul.f32 1.442695, %v1907_v37  ;;  %v1623_v18 = vpop.xlane.xlu1 %1622  ;;  %11150 = vst [vmem:[#allocation100_spill] sm:$0xff] %v8445_v48  ;;  %5485 = vpow2.f32 %v2268_v6  ;;  %v11155_v37 = vld [vmem:[#allocation122_spill] sm:$0xff] }
 0x299   : > { %v2278_v50 = vmul.f32 1.442695, %v1908_v32  ;;  %v2280_v27 = vmul.f32 1.442695, %v1909_v9  ;;  %v1910_v26 = vsub.f32 %v11151_v39, %v1623_v18  ;;  %v1911_v62 = vsub.f32 %v11152_v15, %v1623_v18  ;;  %v8449_v21 = vpop.xlane.xlu0 %2595  ;;  %3401 = vst [vmem:[%s8425_s24 + $0x38] sm:$0xff] %v3145_v4  ;;  %v8453_v28 = vpop.eup %5467  ;;  %4066 = vmatprep.mubr.bf16.mxu1 %v3651_v44  ;;  %v11158_v52 = vld [vmem:[#allocation162_spill] sm:$0xff] }
 0x29a   : > { %11153 = vst [vmem:[#allocation105_spill] sm:$0xff] %v8453_v28  ;;  %5487 = vpow2.f32 %v2270_v22  ;;  %v1912_v33 = vsub.f32 %v11154_v41, %v1623_v18  ;;  %v1913_v32 = vsub.f32 %v11155_v37, %v1623_v18  ;;  %v8457_v2 = vpop.eup %5469  ;;  %v3653_v39 = vpack.c.bf16 %v3145_v4, %v3141_v40  ;;  %v11157_v4 = vld [vmem:[#allocation157_spill] sm:$0xff] }
 0x29b   : > { %11156 = vst [vmem:[#allocation98_spill] sm:$0xff] %v8457_v2  ;;  %5489 = vpow2.f32 %v2272_v11  ;;  %v2282_v9 = vmul.f32 1.442695, %v1910_v26  ;;  %v2284_v6 = vmul.f32 1.442695, %v1911_v62  ;;  %v5472_v17 = vpop.eup %5471  ;;  %v2682_v22 = vadd.f32 %v8421_v42, %v8415_v8 }
 0x29c   : > { %5491 = vrcp.f32 %v8405_v45  ;;  %v2286_v15 = vmul.f32 1.442695, %v1912_v33  ;;  %v2288_v5 = vmul.f32 1.442695, %v1913_v32  ;;  %v8462_v0 = vpop.xlane.xlu1 %2600  ;;  %v5474_v18 = vpop.eup %5473  ;;  %v2948_v3 = vmul.f32 %v5472_v17, %v8376_v25  ;;  %4355 = vmatprep.mubr.bf16.mxu0 %v3653_v39  ;;  %v11160_v25 = vld [vmem:[#allocation160_spill] sm:$0xff] }
 0x29d   : > { %5493 = vrcp.f32 %v8419_v7  ;;  %v3138_v11 = vmul.f32 %v11157_v4, %v8403_v29  ;;  %v3142_v40 = vmul.f32 %v11158_v52, %v8417_v49  ;;  %v1628_v44 = vpop.xlane.xlu0 %1627  ;;  %v8470_v26 = vpop.eup %5475  ;;  %v2949_v62 = vmul.f32 %v5474_v18, %v8388_v36  ;;  %v11162_v4 = vld [vmem:[#allocation15_spill] sm:$0xff] }
 0x29e   : > { %11159 = vst [vmem:[#allocation99_spill] sm:$0xff] %v8470_v26  ;;  %5495 = vpow2.f32 %v2274_v61  ;;  %v2683_v41 = vadd.f32 %v8430_v24, %v2682_v22  ;;  %v3140_v33 = vmul.f32 %v11160_v25, %v8403_v29  ;;  %v8476_v37 = vpop.eup %5477  ;;  %v3012_v32 = vsub.f32 2.0, %v2948_v3  ;;  %v11164_v22 = vld [vmem:[#allocation114_spill] sm:$0xff] }
 0x29f   : > { %11161 = vst [vmem:[#allocation103_spill] sm:$0xff] %v8476_v37  ;;  %5497 = vpow2.f32 %v2276_v13  ;;  %3394 = vst [vmem:[%s8425_s24] sm:$0xff] %v3138_v11  ;;  %v3650_v39 = vpack.c.bf16 %v3142_v40, %v3138_v11  ;;  %v3144_v52 = vmul.f32 %v11162_v4, %v8417_v49  ;;  %v8482_v8 = vpop.eup %5479  ;;  %v3013_v36 = vsub.f32 2.0, %v2949_v62  ;;  %v11166_v11 = vld [vmem:[#allocation115_spill] sm:$0xff] }
 0x2a0   : > { %3398 = vst [vmem:[%s8425_s24 + $0x20] sm:$0xff] %v3142_v40  ;;  %11163 = vst [vmem:[#allocation110_spill] sm:$0xff] %v8482_v8  ;;  %5499 = vpow2.f32 %v2278_v50  ;;  %v2684_v61 = vadd.f32 %v8435_v14, %v2683_v41  ;;  %v1914_v29 = vsub.f32 %v11164_v22, %v1628_v44  ;;  %v8487_v25 = vpop.eup %5481  ;;  %v8489_v3 = vmul.f32 %v5472_v17, %v3012_v32  ;;  %v1633_v49 = vpop.xlane.xlu1 %1632  ;;  %v11168_v50 = vld [vmem:[#allocation125_spill] sm:$0xff]  ;;  %v11169_v22 = vld [vmem:[#allocation131_spill] sm:$0xff] }
 0x2a1   : > { %3396 = vst [vmem:[%s8425_s24 + $0x10] sm:$0xff] %v3140_v33  ;;  %11165 = vst [vmem:[#allocation158_spill] sm:$0xff] %v8487_v25  ;;  %5501 = vpow2.f32 %v2280_v27  ;;  %4067 = vmatmul.mubr.bf16.vlgmr.msra.gmra.mrb[128].mxu1 %v3650_v39  ;;  %v3652_v13 = vpack.c.bf16 %v3144_v52, %v3140_v33  ;;  %v1915_v40 = vsub.f32 %v11166_v11, %v1628_v44  ;;  %v8493_v4 = vpop.eup %5483  ;;  %v8511_v11 = vpop.xlane.xlu0 %2605 }
 0x2a2   : > { %3400 = vst [vmem:[%s8425_s24 + $0x30] sm:$0xff] %v3144_v52  ;;  %11167 = vst [vmem:[#allocation12_spill] sm:$0xff] %v8493_v4  ;;  %v8495_v62 = vmul.f32 %v5474_v18, %v3013_v36  ;;  %5503 = vpow2.f32 %v2282_v9  ;;  %2685 = vadd.xlane.f32.xlu0 %v2684_v61  ;;  %v1916_v41 = vsub.f32 %v11168_v50, %v1628_v44  ;;  %v8499_v14 = vpop.eup %5485  ;;  %v2290_v17 = vmul.f32 1.442695, %v1914_v29  ;;  %v11172_v9 = vld [vmem:[#allocation116_spill] sm:$0xff]  ;;  %v11174_v61 = vld [vmem:[#allocation117_spill] sm:$0xff] }
 0x2a3   : > { %v1917_v24 = vsub.f32 %v11169_v22, %v1628_v44  ;;  %11170 = vst [vmem:[#allocation106_spill] sm:$0xff] %v8499_v14  ;;  %5505 = vpow2.f32 %v2284_v6  ;;  %4356 = vmatmul.mubr.bf16.vlgmr.msra.gmra.mrb[128].mxu0 %v3652_v13  ;;  %v2292_v27 = vmul.f32 1.442695, %v1915_v40  ;;  %v2687_v33 = vadd.f32 %v8445_v48, %v8443_v58  ;;  %v11175_v13 = vld [vmem:[#allocation128_spill] sm:$0xff] }
 0x2a4   : > { %v8503_v32 = vpop.eup %5487  ;;  %5507 = vpow2.f32 %v2286_v15  ;;  %v2294_v18 = vmul.f32 1.442695, %v1916_v41  ;;  %v1918_v52 = vsub.f32 %v11172_v9, %v1633_v49  ;;  %v1919_v6 = vsub.f32 %v11174_v61, %v1633_v49  ;;  %v11177_v15 = vld [vmem:[#allocation132_spill] sm:$0xff] }
 0x2a5   : > { %11171 = vst [vmem:[#allocation107_spill] sm:$0xff] %v8503_v32  ;;  %v2296_v39 = vmul.f32 1.442695, %v1917_v24  ;;  %v8506_v36 = vpop.eup %5489  ;;  %5509 = vpow2.f32 %v2288_v5  ;;  %v2688_v44 = vadd.f32 %v8453_v28, %v2687_v33  ;;  %v1920_v29 = vsub.f32 %v11175_v13, %v1633_v49  ;;  %v11178_v5 = vld [vmem:[#allocation168_spill] sm:$0xff] }
 0x2a6   : > { %11173 = vst [vmem:[#allocation111_spill] sm:$0xff] %v8506_v36  ;;  %v5492_v40 = vpop.eup %5491  ;;  %5511 = vrcp.f32 %v8449_v21  ;;  %v11176_v24 = vmax.f32 %v8060_v53, %v8064_v56  ;;  %v1921_v50 = vsub.f32 %v11177_v15, %v1633_v49  ;;  %v2298_v41 = vmul.f32 1.442695, %v1918_v52 }
 0x2a7   : > { %v3147_v22 = vmul.f32 %v11178_v5, %v8489_v3  ;;  %v5494_v33 = vpop.eup %5493  ;;  %v2950_v9 = vmul.f32 %v5492_v40, %v8405_v45  ;;  %5513 = vrcp.f32 %v8462_v0  ;;  %v2689_v61 = vadd.f32 %v8457_v2, %v2688_v44  ;;  %v11181_v45 = vld [vmem:[#allocation170_spill] sm:$0xff]  ;;  %v11182_v44 = vld [vmem:[#allocation20_spill] sm:$0xff]  ;;  %v8533_v5 = vpop.xlane.xlu1 %2610 }
 0x2a8   : > { %1717 = vmax.xlane.f32.xlu0 %v11176_v24  ;;  %v2300_v13 = vmul.f32 1.442695, %v1919_v6  ;;  %v8523_v28 = vpop.eup %5495  ;;  %v2951_v58 = vmul.f32 %v5494_v33, %v8419_v7  ;;  %5515 = vpow2.f32 %v2290_v17  ;;  %v2302_v53 = vmul.f32 1.442695, %v1920_v29  ;;  %v11184_v29 = vld [vmem:[#allocation25_spill] sm:$0xff] }
 0x2a9   : > { %11179 = vst [vmem:[#allocation112_spill] sm:$0xff] %v8523_v28  ;;  %v2304_v24 = vmul.f32 1.442695, %v1921_v50  ;;  %3403 = vst [vmem:[%s8425_s24 + $0x48] sm:$0xff] %v3147_v22  ;;  %v8527_v49 = vpop.eup %5497  ;;  %v3014_v52 = vsub.f32 2.0, %v2950_v9  ;;  %5517 = vpow2.f32 %v2292_v27  ;;  %2690 = vadd.xlane.f32.xlu1 %v2689_v61  ;;  %v3151_v15 = vmul.f32 %v11181_v45, %v8495_v62 }
 0x2aa   : > { %11180 = vst [vmem:[#allocation163_spill] sm:$0xff] %v8527_v49  ;;  %v3149_v6 = vmul.f32 %v11182_v44, %v8489_v3  ;;  %v8535_v7 = vpop.eup %5499  ;;  %v3015_v17 = vsub.f32 2.0, %v2951_v58  ;;  %5519 = vpow2.f32 %v2294_v18  ;;  %v3153_v50 = vmul.f32 %v11184_v29, %v8495_v62  ;;  %v11186_v44 = vld [vmem:[#allocation166_spill] sm:$0xff]  ;;  %v1638_v58 = vpop.xlane.xlu0 %1637 }
 0x2ab   : > { %11183 = vst [vmem:[#allocation164_spill] sm:$0xff] %v8535_v7  ;;  %v2692_v27 = vadd.f32 %v8476_v37, %v8470_v26  ;;  %v8541_v9 = vpop.eup %5501  ;;  %v8543_v61 = vmul.f32 %v5492_v40, %v3014_v52  ;;  %5521 = vpow2.f32 %v2296_v39  ;;  %3407 = vst [vmem:[%s8425_s24 + $0x68] sm:$0xff] %v3151_v15  ;;  %v3655_v45 = vpack.c.bf16 %v3151_v15, %v3147_v22  ;;  %v11189_v22 = vld [vmem:[#allocation22_spill] sm:$0xff]  ;;  %v11191_v15 = vld [vmem:[#allocation23_spill] sm:$0xff] }
 0x2ac   : > { %11185 = vst [vmem:[#allocation108_spill] sm:$0xff] %v8541_v9  ;;  %3405 = vst [vmem:[%s8425_s24 + $0x58] sm:$0xff] %v3149_v6  ;;  %v3146_v2 = vmul.f32 %v11186_v44, %v8489_v3  ;;  %v8549_v18 = vpop.eup %5503  ;;  %v8551_v48 = vmul.f32 %v5494_v33, %v3015_v17  ;;  %5523 = vpow2.f32 %v2298_v41  ;;  %v3657_v29 = vpack.c.bf16 %v3153_v50, %v3149_v6  ;;  %v11190_v41 = vld [vmem:[#allocation169_spill] sm:$0xff] }
 0x2ad   : > { %11187 = vst [vmem:[#allocation109_spill] sm:$0xff] %v8549_v18  ;;  %3409 = vst [vmem:[%s8425_s24 + $0x78] sm:$0xff] %v3153_v50  ;;  %v2693_v26 = vadd.f32 %v8482_v8, %v2692_v27  ;;  %v8555_v40 = vpop.eup %5505  ;;  %5525 = vpow2.f32 %v2300_v13  ;;  %v11188_v39 = vmax.f32 %v8067_v31, %v8071_v59  ;;  %4074 = vmatprep.mubr.bf16.mxu1 %v3655_v45  ;;  %v11193_v13 = vld [vmem:[#allocation118_spill] sm:$0xff]  ;;  %v11194_v27 = vld [vmem:[#allocation119_spill] sm:$0xff] }
 0x2ae   : > { %v3150_v33 = vmul.f32 %v11189_v22, %v8495_v62  ;;  %3402 = vst [vmem:[%s8425_s24 + $0x40] sm:$0xff] %v3146_v2  ;;  %v3148_v52 = vmul.f32 %v11190_v41, %v8489_v3  ;;  %v3152_v6 = vmul.f32 %v11191_v15, %v8495_v62  ;;  %v8567_v17 = vpop.eup %5507  ;;  %5527 = vpow2.f32 %v2302_v53  ;;  %4363 = vmatprep.mubr.bf16.mxu0 %v3657_v29  ;;  %v11195_v22 = vld [vmem:[#allocation129_spill] sm:$0xff]  ;;  %v1643_v41 = vpop.xlane.xlu1 %1642 }
 0x2af   : > { %1722 = vmax.xlane.f32.xlu1 %v11188_v39  ;;  %11192 = vst [vmem:[#allocation113_spill] sm:$0xff] %v8567_v17  ;;  %v2694_v31 = vadd.f32 %v8487_v25, %v2693_v26  ;;  %v1922_v50 = vsub.f32 %v11193_v13, %v1638_v58  ;;  %v1923_v45 = vsub.f32 %v11194_v27, %v1638_v58  ;;  %v8572_v44 = vpop.eup %5509  ;;  %5529 = vpow2.f32 %v2304_v24  ;;  %v11196_v26 = vld [vmem:[#allocation136_spill] sm:$0xff] }
 0x2b0   : > { %3406 = vst [vmem:[%s8425_s24 + $0x60] sm:$0xff] %v3150_v33  ;;  %v3654_v39 = vpack.c.bf16 %v3150_v33, %v3146_v2  ;;  %3404 = vst [vmem:[%s8425_s24 + $0x50] sm:$0xff] %v3148_v52  ;;  %v3656_v3 = vpack.c.bf16 %v3152_v6, %v3148_v52  ;;  %v1924_v62 = vsub.f32 %v11195_v22, %v1638_v58  ;;  %v5512_v15 = vpop.eup %5511  ;;  %5531 = vrcp.f32 %v8511_v11 }
 0x2b1   : > { %3408 = vst [vmem:[%s8425_s24 + $0x70] sm:$0xff] %v3152_v6  ;;  %2695 = vadd.xlane.f32.xlu0 %v2694_v31  ;;  %v1925_v53 = vsub.f32 %v11196_v26, %v1638_v58  ;;  %v2306_v29 = vmul.f32 1.442695, %v1922_v50  ;;  %v2308_v13 = vmul.f32 1.442695, %v1923_v45  ;;  %v5514_v27 = vpop.eup %5513  ;;  %v2952_v8 = vmul.f32 %v5512_v15, %v8449_v21  ;;  %v11198_v58 = vld [vmem:[#allocation120_spill] sm:$0xff]  ;;  %v8588_v50 = vpop.xlane.xlu0 %2615 }
 0x2b2   : > { %4075 = vmatmul.mubr.bf16.gmra.mrb[132].mxu1 %v3654_v39  ;;  %4364 = vmatmul.mubr.bf16.gmra.mrb[132].mxu0 %v3656_v3  ;;  %5533 = vrcp.f32 %v8533_v5  ;;  %v2310_v2 = vmul.f32 1.442695, %v1924_v62  ;;  %v2697_v24 = vadd.f32 %v8499_v14, %v8493_v4  ;;  %v8584_v33 = vpop.eup %5515  ;;  %v2953_v52 = vmul.f32 %v5514_v27, %v8462_v0  ;;  %v11199_v3 = vld [vmem:[#allocation121_spill] sm:$0xff] }
 0x2b3   : > { %11197 = vst [vmem:[#allocation122_spill] sm:$0xff] %v8584_v33  ;;  %5535 = vpow2.f32 %v2306_v29  ;;  %v2312_v6 = vmul.f32 1.442695, %v1925_v53  ;;  %v1926_v31 = vsub.f32 %v11198_v58, %v1643_v41  ;;  %v8590_v45 = vpop.eup %5517  ;;  %v3016_v21 = vsub.f32 2.0, %v2952_v8  ;;  %v11202_v53 = vld [vmem:[#allocation130_spill] sm:$0xff]  ;;  %v11203_v58 = vld [vmem:[#allocation137_spill] sm:$0xff] }
 0x2b4   : > { %5537 = vpow2.f32 %v2308_v13  ;;  %v2698_v39 = vadd.f32 %v8503_v32, %v2697_v24  ;;  %v1927_v22 = vsub.f32 %v11199_v3, %v1643_v41  ;;  %v8594_v62 = vpop.eup %5519  ;;  %v3017_v26 = vsub.f32 2.0, %v2953_v52  ;;  %v8606_v3 = vpop.xlane.xlu1 %2620 }
 0x2b5   : > { %11200 = vst [vmem:[#allocation157_spill] sm:$0xff] %v8594_v62  ;;  %5539 = vpow2.f32 %v2310_v2  ;;  %v11201_v0 = vmax.f32 %v8124_v1, %v8107_v20  ;;  %v1928_v29 = vsub.f32 %v11202_v53, %v1643_v41  ;;  %v1929_v4 = vsub.f32 %v11203_v58, %v1643_v41  ;;  %v8601_v14 = vpop.eup %5521  ;;  %v11211_v58 = vld [vmem:[#allocation172_spill] sm:$0xff] }
 0x2b6   : > { %v8603_v8 = vmul.f32 %v5512_v15, %v3016_v21  ;;  %5541 = vpow2.f32 %v2312_v6  ;;  %v2699_v13 = vadd.f32 %v8506_v36, %v2698_v39  ;;  %v2314_v24 = vmul.f32 1.442695, %v1926_v31  ;;  %v8608_v52 = vpop.eup %5523  ;;  %v11206_v15 = vld [vmem:[#allocation173_spill] sm:$0xff]  ;;  %v11208_v39 = vld [vmem:[#allocation28_spill] sm:$0xff] }
 0x2b7   : > { %1727 = vmax.xlane.f32.xlu0 %v11201_v0  ;;  %11204 = vst [vmem:[#allocation162_spill] sm:$0xff] %v8608_v52  ;;  %v8610_v2 = vmul.f32 %v5514_v27, %v3017_v26  ;;  %v2316_v1 = vmul.f32 1.442695, %v1927_v22  ;;  %v2318_v0 = vmul.f32 1.442695, %v1928_v29  ;;  %v8612_v41 = vpop.eup %5525  ;;  %v3155_v6 = vmul.f32 %v11206_v15, %v8543_v61  ;;  %v11207_v31 = vld [vmem:[#allocation177_spill] sm:$0xff] }
 0x2b8   : > { %v2320_v53 = vmul.f32 1.442695, %v1929_v4  ;;  %11205 = vst [vmem:[#allocation160_spill] sm:$0xff] %v8612_v41  ;;  %2700 = vadd.xlane.f32.xlu1 %v2699_v13  ;;  %5543 = vpow2.f32 %v2314_v24  ;;  %v3159_v21 = vmul.f32 %v11207_v31, %v8551_v48  ;;  %v3157_v27 = vmul.f32 %v11208_v39, %v8543_v61  ;;  %v8620_v26 = vpop.eup %5527  ;;  %v11210_v4 = vld [vmem:[#allocation32_spill] sm:$0xff]  ;;  %v1648_v24 = vpop.xlane.xlu0 %1647 }
 0x2b9   : > { %11209 = vst [vmem:[#allocation15_spill] sm:$0xff] %v8620_v26  ;;  %5545 = vpow2.f32 %v2316_v1  ;;  %v3161_v22 = vmul.f32 %v11210_v4, %v8551_v48  ;;  %v2702_v29 = vadd.f32 %v8527_v49, %v8523_v28  ;;  %v3154_v13 = vmul.f32 %v11211_v58, %v8543_v61  ;;  %v8628_v15 = vpop.eup %5529  ;;  %3411 = vst [vmem:[%s8425_s24 + $0x88] sm:$0xff] %v3155_v6  ;;  %v11213_v1 = vld [vmem:[#allocation176_spill] sm:$0xff]  ;;  %v11214_v4 = vld [vmem:[#allocation175_spill] sm:$0xff] }
 0x2ba   : > { %11212 = vst [vmem:[#allocation114_spill] sm:$0xff] %v8628_v15  ;;  %5547 = vpow2.f32 %v2318_v0  ;;  %3415 = vst [vmem:[%s8425_s24 + $0xa8] sm:$0xff] %v3159_v21  ;;  %v3659_v31 = vpack.c.bf16 %v3159_v21, %v3155_v6  ;;  %v3158_v39 = vmul.f32 %v11213_v1, %v8551_v48  ;;  %v3156_v28 = vmul.f32 %v11214_v4, %v8543_v61  ;;  %v5532_v49 = vpop.eup %5531  ;;  %v11215_v0 = vld [vmem:[#allocation178_spill] sm:$0xff] }
 0x2bb   : > { %3413 = vst [vmem:[%s8425_s24 + $0x98] sm:$0xff] %v3157_v27  ;;  %5549 = vpow2.f32 %v2320_v53  ;;  %3417 = vst [vmem:[%s8425_s24 + $0xb8] sm:$0xff] %v3161_v22  ;;  %v3661_v58 = vpack.c.bf16 %v3161_v22, %v3157_v27  ;;  %v2703_v32 = vadd.f32 %v8535_v7, %v2702_v29  ;;  %v3160_v6 = vmul.f32 %v11215_v0, %v8551_v48  ;;  %v11217_v53 = vld [vmem:[#allocation123_spill] sm:$0xff]  ;;  %v1653_v22 = vpop.xlane.xlu1 %1652  ;;  %v11221_v0 = vld [vmem:[#allocation133_spill] sm:$0xff] }
 0x2bc   : > { %3410 = vst [vmem:[%s8425_s24 + $0x80] sm:$0xff] %v3154_v13  ;;  %v5534_v21 = vpop.eup %5533  ;;  %v2954_v36 = vmul.f32 %v5532_v49, %v8511_v11  ;;  %5551 = vrcp.f32 %v8588_v50  ;;  %v11216_v1 = vmax.f32 %v8127_v57, %v8131_v38  ;;  %4082 = vmatprep.mubr.bf16.mxu1 %v3659_v31  ;;  %3414 = vst [vmem:[%s8425_s24 + $0xa0] sm:$0xff] %v3158_v39  ;;  %v8670_v37 = vpop.xlane.xlu0 %2625 }
 0x2bd   : > { %v3658_v61 = vpack.c.bf16 %v3158_v39, %v3154_v13  ;;  %3412 = vst [vmem:[%s8425_s24 + $0x90] sm:$0xff] %v3156_v28  ;;  %v1930_v27 = vsub.f32 %v11217_v53, %v1648_v24  ;;  %v8650_v29 = vpop.eup %5535  ;;  %v2955_v48 = vmul.f32 %v5534_v21, %v8533_v5  ;;  %4371 = vmatprep.mubr.bf16.mxu0 %v3661_v58  ;;  %3416 = vst [vmem:[%s8425_s24 + $0xb0] sm:$0xff] %v3160_v6  ;;  %v11220_v13 = vld [vmem:[#allocation124_spill] sm:$0xff]  ;;  %v11222_v53 = vld [vmem:[#allocation139_spill] sm:$0xff] }
 0x2be   : > { %1732 = vmax.xlane.f32.xlu1 %v11216_v1  ;;  %11218 = vst [vmem:[#allocation115_spill] sm:$0xff] %v8650_v29  ;;  %v2704_v11 = vadd.f32 %v8541_v9, %v2703_v32  ;;  %v3660_v4 = vpack.c.bf16 %v3160_v6, %v3156_v28  ;;  %5553 = vrcp.f32 %v8606_v3  ;;  %v8656_v57 = vpop.eup %5537  ;;  %v3018_v31 = vsub.f32 2.0, %v2954_v36  ;;  %v11223_v58 = vld [vmem:[#allocation126_spill] sm:$0xff] }
 0x2bf   : > { %11219 = vst [vmem:[#allocation125_spill] sm:$0xff] %v8656_v57  ;;  %4083 = vmatmul.mubr.bf16.gmra.mrb[136].mxu1 %v3658_v61  ;;  %v1931_v39 = vsub.f32 %v11220_v13, %v1648_v24  ;;  %v1932_v1 = vsub.f32 %v11221_v0, %v1648_v24  ;;  %v1933_v7 = vsub.f32 %v11222_v53, %v1648_v24  ;;  %v8661_v25 = vpop.eup %5539  ;;  %v3019_v5 = vsub.f32 2.0, %v2955_v48  ;;  %v11226_v53 = vld [vmem:[#allocation134_spill] sm:$0xff] }
 0x2c0   : > { %2705 = vadd.xlane.f32.xlu0 %v2704_v11  ;;  %4372 = vmatmul.mubr.bf16.gmra.mrb[136].mxu0 %v3660_v4  ;;  %v2322_v32 = vmul.f32 1.442695, %v1930_v27  ;;  %v2707_v28 = vadd.f32 %v8555_v40, %v8549_v18  ;;  %v1934_v6 = vsub.f32 %v11223_v58, %v1653_v22  ;;  %v8666_v9 = vpop.eup %5541  ;;  %v8668_v36 = vmul.f32 %v5532_v49, %v3018_v31  ;;  %v11224_v27 = vld [vmem:[#allocation127_spill] sm:$0xff]  ;;  %v11227_v18 = vld [vmem:[#allocation141_spill] sm:$0xff] }
 0x2c1   : > { %v2324_v61 = vmul.f32 1.442695, %v1931_v39  ;;  %v2326_v13 = vmul.f32 1.442695, %v1932_v1  ;;  %v2328_v0 = vmul.f32 1.442695, %v1933_v7  ;;  %v8672_v24 = vmul.f32 %v5534_v21, %v3019_v5 }
 0x2c2   : > { %5555 = vpow2.f32 %v2322_v32  ;;  %v2708_v48 = vadd.f32 %v8567_v17, %v2707_v28  ;;  %v1935_v11 = vsub.f32 %v11224_v27, %v1653_v22  ;;  %v8676_v4 = vpop.eup %5543  ;;  %v1936_v58 = vsub.f32 %v11226_v53, %v1653_v22  ;;  %v11229_v5 = vld [vmem:[#allocation104_spill] sm:$0xff] }
 0x2c3   : > { %11225 = vst [vmem:[#allocation131_spill] sm:$0xff] %v8676_v4  ;;  %5557 = vpow2.f32 %v2324_v61  ;;  %v1937_v49 = vsub.f32 %v11227_v18, %v1653_v22  ;;  %v2330_v31 = vmul.f32 1.442695, %v1934_v6  ;;  %v8680_v39 = vpop.eup %5545  ;;  %v11228_v21 = vmax.f32 %v8168_v54, %v8172_v46  ;;  %v11231_v6 = vld [vmem:[#allocation36_spill] sm:$0xff]  ;;  %v11233_v54 = vld [vmem:[#allocation34_spill] sm:$0xff] }
 0x2c4   : > { %5559 = vpow2.f32 %v2326_v13  ;;  %v2709_v7 = vadd.f32 %v8572_v44, %v2708_v48  ;;  %v2332_v1 = vmul.f32 1.442695, %v1935_v11  ;;  %v3163_v32 = vmul.f32 %v11229_v5, %v8603_v8  ;;  %v8688_v28 = vpop.eup %5547  ;;  %v8692_v13 = vpop.xlane.xlu1 %2630  ;;  %v11234_v11 = vld [vmem:[#allocation37_spill] sm:$0xff] }
 0x2c5   : > { %1737 = vmax.xlane.f32.xlu0 %v11228_v21  ;;  %11230 = vst [vmem:[#allocation116_spill] sm:$0xff] %v8688_v28  ;;  %5561 = vpow2.f32 %v2328_v0  ;;  %v2334_v18 = vmul.f32 1.442695, %v1936_v58  ;;  %v2336_v22 = vmul.f32 1.442695, %v1937_v49  ;;  %v3167_v61 = vmul.f32 %v11231_v6, %v8610_v2  ;;  %v8694_v48 = vpop.eup %5549  ;;  %v11236_v21 = vld [vmem:[#allocation35_spill] sm:$0xff]  ;;  %v1658_v6 = vpop.xlane.xlu0 %1657 }
 0x2c6   : > { %11232 = vst [vmem:[#allocation117_spill] sm:$0xff] %v8694_v48  ;;  %2710 = vadd.xlane.f32.xlu1 %v2709_v7  ;;  %5563 = vpow2.f32 %v2330_v31  ;;  %3419 = vst [vmem:[%s8425_s24 + $0xc8] sm:$0xff] %v3163_v32  ;;  %v3165_v27 = vmul.f32 %v11233_v54, %v8603_v8  ;;  %v3169_v0 = vmul.f32 %v11234_v11, %v8610_v2  ;;  %v5552_v58 = vpop.eup %5551  ;;  %v11235_v7 = vld [vmem:[#allocation33_spill] sm:$0xff] }
 0x2c7   : > { %v2712_v53 = vadd.f32 %v8590_v45, %v8584_v33  ;;  %5565 = vpow2.f32 %v2332_v1  ;;  %3423 = vst [vmem:[%s8425_s24 + $0xe8] sm:$0xff] %v3167_v61  ;;  %v3663_v49 = vpack.c.bf16 %v3167_v61, %v3163_v32  ;;  %v3162_v31 = vmul.f32 %v11235_v7, %v8603_v8  ;;  %v11237_v61 = vld [vmem:[#allocation180_spill] sm:$0xff] }
 0x2c8   : > { %v3166_v5 = vmul.f32 %v11236_v21, %v8610_v2  ;;  %v5554_v54 = vpop.eup %5553  ;;  %v2956_v17 = vmul.f32 %v5552_v58, %v8588_v50  ;;  %5567 = vpow2.f32 %v2334_v18  ;;  %3421 = vst [vmem:[%s8425_s24 + $0xd8] sm:$0xff] %v3165_v27  ;;  %3425 = vst [vmem:[%s8425_s24 + $0xf8] sm:$0xff] %v3169_v0  ;;  %v3665_v11 = vpack.c.bf16 %v3169_v0, %v3165_v27  ;;  %v11241_v0 = vld [vmem:[#allocation138_spill] sm:$0xff] }
 0x2c9   : > { %v2713_v1 = vadd.f32 %v8594_v62, %v2712_v53  ;;  %v2957_v33 = vmul.f32 %v5554_v54, %v8606_v3  ;;  %5569 = vpow2.f32 %v2336_v22  ;;  %4090 = vmatprep.mubr.bf16.mxu1 %v3663_v49  ;;  %3418 = vst [vmem:[%s8425_s24 + $0xc0] sm:$0xff] %v3162_v31  ;;  %v3164_v7 = vmul.f32 %v11237_v61, %v8603_v8  ;;  %v11239_v3 = vld [vmem:[#allocation38_spill] sm:$0xff]  ;;  %v11240_v8 = vld [vmem:[#allocation135_spill] sm:$0xff]  ;;  %v1663_v49 = vpop.xlane.xlu1 %1662 }
 0x2ca   : > { %3422 = vst [vmem:[%s8425_s24 + $0xe0] sm:$0xff] %v3166_v5  ;;  %v3662_v32 = vpack.c.bf16 %v3166_v5, %v3162_v31  ;;  %v3020_v21 = vsub.f32 2.0, %v2956_v17  ;;  %5571 = vrcp.f32 %v8670_v37  ;;  %v11238_v50 = vmax.f32 %v8175_v43, %v8179_v19  ;;  %4379 = vmatprep.mubr.bf16.mxu0 %v3665_v11  ;;  %v11243_v11 = vld [vmem:[#allocation143_spill] sm:$0xff] }
 0x2cb   : > { %v2714_v18 = vadd.f32 %v8601_v14, %v2713_v1  ;;  %v3168_v22 = vmul.f32 %v11239_v3, %v8610_v2  ;;  %v3021_v27 = vsub.f32 2.0, %v2957_v33  ;;  %3420 = vst [vmem:[%s8425_s24 + $0xd0] sm:$0xff] %v3164_v7  ;;  %5573 = vrcp.f32 %v8692_v13  ;;  %v11244_v2 = vld [vmem:[#allocation146_spill] sm:$0xff] }
 0x2cc   : > { %1742 = vmax.xlane.f32.xlu1 %v11238_v50  ;;  %4091 = vmatmul.mubr.bf16.gmra.mrb[140].mxu1 %v3662_v32  ;;  %v1938_v17 = vsub.f32 %v11240_v8, %v1658_v6  ;;  %v1939_v53 = vsub.f32 %v11241_v0, %v1658_v6  ;;  %v8728_v31 = vpop.eup %5555  ;;  %v8730_v43 = vmul.f32 %v5552_v58, %v3020_v21  ;;  %v8741_v0 = vpop.xlane.xlu0 %2635 }
 0x2cd   : > { %11242 = vst [vmem:[#allocation128_spill] sm:$0xff] %v8728_v31  ;;  %2715 = vadd.xlane.f32.xlu0 %v2714_v18  ;;  %3424 = vst [vmem:[%s8425_s24 + $0xf0] sm:$0xff] %v3168_v22  ;;  %v3664_v5 = vpack.c.bf16 %v3168_v22, %v3164_v7  ;;  %v1940_v1 = vsub.f32 %v11243_v11, %v1658_v6  ;;  %v1941_v33 = vsub.f32 %v11244_v2, %v1658_v6  ;;  %v8735_v32 = vpop.eup %5557  ;;  %v11247_v18 = vld [vmem:[#allocation140_spill] sm:$0xff]  ;;  %v11248_v11 = vld [vmem:[#allocation142_spill] sm:$0xff] }
 0x2ce   : > { %11245 = vst [vmem:[#allocation132_spill] sm:$0xff] %v8735_v32  ;;  %v8737_v61 = vmul.f32 %v5554_v54, %v3021_v27  ;;  %v2338_v50 = vmul.f32 1.442695, %v1938_v17  ;;  %v2340_v3 = vmul.f32 1.442695, %v1939_v53  ;;  %v2717_v8 = vadd.f32 %v8612_v41, %v8608_v52  ;;  %v8743_v58 = vpop.eup %5559  ;;  %v11249_v27 = vld [vmem:[#allocation144_spill] sm:$0xff] }
 0x2cf   : > { %11246 = vst [vmem:[#allocation168_spill] sm:$0xff] %v8743_v58  ;;  %4380 = vmatmul.mubr.bf16.gmra.mrb[140].mxu0 %v3664_v5  ;;  %v2342_v21 = vmul.f32 1.442695, %v1940_v1  ;;  %v2344_v7 = vmul.f32 1.442695, %v1941_v33  ;;  %v1942_v22 = vsub.f32 %v11247_v18, %v1663_v49  ;;  %v1943_v6 = vsub.f32 %v11248_v11, %v1663_v49  ;;  %v8747_v2 = vpop.eup %5561  ;;  %v11250_v53 = vld [vmem:[#allocation147_spill] sm:$0xff] }
 0x2d0   : > { %5575 = vpow2.f32 %v2338_v50  ;;  %v2718_v54 = vadd.f32 %v8620_v26, %v2717_v8  ;;  %v1944_v17 = vsub.f32 %v11249_v27, %v1663_v49  ;;  %v1945_v52 = vsub.f32 %v11250_v53, %v1663_v49  ;;  %v8752_v41 = vpop.eup %5563  ;;  %v11253_v18 = vld [vmem:[#allocation41_spill] sm:$0xff]  ;;  %v8762_v53 = vpop.xlane.xlu1 %2640 }
 0x2d1   : > { %11251 = vst [vmem:[#allocation170_spill] sm:$0xff] %v8752_v41  ;;  %5577 = vpow2.f32 %v2340_v3  ;;  %v11252_v5 = vmax.f32 %v8248_v10, %v8223_v51  ;;  %v2346_v1 = vmul.f32 1.442695, %v1942_v22  ;;  %v2348_v33 = vmul.f32 1.442695, %v1943_v6  ;;  %v8759_v50 = vpop.eup %5565  ;;  %v11256_v10 = vld [vmem:[#allocation44_spill] sm:$0xff] }
 0x2d2   : > { %v3171_v11 = vmul.f32 %v11253_v18, %v8668_v36  ;;  %11254 = vst [vmem:[#allocation20_spill] sm:$0xff] %v8759_v50  ;;  %5579 = vpow2.f32 %v2342_v21  ;;  %v2719_v8 = vadd.f32 %v8628_v15, %v2718_v54  ;;  %v2350_v27 = vmul.f32 1.442695, %v1944_v17  ;;  %v8764_v3 = vpop.eup %5567  ;;  %v11257_v6 = vld [vmem:[#allocation42_spill] sm:$0xff]  ;;  %v11258_v21 = vld [vmem:[#allocation45_spill] sm:$0xff]  ;;  %v1668_v15 = vpop.xlane.xlu0 %1667 }
 0x2d3   : > { %1747 = vmax.xlane.f32.xlu0 %v11252_v5  ;;  %v2352_v49 = vmul.f32 1.442695, %v1945_v52  ;;  %11255 = vst [vmem:[#allocation25_spill] sm:$0xff] %v8764_v3  ;;  %5581 = vpow2.f32 %v2344_v7  ;;  %v3175_v22 = vmul.f32 %v11256_v10, %v8672_v24  ;;  %v3173_v5 = vmul.f32 %v11257_v6, %v8668_v36  ;;  %v8773_v17 = vpop.eup %5569  ;;  %v11260_v7 = vld [vmem:[#allocation39_spill] sm:$0xff] }
 0x2d4   : > { %3427 = vst [vmem:[%s8425_s24 + $0x108] sm:$0xff] %v3171_v11  ;;  %v3177_v54 = vmul.f32 %v11258_v21, %v8672_v24  ;;  %11259 = vst [vmem:[#allocation166_spill] sm:$0xff] %v8773_v17  ;;  %2720 = vadd.xlane.f32.xlu1 %v2719_v8  ;;  %5583 = vpow2.f32 %v2346_v1  ;;  %v2722_v52 = vadd.f32 %v8656_v57, %v8650_v29  ;;  %v11261_v10 = vld [vmem:[#allocation43_spill] sm:$0xff]  ;;  %v5572_v6 = vpop.eup %5571  ;;  %v11262_v8 = vld [vmem:[#allocation182_spill] sm:$0xff] }
 0x2d5   : > { %v3170_v18 = vmul.f32 %v11260_v7, %v8668_v36  ;;  %v3174_v26 = vmul.f32 %v11261_v10, %v8672_v24  ;;  %5585 = vpow2.f32 %v2348_v33  ;;  %3431 = vst [vmem:[%s8425_s24 + $0x128] sm:$0xff] %v3175_v22  ;;  %v3667_v21 = vpack.c.bf16 %v3175_v22, %v3171_v11  ;;  %3429 = vst [vmem:[%s8425_s24 + $0x118] sm:$0xff] %v3173_v5  ;;  %v5574_v57 = vpop.eup %5573  ;;  %v11263_v11 = vld [vmem:[#allocation47_spill] sm:$0xff] }
 0x2d6   : > { %3433 = vst [vmem:[%s8425_s24 + $0x138] sm:$0xff] %v3177_v54  ;;  %v3669_v1 = vpack.c.bf16 %v3177_v54, %v3173_v5  ;;  %v3172_v29 = vmul.f32 %v11262_v8, %v8668_v36  ;;  %v2958_v62 = vmul.f32 %v5572_v6, %v8670_v37  ;;  %5587 = vpow2.f32 %v2350_v27  ;;  %v11264_v36 = vld [vmem:[#allocation149_spill] sm:$0xff] }
 0x2d7   : > { %v2723_v7 = vadd.f32 %v8661_v25, %v2722_v52  ;;  %3426 = vst [vmem:[%s8425_s24 + $0x100] sm:$0xff] %v3170_v18  ;;  %3430 = vst [vmem:[%s8425_s24 + $0x120] sm:$0xff] %v3174_v26  ;;  %v3666_v10 = vpack.c.bf16 %v3174_v26, %v3170_v18  ;;  %v2959_v33 = vmul.f32 %v5574_v57, %v8692_v13  ;;  %5589 = vpow2.f32 %v2352_v49  ;;  %v11266_v13 = vld [vmem:[#allocation151_spill] sm:$0xff]  ;;  %v1673_v49 = vpop.xlane.xlu1 %1672 }
 0x2d8   : > { %4098 = vmatprep.mubr.bf16.mxu1 %v3667_v21  ;;  %4387 = vmatprep.mubr.bf16.mxu0 %v3669_v1  ;;  %v3176_v22 = vmul.f32 %v11263_v11, %v8672_v24  ;;  %3428 = vst [vmem:[%s8425_s24 + $0x110] sm:$0xff] %v3172_v29  ;;  %v1946_v5 = vsub.f32 %v11264_v36, %v1668_v15  ;;  %v3022_v54 = vsub.f32 2.0, %v2958_v62  ;;  %5591 = vrcp.f32 %v8741_v0  ;;  %v11267_v24 = vld [vmem:[#allocation150_spill] sm:$0xff] }
 0x2d9   : > { %v11265_v37 = vmax.f32 %v8251_v63, %v8229_v16  ;;  %v2724_v26 = vadd.f32 %v8666_v9, %v2723_v7  ;;  %4099 = vmatmul.mubr.bf16.gmra.mrb[144].mxu1 %v3666_v10  ;;  %v1947_v27 = vsub.f32 %v11266_v13, %v1668_v15  ;;  %v3023_v52 = vsub.f32 2.0, %v2959_v33  ;;  %v11269_v63 = vld [vmem:[#allocation154_spill] sm:$0xff]  ;;  %v8816_v13 = vpop.xlane.xlu0 %2645 }
 0x2da   : > { %3432 = vst [vmem:[%s8425_s24 + $0x130] sm:$0xff] %v3176_v22  ;;  %v3668_v18 = vpack.c.bf16 %v3176_v22, %v3172_v29  ;;  %5593 = vrcp.f32 %v8762_v53  ;;  %v1948_v21 = vsub.f32 %v11267_v24, %v1668_v15  ;;  %v8804_v62 = vpop.eup %5575  ;;  %v8806_v1 = vmul.f32 %v5572_v6, %v3022_v54  ;;  %v11271_v22 = vld [vmem:[#allocation152_spill] sm:$0xff] }
 0x2db   : > { %1752 = vmax.xlane.f32.xlu1 %v11265_v37  ;;  %11268 = vst [vmem:[#allocation22_spill] sm:$0xff] %v8804_v62  ;;  %2725 = vadd.xlane.f32.xlu0 %v2724_v26  ;;  %v1949_v8 = vsub.f32 %v11269_v63, %v1668_v15  ;;  %v2354_v11 = vmul.f32 1.442695, %v1946_v5  ;;  %v2356_v7 = vmul.f32 1.442695, %v1947_v27  ;;  %v8809_v10 = vpop.eup %5577  ;;  %v8811_v36 = vmul.f32 %v5574_v57, %v3023_v52  ;;  %v11273_v15 = vld [vmem:[#allocation153_spill] sm:$0xff] }
 0x2dc   : > { %11270 = vst [vmem:[#allocation169_spill] sm:$0xff] %v8809_v10  ;;  %4388 = vmatmul.mubr.bf16.gmra.mrb[144].mxu0 %v3668_v18  ;;  %v2358_v33 = vmul.f32 1.442695, %v1948_v21  ;;  %v2727_v29 = vadd.f32 %v8680_v39, %v8676_v4  ;;  %v1950_v37 = vsub.f32 %v11271_v22, %v1673_v49  ;;  %v8818_v6 = vpop.eup %5579  ;;  %v1951_v5 = vsub.f32 %v11273_v15, %v1673_v49  ;;  %v11274_v26 = vld [vmem:[#allocation155_spill] sm:$0xff]  ;;  %v11279_v15 = vld [vmem:[#allocation48_spill] sm:$0xff] }
 0x2dd   : > { %11272 = vst [vmem:[#allocation23_spill] sm:$0xff] %v8818_v6  ;;  %5595 = vpow2.f32 %v2354_v11  ;;  %v2360_v54 = vmul.f32 1.442695, %v1949_v8  ;;  %v1952_v27 = vsub.f32 %v11274_v26, %v1673_v49  ;;  %v8822_v24 = vpop.eup %5581  ;;  %v11276_v52 = vld [vmem:[#allocation167_spill] sm:$0xff]  ;;  %v11278_v11 = vmax.f32 %v8262_v47, %v8266_v12  ;;  %v11283_v47 = vld [vmem:[#allocation50_spill] sm:$0xff]  ;;  %v1678_v4 = vpop.xlane.xlu0 %1677 }
 0x2de   : > { %11275 = vst [vmem:[#allocation118_spill] sm:$0xff] %v8822_v24  ;;  %5597 = vpow2.f32 %v2356_v7  ;;  %v2728_v57 = vadd.f32 %v8688_v28, %v2727_v29  ;;  %v1953_v18 = vsub.f32 %v11276_v52, %v1673_v49  ;;  %v2362_v21 = vmul.f32 1.442695, %v1950_v37  ;;  %v8826_v63 = vpop.eup %5583  ;;  %v8833_v7 = vpop.xlane.xlu1 %2650 }
 0x2df   : > { %11277 = vst [vmem:[#allocation119_spill] sm:$0xff] %v8826_v63  ;;  %5599 = vpow2.f32 %v2358_v33  ;;  %1757 = vmax.xlane.f32.xlu0 %v11278_v11  ;;  %v2364_v8 = vmul.f32 1.442695, %v1951_v5  ;;  %v2366_v22 = vmul.f32 1.442695, %v1952_v27  ;;  %v3179_v26 = vmul.f32 %v11279_v15, %v8730_v43  ;;  %v8835_v29 = vpop.eup %5585  ;;  %v11281_v33 = vld [vmem:[#allocation52_spill] sm:$0xff] }
 0x2e0   : > { %11280 = vst [vmem:[#allocation129_spill] sm:$0xff] %v8835_v29  ;;  %5601 = vpow2.f32 %v2360_v54  ;;  %v2729_v49 = vadd.f32 %v8694_v48, %v2728_v57  ;;  %v2368_v37 = vmul.f32 1.442695, %v1953_v18  ;;  %v3183_v52 = vmul.f32 %v11281_v33, %v8737_v61  ;;  %v8840_v28 = vpop.eup %5587  ;;  %v11284_v27 = vld [vmem:[#allocation53_spill] sm:$0xff]  ;;  %v11287_v33 = vld [vmem:[#allocation51_spill] sm:$0xff] }
 0x2e1   : > { %11282 = vst [vmem:[#allocation136_spill] sm:$0xff] %v8840_v28  ;;  %5603 = vpow2.f32 %v2362_v21  ;;  %3435 = vst [vmem:[%s8425_s24 + $0x148] sm:$0xff] %v3179_v26  ;;  %v3181_v5 = vmul.f32 %v11283_v47, %v8730_v43  ;;  %v3185_v11 = vmul.f32 %v11284_v27, %v8737_v61  ;;  %v2732_v54 = vadd.f32 %v8735_v32, %v8728_v31  ;;  %v8849_v57 = vpop.eup %5589  ;;  %v11286_v21 = vld [vmem:[#allocation46_spill] sm:$0xff] }
 0x2e2   : > { %11285 = vst [vmem:[#allocation120_spill] sm:$0xff] %v8849_v57  ;;  %2730 = vadd.xlane.f32.xlu1 %v2729_v49  ;;  %5605 = vpow2.f32 %v2364_v8  ;;  %3439 = vst [vmem:[%s8425_s24 + $0x168] sm:$0xff] %v3183_v52  ;;  %v3671_v18 = vpack.c.bf16 %v3183_v52, %v3179_v26  ;;  %v3178_v15 = vmul.f32 %v11286_v21, %v8730_v43  ;;  %v5592_v48 = vpop.eup %5591  ;;  %v11288_v8 = vld [vmem:[#allocation49_spill] sm:$0xff] }
 0x2e3   : > { %v3182_v47 = vmul.f32 %v11287_v33, %v8737_v61  ;;  %5607 = vpow2.f32 %v2366_v22  ;;  %3437 = vst [vmem:[%s8425_s24 + $0x158] sm:$0xff] %v3181_v5  ;;  %3441 = vst [vmem:[%s8425_s24 + $0x178] sm:$0xff] %v3185_v11  ;;  %v3673_v27 = vpack.c.bf16 %v3185_v11, %v3181_v5  ;;  %v2733_v49 = vadd.f32 %v8743_v58, %v2732_v54  ;;  %v11289_v22 = vld [vmem:[#allocation55_spill] sm:$0xff] }
 0x2e4   : > { %v3180_v31 = vmul.f32 %v11288_v8, %v8730_v43  ;;  %v5594_v26 = vpop.eup %5593  ;;  %v2960_v52 = vmul.f32 %v5592_v48, %v8741_v0  ;;  %5609 = vpow2.f32 %v2368_v37  ;;  %4106 = vmatprep.mubr.bf16.mxu1 %v3671_v18  ;;  %3434 = vst [vmem:[%s8425_s24 + $0x140] sm:$0xff] %v3178_v15  ;;  %v3184_v33 = vmul.f32 %v11289_v22, %v8737_v61  ;;  %v11290_v43 = vld [vmem:[#allocation159_spill] sm:$0xff]  ;;  %v1683_v0 = vpop.xlane.xlu1 %1682  ;;  %v11292_v61 = vld [vmem:[#allocation14_spill] sm:$0xff]  ;;  %v11295_v8 = vld [vmem:[#allocation181_spill] sm:$0xff] }
 0x2e5   : > { %3438 = vst [vmem:[%s8425_s24 + $0x160] sm:$0xff] %v3182_v47  ;;  %v3670_v21 = vpack.c.bf16 %v3182_v47, %v3178_v15  ;;  %v2961_v32 = vmul.f32 %v5594_v26, %v8762_v53  ;;  %5611 = vrcp.f32 %v8816_v13  ;;  %4395 = vmatprep.mubr.bf16.mxu0 %v3673_v27  ;;  %v2734_v5 = vadd.f32 %v8747_v2, %v2733_v49  ;;  %v11294_v27 = vld [vmem:[#allocation174_spill] sm:$0xff] }
 0x2e6   : > { %3436 = vst [vmem:[%s8425_s24 + $0x150] sm:$0xff] %v3180_v31  ;;  %v1954_v11 = vsub.f32 %v11290_v43, %v1678_v4  ;;  %v3024_v37 = vsub.f32 2.0, %v2960_v52  ;;  %v11291_v54 = vmax.f32 %v8269_v60, %v8273_v30  ;;  %3440 = vst [vmem:[%s8425_s24 + $0x170] sm:$0xff] %v3184_v33  ;;  %v3672_v18 = vpack.c.bf16 %v3184_v33, %v3180_v31  ;;  %v11297_v33 = vld [vmem:[#allocation179_spill] sm:$0xff] }
 0x2e7   : > { %4107 = vmatmul.mubr.bf16.gmra.mrb[148].mxu1 %v3670_v21  ;;  %5613 = vrcp.f32 %v8833_v7  ;;  %v1955_v53 = vsub.f32 %v11292_v61, %v1678_v4  ;;  %v8877_v15 = vpop.eup %5595  ;;  %v3025_v47 = vsub.f32 2.0, %v2961_v32  ;;  %2735 = vadd.xlane.f32.xlu0 %v2734_v5  ;;  %v1956_v49 = vsub.f32 %v11294_v27, %v1678_v4 }
 0x2e8   : > { %1762 = vmax.xlane.f32.xlu1 %v11291_v54  ;;  %11293 = vst [vmem:[#allocation121_spill] sm:$0xff] %v8877_v15  ;;  %v1957_v22 = vsub.f32 %v11295_v8, %v1678_v4  ;;  %v2370_v52 = vmul.f32 1.442695, %v1954_v11  ;;  %v8881_v43 = vpop.eup %5597  ;;  %v8883_v60 = vmul.f32 %v5592_v48, %v3024_v37  ;;  %4396 = vmatmul.mubr.bf16.gmra.mrb[148].mxu0 %v3672_v18  ;;  %v8892_v4 = vpop.xlane.xlu0 %2655  ;;  %v11300_v37 = vld [vmem:[#allocation40_spill] sm:$0xff] }
 0x2e9   : > { %11296 = vst [vmem:[#allocation130_spill] sm:$0xff] %v8881_v43  ;;  %v2372_v21 = vmul.f32 1.442695, %v1955_v53  ;;  %v2737_v31 = vadd.f32 %v8759_v50, %v8752_v41  ;;  %v1958_v54 = vsub.f32 %v11297_v33, %v1683_v0  ;;  %v8888_v61 = vpop.eup %5599  ;;  %v8890_v32 = vmul.f32 %v5594_v26, %v3025_v47  ;;  %v11301_v53 = vld [vmem:[#allocation56_spill] sm:$0xff]  ;;  %v11304_v47 = vld [vmem:[#allocation73_spill] sm:$0xff] }
 0x2ea   : > { %11298 = vst [vmem:[#allocation137_spill] sm:$0xff] %v8888_v61  ;;  %5615 = vpow2.f32 %v2370_v52  ;;  %v2374_v5 = vmul.f32 1.442695, %v1956_v49  ;;  %v2376_v27 = vmul.f32 1.442695, %v1957_v22  ;;  %v8894_v11 = vpop.eup %5601  ;;  %v1959_v18 = vsub.f32 %v11300_v37, %v1683_v0  ;;  %v11305_v52 = vld [vmem:[#allocation57_spill] sm:$0xff] }
 0x2eb   : > { %11299 = vst [vmem:[#allocation173_spill] sm:$0xff] %v8894_v11  ;;  %5617 = vpow2.f32 %v2372_v21  ;;  %v2738_v48 = vadd.f32 %v8764_v3, %v2737_v31  ;;  %v1960_v8 = vsub.f32 %v11301_v53, %v1683_v0  ;;  %v8899_v58 = vpop.eup %5603  ;;  %v11303_v26 = vmax.f32 %v8293_v34, %v8297_v55  ;;  %v8910_v3 = vpop.xlane.xlu1 %2660 }
 0x2ec   : > { %11302 = vst [vmem:[#allocation177_spill] sm:$0xff] %v8899_v58  ;;  %5619 = vpow2.f32 %v2374_v5  ;;  %v1961_v49 = vsub.f32 %v11304_v47, %v1683_v0  ;;  %v2378_v22 = vmul.f32 1.442695, %v1958_v54  ;;  %v3187_v21 = vmul.f32 %v11305_v52, %v8806_v1  ;;  %v8907_v33 = vpop.eup %5605  ;;  %v11308_v0 = vld [vmem:[#allocation60_spill] sm:$0xff]  ;;  %v1688_v41 = vpop.xlane.xlu0 %1687 }
 0x2ed   : > { %1767 = vmax.xlane.f32.xlu0 %v11303_v26  ;;  %11306 = vst [vmem:[#allocation28_spill] sm:$0xff] %v8907_v33  ;;  %5621 = vpow2.f32 %v2376_v27  ;;  %v2739_v31 = vadd.f32 %v8773_v17, %v2738_v48  ;;  %v2380_v37 = vmul.f32 1.442695, %v1959_v18  ;;  %v2382_v53 = vmul.f32 1.442695, %v1960_v8  ;;  %v8912_v5 = vpop.eup %5607  ;;  %v11309_v26 = vld [vmem:[#allocation58_spill] sm:$0xff] }
 0x2ee   : > { %11307 = vst [vmem:[#allocation32_spill] sm:$0xff] %v8912_v5  ;;  %5623 = vpow2.f32 %v2378_v22  ;;  %v2384_v34 = vmul.f32 1.442695, %v1961_v49  ;;  %v3191_v54 = vmul.f32 %v11308_v0, %v8811_v36  ;;  %3443 = vst [vmem:[%s8425_s24 + $0x188] sm:$0xff] %v3187_v21  ;;  %v3189_v47 = vmul.f32 %v11309_v26, %v8806_v1  ;;  %v8919_v27 = vpop.eup %5609  ;;  %v11311_v48 = vld [vmem:[#allocation61_spill] sm:$0xff]  ;;  %v11312_v49 = vld [vmem:[#allocation54_spill] sm:$0xff] }
 0x2ef   : > { %11310 = vst [vmem:[#allocation172_spill] sm:$0xff] %v8919_v27  ;;  %2740 = vadd.xlane.f32.xlu1 %v2739_v31  ;;  %5625 = vpow2.f32 %v2380_v37  ;;  %v3193_v18 = vmul.f32 %v11311_v48, %v8811_v36  ;;  %v2742_v8 = vadd.f32 %v8809_v10, %v8804_v62  ;;  %v3186_v22 = vmul.f32 %v11312_v49, %v8806_v1  ;;  %v5612_v52 = vpop.eup %5611  ;;  %v11313_v31 = vld [vmem:[#allocation59_spill] sm:$0xff]  ;;  %v11314_v37 = vld [vmem:[#allocation184_spill] sm:$0xff] }
 0x2f0   : > { %5627 = vpow2.f32 %v2382_v53  ;;  %3447 = vst [vmem:[%s8425_s24 + $0x1a8] sm:$0xff] %v3191_v54  ;;  %v3675_v0 = vpack.c.bf16 %v3191_v54, %v3187_v21  ;;  %3445 = vst [vmem:[%s8425_s24 + $0x198] sm:$0xff] %v3189_v47  ;;  %v3190_v26 = vmul.f32 %v11313_v31, %v8811_v36  ;;  %v3188_v48 = vmul.f32 %v11314_v37, %v8806_v1  ;;  %v11315_v1 = vld [vmem:[#allocation63_spill] sm:$0xff] }
 0x2f1   : > { %v5614_v17 = vpop.eup %5613  ;;  %v2962_v62 = vmul.f32 %v5612_v52, %v8816_v13  ;;  %5629 = vpow2.f32 %v2384_v34  ;;  %3449 = vst [vmem:[%s8425_s24 + $0x1b8] sm:$0xff] %v3193_v18  ;;  %v3677_v49 = vpack.c.bf16 %v3193_v18, %v3189_v47  ;;  %v2743_v53 = vadd.f32 %v8818_v6, %v2742_v8  ;;  %3442 = vst [vmem:[%s8425_s24 + $0x180] sm:$0xff] %v3186_v22  ;;  %v1693_v18 = vpop.xlane.xlu1 %1692 }
 0x2f2   : > { %v2963_v21 = vmul.f32 %v5614_v17, %v8833_v7  ;;  %5631 = vrcp.f32 %v8892_v4  ;;  %4114 = vmatprep.mubr.bf16.mxu1 %v3675_v0  ;;  %3446 = vst [vmem:[%s8425_s24 + $0x1a0] sm:$0xff] %v3190_v26  ;;  %v3674_v54 = vpack.c.bf16 %v3190_v26, %v3186_v22  ;;  %v3192_v31 = vmul.f32 %v11315_v1, %v8811_v36  ;;  %v11317_v7 = vld [vmem:[#allocation183_spill] sm:$0xff]  ;;  %v11319_v0 = vld [vmem:[#allocation65_spill] sm:$0xff]  ;;  %v11320_v26 = vld [vmem:[#allocation76_spill] sm:$0xff] }
 0x2f3   : > { %3444 = vst [vmem:[%s8425_s24 + $0x190] sm:$0xff] %v3188_v48  ;;  %v3026_v37 = vsub.f32 2.0, %v2962_v62  ;;  %v11316_v13 = vmax.f32 %v8333_v35, %v8337_v23  ;;  %4403 = vmatprep.mubr.bf16.mxu0 %v3677_v49  ;;  %v2744_v34 = vadd.f32 %v8822_v24, %v2743_v53  ;;  %5633 = vrcp.f32 %v8910_v3  ;;  %v11322_v53 = vld [vmem:[#allocation86_spill] sm:$0xff] }
 0x2f4   : > { %v1962_v47 = vsub.f32 %v11317_v7, %v1688_v41  ;;  %v8949_v8 = vpop.eup %5615  ;;  %v3027_v22 = vsub.f32 2.0, %v2963_v21  ;;  %4115 = vmatmul.mubr.bf16.gmra.mrb[152].mxu1 %v3674_v54  ;;  %3448 = vst [vmem:[%s8425_s24 + $0x1b0] sm:$0xff] %v3192_v31  ;;  %v3676_v36 = vpack.c.bf16 %v3192_v31, %v3188_v48  ;;  %v1963_v62 = vsub.f32 %v11319_v0, %v1688_v41  ;;  %v11324_v31 = vld [vmem:[#allocation78_spill] sm:$0xff] }
 0x2f5   : > { %1772 = vmax.xlane.f32.xlu1 %v11316_v13  ;;  %11318 = vst [vmem:[#allocation176_spill] sm:$0xff] %v8949_v8  ;;  %v1964_v1 = vsub.f32 %v11320_v26, %v1688_v41  ;;  %v8954_v35 = vpop.eup %5617  ;;  %v8956_v49 = vmul.f32 %v5612_v52, %v3026_v37  ;;  %2745 = vadd.xlane.f32.xlu0 %v2744_v34  ;;  %v8966_v26 = vpop.xlane.xlu0 %2665  ;;  %v11325_v34 = vld [vmem:[#allocation11_spill] sm:$0xff] }
 0x2f6   : > { %11321 = vst [vmem:[#allocation175_spill] sm:$0xff] %v8954_v35  ;;  %v1965_v13 = vsub.f32 %v11322_v53, %v1688_v41  ;;  %v2386_v6 = vmul.f32 1.442695, %v1962_v47  ;;  %v2747_v7 = vadd.f32 %v8835_v29, %v8826_v63  ;;  %v8961_v24 = vpop.eup %5619  ;;  %v8963_v21 = vmul.f32 %v5614_v17, %v3027_v22  ;;  %4404 = vmatmul.mubr.bf16.gmra.mrb[152].mxu0 %v3676_v36  ;;  %v11327_v17 = vld [vmem:[#allocation88_spill] sm:$0xff]  ;;  %v11328_v36 = vld [vmem:[#allocation165_spill] sm:$0xff] }
 0x2f7   : > { %11323 = vst [vmem:[#allocation178_spill] sm:$0xff] %v8961_v24  ;;  %v2388_v48 = vmul.f32 1.442695, %v1963_v62  ;;  %v2390_v54 = vmul.f32 1.442695, %v1964_v1  ;;  %v1966_v0 = vsub.f32 %v11324_v31, %v1693_v18  ;;  %v8968_v52 = vpop.eup %5621  ;;  %v1967_v47 = vsub.f32 %v11325_v34, %v1693_v18  ;;  %v11332_v34 = vld [vmem:[#allocation64_spill] sm:$0xff] }
 0x2f8   : > { %5635 = vpow2.f32 %v2386_v6  ;;  %v2392_v37 = vmul.f32 1.442695, %v1965_v13  ;;  %v2748_v41 = vadd.f32 %v8840_v28, %v2747_v7  ;;  %v8972_v53 = vpop.eup %5623  ;;  %v1968_v22 = vsub.f32 %v11327_v17, %v1693_v18  ;;  %v11329_v6 = vld [vmem:[#allocation250_spill] sm:$0xff]  ;;  %v11334_v17 = vld [vmem:[#allocation68_spill] sm:$0xff] }
 0x2f9   : > { %11326 = vst [vmem:[#allocation123_spill] sm:$0xff] %v8972_v53  ;;  %5637 = vpow2.f32 %v2388_v48  ;;  %v1969_v62 = vsub.f32 %v11328_v36, %v1693_v18  ;;  %v2394_v1 = vmul.f32 1.442695, %v1966_v0  ;;  %v8976_v31 = vpop.eup %5625  ;;  %v11330_v13 = vld [vmem:[#allocation90_spill] sm:$0xff]  ;;  %v2396_v7 = vmul.f32 1.442695, %v1967_v47  ;;  %v1698_v10 = vpop.xlane.xlu0 %1697 }
 0x2fa   : > { %5639 = vpow2.f32 %v2390_v54  ;;  %v2749_v63 = vadd.f32 %v8849_v57, %v2748_v41  ;;  %v11331_v29 = vmax.f32 %v11329_v6, %v11330_v13  ;;  %v3195_v28 = vmul.f32 %v11332_v34, %v8883_v60  ;;  %v8984_v48 = vpop.eup %5627  ;;  %v8988_v54 = vpop.xlane.xlu1 %2670  ;;  %v11336_v6 = vld [vmem:[#allocation69_spill] sm:$0xff] }
 0x2fb   : > { %11333 = vst [vmem:[#allocation124_spill] sm:$0xff] %v8984_v48  ;;  %5641 = vpow2.f32 %v2392_v37  ;;  %v2398_v18 = vmul.f32 1.442695, %v1968_v22  ;;  %v2400_v0 = vmul.f32 1.442695, %v1969_v62  ;;  %v3199_v36 = vmul.f32 %v11334_v17, %v8890_v32  ;;  %v8990_v41 = vpop.eup %5629  ;;  %v11338_v17 = vld [vmem:[#allocation67_spill] sm:$0xff] }
 0x2fc   : > { %1777 = vmax.xlane.f32.xlu0 %v11331_v29  ;;  %2750 = vadd.xlane.f32.xlu1 %v2749_v63  ;;  %5643 = vpow2.f32 %v2394_v1  ;;  %3451 = vst [vmem:[%s8425_s24 + $0x1c8] sm:$0xff] %v3195_v28  ;;  %v11335_v29 = vld [vmem:[#allocation66_spill] sm:$0xff]  ;;  %v3201_v37 = vmul.f32 %v11336_v6, %v8890_v32  ;;  %v2752_v22 = vadd.f32 %v8881_v43, %v8877_v15  ;;  %v5632_v62 = vpop.eup %5631 }
 0x2fd   : > { %v3197_v47 = vmul.f32 %v11335_v29, %v8883_v60  ;;  %5645 = vpow2.f32 %v2396_v7  ;;  %3455 = vst [vmem:[%s8425_s24 + $0x1e8] sm:$0xff] %v3199_v36  ;;  %v3679_v34 = vpack.c.bf16 %v3199_v36, %v3195_v28  ;;  %v11337_v63 = vld [vmem:[#allocation62_spill] sm:$0xff]  ;;  %v3198_v57 = vmul.f32 %v11338_v17, %v8890_v32  ;;  %v5634_v29 = vpop.eup %5633  ;;  %v11339_v36 = vld [vmem:[#allocation161_spill] sm:$0xff] }
 0x2fe   : > { %v3194_v1 = vmul.f32 %v11337_v63, %v8883_v60  ;;  %v2964_v50 = vmul.f32 %v5632_v62, %v8892_v4  ;;  %5647 = vpow2.f32 %v2398_v18  ;;  %3457 = vst [vmem:[%s8425_s24 + $0x1f8] sm:$0xff] %v3201_v37  ;;  %v2753_v7 = vadd.f32 %v8888_v61, %v2752_v22  ;;  %v11340_v4 = vld [vmem:[#allocation91_spill] sm:$0xff]  ;;  %v11341_v18 = vld [vmem:[#allocation96_spill] sm:$0xff] }
 0x2ff   : > { %3453 = vst [vmem:[%s8425_s24 + $0x1d8] sm:$0xff] %v3197_v47  ;;  %v3681_v6 = vpack.c.bf16 %v3201_v37, %v3197_v47  ;;  %v2965_v15 = vmul.f32 %v5634_v29, %v8910_v3  ;;  %5649 = vpow2.f32 %v2400_v0  ;;  %4122 = vmatprep.mubr.bf16.mxu1 %v3679_v34  ;;  %3454 = vst [vmem:[%s8425_s24 + $0x1e0] sm:$0xff] %v3198_v57  ;;  %v11343_v3 = vld [vmem:[#allocation71_spill] sm:$0xff] }
 0x300   : > { %3450 = vst [vmem:[%s8425_s24 + $0x1c0] sm:$0xff] %v3194_v1  ;;  %v3678_v28 = vpack.c.bf16 %v3198_v57, %v3194_v1  ;;  %v3196_v63 = vmul.f32 %v11339_v36, %v8883_v60  ;;  %v3028_v17 = vsub.f32 2.0, %v2964_v50  ;;  %5651 = vrcp.f32 %v8966_v26  ;;  %v11344_v57 = vld [vmem:[#allocation13_spill] sm:$0xff]  ;;  %v1703_v1 = vpop.xlane.xlu1 %1702 }
 0x301   : > { %v11342_v47 = vmax.f32 %v11340_v4, %v11341_v18  ;;  %4411 = vmatprep.mubr.bf16.mxu0 %v3681_v6  ;;  %v2754_v37 = vadd.f32 %v8894_v11, %v2753_v7  ;;  %v3200_v0 = vmul.f32 %v11343_v3, %v8890_v32  ;;  %v3029_v22 = vsub.f32 2.0, %v2965_v15  ;;  %v11345_v60 = vld [vmem:[#allocation17_spill] sm:$0xff]  ;;  %v11347_v7 = vld [vmem:[#allocation19_spill] sm:$0xff]  ;;  %v9037_v11 = vpop.xlane.xlu0 %2675 }
 0x302   : > { %4123 = vmatmul.mubr.bf16.gmra.mrb[156].mxu1 %v3678_v28  ;;  %3452 = vst [vmem:[%s8425_s24 + $0x1d0] sm:$0xff] %v3196_v63  ;;  %5653 = vrcp.f32 %v8988_v54  ;;  %v1970_v50 = vsub.f32 %v11344_v57, %v1698_v10  ;;  %v1971_v34 = vsub.f32 %v11345_v60, %v1698_v10  ;;  %v9024_v36 = vpop.eup %5635  ;;  %v9026_v4 = vmul.f32 %v5632_v62, %v3028_v17  ;;  %v11348_v32 = vld [vmem:[#allocation21_spill] sm:$0xff] }
 0x303   : > { %1782 = vmax.xlane.f32.xlu1 %v11342_v47  ;;  %11346 = vst [vmem:[#allocation133_spill] sm:$0xff] %v9024_v36  ;;  %2755 = vadd.xlane.f32.xlu0 %v2754_v37  ;;  %3456 = vst [vmem:[%s8425_s24 + $0x1f0] sm:$0xff] %v3200_v0  ;;  %v3680_v6 = vpack.c.bf16 %v3200_v0, %v3196_v63  ;;  %v1972_v47 = vsub.f32 %v11347_v7, %v1698_v10  ;;  %v9031_v28 = vpop.eup %5637  ;;  %v11350_v37 = vld [vmem:[#allocation186_spill] sm:$0xff]  ;;  %v11351_v7 = vld [vmem:[#allocation188_spill] sm:$0xff] }
 0x304   : > { %v1973_v15 = vsub.f32 %v11348_v32, %v1698_v10  ;;  %11349 = vst [vmem:[#allocation139_spill] sm:$0xff] %v9031_v28  ;;  %v9033_v3 = vmul.f32 %v5634_v29, %v3029_v22  ;;  %v2402_v61 = vmul.f32 1.442695, %v1970_v50  ;;  %v2404_v57 = vmul.f32 1.442695, %v1971_v34  ;;  %v9039_v62 = vpop.eup %5639  ;;  %v11352_v22 = vld [vmem:[#allocation24_spill] sm:$0xff] }
 0x305   : > { %v2757_v60 = vadd.f32 %v8907_v33, %v8899_v58  ;;  %4412 = vmatmul.mubr.bf16.gmra.mrb[156].mxu0 %v3680_v6  ;;  %v2406_v17 = vmul.f32 1.442695, %v1972_v47  ;;  %v1974_v0 = vsub.f32 %v11350_v37, %v1703_v1  ;;  %v1975_v10 = vsub.f32 %v11351_v7, %v1703_v1  ;;  %v9043_v32 = vpop.eup %5641  ;;  %v11353_v34 = vld [vmem:[#allocation171_spill] sm:$0xff]  ;;  %v11354_v6 = vld [vmem:[#allocation101_spill] sm:$0xff]  ;;  %v11355_v47 = vld [vmem:[#allocation252_spill] sm:$0xff] }
 0x306   : > { %v2408_v63 = vmul.f32 1.442695, %v1973_v15  ;;  %5655 = vpow2.f32 %v2402_v61  ;;  %v1976_v50 = vsub.f32 %v11352_v22, %v1703_v1  ;;  %v1977_v58 = vsub.f32 %v11353_v34, %v1703_v1  ;;  %v9048_v33 = vpop.eup %5643  ;;  %v11357_v7 = vld [vmem:[#allocation72_spill] sm:$0xff]  ;;  %v9058_v34 = vpop.xlane.xlu1 %2680 }
 0x307   : > { %v2758_v29 = vadd.f32 %v8912_v5, %v2757_v60  ;;  %5657 = vpow2.f32 %v2404_v57  ;;  %v11356_v15 = vmax.f32 %v11354_v6, %v11355_v47  ;;  %v2410_v37 = vmul.f32 1.442695, %v1974_v0  ;;  %v9055_v61 = vpop.eup %5645  ;;  %v11358_v6 = vld [vmem:[#allocation74_spill] sm:$0xff] }
 0x308   : > { %v2412_v43 = vmul.f32 1.442695, %v1975_v10  ;;  %v3203_v18 = vmul.f32 %v11357_v7, %v8956_v49  ;;  %5659 = vpow2.f32 %v2406_v17  ;;  %v2414_v22 = vmul.f32 1.442695, %v1976_v50  ;;  %v9060_v57 = vpop.eup %5647  ;;  %v11359_v10 = vld [vmem:[#allocation148_spill] sm:$0xff]  ;;  %v11360_v17 = vld [vmem:[#allocation79_spill] sm:$0xff] }
 0x309   : > { %1787 = vmax.xlane.f32.xlu0 %v11356_v15  ;;  %v2759_v60 = vadd.f32 %v8919_v27, %v2758_v29  ;;  %v2416_v1 = vmul.f32 1.442695, %v1977_v58  ;;  %5661 = vpow2.f32 %v2408_v63  ;;  %v3207_v0 = vmul.f32 %v11358_v6, %v8963_v21  ;;  %v9069_v50 = vpop.eup %5649  ;;  %v11361_v63 = vld [vmem:[#allocation70_spill] sm:$0xff]  ;;  %v11362_v6 = vld [vmem:[#allocation156_spill] sm:$0xff]  ;;  %v1708_v27 = vpop.xlane.xlu0 %1707 }
 0x30a   : > { %3459 = vst [vmem:[%s8425_s24 + $0x208] sm:$0xff] %v3203_v18  ;;  %v3205_v15 = vmul.f32 %v11359_v10, %v8956_v49  ;;  %v3209_v29 = vmul.f32 %v11360_v17, %v8963_v21  ;;  %5663 = vpow2.f32 %v2410_v37  ;;  %v2762_v58 = vadd.f32 %v8954_v35, %v8949_v8  ;;  %v5652_v10 = vpop.eup %5651 }
 0x30b   : > { %2760 = vadd.xlane.f32.xlu1 %v2759_v60  ;;  %v3202_v7 = vmul.f32 %v11361_v63, %v8956_v49  ;;  %v3206_v5 = vmul.f32 %v11362_v6, %v8963_v21  ;;  %5665 = vpow2.f32 %v2412_v43  ;;  %3463 = vst [vmem:[%s8425_s24 + $0x228] sm:$0xff] %v3207_v0  ;;  %v3683_v17 = vpack.c.bf16 %v3207_v0, %v3203_v18  ;;  %v11363_v60 = vld [vmem:[#allocation145_spill] sm:$0xff]  ;;  %v11364_v18 = vld [vmem:[#allocation75_spill] sm:$0xff] }
 0x30c   : > { %3461 = vst [vmem:[%s8425_s24 + $0x218] sm:$0xff] %v3205_v15  ;;  %3465 = vst [vmem:[%s8425_s24 + $0x238] sm:$0xff] %v3209_v29  ;;  %v3685_v37 = vpack.c.bf16 %v3209_v29, %v3205_v15  ;;  %v3204_v8 = vmul.f32 %v11363_v60, %v8956_v49  ;;  %v5654_v35 = vpop.eup %5653  ;;  %v2966_v47 = vmul.f32 %v5652_v10, %v8966_v26  ;;  %5667 = vpow2.f32 %v2414_v22  ;;  %v11365_v49 = vld [vmem:[#allocation26_spill] sm:$0xff]  ;;  %v11366_v26 = vld [vmem:[#allocation92_spill] sm:$0xff] }
 0x30d   : > { %v2763_v63 = vadd.f32 %v8961_v24, %v2762_v58  ;;  %3458 = vst [vmem:[%s8425_s24 + $0x200] sm:$0xff] %v3202_v7  ;;  %3462 = vst [vmem:[%s8425_s24 + $0x220] sm:$0xff] %v3206_v5  ;;  %v3682_v6 = vpack.c.bf16 %v3206_v5, %v3202_v7  ;;  %v2967_v43 = vmul.f32 %v5654_v35, %v8988_v54  ;;  %5669 = vpow2.f32 %v2416_v1  ;;  %v11367_v22 = vld [vmem:[#allocation93_spill] sm:$0xff]  ;;  %v11369_v54 = vld [vmem:[#allocation30_spill] sm:$0xff]  ;;  %v1713_v7 = vpop.xlane.xlu1 %1712 }
 0x30e   : > { %4130 = vmatprep.mubr.bf16.mxu1 %v3683_v17  ;;  %4419 = vmatprep.mubr.bf16.mxu0 %v3685_v37  ;;  %v3208_v0 = vmul.f32 %v11364_v18, %v8963_v21  ;;  %3460 = vst [vmem:[%s8425_s24 + $0x210] sm:$0xff] %v3204_v8  ;;  %v1978_v15 = vsub.f32 %v11365_v49, %v1708_v27  ;;  %v3030_v29 = vsub.f32 2.0, %v2966_v47  ;;  %5671 = vrcp.f32 %v9037_v11  ;;  %v11370_v21 = vld [vmem:[#allocation27_spill] sm:$0xff] }
 0x30f   : > { %v11368_v58 = vmax.f32 %v11366_v26, %v11367_v22  ;;  %v2764_v5 = vadd.f32 %v8968_v52, %v2763_v63  ;;  %4131 = vmatmul.mubr.bf16.gmra.mrb[160].mxu1 %v3682_v6  ;;  %v1979_v1 = vsub.f32 %v11369_v54, %v1708_v27  ;;  %v3031_v17 = vsub.f32 2.0, %v2967_v43  ;;  %v11372_v49 = vld [vmem:[#allocation31_spill] sm:$0xff] }
 0x310   : > { %3464 = vst [vmem:[%s8425_s24 + $0x230] sm:$0xff] %v3208_v0  ;;  %v3684_v37 = vpack.c.bf16 %v3208_v0, %v3204_v8  ;;  %5673 = vrcp.f32 %v9058_v34  ;;  %v1980_v60 = vsub.f32 %v11370_v21, %v1708_v27  ;;  %v9100_v47 = vpop.eup %5655  ;;  %v9102_v18 = vmul.f32 %v5652_v10, %v3030_v29  ;;  %v11373_v0 = vld [vmem:[#allocation29_spill] sm:$0xff]  ;;  %v11374_v29 = vld [vmem:[#allocation196_spill] sm:$0xff] }
 0x311   : > { %1792 = vmax.xlane.f32.xlu1 %v11368_v58  ;;  %11371 = vst [vmem:[#allocation126_spill] sm:$0xff] %v9100_v47  ;;  %2765 = vadd.xlane.f32.xlu0 %v2764_v5  ;;  %v1981_v26 = vsub.f32 %v11372_v49, %v1708_v27  ;;  %v2418_v58 = vmul.f32 1.442695, %v1978_v15  ;;  %v2420_v63 = vmul.f32 1.442695, %v1979_v1  ;;  %v9105_v6 = vpop.eup %5657  ;;  %v9107_v54 = vmul.f32 %v5654_v35, %v3031_v17  ;;  %v11375_v27 = vld [vmem:[#allocation199_spill] sm:$0xff] }
 0x312   : > { %4420 = vmatmul.mubr.bf16.gmra.mrb[160].mxu0 %v3684_v37  ;;  %v2422_v43 = vmul.f32 1.442695, %v1980_v60  ;;  %v2767_v8 = vadd.f32 %v8976_v31, %v8972_v53  ;;  %v1982_v21 = vsub.f32 %v11373_v0, %v1713_v7  ;;  %v9112_v24 = vpop.eup %5659  ;;  %v1983_v5 = vsub.f32 %v11374_v29, %v1713_v7  ;;  %v11376_v17 = vld [vmem:[#allocation201_spill] sm:$0xff] }
 0x313   : > { %5675 = vpow2.f32 %v2418_v58  ;;  %v2424_v10 = vmul.f32 1.442695, %v1981_v26  ;;  %v1984_v15 = vsub.f32 %v11375_v27, %v1713_v7  ;;  %v9116_v1 = vpop.eup %5661  ;;  %v1985_v37 = vsub.f32 %v11376_v17, %v1713_v7  ;;  %v11378_v26 = vld [vmem:[#allocation80_spill] sm:$0xff] }
 0x314   : > { %5677 = vpow2.f32 %v2420_v63  ;;  %v2768_v35 = vadd.f32 %v8984_v48, %v2767_v8  ;;  %v2426_v60 = vmul.f32 1.442695, %v1982_v21  ;;  %v9120_v49 = vpop.eup %5663  ;;  %v2428_v0 = vmul.f32 1.442695, %v1983_v5  ;;  %v11379_v8 = vld [vmem:[#allocation83_spill] sm:$0xff] }
 0x315   : > { %11377 = vst [vmem:[#allocation127_spill] sm:$0xff] %v9120_v49  ;;  %5679 = vpow2.f32 %v2422_v43  ;;  %v2430_v53 = vmul.f32 1.442695, %v1984_v15  ;;  %v3211_v58 = vmul.f32 %v11378_v26, %v9026_v4  ;;  %v9124_v29 = vpop.eup %5665  ;;  %v2432_v27 = vmul.f32 1.442695, %v1985_v37  ;;  %v11381_v43 = vld [vmem:[#allocation16_spill] sm:$0xff] }
 0x316   : > { %5681 = vpow2.f32 %v2424_v10  ;;  %v2769_v63 = vadd.f32 %v8990_v41, %v2768_v35  ;;  %v3215_v48 = vmul.f32 %v11379_v8, %v9033_v3  ;;  %v9129_v7 = vpop.eup %5667  ;;  %v3213_v21 = vmul.f32 %v11381_v43, %v9026_v4  ;;  %v11382_v5 = vld [vmem:[#allocation87_spill] sm:$0xff]  ;;  %v11383_v37 = vld [vmem:[#allocation77_spill] sm:$0xff]  ;;  %v11384_v26 = vld [vmem:[#allocation82_spill] sm:$0xff] }
 0x317   : > { %11380 = vst [vmem:[#allocation134_spill] sm:$0xff] %v9129_v7  ;;  %5683 = vpow2.f32 %v2426_v60  ;;  %3467 = vst [vmem:[%s8425_s24 + $0x248] sm:$0xff] %v3211_v58  ;;  %v3217_v15 = vmul.f32 %v11382_v5, %v9033_v3  ;;  %v2772_v10 = vadd.f32 %v9031_v28, %v9024_v36  ;;  %v9138_v35 = vpop.eup %5669  ;;  %v3210_v60 = vmul.f32 %v11383_v37, %v9026_v4 }
 0x318   : > { %2770 = vadd.xlane.f32.xlu1 %v2769_v63  ;;  %5685 = vpow2.f32 %v2428_v0  ;;  %3471 = vst [vmem:[%s8425_s24 + $0x268] sm:$0xff] %v3215_v48  ;;  %v3687_v17 = vpack.c.bf16 %v3215_v48, %v3211_v58  ;;  %v3214_v8 = vmul.f32 %v11384_v26, %v9033_v3  ;;  %v5672_v43 = vpop.eup %5671  ;;  %3469 = vst [vmem:[%s8425_s24 + $0x258] sm:$0xff] %v3213_v21  ;;  %v11385_v0 = vld [vmem:[#allocation81_spill] sm:$0xff] }
 0x319   : > { %5687 = vpow2.f32 %v2430_v53  ;;  %3473 = vst [vmem:[%s8425_s24 + $0x278] sm:$0xff] %v3217_v15  ;;  %v3689_v5 = vpack.c.bf16 %v3217_v15, %v3213_v21  ;;  %v2773_v36 = vadd.f32 %v9039_v62, %v2772_v10  ;;  %v3212_v63 = vmul.f32 %v11385_v0, %v9026_v4  ;;  %3466 = vst [vmem:[%s8425_s24 + $0x240] sm:$0xff] %v3210_v60  ;;  %v11386_v53 = vld [vmem:[#allocation84_spill] sm:$0xff]  ;;  %v11391_v0 = vld [vmem:[#allocation193_spill] sm:$0xff] }
 0x31a   : > { %v5674_v28 = vpop.eup %5673  ;;  %v2968_v48 = vmul.f32 %v5672_v43, %v9037_v11  ;;  %5689 = vpow2.f32 %v2432_v27  ;;  %4138 = vmatprep.mubr.bf16.mxu1 %v3687_v17  ;;  %3470 = vst [vmem:[%s8425_s24 + $0x260] sm:$0xff] %v3214_v8  ;;  %v3686_v58 = vpack.c.bf16 %v3214_v8, %v3210_v60  ;;  %v3216_v37 = vmul.f32 %v11386_v53, %v9033_v3  ;;  %v11387_v11 = vld [vmem:[#allocation18_spill] sm:$0xff]  ;;  %v11388_v3 = vld [vmem:[#allocation187_spill] sm:$0xff]  ;;  %v11389_v17 = vld [vmem:[#allocation189_spill] sm:$0xff] }
 0x31b   : > { %v2969_v26 = vmul.f32 %v5674_v28, %v9058_v34  ;;  %4427 = vmatprep.mubr.bf16.mxu0 %v3689_v5  ;;  %v2774_v21 = vadd.f32 %v9043_v32, %v2773_v36  ;;  %3468 = vst [vmem:[%s8425_s24 + $0x250] sm:$0xff] %v3212_v63  ;;  %v2777_v4 = vadd.f32 %v9055_v61, %v9048_v33 }
 0x31c   : > { %v3219_v27 = vmul.f32 %v11387_v11, %v9102_v18  ;;  %v3032_v15 = vsub.f32 2.0, %v2968_v48  ;;  %4139 = vmatmul.mubr.bf16.gmra.mrb[164].mxu1 %v3686_v58  ;;  %3472 = vst [vmem:[%s8425_s24 + $0x270] sm:$0xff] %v3216_v37  ;;  %v3688_v10 = vpack.c.bf16 %v3216_v37, %v3212_v63  ;;  %v3223_v34 = vmul.f32 %v11388_v3, %v9107_v54 }
 0x31d   : > { %v3221_v60 = vmul.f32 %v11389_v17, %v9102_v18  ;;  %v9167_v36 = vpop.eup %5675  ;;  %v3033_v8 = vsub.f32 2.0, %v2969_v26  ;;  %2775 = vadd.xlane.f32.xlu0 %v2774_v21  ;;  %v2778_v5 = vadd.f32 %v9060_v57, %v2777_v4  ;;  %v3225_v48 = vmul.f32 %v11391_v0, %v9107_v54  ;;  %v11392_v26 = vld [vmem:[#allocation85_spill] sm:$0xff] }
 0x31e   : > { %11390 = vst [vmem:[#allocation141_spill] sm:$0xff] %v9167_v36  ;;  %3475 = vst [vmem:[%s8425_s24 + $0x288] sm:$0xff] %v3219_v27  ;;  %v2782_v63 = vadd.f32 %v9105_v6, %v9100_v47  ;;  %v9175_v58 = vpop.eup %5677  ;;  %v3096_v53 = vmul.f32 %v5672_v43, %v3032_v15  ;;  %4428 = vmatmul.mubr.bf16.gmra.mrb[164].mxu0 %v3688_v10  ;;  %v3691_v37 = vpack.c.bf16 %v3223_v34, %v3219_v27  ;;  %v11393_v4 = vld [vmem:[#allocation185_spill] sm:$0xff] }
 0x31f   : > { %3479 = vst [vmem:[%s8425_s24 + $0x2a8] sm:$0xff] %v3223_v34  ;;  %3477 = vst [vmem:[%s8425_s24 + $0x298] sm:$0xff] %v3221_v60  ;;  %v3218_v21 = vmul.f32 %v11392_v26, %v9102_v18  ;;  %v3222_v11 = vmul.f32 %v11393_v4, %v9107_v54  ;;  %v9183_v3 = vpop.eup %5679  ;;  %v3097_v17 = vmul.f32 %v5674_v28, %v3033_v8  ;;  %v11395_v10 = vld [vmem:[#allocation89_spill] sm:$0xff]  ;;  %v11396_v26 = vld [vmem:[#allocation190_spill] sm:$0xff] }
 0x320   : > { %11394 = vst [vmem:[#allocation104_spill] sm:$0xff] %v9183_v3  ;;  %v2779_v0 = vadd.f32 %v9069_v50, %v2778_v5  ;;  %3481 = vst [vmem:[%s8425_s24 + $0x2b8] sm:$0xff] %v3225_v48  ;;  %v3693_v47 = vpack.c.bf16 %v3225_v48, %v3221_v60  ;;  %v2783_v43 = vadd.f32 %v9112_v24, %v2782_v63  ;;  %v9188_v15 = vpop.eup %5681  ;;  %4146 = vmatprep.mubr.bf16.mxu1 %v3691_v37  ;;  %v11398_v48 = vld [vmem:[#allocation192_spill] sm:$0xff]  ;;  %v11399_v37 = vld [vmem:[#allocation197_spill] sm:$0xff] }
 0x321   : > { %3474 = vst [vmem:[%s8425_s24 + $0x280] sm:$0xff] %v3218_v21  ;;  %3478 = vst [vmem:[%s8425_s24 + $0x2a0] sm:$0xff] %v3222_v11  ;;  %v3690_v27 = vpack.c.bf16 %v3222_v11, %v3218_v21  ;;  %v3220_v34 = vmul.f32 %v11395_v10, %v9102_v18  ;;  %v3224_v28 = vmul.f32 %v11396_v26, %v9107_v54  ;;  %v9198_v60 = vpop.eup %5683  ;;  %v11401_v11 = vld [vmem:[#allocation198_spill] sm:$0xff] }
 0x322   : > { %v2787_v8 = vadd.f32 %v9124_v29, %v9120_v49  ;;  %11397 = vst [vmem:[#allocation36_spill] sm:$0xff] %v9198_v60  ;;  %2780 = vadd.xlane.f32.xlu1 %v2779_v0  ;;  %4435 = vmatprep.mubr.bf16.mxu0 %v3693_v47  ;;  %v2784_v5 = vadd.f32 %v9116_v1, %v2783_v43  ;;  %v9203_v4 = vpop.eup %5685  ;;  %v11402_v26 = vld [vmem:[#allocation202_spill] sm:$0xff] }
 0x323   : > { %v3227_v63 = vmul.f32 %v11398_v48, %v3096_v53  ;;  %v3231_v21 = vmul.f32 %v11399_v37, %v3097_v17  ;;  %11400 = vst [vmem:[#allocation34_spill] sm:$0xff] %v9203_v4  ;;  %3476 = vst [vmem:[%s8425_s24 + $0x290] sm:$0xff] %v3220_v34  ;;  %v3692_v18 = vpack.c.bf16 %v3224_v28, %v3220_v34  ;;  %v9210_v47 = vpop.eup %5687  ;;  %v11404_v37 = vld [vmem:[#allocation191_spill] sm:$0xff] }
 0x324   : > { %3480 = vst [vmem:[%s8425_s24 + $0x2b0] sm:$0xff] %v3224_v28  ;;  %v2788_v54 = vadd.f32 %v9129_v7, %v2787_v8  ;;  %v3229_v10 = vmul.f32 %v11401_v11, %v3096_v53  ;;  %v3233_v0 = vmul.f32 %v11402_v26, %v3097_v17  ;;  %11403 = vst [vmem:[#allocation37_spill] sm:$0xff] %v9210_v47  ;;  %2785 = vadd.xlane.f32.xlu0 %v2784_v5  ;;  %v11405_v28 = vld [vmem:[#allocation195_spill] sm:$0xff]  ;;  %v9218_v8 = vpop.eup %5689  ;;  %v11407_v26 = vld [vmem:[#allocation194_spill] sm:$0xff] }
 0x325   : > { %3483 = vst [vmem:[%s8425_s24 + $0x2c8] sm:$0xff] %v3227_v63  ;;  %3487 = vst [vmem:[%s8425_s24 + $0x2e8] sm:$0xff] %v3231_v21  ;;  %v3695_v43 = vpack.c.bf16 %v3231_v21, %v3227_v63  ;;  %v2792_v48 = vadd.f32 %v9175_v58, %v9167_v36  ;;  %v3226_v34 = vmul.f32 %v11404_v37, %v3096_v53  ;;  %4147 = vmatmul.mubr.bf16.gmra.mrb[168].mxu1 %v3690_v27  ;;  %v11408_v63 = vld [vmem:[#allocation200_spill] sm:$0xff] }
 0x326   : > { %v3230_v49 = vmul.f32 %v11405_v28, %v3097_v17  ;;  %11406 = vst [vmem:[#allocation33_spill] sm:$0xff] %v9218_v8  ;;  %v2789_v11 = vadd.f32 %v9138_v35, %v2788_v54  ;;  %3485 = vst [vmem:[%s8425_s24 + $0x2d8] sm:$0xff] %v3229_v10  ;;  %v3697_v5 = vpack.c.bf16 %v3233_v0, %v3229_v10  ;;  %4436 = vmatmul.mubr.bf16.gmra.mrb[168].mxu0 %v3692_v18  ;;  %v11409_v18 = vld [vmem:[#allocation203_spill] sm:$0xff]  ;;  %v11410_v28 = vld [vmem:[#allocation204_spill] sm:$0xff] }
 0x327   : > { %3489 = vst [vmem:[%s8425_s24 + $0x2f8] sm:$0xff] %v3233_v0  ;;  %v3228_v7 = vmul.f32 %v11407_v26, %v3096_v53  ;;  %v3232_v21 = vmul.f32 %v11408_v63, %v3097_v17  ;;  %4154 = vmatprep.mubr.bf16.mxu1 %v3695_v43  ;;  %v2793_v36 = vadd.f32 %v9183_v3, %v2792_v48  ;;  %3482 = vst [vmem:[%s8425_s24 + $0x2c0] sm:$0xff] %v3226_v34 }
 0x328   : > { %3486 = vst [vmem:[%s8425_s24 + $0x2e0] sm:$0xff] %v3230_v49  ;;  %v2797_v37 = vadd.f32 %v9203_v4, %v9198_v60  ;;  %2790 = vadd.xlane.f32.xlu1 %v2789_v11  ;;  %4443 = vmatprep.mubr.bf16.mxu0 %v3697_v5  ;;  %v3694_v53 = vpack.c.bf16 %v3230_v49, %v3226_v34  ;;  %v11411_v5 = vld [vmem:[#allocation207_spill] sm:$0xff] }
 0x329   : > { %3484 = vst [vmem:[%s8425_s24 + $0x2d0] sm:$0xff] %v3228_v7  ;;  %3488 = vst [vmem:[%s8425_s24 + $0x2f0] sm:$0xff] %v3232_v21  ;;  %v2794_v27 = vadd.f32 %v9188_v15, %v2793_v36  ;;  %v3696_v10 = vpack.c.bf16 %v3232_v21, %v3228_v7 }
 0x32a   : > { %v2798_v54 = vadd.f32 %v9210_v47, %v2797_v37 }
 0x32b   : > { %2795 = vadd.xlane.f32.xlu0 %v2794_v27 }
 0x32c   : > { %v2799_v17 = vadd.f32 %v9218_v8, %v2798_v54 }
 0x32d   : > { %4155 = vmatmul.mubr.bf16.gmra.mrb[172].mxu1 %v3694_v53  ;;  %v11412_v53 = vld [vmem:[#allocation205_spill] sm:$0xff] }
 0x32e   : > { %2800 = vadd.xlane.f32.xlu1 %v2799_v17  ;;  %4444 = vmatmul.mubr.bf16.gmra.mrb[172].mxu0 %v3696_v10  ;;  %v11413_v10 = vld [vmem:[#allocation206_spill] sm:$0xff] }
 0x32f   : > { %v2686_v0 = vpop.xlane.xlu0 %2685 }
 0x330   : > { %5691 = vrcp.f32 %v2686_v0 }
 0x335   : > { %v1718_v43 = vpop.xlane.xlu0 %1717 }
 0x336   : > { %v1986_v48 = vsub.f32 %v11409_v18, %v1718_v43  ;;  %v1987_v11 = vsub.f32 %v11410_v28, %v1718_v43  ;;  %v1988_v26 = vsub.f32 %v11411_v5, %v1718_v43  ;;  %v1989_v36 = vsub.f32 %v8064_v56, %v1718_v43  ;;  %v2691_v63 = vpop.xlane.xlu1 %2690  ;;  %v11414_v28 = vld [vmem:[#allocation208_spill] sm:$0xff] }
 0x337   : > { %5693 = vrcp.f32 %v2691_v63 }
 0x338   : > { %v2434_v49 = vmul.f32 1.442695, %v1986_v48  ;;  %v2436_v34 = vmul.f32 1.442695, %v1987_v11  ;;  %v2438_v37 = vmul.f32 1.442695, %v1988_v26 }
 0x339   : > { %v2440_v7 = vmul.f32 1.442695, %v1989_v36 }
 0x33a   : > { %5695 = vpow2.f32 %v2434_v49  ;;  %v5692_v21 = vpop.eup %5691 }
 0x33b   : > { %5697 = vpow2.f32 %v2436_v34  ;;  %v2970_v54 = vmul.f32 %v5692_v21, %v2686_v0 }
 0x33c   : > { %v1723_v27 = vpop.xlane.xlu1 %1722  ;;  %5699 = vpow2.f32 %v2438_v37 }
 0x33d   : > { %v1990_v17 = vsub.f32 %v11412_v53, %v1723_v27  ;;  %v1991_v18 = vsub.f32 %v11413_v10, %v1723_v27  ;;  %v1992_v5 = vsub.f32 %v11414_v28, %v1723_v27  ;;  %v1993_v56 = vsub.f32 %v8071_v59, %v1723_v27  ;;  %v11415_v10 = vld [vmem:[#allocation94_spill] sm:$0xff]  ;;  %v11416_v27 = vld [vmem:[#allocation97_spill] sm:$0xff] }
 0x33e   : > { %v3034_v43 = vsub.f32 2.0, %v2970_v54  ;;  %5701 = vpow2.f32 %v2440_v7  ;;  %v2696_v26 = vpop.xlane.xlu0 %2695  ;;  %v11419_v28 = vld [vmem:[#allocation210_spill] sm:$0xff] }
 0x33f   : > { %v2442_v48 = vmul.f32 1.442695, %v1990_v17  ;;  %v2444_v11 = vmul.f32 1.442695, %v1991_v18  ;;  %v2446_v49 = vmul.f32 1.442695, %v1992_v5  ;;  %5703 = vrcp.f32 %v2696_v26 }
 0x340   : > { %v3098_v36 = vmul.f32 %v5692_v21, %v3034_v43  ;;  %v2448_v34 = vmul.f32 1.442695, %v1993_v56  ;;  %v11418_v21 = vld [vmem:[#allocation209_spill] sm:$0xff] }
 0x341   : > { %5705 = vpow2.f32 %v2442_v48  ;;  %v5694_v0 = vpop.eup %5693  ;;  %v11421_v43 = vld [vmem:[#allocation217_spill] sm:$0xff] }
 0x342   : > { %5707 = vpow2.f32 %v2444_v11  ;;  %v3235_v53 = vmul.f32 %v8421_v42, %v3098_v36  ;;  %v3237_v59 = vmul.f32 %v11415_v10, %v3098_v36  ;;  %v9246_v7 = vmul.f32 %v11416_v27, %v3098_v36  ;;  %v11422_v11 = vld [vmem:[#allocation102_spill] sm:$0xff] }
 0x343   : > { %v2971_v17 = vmul.f32 %v5694_v0, %v2691_v63  ;;  %5709 = vpow2.f32 %v2446_v49  ;;  %v9261_v10 = vmul.f32 %v11422_v11, %v3098_v36 }
 0x344   : > { %v1728_v37 = vpop.xlane.xlu0 %1727  ;;  %v9248_v54 = vpop.eup %5695  ;;  %5711 = vpow2.f32 %v2448_v34  ;;  %3491 = vst [vmem:[%s8425_s24 + $0x308] sm:$0xff] %v3235_v53  ;;  %3493 = vst [vmem:[%s8425_s24 + $0x318] sm:$0xff] %v3237_v59 }
 0x345   : > { %11417 = vst [vmem:[#allocation35_spill] sm:$0xff] %v9248_v54  ;;  %v1994_v18 = vsub.f32 %v11418_v21, %v1728_v37  ;;  %v1995_v5 = vsub.f32 %v11419_v28, %v1728_v37  ;;  %v9252_v56 = vpop.eup %5697  ;;  %v1996_v48 = vsub.f32 %v11421_v43, %v1728_v37  ;;  %v1997_v42 = vsub.f32 %v8107_v20, %v1728_v37  ;;  %v2701_v49 = vpop.xlane.xlu1 %2700 }
 0x346   : > { %11420 = vst [vmem:[#allocation180_spill] sm:$0xff] %v9252_v56  ;;  %3490 = vst [vmem:[%s8425_s24 + $0x300] sm:$0xff] %v9246_v7  ;;  %v3035_v63 = vsub.f32 2.0, %v2971_v17  ;;  %v2802_v28 = vadd.f32 %v9252_v56, %v9248_v54  ;;  %v9265_v34 = vpop.eup %5699  ;;  %5713 = vrcp.f32 %v2701_v49  ;;  %v11426_v54 = vld [vmem:[#allocation98_spill] sm:$0xff] }
 0x347   : > { %v2450_v27 = vmul.f32 1.442695, %v1994_v18  ;;  %v2452_v21 = vmul.f32 1.442695, %v1995_v5  ;;  %11423 = vst [vmem:[#allocation38_spill] sm:$0xff] %v9265_v34  ;;  %3492 = vst [vmem:[%s8425_s24 + $0x310] sm:$0xff] %v9261_v10 }
 0x348   : > { %v2454_v43 = vmul.f32 1.442695, %v1996_v48  ;;  %v2456_v47 = vmul.f32 1.442695, %v1997_v42  ;;  %v3099_v20 = vmul.f32 %v5694_v0, %v3035_v63  ;;  %v2803_v37 = vadd.f32 %v9265_v34, %v2802_v28  ;;  %v9270_v36 = vpop.eup %5701  ;;  %v11425_v5 = vld [vmem:[#allocation100_spill] sm:$0xff]  ;;  %v11428_v63 = vld [vmem:[#allocation211_spill] sm:$0xff] }
 0x349   : > { %5715 = vpow2.f32 %v2450_v27  ;;  %11424 = vst [vmem:[#allocation135_spill] sm:$0xff] %v9270_v36  ;;  %v5704_v17 = vpop.eup %5703  ;;  %v11429_v28 = vld [vmem:[#allocation212_spill] sm:$0xff] }
 0x34a   : > { %5717 = vpow2.f32 %v2452_v21  ;;  %v3239_v11 = vmul.f32 %v11425_v5, %v3099_v20  ;;  %v3241_v56 = vmul.f32 %v11426_v54, %v3099_v20  ;;  %v2804_v48 = vadd.f32 %v9270_v36, %v2803_v37  ;;  %v11431_v21 = vld [vmem:[#allocation218_spill] sm:$0xff] }
 0x34b   : > { %5719 = vpow2.f32 %v2454_v43  ;;  %v1733_v18 = vpop.xlane.xlu1 %1732  ;;  %v9275_v42 = vpop.eup %5705  ;;  %v2972_v0 = vmul.f32 %v5704_v17, %v2696_v26 }
 0x34c   : > { %11427 = vst [vmem:[#allocation138_spill] sm:$0xff] %v9275_v42  ;;  %5721 = vpow2.f32 %v2456_v47  ;;  %v1998_v27 = vsub.f32 %v11428_v63, %v1733_v18  ;;  %v1999_v34 = vsub.f32 %v11429_v28, %v1733_v18  ;;  %v9279_v60 = vpop.eup %5707  ;;  %v2000_v8 = vsub.f32 %v11431_v21, %v1733_v18  ;;  %3495 = vst [vmem:[%s8425_s24 + $0x328] sm:$0xff] %v3239_v11  ;;  %v11432_v63 = vld [vmem:[#allocation95_spill] sm:$0xff] }
 0x34d   : > { %11430 = vst [vmem:[#allocation143_spill] sm:$0xff] %v9279_v60  ;;  %v2001_v43 = vsub.f32 %v8131_v38, %v1733_v18  ;;  %v3699_v5 = vpack.c.bf16 %v3239_v11, %v3235_v53  ;;  %3497 = vst [vmem:[%s8425_s24 + $0x338] sm:$0xff] %v3241_v56  ;;  %v3701_v54 = vpack.c.bf16 %v3241_v56, %v3237_v59  ;;  %2805 = vadd.xlane.f32.xlu0 %v2804_v48  ;;  %v9285_v47 = vpop.xlane.xlu0 %2705  ;;  %v9288_v4 = vpop.eup %5709  ;;  %v11434_v38 = vld [vmem:[#allocation105_spill] sm:$0xff] }
 0x34e   : > { %v3036_v37 = vsub.f32 2.0, %v2972_v0  ;;  %v2458_v36 = vmul.f32 1.442695, %v1998_v27  ;;  %v2460_v26 = vmul.f32 1.442695, %v1999_v34  ;;  %v3238_v28 = vmul.f32 %v11432_v63, %v3099_v20  ;;  %11433 = vst [vmem:[#allocation146_spill] sm:$0xff] %v9288_v4  ;;  %v9292_v59 = vpop.eup %5711 }
 0x34f   : > { %v2462_v3 = vmul.f32 1.442695, %v2000_v8  ;;  %v2464_v21 = vmul.f32 1.442695, %v2001_v43  ;;  %5723 = vrcp.f32 %v9285_v47  ;;  %4162 = vmatprep.mubr.bf16.mxu1 %v3699_v5  ;;  %4451 = vmatprep.mubr.bf16.mxu0 %v3701_v54  ;;  %v3240_v53 = vmul.f32 %v11434_v38, %v3099_v20  ;;  %11435 = vst [vmem:[#allocation140_spill] sm:$0xff] %v9292_v59  ;;  %v11437_v0 = vld [vmem:[#allocation158_spill] sm:$0xff] }
 0x350   : > { %v3100_v56 = vmul.f32 %v5704_v17, %v3036_v37  ;;  %5725 = vpow2.f32 %v2458_v36  ;;  %3494 = vst [vmem:[%s8425_s24 + $0x320] sm:$0xff] %v3238_v28  ;;  %v3698_v34 = vpack.c.bf16 %v3238_v28, %v9246_v7  ;;  %v2807_v18 = vadd.f32 %v9279_v60, %v9275_v42  ;;  %v5714_v11 = vpop.eup %5713  ;;  %v11436_v17 = vld [vmem:[#allocation103_spill] sm:$0xff]  ;;  %v11439_v5 = vld [vmem:[#allocation213_spill] sm:$0xff]  ;;  %v11440_v54 = vld [vmem:[#allocation214_spill] sm:$0xff] }
 0x351   : > { %5727 = vpow2.f32 %v2460_v26  ;;  %3496 = vst [vmem:[%s8425_s24 + $0x330] sm:$0xff] %v3240_v53  ;;  %v3700_v8 = vpack.c.bf16 %v3240_v53, %v9261_v10  ;;  %v2973_v43 = vmul.f32 %v5714_v11, %v2701_v49  ;;  %v11442_v63 = vld [vmem:[#allocation219_spill] sm:$0xff] }
 0x352   : > { %5729 = vpow2.f32 %v2462_v3  ;;  %v1738_v48 = vpop.xlane.xlu0 %1737  ;;  %4163 = vmatmul.mubr.bf16.gmra.mrb[176].mxu1 %v3698_v34  ;;  %v2808_v20 = vadd.f32 %v9288_v4, %v2807_v18  ;;  %v9302_v36 = vmul.f32 %v11436_v17, %v3100_v56  ;;  %v9305_v7 = vmul.f32 %v11437_v0, %v3100_v56  ;;  %v11443_v49 = vld [vmem:[#allocation99_spill] sm:$0xff] }
 0x353   : > { %v9307_v27 = vpop.eup %5715  ;;  %5731 = vpow2.f32 %v2464_v21  ;;  %v2002_v10 = vsub.f32 %v11439_v5, %v1738_v48  ;;  %v2003_v3 = vsub.f32 %v11440_v54, %v1738_v48  ;;  %4452 = vmatmul.mubr.bf16.gmra.mrb[176].mxu0 %v3700_v8  ;;  %v9313_v26 = vpop.xlane.xlu1 %2710  ;;  %v2004_v28 = vsub.f32 %v11442_v63, %v1738_v48  ;;  %v11446_v5 = vld [vmem:[#allocation110_spill] sm:$0xff] }
 0x354   : > { %11438 = vst [vmem:[#allocation142_spill] sm:$0xff] %v9307_v27  ;;  %v9311_v37 = vpop.eup %5717  ;;  %v2005_v38 = vsub.f32 %v8172_v46, %v1738_v48  ;;  %v2809_v53 = vadd.f32 %v9292_v59, %v2808_v20  ;;  %3499 = vst [vmem:[%s8425_s24 + $0x348] sm:$0xff] %v9302_v36  ;;  %v9323_v21 = vmul.f32 %v11443_v49, %v3100_v56  ;;  %v3037_v18 = vsub.f32 2.0, %v2973_v43 }
 0x355   : > { %11441 = vst [vmem:[#allocation144_spill] sm:$0xff] %v9311_v37  ;;  %3501 = vst [vmem:[%s8425_s24 + $0x358] sm:$0xff] %v9305_v7  ;;  %v9325_v34 = vpop.eup %5719  ;;  %5733 = vrcp.f32 %v9313_v26  ;;  %v2466_v8 = vmul.f32 1.442695, %v2002_v10  ;;  %v2468_v17 = vmul.f32 1.442695, %v2003_v3  ;;  %v2812_v20 = vadd.f32 %v9311_v37, %v9307_v27 }
 0x356   : > { %11444 = vst [vmem:[#allocation147_spill] sm:$0xff] %v9325_v34  ;;  %v9328_v0 = vpop.eup %5721  ;;  %v2470_v46 = vmul.f32 1.442695, %v2004_v28  ;;  %v2472_v48 = vmul.f32 1.442695, %v2005_v38  ;;  %2810 = vadd.xlane.f32.xlu1 %v2809_v53  ;;  %3498 = vst [vmem:[%s8425_s24 + $0x340] sm:$0xff] %v9323_v21  ;;  %v9335_v54 = vmul.f32 %v11446_v5, %v3100_v56  ;;  %v3101_v63 = vmul.f32 %v5714_v11, %v3037_v18 }
 0x357   : > { %11445 = vst [vmem:[#allocation41_spill] sm:$0xff] %v9328_v0  ;;  %5735 = vpow2.f32 %v2466_v8  ;;  %v2813_v10 = vadd.f32 %v9325_v34, %v2812_v20  ;;  %v11447_v28 = vld [vmem:[#allocation215_spill] sm:$0xff]  ;;  %v11448_v53 = vld [vmem:[#allocation216_spill] sm:$0xff]  ;;  %v11450_v8 = vld [vmem:[#allocation106_spill] sm:$0xff] }
 0x358   : > { %5737 = vpow2.f32 %v2468_v17  ;;  %3500 = vst [vmem:[%s8425_s24 + $0x350] sm:$0xff] %v9335_v54  ;;  %v11449_v27 = vld [vmem:[#allocation220_spill] sm:$0xff]  ;;  %v3247_v17 = vmul.f32 %v11450_v8, %v3101_v63 }
 0x359   : > { %v1743_v43 = vpop.xlane.xlu1 %1742  ;;  %v5724_v3 = vpop.eup %5723  ;;  %5739 = vpow2.f32 %v2470_v46  ;;  %v2814_v8 = vadd.f32 %v9328_v0, %v2813_v10 }
 0x35a   : > { %v2006_v38 = vsub.f32 %v11447_v28, %v1743_v43  ;;  %v2007_v49 = vsub.f32 %v11448_v53, %v1743_v43  ;;  %v2008_v37 = vsub.f32 %v11449_v27, %v1743_v43  ;;  %v9343_v4 = vpop.eup %5725  ;;  %v2974_v56 = vmul.f32 %v5724_v3, %v9285_v47  ;;  %v9347_v18 = vpop.xlane.xlu0 %2715  ;;  %3503 = vst [vmem:[%s8425_s24 + $0x368] sm:$0xff] %v3247_v17 }
 0x35b   : > { %5741 = vpow2.f32 %v2472_v48  ;;  %v2009_v11 = vsub.f32 %v8179_v19, %v1743_v43  ;;  %v9350_v20 = vpop.eup %5727  ;;  %v3703_v47 = vpack.c.bf16 %v3247_v17, %v9302_v36  ;;  %v11451_v19 = vld [vmem:[#allocation111_spill] sm:$0xff]  ;;  %2815 = vadd.xlane.f32.xlu0 %v2814_v8 }
 0x35c   : > { %v2474_v46 = vmul.f32 1.442695, %v2006_v38  ;;  %v2476_v5 = vmul.f32 1.442695, %v2007_v49  ;;  %v2478_v28 = vmul.f32 1.442695, %v2008_v37  ;;  %5743 = vrcp.f32 %v9347_v18  ;;  %v9353_v27 = vpop.eup %5729 }
 0x35d   : > { %v3038_v53 = vsub.f32 2.0, %v2974_v56  ;;  %v2480_v34 = vmul.f32 1.442695, %v2009_v11  ;;  %v3249_v48 = vmul.f32 %v11451_v19, %v3101_v63  ;;  %v9358_v43 = vpop.eup %5731  ;;  %v11452_v38 = vld [vmem:[#allocation12_spill] sm:$0xff]  ;;  %v11453_v49 = vld [vmem:[#allocation107_spill] sm:$0xff]  ;;  %4170 = vmatprep.mubr.bf16.mxu1 %v3703_v47  ;;  %v2817_v11 = vadd.f32 %v9350_v20, %v9343_v4  ;;  %v11455_v19 = vld [vmem:[#allocation222_spill] sm:$0xff] }
 0x35e   : > { %5745 = vpow2.f32 %v2474_v46  ;;  %v3246_v37 = vmul.f32 %v11452_v38, %v3101_v63  ;;  %v3248_v42 = vmul.f32 %v11453_v49, %v3101_v63  ;;  %v11454_v46 = vld [vmem:[#allocation221_spill] sm:$0xff]  ;;  %v11456_v38 = vld [vmem:[#allocation231_spill] sm:$0xff] }
 0x35f   : > { %v3102_v59 = vmul.f32 %v5724_v3, %v3038_v53  ;;  %5747 = vpow2.f32 %v2476_v5  ;;  %3505 = vst [vmem:[%s8425_s24 + $0x378] sm:$0xff] %v3249_v48  ;;  %v3705_v36 = vpack.c.bf16 %v3249_v48, %v9305_v7  ;;  %v5734_v17 = vpop.eup %5733 }
 0x360   : > { %v1748_v56 = vpop.xlane.xlu0 %1747  ;;  %5749 = vpow2.f32 %v2478_v28  ;;  %3502 = vst [vmem:[%s8425_s24 + $0x360] sm:$0xff] %v3246_v37  ;;  %3504 = vst [vmem:[%s8425_s24 + $0x370] sm:$0xff] %v3248_v42  ;;  %v2975_v63 = vmul.f32 %v5734_v17, %v9313_v26  ;;  %v3702_v7 = vpack.c.bf16 %v3246_v37, %v9323_v21  ;;  %v3704_v49 = vpack.c.bf16 %v3248_v42, %v9335_v54 }
 0x361   : > { %v2010_v10 = vsub.f32 %v11454_v46, %v1748_v56  ;;  %v2011_v0 = vsub.f32 %v11455_v19, %v1748_v56  ;;  %v2012_v60 = vsub.f32 %v11456_v38, %v1748_v56  ;;  %5751 = vpow2.f32 %v2480_v34  ;;  %4459 = vmatprep.mubr.bf16.mxu0 %v3705_v36  ;;  %v9375_v5 = vpop.eup %5735  ;;  %v9377_v28 = vpop.xlane.xlu1 %2720  ;;  %v11459_v34 = vld [vmem:[#allocation163_spill] sm:$0xff] }
 0x362   : > { %v2013_v3 = vsub.f32 %v8223_v51, %v1748_v56  ;;  %11457 = vst [vmem:[#allocation44_spill] sm:$0xff] %v9375_v5  ;;  %v9380_v8 = vpop.eup %5737  ;;  %v3039_v46 = vsub.f32 2.0, %v2975_v63  ;;  %5753 = vrcp.f32 %v9377_v28  ;;  %4171 = vmatmul.mubr.bf16.gmra.mrb[180].mxu1 %v3702_v7  ;;  %v2818_v51 = vadd.f32 %v9353_v27, %v2817_v11  ;;  %4460 = vmatmul.mubr.bf16.gmra.mrb[180].mxu0 %v3704_v49  ;;  %v11462_v11 = vld [vmem:[#allocation112_spill] sm:$0xff] }
 0x363   : > { %v2482_v53 = vmul.f32 1.442695, %v2010_v10  ;;  %v2484_v47 = vmul.f32 1.442695, %v2011_v0  ;;  %v2486_v48 = vmul.f32 1.442695, %v2012_v60  ;;  %v9384_v21 = vpop.eup %5739  ;;  %v3251_v0 = vmul.f32 %v11459_v34, %v3102_v59 }
 0x364   : > { %v2488_v26 = vmul.f32 1.442695, %v2013_v3  ;;  %11458 = vst [vmem:[#allocation42_spill] sm:$0xff] %v9384_v21  ;;  %v11460_v60 = vld [vmem:[#allocation108_spill] sm:$0xff]  ;;  %v2822_v42 = vadd.f32 %v9380_v8, %v9375_v5  ;;  %v3103_v56 = vmul.f32 %v5734_v17, %v3039_v46  ;;  %v2819_v36 = vadd.f32 %v9358_v43, %v2818_v51 }
 0x365   : > { %5755 = vpow2.f32 %v2482_v53  ;;  %v3253_v37 = vmul.f32 %v11460_v60, %v3102_v59  ;;  %v9390_v54 = vpop.eup %5741  ;;  %v9394_v10 = vmul.f32 %v11462_v11, %v3102_v59  ;;  %3507 = vst [vmem:[%s8425_s24 + $0x388] sm:$0xff] %v3251_v0  ;;  %v11463_v3 = vld [vmem:[#allocation164_spill] sm:$0xff]  ;;  %v11464_v53 = vld [vmem:[#allocation223_spill] sm:$0xff] }
 0x366   : > { %11461 = vst [vmem:[#allocation45_spill] sm:$0xff] %v9390_v54  ;;  %5757 = vpow2.f32 %v2484_v47  ;;  %v5744_v19 = vpop.eup %5743  ;;  %v2823_v63 = vadd.f32 %v9384_v21, %v2822_v42  ;;  %v9400_v7 = vmul.f32 %v11463_v3, %v3102_v59  ;;  %v11465_v49 = vld [vmem:[#allocation224_spill] sm:$0xff]  ;;  %2820 = vadd.xlane.f32.xlu1 %v2819_v36  ;;  %v11470_v21 = vld [vmem:[#allocation109_spill] sm:$0xff] }
 0x367   : > { %5759 = vpow2.f32 %v2486_v48  ;;  %3509 = vst [vmem:[%s8425_s24 + $0x398] sm:$0xff] %v3253_v37  ;;  %v2976_v17 = vmul.f32 %v5744_v19, %v9347_v18  ;;  %3506 = vst [vmem:[%s8425_s24 + $0x380] sm:$0xff] %v9394_v10  ;;  %v11467_v51 = vld [vmem:[#allocation232_spill] sm:$0xff]  ;;  %v3255_v18 = vmul.f32 %v8555_v40, %v3103_v56 }
 0x368   : > { %v1753_v38 = vpop.xlane.xlu1 %1752  ;;  %5761 = vpow2.f32 %v2488_v26  ;;  %v9407_v48 = vpop.eup %5745  ;;  %v3257_v26 = vmul.f32 %v8572_v44, %v3103_v56  ;;  %3508 = vst [vmem:[%s8425_s24 + $0x390] sm:$0xff] %v9400_v7  ;;  %v2824_v44 = vadd.f32 %v9390_v54, %v2823_v63  ;;  %v11474_v63 = vld [vmem:[#allocation233_spill] sm:$0xff] }
 0x369   : > { %v2014_v47 = vsub.f32 %v11464_v53, %v1753_v38  ;;  %v2015_v46 = vsub.f32 %v11465_v49, %v1753_v38  ;;  %11466 = vst [vmem:[#allocation39_spill] sm:$0xff] %v9407_v48  ;;  %v2016_v34 = vsub.f32 %v11467_v51, %v1753_v38  ;;  %v2017_v60 = vsub.f32 %v8229_v16, %v1753_v38  ;;  %v9411_v59 = vpop.xlane.xlu0 %2725  ;;  %v9417_v42 = vpop.eup %5747 }
 0x36a   : > { %v3040_v36 = vsub.f32 2.0, %v2976_v17  ;;  %5763 = vrcp.f32 %v9411_v59  ;;  %v9420_v53 = vpop.eup %5749  ;;  %3511 = vst [vmem:[%s8425_s24 + $0x3a8] sm:$0xff] %v3255_v18  ;;  %v3707_v16 = vpack.c.bf16 %v3255_v18, %v3251_v0  ;;  %3513 = vst [vmem:[%s8425_s24 + $0x3b8] sm:$0xff] %v3257_v26  ;;  %v3709_v38 = vpack.c.bf16 %v3257_v26, %v3253_v37  ;;  %v11472_v18 = vld [vmem:[#allocation225_spill] sm:$0xff]  ;;  %2825 = vadd.xlane.f32.xlu0 %v2824_v44 }
 0x36b   : > { %v2490_v11 = vmul.f32 1.442695, %v2014_v47  ;;  %v2492_v3 = vmul.f32 1.442695, %v2015_v46  ;;  %11468 = vst [vmem:[#allocation43_spill] sm:$0xff] %v9420_v53  ;;  %v9424_v40 = vpop.eup %5751  ;;  %v3254_v17 = vmul.f32 %v11470_v21, %v3103_v56  ;;  %v2827_v0 = vadd.f32 %v9417_v42, %v9407_v48 }
 0x36c   : > { %v2494_v49 = vmul.f32 1.442695, %v2016_v34  ;;  %v2496_v51 = vmul.f32 1.442695, %v2017_v60  ;;  %11469 = vst [vmem:[#allocation182_spill] sm:$0xff] %v9424_v40  ;;  %v3104_v47 = vmul.f32 %v5744_v19, %v3040_v36  ;;  %4178 = vmatprep.mubr.bf16.mxu1 %v3707_v16  ;;  %4467 = vmatprep.mubr.bf16.mxu0 %v3709_v38  ;;  %v11471_v34 = vld [vmem:[#allocation113_spill] sm:$0xff]  ;;  %v5754_v37 = vpop.eup %5753 }
 0x36d   : > { %5765 = vpow2.f32 %v2490_v11  ;;  %v1758_v46 = vpop.xlane.xlu0 %1757  ;;  %v3256_v60 = vmul.f32 %v11471_v34, %v3103_v56  ;;  %v11473_v11 = vld [vmem:[#allocation226_spill] sm:$0xff]  ;;  %3510 = vst [vmem:[%s8425_s24 + $0x3a0] sm:$0xff] %v3254_v17  ;;  %v2977_v19 = vmul.f32 %v5754_v37, %v9377_v28  ;;  %v3706_v36 = vpack.c.bf16 %v3254_v17, %v9394_v10 }
 0x36e   : > { %5767 = vpow2.f32 %v2492_v3  ;;  %v2018_v26 = vsub.f32 %v11472_v18, %v1758_v46  ;;  %v2019_v5 = vsub.f32 %v11473_v11, %v1758_v46  ;;  %v2020_v54 = vsub.f32 %v11474_v63, %v1758_v46 }
 0x36f   : > { %5769 = vpow2.f32 %v2494_v49  ;;  %v9435_v21 = vpop.eup %5755  ;;  %v2021_v56 = vsub.f32 %v8266_v12, %v1758_v46  ;;  %3512 = vst [vmem:[%s8425_s24 + $0x3b0] sm:$0xff] %v3256_v60  ;;  %v9443_v49 = vpop.xlane.xlu1 %2730  ;;  %v3708_v44 = vpack.c.bf16 %v3256_v60, %v9400_v7  ;;  %v3041_v11 = vsub.f32 2.0, %v2977_v19  ;;  %4179 = vmatmul.mubr.bf16.gmra.mrb[184].mxu1 %v3706_v36  ;;  %v11479_v46 = vld [vmem:[#allocation122_spill] sm:$0xff]  ;;  %v11481_v19 = vld [vmem:[#allocation227_spill] sm:$0xff]  ;;  %v11482_v36 = vld [vmem:[#allocation228_spill] sm:$0xff] }
 0x370   : > { %11475 = vst [vmem:[#allocation47_spill] sm:$0xff] %v9435_v21  ;;  %5771 = vpow2.f32 %v2496_v51  ;;  %v9441_v3 = vpop.eup %5757  ;;  %v2498_v16 = vmul.f32 1.442695, %v2018_v26  ;;  %v2500_v38 = vmul.f32 1.442695, %v2019_v5  ;;  %v2828_v12 = vadd.f32 %v9420_v53, %v2827_v0 }
 0x371   : > { %11476 = vst [vmem:[#allocation149_spill] sm:$0xff] %v9441_v3  ;;  %v2502_v34 = vmul.f32 1.442695, %v2020_v54  ;;  %v9446_v18 = vpop.eup %5759  ;;  %5773 = vrcp.f32 %v9443_v49  ;;  %v2504_v28 = vmul.f32 1.442695, %v2021_v56  ;;  %4468 = vmatmul.mubr.bf16.gmra.mrb[184].mxu0 %v3708_v44  ;;  %v3259_v5 = vmul.f32 %v8590_v45, %v3104_v47  ;;  %v11484_v44 = vld [vmem:[#allocation234_spill] sm:$0xff] }
 0x372   : > { %11477 = vst [vmem:[#allocation151_spill] sm:$0xff] %v9446_v18  ;;  %v9450_v10 = vpop.eup %5761  ;;  %5775 = vpow2.f32 %v2498_v16  ;;  %v3261_v54 = vmul.f32 %v8601_v14, %v3104_v47  ;;  %v2832_v7 = vadd.f32 %v9441_v3, %v9435_v21  ;;  %v3105_v51 = vmul.f32 %v5754_v37, %v3041_v11  ;;  %v11480_v14 = vld [vmem:[#allocation157_spill] sm:$0xff] }
 0x373   : > { %11478 = vst [vmem:[#allocation150_spill] sm:$0xff] %v9450_v10  ;;  %5777 = vpow2.f32 %v2500_v38  ;;  %v2829_v17 = vadd.f32 %v9424_v40, %v2828_v12  ;;  %v9458_v60 = vmul.f32 %v11479_v46, %v3104_v47  ;;  %3515 = vst [vmem:[%s8425_s24 + $0x3c8] sm:$0xff] %v3259_v5  ;;  %v9464_v63 = vmul.f32 %v11480_v14, %v3104_v47  ;;  %v11487_v14 = vld [vmem:[#allocation114_spill] sm:$0xff] }
 0x374   : > { %v5764_v0 = vpop.eup %5763  ;;  %5779 = vpow2.f32 %v2502_v34  ;;  %3517 = vst [vmem:[%s8425_s24 + $0x3d8] sm:$0xff] %v3261_v54  ;;  %v2833_v45 = vadd.f32 %v9446_v18, %v2832_v7  ;;  %v9469_v38 = vpop.xlane.xlu0 %2735 }
 0x375   : > { %v1763_v26 = vpop.xlane.xlu1 %1762  ;;  %v2978_v37 = vmul.f32 %v5764_v0, %v9411_v59  ;;  %5781 = vpow2.f32 %v2504_v28  ;;  %2830 = vadd.xlane.f32.xlu1 %v2829_v17  ;;  %3514 = vst [vmem:[%s8425_s24 + $0x3c0] sm:$0xff] %v9458_v60  ;;  %v11485_v59 = vld [vmem:[#allocation160_spill] sm:$0xff]  ;;  %3516 = vst [vmem:[%s8425_s24 + $0x3d0] sm:$0xff] %v9464_v63  ;;  %v9492_v53 = vpop.f32.mrb[128].mxu1 }
 0x376   : > { %v2022_v56 = vsub.f32 %v11481_v19, %v1763_v26  ;;  %v2023_v16 = vsub.f32 %v11482_v36, %v1763_v26  ;;  %v2024_v11 = vsub.f32 %v11484_v44, %v1763_v26  ;;  %v2025_v47 = vsub.f32 %v8273_v30, %v1763_v26 }
 0x377   : > { %v9473_v34 = vpop.eup %5765  ;;  %5783 = vrcp.f32 %v9469_v38  ;;  %v3263_v28 = vmul.f32 %v11485_v59, %v3105_v51  ;;  %v3042_v7 = vsub.f32 2.0, %v2978_v37  ;;  %v3265_v19 = vmul.f32 %v11487_v14, %v3105_v51  ;;  %v11491_v14 = vld [vmem:[#allocation229_spill] sm:$0xff] }
 0x378   : > { %11483 = vst [vmem:[#allocation154_spill] sm:$0xff] %v9473_v34  ;;  %v9481_v12 = vpop.eup %5767  ;;  %v2506_v17 = vmul.f32 1.442695, %v2022_v56  ;;  %v2508_v46 = vmul.f32 1.442695, %v2023_v16  ;;  %v2834_v26 = vadd.f32 %v9450_v10, %v2833_v45  ;;  %v11490_v56 = vld [vmem:[#allocation162_spill] sm:$0xff] }
 0x379   : > { %11486 = vst [vmem:[#allocation152_spill] sm:$0xff] %v9481_v12  ;;  %v9484_v36 = vpop.eup %5769  ;;  %v2510_v18 = vmul.f32 1.442695, %v2024_v11  ;;  %v2512_v44 = vmul.f32 1.442695, %v2025_v47  ;;  %3519 = vst [vmem:[%s8425_s24 + $0x3e8] sm:$0xff] %v3263_v28  ;;  %v3711_v30 = vpack.c.bf16 %v3263_v28, %v3259_v5  ;;  %v3106_v59 = vmul.f32 %v5764_v0, %v3042_v7 }
 0x37a   : > { %11488 = vst [vmem:[#allocation153_spill] sm:$0xff] %v9484_v36  ;;  %v9488_v21 = vpop.eup %5771  ;;  %5785 = vpow2.f32 %v2506_v17  ;;  %v1768_v3 = vpop.xlane.xlu0 %1767  ;;  %3521 = vst [vmem:[%s8425_s24 + $0x3f8] sm:$0xff] %v3265_v19  ;;  %v3713_v37 = vpack.c.bf16 %v3265_v19, %v3261_v54  ;;  %v3262_v16 = vmul.f32 %v11490_v56, %v3105_v51  ;;  %v11492_v47 = vld [vmem:[#allocation230_spill] sm:$0xff]  ;;  %v11493_v5 = vld [vmem:[#allocation237_spill] sm:$0xff]  ;;  %2835 = vadd.xlane.f32.xlu0 %v2834_v26 }
 0x37b   : > { %11489 = vst [vmem:[#allocation155_spill] sm:$0xff] %v9488_v21  ;;  %5787 = vpow2.f32 %v2508_v46  ;;  %v2026_v11 = vsub.f32 %v11491_v14, %v1768_v3  ;;  %v2027_v48 = vsub.f32 %v11492_v47, %v1768_v3  ;;  %v2028_v28 = vsub.f32 %v11493_v5, %v1768_v3  ;;  %4186 = vmatprep.mubr.bf16.mxu1 %v3711_v30  ;;  %v4070_v45 = vpop.f32.mrb[129].mxu1  ;;  %v5774_v0 = vpop.eup %5773  ;;  %v11494_v17 = vld [vmem:[#allocation15_spill] sm:$0xff] }
 0x37c   : > { %5789 = vpow2.f32 %v2510_v18  ;;  %v2029_v7 = vsub.f32 %v8297_v55, %v1768_v3  ;;  %4475 = vmatprep.mubr.bf16.mxu0 %v3713_v37  ;;  %3518 = vst [vmem:[%s8425_s24 + $0x3e0] sm:$0xff] %v3262_v16  ;;  %v3710_v54 = vpack.c.bf16 %v3262_v16, %v9458_v60  ;;  %v3264_v46 = vmul.f32 %v11494_v17, %v3105_v51  ;;  %v9501_v19 = vpop.f32.mrb[128].mxu0  ;;  %v9503_v56 = vpop.f32.mrb[130].mxu1 }
 0x37d   : > { %v9505_v14 = vpop.eup %5775  ;;  %v2979_v30 = vmul.f32 %v5774_v0, %v9443_v49  ;;  %5791 = vpow2.f32 %v2512_v44  ;;  %v9508_v26 = vpop.xlane.xlu1 %2740  ;;  %v2514_v18 = vmul.f32 1.442695, %v2026_v11  ;;  %v2516_v55 = vmul.f32 1.442695, %v2027_v48  ;;  %v11498_v11 = vld [vmem:[#allocation125_spill] sm:$0xff] }
 0x37e   : > { %11495 = vst [vmem:[#allocation167_spill] sm:$0xff] %v9505_v14  ;;  %v4359_v3 = vpop.f32.mrb[129].mxu0  ;;  %v9510_v37 = vpop.eup %5777  ;;  %5793 = vrcp.f32 %v9508_v26  ;;  %v2518_v60 = vmul.f32 1.442695, %v2028_v28  ;;  %v2520_v51 = vmul.f32 1.442695, %v2029_v7  ;;  %4187 = vmatmul.mubr.bf16.gmra.mrb[188].mxu1 %v3710_v54  ;;  %v3712_v16 = vpack.c.bf16 %v3264_v46, %v9464_v63 }
 0x37f   : > { %11496 = vst [vmem:[#allocation48_spill] sm:$0xff] %v9510_v37  ;;  %3520 = vst [vmem:[%s8425_s24 + $0x3f0] sm:$0xff] %v3264_v46  ;;  %v9515_v47 = vpop.f32.mrb[130].mxu0  ;;  %v4073_v5 = vpop.f32.mrb[131].mxu1  ;;  %v3043_v44 = vsub.f32 2.0, %v2979_v30  ;;  %5795 = vpow2.f32 %v2514_v18  ;;  %v2837_v48 = vadd.f32 %v9481_v12, %v9473_v34  ;;  %v3267_v45 = vmul.f32 %v11498_v11, %v3106_v59  ;;  %v11500_v54 = vld [vmem:[#allocation115_spill] sm:$0xff] }
 0x380   : > { %v9517_v49 = vpop.eup %5779  ;;  %v4362_v17 = vpop.f32.mrb[131].mxu0  ;;  %5797 = vpow2.f32 %v2516_v55  ;;  %4476 = vmatmul.mubr.bf16.gmra.mrb[188].mxu0 %v3712_v16  ;;  %v3269_v63 = vmul.f32 %v8666_v9, %v3106_v59  ;;  %v2842_v7 = vadd.f32 %v9510_v37, %v9505_v14  ;;  %v9528_v46 = vmul.f32 %v11500_v54, %v3106_v59  ;;  %v11501_v9 = vld [vmem:[#allocation235_spill] sm:$0xff] }
 0x381   : > { %11497 = vst [vmem:[#allocation52_spill] sm:$0xff] %v9517_v49  ;;  %v9522_v28 = vpop.eup %5781  ;;  %v3107_v18 = vmul.f32 %v5774_v0, %v3043_v44  ;;  %5799 = vpow2.f32 %v2518_v60  ;;  %v2838_v5 = vadd.f32 %v9484_v36, %v2837_v48  ;;  %3523 = vst [vmem:[%s8425_s24 + $0x408] sm:$0xff] %v3267_v45  ;;  %v9533_v55 = vmul.f32 %v8661_v25, %v3106_v59  ;;  %v11502_v17 = vld [vmem:[#allocation236_spill] sm:$0xff]  ;;  %v11529_v12 = vld [vmem:[#allocation243_spill] sm:$0xff] }
 0x382   : > { %11499 = vst [vmem:[#allocation50_spill] sm:$0xff] %v9522_v28  ;;  %v5784_v30 = vpop.eup %5783  ;;  %v1773_v3 = vpop.xlane.xlu1 %1772  ;;  %5801 = vpow2.f32 %v2520_v51  ;;  %3525 = vst [vmem:[%s8425_s24 + $0x418] sm:$0xff] %v3269_v63  ;;  %v11503_v0 = vld [vmem:[#allocation244_spill] sm:$0xff] }
 0x383   : > { %v2980_v16 = vmul.f32 %v5784_v30, %v9469_v38  ;;  %v2030_v11 = vsub.f32 %v11501_v9, %v1773_v3  ;;  %v2031_v14 = vsub.f32 %v11502_v17, %v1773_v3  ;;  %3522 = vst [vmem:[%s8425_s24 + $0x400] sm:$0xff] %v9528_v46  ;;  %v2032_v60 = vsub.f32 %v11503_v0, %v1773_v3  ;;  %v9543_v48 = vpop.xlane.xlu0 %2745 }
 0x384   : > { %v2033_v44 = vsub.f32 %v8337_v23, %v1773_v3  ;;  %v2839_v25 = vadd.f32 %v9488_v21, %v2838_v5  ;;  %v3271_v59 = vmul.f32 %v8680_v39, %v3107_v18  ;;  %3524 = vst [vmem:[%s8425_s24 + $0x410] sm:$0xff] %v9533_v55  ;;  %v9549_v38 = vpop.eup %5785  ;;  %5803 = vrcp.f32 %v9543_v48  ;;  %v11506_v5 = vld [vmem:[#allocation117_spill] sm:$0xff] }
 0x385   : > { %11504 = vst [vmem:[#allocation53_spill] sm:$0xff] %v9549_v38  ;;  %v3044_v51 = vsub.f32 2.0, %v2980_v16  ;;  %v2522_v54 = vmul.f32 1.442695, %v2030_v11  ;;  %v2524_v9 = vmul.f32 1.442695, %v2031_v14  ;;  %v9552_v17 = vpop.eup %5787  ;;  %v3273_v37 = vmul.f32 %v11506_v5, %v3107_v18 }
 0x386   : > { %11505 = vst [vmem:[#allocation46_spill] sm:$0xff] %v9552_v17  ;;  %v2526_v0 = vmul.f32 1.442695, %v2032_v60  ;;  %v2528_v23 = vmul.f32 1.442695, %v2033_v44  ;;  %2840 = vadd.xlane.f32.xlu1 %v2839_v25  ;;  %3527 = vst [vmem:[%s8425_s24 + $0x428] sm:$0xff] %v3271_v59  ;;  %v3715_v3 = vpack.c.bf16 %v3271_v59, %v3267_v45  ;;  %v9556_v39 = vpop.eup %5789  ;;  %v2843_v14 = vadd.f32 %v9517_v49, %v2842_v7 }
 0x387   : > { %11507 = vst [vmem:[#allocation51_spill] sm:$0xff] %v9556_v39  ;;  %v9558_v36 = vmul.f32 %v5784_v30, %v3044_v51  ;;  %5805 = vpow2.f32 %v2522_v54  ;;  %v11508_v16 = vld [vmem:[#allocation131_spill] sm:$0xff]  ;;  %v9562_v34 = vpop.eup %5791  ;;  %3529 = vst [vmem:[%s8425_s24 + $0x438] sm:$0xff] %v3273_v37  ;;  %v3717_v44 = vpack.c.bf16 %v3273_v37, %v3269_v63  ;;  %v11510_v45 = vld [vmem:[#allocation116_spill] sm:$0xff]  ;;  %v2847_v30 = vadd.f32 %v9552_v17, %v9549_v38 }
 0x388   : > { %v3270_v11 = vmul.f32 %v11508_v16, %v3107_v18  ;;  %11509 = vst [vmem:[#allocation49_spill] sm:$0xff] %v9562_v34  ;;  %5807 = vpow2.f32 %v2524_v9  ;;  %4194 = vmatprep.mubr.bf16.mxu1 %v3715_v3  ;;  %v3272_v25 = vmul.f32 %v11510_v45, %v3107_v18  ;;  %v5794_v59 = vpop.eup %5793  ;;  %v11511_v51 = vld [vmem:[#allocation238_spill] sm:$0xff]  ;;  %v11512_v7 = vld [vmem:[#allocation239_spill] sm:$0xff]  ;;  %v11513_v16 = vld [vmem:[#allocation245_spill] sm:$0xff]  ;;  %v2844_v18 = vadd.f32 %v9522_v28, %v2843_v14  ;;  %v9589_v14 = vpop.f32.mrb[132].mxu0 }
 0x389   : > { %v1778_v60 = vpop.xlane.xlu0 %1777  ;;  %5809 = vpow2.f32 %v2526_v0  ;;  %v9572_v9 = vpop.eup %5795  ;;  %v2981_v3 = vmul.f32 %v5794_v59, %v9508_v26  ;;  %4483 = vmatprep.mubr.bf16.mxu0 %v3717_v44 }
 0x38a   : > { %v2034_v54 = vsub.f32 %v11511_v51, %v1778_v60  ;;  %v2035_v5 = vsub.f32 %v11512_v7, %v1778_v60  ;;  %v2036_v49 = vsub.f32 %v11513_v16, %v1778_v60  ;;  %3526 = vst [vmem:[%s8425_s24 + $0x420] sm:$0xff] %v3270_v11  ;;  %11514 = vst [vmem:[#allocation55_spill] sm:$0xff] %v9572_v9  ;;  %5811 = vpow2.f32 %v2528_v23  ;;  %v9575_v37 = vpop.xlane.xlu1 %2750  ;;  %v9580_v0 = vpop.eup %5797 }
 0x38b   : > { %v2037_v63 = vsub.f32 %v11330_v13, %v1778_v60  ;;  %3528 = vst [vmem:[%s8425_s24 + $0x430] sm:$0xff] %v3272_v25  ;;  %11515 = vst [vmem:[#allocation159_spill] sm:$0xff] %v9580_v0  ;;  %5813 = vrcp.f32 %v9575_v37  ;;  %v9583_v16 = vpop.eup %5799  ;;  %v3045_v38 = vsub.f32 2.0, %v2981_v3  ;;  %2845 = vadd.xlane.f32.xlu0 %v2844_v18  ;;  %v3714_v23 = vpack.c.bf16 %v3270_v11, %v9528_v46  ;;  %v9587_v60 = vpop.f32.mrb[132].mxu1 }
 0x38c   : > { %v2530_v45 = vmul.f32 1.442695, %v2034_v54  ;;  %v2532_v51 = vmul.f32 1.442695, %v2035_v5  ;;  %v2534_v7 = vmul.f32 1.442695, %v2036_v49  ;;  %v3716_v13 = vpack.c.bf16 %v3272_v25, %v9533_v55  ;;  %v9591_v44 = vpop.eup %5801 }
 0x38d   : > { %11516 = vst [vmem:[#allocation14_spill] sm:$0xff] %v9583_v16  ;;  %v2536_v26 = vmul.f32 1.442695, %v2037_v63  ;;  %v2848_v54 = vadd.f32 %v9556_v39, %v2847_v30  ;;  %v11517_v49 = vld [vmem:[#allocation132_spill] sm:$0xff]  ;;  %v9600_v3 = vmul.f32 %v8747_v2, %v9558_v36  ;;  %v4078_v46 = vpop.f32.mrb[133].mxu1  ;;  %v4367_v55 = vpop.f32.mrb[133].mxu0  ;;  %v9602_v11 = vmul.f32 %v5794_v59, %v3045_v38  ;;  %4195 = vmatmul.mubr.bf16.gmra.mrb[192].mxu1 %v3714_v23 }
 0x38e   : > { %5815 = vpow2.f32 %v2530_v45  ;;  %v9596_v5 = vmul.f32 %v11517_v49, %v9558_v36  ;;  %4484 = vmatmul.mubr.bf16.gmra.mrb[192].mxu0 %v3716_v13  ;;  %v2852_v30 = vadd.f32 %v9580_v0, %v9572_v9  ;;  %v11518_v63 = vld [vmem:[#allocation128_spill] sm:$0xff]  ;;  %v9610_v2 = vpop.f32.mrb[134].mxu1  ;;  %v5804_v45 = vpop.eup %5803  ;;  %v11520_v38 = vld [vmem:[#allocation241_spill] sm:$0xff] }
 0x38f   : > { %5817 = vpow2.f32 %v2532_v51  ;;  %v9608_v18 = vmul.f32 %v11518_v63, %v9558_v36  ;;  %v11519_v49 = vld [vmem:[#allocation240_spill] sm:$0xff]  ;;  %3533 = vst [vmem:[%s8425_s24 + $0x458] sm:$0xff] %v9600_v3  ;;  %v9619_v23 = vpop.f32.mrb[134].mxu0  ;;  %v4081_v13 = vpop.f32.mrb[135].mxu1  ;;  %v2982_v63 = vmul.f32 %v5804_v45, %v9543_v48 }
 0x390   : > { %v1783_v25 = vpop.xlane.xlu1 %1782  ;;  %5819 = vpow2.f32 %v2534_v7  ;;  %v11521_v51 = vld [vmem:[#allocation248_spill] sm:$0xff]  ;;  %3531 = vst [vmem:[%s8425_s24 + $0x448] sm:$0xff] %v9596_v5  ;;  %v9623_v39 = vpop.xlane.xlu0 %2755  ;;  %v2849_v7 = vadd.f32 %v9562_v34, %v2848_v54 }
 0x391   : > { %v2038_v46 = vsub.f32 %v11519_v49, %v1783_v25  ;;  %v2039_v59 = vsub.f32 %v11520_v38, %v1783_v25  ;;  %v2040_v55 = vsub.f32 %v11521_v51, %v1783_v25  ;;  %5821 = vpow2.f32 %v2536_v26  ;;  %v11522_v9 = vld [vmem:[#allocation96_spill] sm:$0xff]  ;;  %3530 = vst [vmem:[%s8425_s24 + $0x440] sm:$0xff] %v9608_v18  ;;  %v4370_v49 = vpop.f32.mrb[135].mxu0  ;;  %v9628_v38 = vpop.eup %5805 }
 0x392   : > { %v2041_v0 = vsub.f32 %v11522_v9, %v1783_v25  ;;  %5823 = vrcp.f32 %v9623_v39  ;;  %v9631_v13 = vpop.eup %5807  ;;  %v3046_v48 = vsub.f32 2.0, %v2982_v63  ;;  %2850 = vadd.xlane.f32.xlu1 %v2849_v7  ;;  %v11523_v26 = vld [vmem:[#allocation20_spill] sm:$0xff]  ;;  %v11524_v25 = vld [vmem:[#allocation166_spill] sm:$0xff] }
 0x393   : > { %v2538_v51 = vmul.f32 1.442695, %v2038_v46  ;;  %v2540_v17 = vmul.f32 1.442695, %v2039_v59  ;;  %v2542_v28 = vmul.f32 1.442695, %v2040_v55  ;;  %v3279_v54 = vmul.f32 %v11523_v26, %v9602_v11  ;;  %v9637_v34 = vpop.eup %5809 }
 0x394   : > { %v2544_v9 = vmul.f32 1.442695, %v2041_v0  ;;  %v3281_v49 = vmul.f32 %v11524_v25, %v9602_v11  ;;  %11525 = vst [vmem:[#allocation174_spill] sm:$0xff] %v9637_v34  ;;  %v2853_v46 = vadd.f32 %v9583_v16, %v2852_v30  ;;  %v11526_v59 = vld [vmem:[#allocation170_spill] sm:$0xff]  ;;  %v11527_v63 = vld [vmem:[#allocation168_spill] sm:$0xff]  ;;  %v9646_v7 = vpop.eup %5811  ;;  %v9648_v26 = vmul.f32 %v5804_v45, %v3046_v48 }
 0x395   : > { %5825 = vpow2.f32 %v2538_v51  ;;  %v3278_v55 = vmul.f32 %v11526_v59, %v9602_v11  ;;  %v9644_v0 = vmul.f32 %v11527_v63, %v9558_v36  ;;  %3535 = vst [vmem:[%s8425_s24 + $0x468] sm:$0xff] %v3279_v54  ;;  %v3719_v51 = vpack.c.bf16 %v3279_v54, %v9596_v5  ;;  %v5814_v16 = vpop.eup %5813  ;;  %v11528_v59 = vld [vmem:[#allocation242_spill] sm:$0xff]  ;;  %v11530_v63 = vld [vmem:[#allocation249_spill] sm:$0xff]  ;;  %v11531_v45 = vld [vmem:[#allocation252_spill] sm:$0xff] }
 0x396   : > { %5827 = vpow2.f32 %v2540_v17  ;;  %v1788_v25 = vpop.xlane.xlu0 %1787  ;;  %3537 = vst [vmem:[%s8425_s24 + $0x478] sm:$0xff] %v3281_v49  ;;  %v3721_v30 = vpack.c.bf16 %v3281_v49, %v9600_v3  ;;  %v2983_v17 = vmul.f32 %v5814_v16, %v9575_v37  ;;  %v2854_v3 = vadd.f32 %v9591_v44, %v2853_v46 }
 0x397   : > { %5829 = vpow2.f32 %v2542_v28  ;;  %v2042_v21 = vsub.f32 %v11528_v59, %v1788_v25  ;;  %v2043_v36 = vsub.f32 %v11529_v12, %v1788_v25  ;;  %v2044_v10 = vsub.f32 %v11530_v63, %v1788_v25  ;;  %3534 = vst [vmem:[%s8425_s24 + $0x460] sm:$0xff] %v3278_v55  ;;  %3532 = vst [vmem:[%s8425_s24 + $0x450] sm:$0xff] %v9644_v0 }
 0x398   : > { %5831 = vpow2.f32 %v2544_v9  ;;  %v2045_v5 = vsub.f32 %v11531_v45, %v1788_v25  ;;  %4202 = vmatprep.mubr.bf16.mxu1 %v3719_v51  ;;  %4491 = vmatprep.mubr.bf16.mxu0 %v3721_v30  ;;  %v9664_v28 = vpop.eup %5815  ;;  %v9666_v48 = vpop.xlane.xlu1 %2760  ;;  %v3718_v59 = vpack.c.bf16 %v3278_v55, %v9608_v18  ;;  %v3047_v40 = vsub.f32 2.0, %v2983_v17  ;;  %v11534_v9 = vld [vmem:[#allocation25_spill] sm:$0xff] }
 0x399   : > { %11532 = vst [vmem:[#allocation181_spill] sm:$0xff] %v9664_v28  ;;  %v2546_v12 = vmul.f32 1.442695, %v2042_v21  ;;  %v2548_v54 = vmul.f32 1.442695, %v2043_v36  ;;  %v9669_v63 = vpop.eup %5817  ;;  %5833 = vrcp.f32 %v9666_v48  ;;  %2855 = vadd.xlane.f32.xlu0 %v2854_v3  ;;  %v3280_v46 = vmul.f32 %v11534_v9, %v9602_v11  ;;  %v9679_v21 = vpop.f32.mrb[136].mxu1 }
 0x39a   : > { %v2550_v49 = vmul.f32 1.442695, %v2044_v10  ;;  %11533 = vst [vmem:[#allocation179_spill] sm:$0xff] %v9669_v63  ;;  %v2552_v37 = vmul.f32 1.442695, %v2045_v5  ;;  %v9681_v10 = vpop.f32.mrb[136].mxu0  ;;  %v9683_v18 = vpop.eup %5819  ;;  %4203 = vmatmul.mubr.bf16.gmra.mrb[196].mxu1 %v3718_v59  ;;  %v2857_v55 = vadd.f32 %v9631_v13, %v9628_v38  ;;  %v4358_v25 = vadd.f32 %v9501_v19, %v9492_v53 }
 0x39b   : > { %5835 = vpow2.f32 %v2546_v12  ;;  %v4361_v11 = vadd.f32 %v9515_v47, %v9503_v56  ;;  %v4086_v51 = vpop.f32.mrb[137].mxu1  ;;  %v4375_v30 = vpop.f32.mrb[137].mxu0  ;;  %v3111_v17 = vmul.f32 %v5814_v16, %v3047_v40  ;;  %3536 = vst [vmem:[%s8425_s24 + $0x470] sm:$0xff] %v3280_v46  ;;  %v3720_v45 = vpack.c.bf16 %v3280_v46, %v9644_v0  ;;  %v11535_v5 = vld [vmem:[#allocation169_spill] sm:$0xff]  ;;  %v11536_v40 = vld [vmem:[#allocation118_spill] sm:$0xff]  ;;  %v11538_v46 = vld [vmem:[#allocation247_spill] sm:$0xff] }
 0x39c   : > { %v9691_v36 = vpop.eup %5821  ;;  %5837 = vpow2.f32 %v2548_v54  ;;  %v3283_v3 = vmul.f32 %v11535_v5, %v9648_v26  ;;  %v9697_v12 = vpop.f32.mrb[138].mxu1  ;;  %v2858_v47 = vadd.f32 %v9637_v34, %v2857_v55  ;;  %4612 = vst.msk [vmem:[%s9677_s17] sm:$0xff] %vm671_vm0, %v4358_v25  ;;  %v3285_v16 = vmul.f32 %v11536_v40, %v9648_v26  ;;  %v11537_v9 = vld [vmem:[#allocation246_spill] sm:$0xff] }
 0x39d   : > { %v9699_v53 = vpop.f32.mrb[138].mxu0  ;;  %v5824_v19 = vpop.eup %5823  ;;  %5839 = vpow2.f32 %v2550_v49  ;;  %4613 = vst.msk [vmem:[%s9677_s17 + $0x8] sm:$0xff] %vm671_vm0, %v4361_v11  ;;  %v2862_v0 = vadd.f32 %v9669_v63, %v9664_v28  ;;  %4492 = vmatmul.mubr.bf16.gmra.mrb[196].mxu0 %v3720_v45  ;;  %v11539_v11 = vld [vmem:[#allocation251_spill] sm:$0xff] }
 0x39e   : > { %v1793_v56 = vpop.xlane.xlu1 %1792  ;;  %v4089_v54 = vpop.f32.mrb[139].mxu1  ;;  %v2984_v59 = vmul.f32 %v5824_v19, %v9623_v39  ;;  %5841 = vpow2.f32 %v2552_v37  ;;  %3539 = vst [vmem:[%s8425_s24 + $0x488] sm:$0xff] %v3283_v3  ;;  %v11540_v39 = vld [vmem:[#allocation129_spill] sm:$0xff]  ;;  %3541 = vst [vmem:[%s8425_s24 + $0x498] sm:$0xff] %v3285_v16 }
 0x39f   : > { %v2046_v49 = vsub.f32 %v11537_v9, %v1793_v56  ;;  %v2047_v51 = vsub.f32 %v11538_v46, %v1793_v56  ;;  %v4378_v55 = vpop.f32.mrb[139].mxu0  ;;  %v9714_v25 = vpop.eup %5825  ;;  %v2048_v30 = vsub.f32 %v11539_v11, %v1793_v56  ;;  %v2049_v5 = vsub.f32 %v11367_v22, %v1793_v56  ;;  %v11541_v56 = vld [vmem:[#allocation120_spill] sm:$0xff] }
 0x3a0   : > { %v9718_v40 = vpop.xlane.xlu0 %2765  ;;  %v2859_v54 = vadd.f32 %v9646_v7, %v2858_v47  ;;  %v3287_v37 = vmul.f32 %v11540_v39, %v3111_v17  ;;  %v9723_v9 = vpop.eup %5827  ;;  %v3048_v46 = vsub.f32 2.0, %v2984_v59  ;;  %v3289_v47 = vmul.f32 %v11541_v56, %v3111_v17 }
 0x3a1   : > { %v2554_v45 = vmul.f32 1.442695, %v2046_v49  ;;  %v2556_v28 = vmul.f32 1.442695, %v2047_v51  ;;  %5843 = vrcp.f32 %v9718_v40  ;;  %v9726_v55 = vpop.eup %5829  ;;  %v2558_v11 = vmul.f32 1.442695, %v2048_v30 }
 0x3a2   : > { %v2560_v63 = vmul.f32 1.442695, %v2049_v5  ;;  %2860 = vadd.xlane.f32.xlu1 %v2859_v54  ;;  %3543 = vst [vmem:[%s8425_s24 + $0x4a8] sm:$0xff] %v3287_v37  ;;  %v3723_v22 = vpack.c.bf16 %v3287_v37, %v3283_v3  ;;  %v9730_v39 = vpop.eup %5831  ;;  %v3112_v34 = vmul.f32 %v5824_v19, %v3048_v46  ;;  %v2863_v59 = vadd.f32 %v9683_v18, %v2862_v0  ;;  %v11542_v49 = vld [vmem:[#allocation22_spill] sm:$0xff]  ;;  %v11543_v5 = vld [vmem:[#allocation119_spill] sm:$0xff]  ;;  %v11545_v0 = vld [vmem:[#allocation136_spill] sm:$0xff] }
 0x3a3   : > { %5845 = vpow2.f32 %v2554_v45  ;;  %v3282_v51 = vmul.f32 %v11542_v49, %v9648_v26  ;;  %3545 = vst [vmem:[%s8425_s24 + $0x4b8] sm:$0xff] %v3289_v47  ;;  %v3725_v30 = vpack.c.bf16 %v3289_v47, %v3285_v16  ;;  %v3286_v3 = vmul.f32 %v11543_v5, %v3111_v17  ;;  %v11544_v54 = vld [vmem:[#allocation23_spill] sm:$0xff]  ;;  %v5834_v56 = vpop.eup %5833  ;;  %v11546_v49 = vld [vmem:[#allocation130_spill] sm:$0xff] }
 0x3a4   : > { %5847 = vpow2.f32 %v2556_v28  ;;  %4210 = vmatprep.mubr.bf16.mxu1 %v3723_v22  ;;  %v3284_v37 = vmul.f32 %v11544_v54, %v9648_v26  ;;  %v2864_v19 = vadd.f32 %v9691_v36, %v2863_v59  ;;  %v3288_v46 = vmul.f32 %v11545_v0, %v3111_v17 }
 0x3a5   : > { %5849 = vpow2.f32 %v2558_v11  ;;  %3538 = vst [vmem:[%s8425_s24 + $0x480] sm:$0xff] %v3282_v51  ;;  %v2867_v28 = vadd.f32 %v9723_v9, %v9714_v25  ;;  %v9744_v45 = vpop.eup %5835  ;;  %v2985_v16 = vmul.f32 %v5834_v56, %v9666_v48  ;;  %4499 = vmatprep.mubr.bf16.mxu0 %v3725_v30  ;;  %3542 = vst [vmem:[%s8425_s24 + $0x4a0] sm:$0xff] %v3286_v3  ;;  %v4092_v11 = vpop.f32.mrb[140].mxu1 }
 0x3a6   : > { %5851 = vpow2.f32 %v2560_v63  ;;  %v3722_v22 = vpack.c.bf16 %v3286_v3, %v3282_v51  ;;  %3540 = vst [vmem:[%s8425_s24 + $0x490] sm:$0xff] %v3284_v37  ;;  %v4366_v26 = vadd.f32 %v9589_v14, %v9587_v60  ;;  %v9751_v47 = vpop.eup %5837  ;;  %v9753_v17 = vpop.xlane.xlu1 %2770  ;;  %2865 = vadd.xlane.f32.xlu0 %v2864_v19  ;;  %3544 = vst [vmem:[%s8425_s24 + $0x4b0] sm:$0xff] %v3288_v46  ;;  %v11547_v14 = vld [vmem:[#allocation173_spill] sm:$0xff] }
 0x3a7   : > { %v3724_v59 = vpack.c.bf16 %v3288_v46, %v3284_v37  ;;  %v2868_v48 = vadd.f32 %v9726_v55, %v2867_v28  ;;  %v4369_v63 = vadd.f32 %v9619_v23, %v9610_v2  ;;  %v3291_v51 = vmul.f32 %v11546_v49, %v3112_v34  ;;  %v4094_v30 = vpop.f32.mrb[141].mxu1  ;;  %v9760_v5 = vpop.eup %5839  ;;  %v11548_v23 = vld [vmem:[#allocation121_spill] sm:$0xff] }
 0x3a8   : > { %v3049_v60 = vsub.f32 2.0, %v2985_v16  ;;  %5853 = vrcp.f32 %v9753_v17  ;;  %4211 = vmatmul.mubr.bf16.gmra.mrb[200].mxu1 %v3722_v22  ;;  %4614 = vst.msk [vmem:[%s9677_s17 + $0x10] sm:$0xff] %vm671_vm0, %v4366_v26  ;;  %v3293_v3 = vmul.f32 %v11547_v14, %v3112_v34  ;;  %v2872_v54 = vadd.f32 %v9751_v47, %v9744_v45  ;;  %v4095_v37 = vpop.f32.mrb[142].mxu1  ;;  %v9768_v19 = vpop.eup %5841  ;;  %v11549_v46 = vld [vmem:[#allocation137_spill] sm:$0xff] }
 0x3a9   : > { %4500 = vmatmul.mubr.bf16.gmra.mrb[200].mxu0 %v3724_v59  ;;  %v2869_v2 = vadd.f32 %v9730_v39, %v2868_v48  ;;  %4615 = vst.msk [vmem:[%s9677_s17 + $0x18] sm:$0xff] %vm671_vm0, %v4369_v63  ;;  %3547 = vst [vmem:[%s8425_s24 + $0x4c8] sm:$0xff] %v3291_v51  ;;  %v3290_v0 = vmul.f32 %v11548_v23, %v3112_v34  ;;  %v3292_v28 = vmul.f32 %v11549_v46, %v3112_v34  ;;  %v4381_v22 = vpop.f32.mrb[140].mxu0  ;;  %v4097_v26 = vpop.f32.mrb[143].mxu1  ;;  %v11553_v46 = vld [vmem:[#allocation32_spill] sm:$0xff] }
 0x3aa   : > { %v4374_v16 = vadd.f32 %v9681_v10, %v9679_v21  ;;  %v3113_v49 = vmul.f32 %v5834_v56, %v3049_v60  ;;  %3549 = vst [vmem:[%s8425_s24 + $0x4d8] sm:$0xff] %v3293_v3  ;;  %v2873_v59 = vadd.f32 %v9760_v5, %v2872_v54  ;;  %v4377_v48 = vadd.f32 %v9699_v53, %v9697_v12  ;;  %v4383_v30 = vpop.f32.mrb[141].mxu0  ;;  %v2776_v10 = vpop.xlane.xlu0 %2775  ;;  %v11550_v56 = vld [vmem:[#allocation28_spill] sm:$0xff] }
 0x3ab   : > { %v4382_v63 = vadd.f32 %v4381_v22, %v4092_v11  ;;  %v5844_v14 = vpop.eup %5843  ;;  %2870 = vadd.xlane.f32.xlu1 %v2869_v2  ;;  %3546 = vst [vmem:[%s8425_s24 + $0x4c0] sm:$0xff] %v3290_v0  ;;  %3548 = vst [vmem:[%s8425_s24 + $0x4d0] sm:$0xff] %v3292_v28  ;;  %v4384_v34 = vpop.f32.mrb[142].mxu0  ;;  %v11551_v54 = vld [vmem:[#allocation172_spill] sm:$0xff]  ;;  %5855 = vrcp.f32 %v2776_v10  ;;  %v11552_v2 = vld [vmem:[#allocation177_spill] sm:$0xff] }
 0x3ac   : > { %4616 = vst.msk [vmem:[%s9677_s17 + $0x20] sm:$0xff] %vm671_vm0, %v4374_v16  ;;  %v2986_v21 = vmul.f32 %v5844_v14, %v9718_v40  ;;  %v3295_v60 = vmul.f32 %v11550_v56, %v3113_v49  ;;  %v3297_v23 = vmul.f32 %v11551_v54, %v3113_v49  ;;  %v2874_v12 = vadd.f32 %v9768_v19, %v2873_v59  ;;  %v4386_v53 = vpop.f32.mrb[143].mxu0 }
 0x3ad   : > { %4617 = vst.msk [vmem:[%s9677_s17 + $0x28] sm:$0xff] %vm671_vm0, %v4377_v48  ;;  %4618 = vst.msk [vmem:[%s9677_s17 + $0x30] sm:$0xff] %vm671_vm0, %v4382_v63  ;;  %v9794_v11 = vpop.eup %5845  ;;  %v3294_v40 = vmul.f32 %v11552_v2, %v3113_v49  ;;  %v3296_v16 = vmul.f32 %v11553_v46, %v3113_v49  ;;  %v4385_v22 = vadd.f32 %v4384_v34, %v4095_v37 }
 0x3ae   : > { %v9798_v26 = vpop.eup %5847  ;;  %v3050_v30 = vsub.f32 2.0, %v2986_v21  ;;  %3551 = vst [vmem:[%s8425_s24 + $0x4e8] sm:$0xff] %v3295_v60  ;;  %v3727_v59 = vpack.c.bf16 %v3295_v60, %v3291_v51  ;;  %3553 = vst [vmem:[%s8425_s24 + $0x4f8] sm:$0xff] %v3297_v23  ;;  %v3729_v48 = vpack.c.bf16 %v3297_v23, %v3293_v3  ;;  %2875 = vadd.xlane.f32.xlu0 %v2874_v12  ;;  %v11555_v23 = vld [vmem:[#allocation176_spill] sm:$0xff]  ;;  %v11556_v12 = vld [vmem:[#allocation178_spill] sm:$0xff] }
 0x3af   : > { %v9802_v63 = vpop.eup %5849  ;;  %3550 = vst [vmem:[%s8425_s24 + $0x4e0] sm:$0xff] %v3294_v40  ;;  %v3726_v56 = vpack.c.bf16 %v3294_v40, %v3290_v0  ;;  %3552 = vst [vmem:[%s8425_s24 + $0x4f0] sm:$0xff] %v3296_v16  ;;  %v3728_v54 = vpack.c.bf16 %v3296_v16, %v3292_v28  ;;  %v2877_v53 = vadd.f32 %v9798_v26, %v9794_v11  ;;  %v2781_v34 = vpop.xlane.xlu1 %2780  ;;  %v11554_v28 = vld [vmem:[#allocation175_spill] sm:$0xff] }
 0x3b0   : > { %4619 = vst.msk [vmem:[%s9677_s17 + $0x38] sm:$0xff] %vm671_vm0, %v4385_v22  ;;  %v9810_v37 = vpop.eup %5851  ;;  %v3114_v49 = vmul.f32 %v5844_v14, %v3050_v30  ;;  %4218 = vmatprep.mubr.bf16.mxu1 %v3727_v59  ;;  %4507 = vmatprep.mubr.bf16.mxu0 %v3729_v48  ;;  %5857 = vrcp.f32 %v2781_v34  ;;  %v4100_v40 = vpop.f32.mrb[144].mxu1 }
 0x3b1   : > { %4219 = vmatmul.mubr.bf16.gmra.mrb[204].mxu1 %v3726_v56  ;;  %4508 = vmatmul.mubr.bf16.gmra.mrb[204].mxu0 %v3728_v54  ;;  %v2878_v51 = vadd.f32 %v9802_v63, %v2877_v53  ;;  %v2786_v0 = vpop.xlane.xlu0 %2785  ;;  %v4102_v22 = vpop.f32.mrb[145].mxu1 }
 0x3b2   : > { %v5854_v3 = vpop.eup %5853  ;;  %v3299_v21 = vmul.f32 %v11554_v28, %v3114_v49  ;;  %v3301_v60 = vmul.f32 %v8968_v52, %v3114_v49  ;;  %v3298_v14 = vmul.f32 %v11555_v23, %v3114_v49  ;;  %v3300_v2 = vmul.f32 %v11556_v12, %v3114_v49  ;;  %v4103_v30 = vpop.f32.mrb[146].mxu1  ;;  %v11557_v22 = vld [vmem:[#allocation123_spill] sm:$0xff] }
 0x3b3   : > { %v2987_v46 = vmul.f32 %v5854_v3, %v9753_v17  ;;  %5859 = vrcp.f32 %v2786_v0  ;;  %v2879_v16 = vadd.f32 %v9810_v37, %v2878_v51  ;;  %v4389_v52 = vpop.f32.mrb[144].mxu0  ;;  %v4105_v53 = vpop.f32.mrb[147].mxu1 }
 0x3b4   : > { %3555 = vst [vmem:[%s8425_s24 + $0x508] sm:$0xff] %v3299_v21  ;;  %3557 = vst [vmem:[%s8425_s24 + $0x518] sm:$0xff] %v3301_v60  ;;  %v4390_v56 = vadd.f32 %v4389_v52, %v4100_v40  ;;  %v4391_v54 = vpop.f32.mrb[145].mxu0 }
 0x3b5   : > { %3554 = vst [vmem:[%s8425_s24 + $0x500] sm:$0xff] %v3298_v14  ;;  %3556 = vst [vmem:[%s8425_s24 + $0x510] sm:$0xff] %v3300_v2  ;;  %v3051_v59 = vsub.f32 2.0, %v2987_v46  ;;  %v2791_v48 = vpop.xlane.xlu1 %2790  ;;  %2880 = vadd.xlane.f32.xlu1 %v2879_v16  ;;  %v5856_v17 = vpop.eup %5855 }
 0x3b6   : > { %5861 = vrcp.f32 %v2791_v48  ;;  %v4392_v51 = vpop.f32.mrb[146].mxu0  ;;  %v2988_v28 = vmul.f32 %v5856_v17, %v2776_v10  ;;  %4620 = vst.msk [vmem:[%s9677_s17 + $0x40] sm:$0xff] %vm671_vm0, %v4390_v56 }
 0x3b7   : > { %v3115_v49 = vmul.f32 %v5854_v3, %v3051_v59  ;;  %v4393_v12 = vadd.f32 %v4392_v51, %v4103_v30  ;;  %v4394_v46 = vpop.f32.mrb[147].mxu0  ;;  %v11558_v3 = vld [vmem:[#allocation124_spill] sm:$0xff] }
 0x3b8   : > { %v2796_v23 = vpop.xlane.xlu0 %2795  ;;  %v3052_v54 = vsub.f32 2.0, %v2988_v28 }
 0x3b9   : > { %5863 = vrcp.f32 %v2796_v23  ;;  %v3303_v16 = vmul.f32 %v8976_v31, %v3115_v49  ;;  %v3305_v40 = vmul.f32 %v8990_v41, %v3115_v49  ;;  %v3302_v52 = vmul.f32 %v11557_v22, %v3115_v49  ;;  %4621 = vst.msk [vmem:[%s9677_s17 + $0x48] sm:$0xff] %vm671_vm0, %v4393_v12 }
 0x3ba   : > { %v3304_v59 = vmul.f32 %v11558_v3, %v3115_v49  ;;  %v5858_v10 = vpop.eup %5857  ;;  %v3116_v31 = vmul.f32 %v5856_v17, %v3052_v54 }
 0x3bb   : > { %v9829_v53 = vpop.xlane.xlu1 %2800  ;;  %3559 = vst [vmem:[%s8425_s24 + $0x528] sm:$0xff] %v3303_v16  ;;  %v3731_v56 = vpack.c.bf16 %v3303_v16, %v3299_v21  ;;  %3561 = vst [vmem:[%s8425_s24 + $0x538] sm:$0xff] %v3305_v40  ;;  %v3733_v30 = vpack.c.bf16 %v3305_v40, %v3301_v60  ;;  %v3730_v51 = vpack.c.bf16 %v3302_v52, %v3298_v14  ;;  %v11559_v21 = vld [vmem:[#allocation139_spill] sm:$0xff]  ;;  %v11560_v16 = vld [vmem:[#allocation133_spill] sm:$0xff] }
 0x3bc   : > { %3558 = vst [vmem:[%s8425_s24 + $0x520] sm:$0xff] %v3302_v52  ;;  %5865 = vrcp.f32 %v9829_v53  ;;  %v2989_v41 = vmul.f32 %v5858_v10, %v2781_v34  ;;  %3560 = vst [vmem:[%s8425_s24 + $0x530] sm:$0xff] %v3304_v59  ;;  %v3732_v46 = vpack.c.bf16 %v3304_v59, %v3300_v2  ;;  %v3307_v60 = vmul.f32 %v11559_v21, %v3116_v31  ;;  %v4108_v2 = vpop.f32.mrb[148].mxu1 }
 0x3bd   : > { %v5860_v28 = vpop.eup %5859  ;;  %4226 = vmatprep.mubr.bf16.mxu1 %v3731_v56  ;;  %4515 = vmatprep.mubr.bf16.mxu0 %v3733_v30  ;;  %v3309_v14 = vmul.f32 %v9043_v32, %v3116_v31  ;;  %v3306_v17 = vmul.f32 %v11560_v16, %v3116_v31  ;;  %v3308_v34 = vmul.f32 %v9039_v62, %v3116_v31  ;;  %v4110_v54 = vpop.f32.mrb[149].mxu1 }
 0x3be   : > { %v3053_v49 = vsub.f32 2.0, %v2989_v41  ;;  %v2990_v12 = vmul.f32 %v5860_v28, %v2786_v0  ;;  %4227 = vmatmul.mubr.bf16.gmra.mrb[208].mxu1 %v3730_v51  ;;  %4516 = vmatmul.mubr.bf16.gmra.mrb[208].mxu0 %v3732_v46  ;;  %3563 = vst [vmem:[%s8425_s24 + $0x548] sm:$0xff] %v3307_v60  ;;  %v4397_v0 = vpop.f32.mrb[148].mxu0  ;;  %v4111_v59 = vpop.f32.mrb[150].mxu1 }
 0x3bf   : > { %3565 = vst [vmem:[%s8425_s24 + $0x558] sm:$0xff] %v3309_v14  ;;  %3562 = vst [vmem:[%s8425_s24 + $0x540] sm:$0xff] %v3306_v17  ;;  %v4113_v51 = vpop.f32.mrb[151].mxu1  ;;  %v4398_v46 = vadd.f32 %v4397_v0, %v4108_v2 }
 0x3c0   : > { %v5862_v40 = vpop.eup %5861  ;;  %v3117_v22 = vmul.f32 %v5858_v10, %v3053_v49  ;;  %v3054_v52 = vsub.f32 2.0, %v2990_v12  ;;  %3564 = vst [vmem:[%s8425_s24 + $0x550] sm:$0xff] %v3308_v34  ;;  %v4399_v10 = vpop.f32.mrb[149].mxu0 }
 0x3c1   : > { %v2991_v3 = vmul.f32 %v5862_v40, %v2791_v48  ;;  %v4400_v49 = vpop.f32.mrb[150].mxu0  ;;  %4622 = vst.msk [vmem:[%s9677_s17 + $0x50] sm:$0xff] %vm671_vm0, %v4398_v46  ;;  %v11564_v10 = vld [vmem:[#allocation141_spill] sm:$0xff] }
 0x3c2   : > { %v3118_v56 = vmul.f32 %v5860_v28, %v3054_v52  ;;  %v3311_v32 = vmul.f32 %v9055_v61, %v3117_v22  ;;  %v3313_v62 = vmul.f32 %v9069_v50, %v3117_v22  ;;  %v3310_v30 = vmul.f32 %v9048_v33, %v3117_v22  ;;  %v4402_v50 = vpop.f32.mrb[151].mxu0 }
 0x3c3   : > { %v5864_v31 = vpop.eup %5863  ;;  %v3055_v41 = vsub.f32 2.0, %v2991_v3  ;;  %v3312_v48 = vmul.f32 %v9060_v57, %v3117_v22  ;;  %v11563_v3 = vld [vmem:[#allocation134_spill] sm:$0xff] }
 0x3c4   : > { %v2992_v12 = vmul.f32 %v5864_v31, %v2796_v23  ;;  %3567 = vst [vmem:[%s8425_s24 + $0x568] sm:$0xff] %v3311_v32  ;;  %v3735_v28 = vpack.c.bf16 %v3311_v32, %v3307_v60  ;;  %3569 = vst [vmem:[%s8425_s24 + $0x578] sm:$0xff] %v3313_v62  ;;  %v3737_v21 = vpack.c.bf16 %v3313_v62, %v3309_v14  ;;  %v11561_v14 = vld [vmem:[#allocation126_spill] sm:$0xff] }
 0x3c5   : > { %3566 = vst [vmem:[%s8425_s24 + $0x560] sm:$0xff] %v3310_v30  ;;  %v3734_v61 = vpack.c.bf16 %v3310_v30, %v3306_v17  ;;  %v3119_v33 = vmul.f32 %v5862_v40, %v3055_v41  ;;  %3568 = vst [vmem:[%s8425_s24 + $0x570] sm:$0xff] %v3312_v48  ;;  %v3736_v52 = vpack.c.bf16 %v3312_v48, %v3308_v34  ;;  %v11566_v48 = vld [vmem:[#allocation34_spill] sm:$0xff] }
 0x3c6   : > { %v5866_v16 = vpop.eup %5865  ;;  %v3315_v54 = vmul.f32 %v9105_v6, %v3118_v56  ;;  %v3317_v57 = vmul.f32 %v9116_v1, %v3118_v56  ;;  %v3056_v23 = vsub.f32 2.0, %v2992_v12  ;;  %4234 = vmatprep.mubr.bf16.mxu1 %v3735_v28  ;;  %4523 = vmatprep.mubr.bf16.mxu0 %v3737_v21  ;;  %v3314_v17 = vmul.f32 %v11561_v14, %v3118_v56 }
 0x3c7   : > { %v2993_v60 = vmul.f32 %v5866_v16, %v9829_v53  ;;  %v3316_v2 = vmul.f32 %v9112_v24, %v3118_v56  ;;  %4235 = vmatmul.mubr.bf16.gmra.mrb[212].mxu1 %v3734_v61  ;;  %4524 = vmatmul.mubr.bf16.gmra.mrb[212].mxu0 %v3736_v52  ;;  %v3319_v6 = vmul.f32 %v9124_v29, %v3119_v33  ;;  %v11562_v53 = vld [vmem:[#allocation127_spill] sm:$0xff]  ;;  %v4116_v61 = vpop.f32.mrb[152].mxu1 }
 0x3c8   : > { %3571 = vst [vmem:[%s8425_s24 + $0x588] sm:$0xff] %v3315_v54  ;;  %v3321_v1 = vmul.f32 %v9138_v35, %v3119_v33  ;;  %3573 = vst [vmem:[%s8425_s24 + $0x598] sm:$0xff] %v3317_v57  ;;  %v3318_v34 = vmul.f32 %v11562_v53, %v3119_v33  ;;  %v3120_v40 = vmul.f32 %v5864_v31, %v3056_v23  ;;  %v11565_v31 = vld [vmem:[#allocation104_spill] sm:$0xff]  ;;  %v4118_v50 = vpop.f32.mrb[153].mxu1 }
 0x3c9   : > { %v3057_v22 = vsub.f32 2.0, %v2993_v60  ;;  %3570 = vst [vmem:[%s8425_s24 + $0x580] sm:$0xff] %v3314_v17  ;;  %v3320_v0 = vmul.f32 %v11563_v3, %v3119_v33  ;;  %3572 = vst [vmem:[%s8425_s24 + $0x590] sm:$0xff] %v3316_v2  ;;  %v4401_v24 = vadd.f32 %v4400_v49, %v4111_v59  ;;  %v3739_v56 = vpack.c.bf16 %v3319_v6, %v3315_v54  ;;  %v11567_v49 = vld [vmem:[#allocation33_spill] sm:$0xff]  ;;  %v4405_v52 = vpop.f32.mrb[152].mxu0  ;;  %v4119_v54 = vpop.f32.mrb[154].mxu1 }
 0x3ca   : > { %3575 = vst [vmem:[%s8425_s24 + $0x5a8] sm:$0xff] %v3319_v6  ;;  %3577 = vst [vmem:[%s8425_s24 + $0x5b8] sm:$0xff] %v3321_v1  ;;  %v3741_v29 = vpack.c.bf16 %v3321_v1, %v3317_v57  ;;  %v3738_v32 = vpack.c.bf16 %v3318_v34, %v3314_v17  ;;  %v3323_v62 = vmul.f32 %v9175_v58, %v3120_v40  ;;  %v11568_v58 = vld [vmem:[#allocation36_spill] sm:$0xff]  ;;  %v4407_v23 = vpop.f32.mrb[153].mxu0  ;;  %v4121_v60 = vpop.f32.mrb[155].mxu1 }
 0x3cb   : > { %3574 = vst [vmem:[%s8425_s24 + $0x5a0] sm:$0xff] %v3318_v34  ;;  %v3121_v35 = vmul.f32 %v5866_v16, %v3057_v22  ;;  %3576 = vst [vmem:[%s8425_s24 + $0x5b0] sm:$0xff] %v3320_v0  ;;  %v3325_v30 = vmul.f32 %v9188_v15, %v3120_v40  ;;  %4242 = vmatprep.mubr.bf16.mxu1 %v3739_v56  ;;  %v3740_v59 = vpack.c.bf16 %v3320_v0, %v3316_v2  ;;  %v11569_v15 = vld [vmem:[#allocation37_spill] sm:$0xff]  ;;  %v4408_v14 = vpop.f32.mrb[154].mxu0  ;;  %v11572_v60 = vld [vmem:[#allocation35_spill] sm:$0xff] }
 0x3cc   : > { %4623 = vst.msk [vmem:[%s9677_s17 + $0x58] sm:$0xff] %vm671_vm0, %v4401_v24  ;;  %4531 = vmatprep.mubr.bf16.mxu0 %v3741_v29  ;;  %v3322_v51 = vmul.f32 %v11564_v10, %v3120_v40  ;;  %v3324_v41 = vmul.f32 %v11565_v31, %v3120_v40  ;;  %3579 = vst [vmem:[%s8425_s24 + $0x5c8] sm:$0xff] %v3323_v62  ;;  %v4406_v57 = vadd.f32 %v4405_v52, %v4116_v61  ;;  %v4410_v2 = vpop.f32.mrb[155].mxu0  ;;  %v11570_v52 = vld [vmem:[#allocation180_spill] sm:$0xff] }
 0x3cd   : > { %v3327_v46 = vmul.f32 %v11566_v48, %v3121_v35  ;;  %v3329_v12 = vmul.f32 %v11567_v49, %v3121_v35  ;;  %3581 = vst [vmem:[%s8425_s24 + $0x5d8] sm:$0xff] %v3325_v30  ;;  %v3326_v28 = vmul.f32 %v11568_v58, %v3121_v35  ;;  %v3328_v21 = vmul.f32 %v11569_v15, %v3121_v35 }
 0x3ce   : > { %3578 = vst [vmem:[%s8425_s24 + $0x5c0] sm:$0xff] %v3322_v51  ;;  %3580 = vst [vmem:[%s8425_s24 + $0x5d0] sm:$0xff] %v3324_v41  ;;  %v4409_v17 = vadd.f32 %v4408_v14, %v4119_v54 }
 0x3cf   : > { %3583 = vst [vmem:[%s8425_s24 + $0x5e8] sm:$0xff] %v3327_v46  ;;  %v3743_v16 = vpack.c.bf16 %v3327_v46, %v3323_v62  ;;  %3585 = vst [vmem:[%s8425_s24 + $0x5f8] sm:$0xff] %v3329_v12  ;;  %v3745_v33 = vpack.c.bf16 %v3329_v12, %v3325_v30  ;;  %4243 = vmatmul.mubr.bf16.gmra.mrb[216].mxu1 %v3738_v32  ;;  %4532 = vmatmul.mubr.bf16.gmra.mrb[216].mxu0 %v3740_v59 }
 0x3d0   : > { %3582 = vst [vmem:[%s8425_s24 + $0x5e0] sm:$0xff] %v3326_v28  ;;  %3584 = vst [vmem:[%s8425_s24 + $0x5f0] sm:$0xff] %v3328_v21  ;;  %v3742_v6 = vpack.c.bf16 %v3326_v28, %v3322_v51  ;;  %v3744_v1 = vpack.c.bf16 %v3328_v21, %v3324_v41 }
 0x3d1   : > { %4250 = vmatprep.mubr.bf16.mxu1 %v3743_v16  ;;  %4539 = vmatprep.mubr.bf16.mxu0 %v3745_v33  ;;  %4624 = vst.msk [vmem:[%s9677_s17 + $0x60] sm:$0xff] %vm671_vm0, %v4406_v57  ;;  %4625 = vst.msk [vmem:[%s9677_s17 + $0x68] sm:$0xff] %vm671_vm0, %v4409_v17  ;;  %v11571_v57 = vld [vmem:[#allocation135_spill] sm:$0xff]  ;;  %v11573_v17 = vld [vmem:[#allocation38_spill] sm:$0xff] }
 0x3d5   : > { %v4124_v53 = vpop.f32.mrb[156].mxu1 }
 0x3d6   : > { %v4126_v34 = vpop.f32.mrb[157].mxu1 }
 0x3d7   : > { %4251 = vmatmul.mubr.bf16.gmra.mrb[220].mxu1 %v3742_v6  ;;  %4540 = vmatmul.mubr.bf16.gmra.mrb[220].mxu0 %v3744_v1  ;;  %v4127_v40 = vpop.f32.mrb[158].mxu1 }
 0x3d8   : > { %v4413_v22 = vpop.f32.mrb[156].mxu0  ;;  %v4129_v3 = vpop.f32.mrb[159].mxu1 }
 0x3d9   : > { %v4414_v0 = vadd.f32 %v4413_v22, %v4124_v53  ;;  %v4415_v24 = vpop.f32.mrb[157].mxu0 }
 0x3da   : > { %v4416_v56 = vpop.f32.mrb[158].mxu0  ;;  %v2806_v32 = vpop.xlane.xlu0 %2805 }
 0x3db   : > { %4626 = vst.msk [vmem:[%s9677_s17 + $0x70] sm:$0xff] %vm671_vm0, %v4414_v0  ;;  %v4417_v29 = vadd.f32 %v4416_v56, %v4127_v40  ;;  %v4418_v35 = vpop.f32.mrb[159].mxu0  ;;  %5867 = vrcp.f32 %v2806_v32 }
 0x3dd   : > { %4627 = vst.msk [vmem:[%s9677_s17 + $0x78] sm:$0xff] %vm671_vm0, %v4417_v29 }
 0x3e2   : > { %v4132_v62 = vpop.f32.mrb[160].mxu1 }
 0x3e3   : > { %v4134_v30 = vpop.f32.mrb[161].mxu1  ;;  %v2811_v12 = vpop.xlane.xlu1 %2810 }
 0x3e4   : > { %v4135_v59 = vpop.f32.mrb[162].mxu1  ;;  %5869 = vrcp.f32 %v2811_v12 }
 0x3e5   : > { %v4421_v10 = vpop.f32.mrb[160].mxu0  ;;  %v4137_v51 = vpop.f32.mrb[163].mxu1 }
 0x3e6   : > { %v4422_v31 = vadd.f32 %v4421_v10, %v4132_v62  ;;  %v4423_v41 = vpop.f32.mrb[161].mxu0  ;;  %v5868_v58 = vpop.eup %5867 }
 0x3e7   : > { %v4424_v48 = vpop.f32.mrb[162].mxu0  ;;  %v2994_v28 = vmul.f32 %v5868_v58, %v2806_v32  ;;  %v11574_v41 = vld [vmem:[#allocation143_spill] sm:$0xff] }
 0x3e8   : > { %4628 = vst.msk [vmem:[%s9677_s17 + $0x80] sm:$0xff] %vm671_vm0, %v4422_v31  ;;  %v4425_v46 = vadd.f32 %v4424_v48, %v4135_v59  ;;  %v4426_v49 = vpop.f32.mrb[163].mxu0  ;;  %v2816_v22 = vpop.xlane.xlu0 %2815 }
 0x3e9   : > { %v3058_v15 = vsub.f32 2.0, %v2994_v28  ;;  %5871 = vrcp.f32 %v2816_v22 }
 0x3ea   : > { %4629 = vst.msk [vmem:[%s9677_s17 + $0x88] sm:$0xff] %vm671_vm0, %v4425_v46  ;;  %v11575_v46 = vld [vmem:[#allocation140_spill] sm:$0xff] }
 0x3eb   : > { %v3122_v61 = vmul.f32 %v5868_v58, %v3058_v15  ;;  %v11577_v15 = vld [vmem:[#allocation146_spill] sm:$0xff] }
 0x3ed   : > { %v3331_v54 = vmul.f32 %v11570_v52, %v3122_v61  ;;  %v3333_v23 = vmul.f32 %v11571_v57, %v3122_v61  ;;  %v3330_v14 = vmul.f32 %v11572_v60, %v3122_v61  ;;  %v3332_v2 = vmul.f32 %v11573_v17, %v3122_v61 }
 0x3ee   : > { %v5870_v34 = vpop.eup %5869 }
 0x3ef   : > { %v4140_v21 = vpop.f32.mrb[164].mxu1  ;;  %3587 = vst [vmem:[%s8425_s24 + $0x608] sm:$0xff] %v3331_v54  ;;  %3589 = vst [vmem:[%s8425_s24 + $0x618] sm:$0xff] %v3333_v23  ;;  %v2995_v24 = vmul.f32 %v5870_v34, %v2811_v12  ;;  %v11576_v12 = vld [vmem:[#allocation138_spill] sm:$0xff] }
 0x3f0   : > { %v4142_v50 = vpop.f32.mrb[165].mxu1  ;;  %3586 = vst [vmem:[%s8425_s24 + $0x600] sm:$0xff] %v3330_v14  ;;  %3588 = vst [vmem:[%s8425_s24 + $0x610] sm:$0xff] %v3332_v2 }
 0x3f1   : > { %v4429_v16 = vpop.f32.mrb[164].mxu0  ;;  %v4143_v33 = vpop.f32.mrb[166].mxu1  ;;  %v3059_v56 = vsub.f32 2.0, %v2995_v24 }
 0x3f2   : > { %v4430_v6 = vadd.f32 %v4429_v16, %v4140_v21  ;;  %v4431_v1 = vpop.f32.mrb[165].mxu0  ;;  %v4145_v53 = vpop.f32.mrb[167].mxu1 }
 0x3f3   : > { %v4432_v40 = vpop.f32.mrb[166].mxu0  ;;  %v3123_v32 = vmul.f32 %v5870_v34, %v3059_v56  ;;  %v2821_v62 = vpop.xlane.xlu1 %2820 }
 0x3f4   : > { %4630 = vst.msk [vmem:[%s9677_s17 + $0x90] sm:$0xff] %vm671_vm0, %v4430_v6  ;;  %v4433_v3 = vadd.f32 %v4432_v40, %v4143_v33  ;;  %v4434_v0 = vpop.f32.mrb[167].mxu0  ;;  %5873 = vrcp.f32 %v2821_v62  ;;  %v5872_v60 = vpop.eup %5871 }
 0x3f5   : > { %v3335_v48 = vmul.f32 %v11574_v41, %v3123_v32  ;;  %v3337_v49 = vmul.f32 %v11575_v46, %v3123_v32  ;;  %v3334_v58 = vmul.f32 %v11576_v12, %v3123_v32  ;;  %v3336_v21 = vmul.f32 %v11577_v15, %v3123_v32  ;;  %v11578_v32 = vld [vmem:[#allocation144_spill] sm:$0xff]  ;;  %v11581_v41 = vld [vmem:[#allocation147_spill] sm:$0xff] }
 0x3f6   : > { %4631 = vst.msk [vmem:[%s9677_s17 + $0x98] sm:$0xff] %vm671_vm0, %v4433_v3  ;;  %v2996_v1 = vmul.f32 %v5872_v60, %v2816_v22 }
 0x3f7   : > { %3591 = vst [vmem:[%s8425_s24 + $0x628] sm:$0xff] %v3335_v48  ;;  %v3747_v16 = vpack.c.bf16 %v3335_v48, %v3331_v54  ;;  %3593 = vst [vmem:[%s8425_s24 + $0x638] sm:$0xff] %v3337_v49  ;;  %v3749_v33 = vpack.c.bf16 %v3337_v49, %v3333_v23  ;;  %v3746_v52 = vpack.c.bf16 %v3334_v58, %v3330_v14  ;;  %v2826_v17 = vpop.xlane.xlu0 %2825 }
 0x3f8   : > { %v4148_v29 = vpop.f32.mrb[168].mxu1  ;;  %3590 = vst [vmem:[%s8425_s24 + $0x620] sm:$0xff] %v3334_v58  ;;  %3592 = vst [vmem:[%s8425_s24 + $0x630] sm:$0xff] %v3336_v21  ;;  %v3748_v57 = vpack.c.bf16 %v3336_v21, %v3332_v2  ;;  %5875 = vrcp.f32 %v2826_v17  ;;  %v3060_v23 = vsub.f32 2.0, %v2996_v1  ;;  %v11584_v1 = vld [vmem:[#allocation42_spill] sm:$0xff] }
 0x3f9   : > { %v4150_v35 = vpop.f32.mrb[169].mxu1  ;;  %v4437_v30 = vpop.f32.mrb[168].mxu0  ;;  %4258 = vmatprep.mubr.bf16.mxu1 %v3747_v16  ;;  %4547 = vmatprep.mubr.bf16.mxu0 %v3749_v33 }
 0x3fa   : > { %v4151_v59 = vpop.f32.mrb[170].mxu1  ;;  %v4438_v10 = vadd.f32 %v4437_v30, %v4148_v29  ;;  %v4439_v51 = vpop.f32.mrb[169].mxu0  ;;  %4259 = vmatmul.mubr.bf16.gmra.mrb[224].mxu1 %v3746_v52  ;;  %4548 = vmatmul.mubr.bf16.gmra.mrb[224].mxu0 %v3748_v57  ;;  %v3124_v24 = vmul.f32 %v5872_v60, %v3060_v23 }
 0x3fb   : > { %v4153_v31 = vpop.f32.mrb[171].mxu1  ;;  %v4440_v28 = vpop.f32.mrb[170].mxu0  ;;  %v11580_v51 = vld [vmem:[#allocation142_spill] sm:$0xff] }
 0x3fc   : > { %4632 = vst.msk [vmem:[%s9677_s17 + $0xa0] sm:$0xff] %vm671_vm0, %v4438_v10  ;;  %v4441_v61 = vadd.f32 %v4440_v28, %v4151_v59  ;;  %v4442_v50 = vpop.f32.mrb[171].mxu0  ;;  %v3339_v30 = vmul.f32 %v11578_v32, %v3124_v24  ;;  %v11579_v59 = vld [vmem:[#allocation41_spill] sm:$0xff]  ;;  %v3338_v31 = vmul.f32 %v11580_v51, %v3124_v24  ;;  %v3340_v48 = vmul.f32 %v11581_v41, %v3124_v24 }
 0x3fd   : > { %v3341_v10 = vmul.f32 %v11579_v59, %v3124_v24  ;;  %v11586_v24 = vld [vmem:[#allocation39_spill] sm:$0xff] }
 0x3fe   : > { %4633 = vst.msk [vmem:[%s9677_s17 + $0xa8] sm:$0xff] %vm671_vm0, %v4441_v61  ;;  %v5874_v3 = vpop.eup %5873  ;;  %3595 = vst [vmem:[%s8425_s24 + $0x648] sm:$0xff] %v3339_v30 }
 0x3ff   : > { %v2997_v29 = vmul.f32 %v5874_v3, %v2821_v62  ;;  %3597 = vst [vmem:[%s8425_s24 + $0x658] sm:$0xff] %v3341_v10  ;;  %3594 = vst [vmem:[%s8425_s24 + $0x640] sm:$0xff] %v3338_v31 }
 0x400   : > { %v4156_v6 = vpop.f32.mrb[172].mxu1  ;;  %3596 = vst [vmem:[%s8425_s24 + $0x650] sm:$0xff] %v3340_v48 }
 0x401   : > { %v4158_v53 = vpop.f32.mrb[173].mxu1  ;;  %v4445_v54 = vpop.f32.mrb[172].mxu0  ;;  %v3061_v46 = vsub.f32 2.0, %v2997_v29 }
 0x402   : > { %v4159_v34 = vpop.f32.mrb[174].mxu1  ;;  %v4446_v14 = vadd.f32 %v4445_v54, %v4156_v6  ;;  %v4447_v40 = vpop.f32.mrb[173].mxu0 }
 0x403   : > { %v4161_v2 = vpop.f32.mrb[175].mxu1  ;;  %v4448_v0 = vpop.f32.mrb[174].mxu0  ;;  %v3125_v62 = vmul.f32 %v5874_v3, %v3061_v46  ;;  %v11585_v3 = vld [vmem:[#allocation182_spill] sm:$0xff] }
 0x404   : > { %4634 = vst.msk [vmem:[%s9677_s17 + $0xb0] sm:$0xff] %vm671_vm0, %v4446_v14  ;;  %v4449_v22 = vadd.f32 %v4448_v0, %v4159_v34  ;;  %v4450_v56 = vpop.f32.mrb[175].mxu0  ;;  %v2831_v35 = vpop.xlane.xlu1 %2830 }
 0x405   : > { %5877 = vrcp.f32 %v2831_v35  ;;  %v5876_v49 = vpop.eup %5875  ;;  %v3343_v28 = vmul.f32 %v9350_v20, %v3125_v62  ;;  %v3345_v15 = vmul.f32 %v9358_v43, %v3125_v62  ;;  %v3342_v21 = vmul.f32 %v9343_v4, %v3125_v62  ;;  %v11582_v43 = vld [vmem:[#allocation45_spill] sm:$0xff]  ;;  %v11587_v56 = vld [vmem:[#allocation43_spill] sm:$0xff] }
 0x406   : > { %4635 = vst.msk [vmem:[%s9677_s17 + $0xb8] sm:$0xff] %vm671_vm0, %v4449_v22  ;;  %v2998_v12 = vmul.f32 %v5876_v49, %v2826_v17  ;;  %v3344_v61 = vmul.f32 %v9353_v27, %v3125_v62  ;;  %v11583_v17 = vld [vmem:[#allocation44_spill] sm:$0xff]  ;;  %v11590_v62 = vld [vmem:[#allocation47_spill] sm:$0xff] }
 0x407   : > { %v2836_v58 = vpop.xlane.xlu0 %2835  ;;  %3599 = vst [vmem:[%s8425_s24 + $0x668] sm:$0xff] %v3343_v28  ;;  %v3751_v16 = vpack.c.bf16 %v3343_v28, %v3339_v30  ;;  %3601 = vst [vmem:[%s8425_s24 + $0x678] sm:$0xff] %v3345_v15  ;;  %v3753_v33 = vpack.c.bf16 %v3345_v15, %v3341_v10  ;;  %v3750_v52 = vpack.c.bf16 %v3342_v21, %v3338_v31  ;;  %v11588_v31 = vld [vmem:[#allocation149_spill] sm:$0xff] }
 0x408   : > { %5879 = vrcp.f32 %v2836_v58  ;;  %v3062_v50 = vsub.f32 2.0, %v2998_v12  ;;  %3598 = vst [vmem:[%s8425_s24 + $0x660] sm:$0xff] %v3342_v21  ;;  %3600 = vst [vmem:[%s8425_s24 + $0x670] sm:$0xff] %v3344_v61  ;;  %v3752_v20 = vpack.c.bf16 %v3344_v61, %v3340_v48  ;;  %v11589_v48 = vld [vmem:[#allocation150_spill] sm:$0xff]  ;;  %v11591_v12 = vld [vmem:[#allocation151_spill] sm:$0xff] }
 0x409   : > { %4266 = vmatprep.mubr.bf16.mxu1 %v3751_v16  ;;  %4555 = vmatprep.mubr.bf16.mxu0 %v3753_v33 }
 0x40a   : > { %v3126_v57 = vmul.f32 %v5876_v49, %v3062_v50  ;;  %4267 = vmatmul.mubr.bf16.gmra.mrb[228].mxu1 %v3750_v52  ;;  %4556 = vmatmul.mubr.bf16.gmra.mrb[228].mxu0 %v3752_v20  ;;  %v11592_v20 = vld [vmem:[#allocation152_spill] sm:$0xff] }
 0x40c   : > { %v3347_v27 = vmul.f32 %v9380_v8, %v3126_v57  ;;  %v3349_v60 = vmul.f32 %v11582_v43, %v3126_v57  ;;  %v3346_v6 = vmul.f32 %v11583_v17, %v3126_v57  ;;  %v3348_v53 = vmul.f32 %v11584_v1, %v3126_v57  ;;  %v11594_v43 = vld [vmem:[#allocation154_spill] sm:$0xff]  ;;  %v11595_v17 = vld [vmem:[#allocation153_spill] sm:$0xff] }
 0x40e   : > { %3603 = vst [vmem:[%s8425_s24 + $0x688] sm:$0xff] %v3347_v27  ;;  %3605 = vst [vmem:[%s8425_s24 + $0x698] sm:$0xff] %v3349_v60 }
 0x40f   : > { %v5878_v4 = vpop.eup %5877  ;;  %3602 = vst [vmem:[%s8425_s24 + $0x680] sm:$0xff] %v3346_v6  ;;  %3604 = vst [vmem:[%s8425_s24 + $0x690] sm:$0xff] %v3348_v53 }
 0x410   : > { %v2999_v54 = vmul.f32 %v5878_v4, %v2831_v35 }
 0x412   : > { %v3063_v34 = vsub.f32 2.0, %v2999_v54  ;;  %v5880_v14 = vpop.eup %5879 }
 0x413   : > { %v2841_v23 = vpop.xlane.xlu1 %2840  ;;  %v3000_v8 = vmul.f32 %v5880_v14, %v2836_v58 }
 0x414   : > { %v3127_v40 = vmul.f32 %v5878_v4, %v3063_v34  ;;  %5881 = vrcp.f32 %v2841_v23  ;;  %v11593_v4 = vld [vmem:[#allocation155_spill] sm:$0xff] }
 0x415   : > { %v3064_v35 = vsub.f32 2.0, %v3000_v8 }
 0x416   : > { %v3351_v2 = vmul.f32 %v9417_v42, %v3127_v40  ;;  %v3353_v0 = vmul.f32 %v11585_v3, %v3127_v40  ;;  %v3350_v22 = vmul.f32 %v11586_v24, %v3127_v40  ;;  %v3352_v29 = vmul.f32 %v11587_v56, %v3127_v40  ;;  %v11596_v24 = vld [vmem:[#allocation48_spill] sm:$0xff]  ;;  %v11597_v56 = vld [vmem:[#allocation50_spill] sm:$0xff] }
 0x417   : > { %v3128_v42 = vmul.f32 %v5880_v14, %v3064_v35  ;;  %v11598_v35 = vld [vmem:[#allocation167_spill] sm:$0xff] }
 0x418   : > { %3607 = vst [vmem:[%s8425_s24 + $0x6a8] sm:$0xff] %v3351_v2  ;;  %v3755_v32 = vpack.c.bf16 %v3351_v2, %v3347_v27  ;;  %3609 = vst [vmem:[%s8425_s24 + $0x6b8] sm:$0xff] %v3353_v0  ;;  %v3757_v30 = vpack.c.bf16 %v3353_v0, %v3349_v60  ;;  %v3754_v59 = vpack.c.bf16 %v3350_v22, %v3346_v6  ;;  %v2846_v51 = vpop.xlane.xlu0 %2845 }
 0x419   : > { %3606 = vst [vmem:[%s8425_s24 + $0x6a0] sm:$0xff] %v3350_v22  ;;  %3608 = vst [vmem:[%s8425_s24 + $0x6b0] sm:$0xff] %v3352_v29  ;;  %v3756_v10 = vpack.c.bf16 %v3352_v29, %v3348_v53  ;;  %5883 = vrcp.f32 %v2846_v51  ;;  %v3355_v41 = vmul.f32 %v11588_v31, %v3128_v42  ;;  %v3357_v46 = vmul.f32 %v11589_v48, %v3128_v42 }
 0x41a   : > { %4274 = vmatprep.mubr.bf16.mxu1 %v3755_v32  ;;  %4563 = vmatprep.mubr.bf16.mxu0 %v3757_v30  ;;  %v3354_v49 = vmul.f32 %v11590_v62, %v3128_v42  ;;  %v3356_v58 = vmul.f32 %v11591_v12, %v3128_v42  ;;  %v11599_v42 = vld [vmem:[#allocation52_spill] sm:$0xff] }
 0x41b   : > { %4275 = vmatmul.mubr.bf16.gmra.mrb[232].mxu1 %v3754_v59  ;;  %4564 = vmatmul.mubr.bf16.gmra.mrb[232].mxu0 %v3756_v10  ;;  %3611 = vst [vmem:[%s8425_s24 + $0x6c8] sm:$0xff] %v3355_v41  ;;  %3613 = vst [vmem:[%s8425_s24 + $0x6d8] sm:$0xff] %v3357_v46 }
 0x41c   : > { %3610 = vst [vmem:[%s8425_s24 + $0x6c0] sm:$0xff] %v3354_v49  ;;  %3612 = vst [vmem:[%s8425_s24 + $0x6d0] sm:$0xff] %v3356_v58 }
 0x41e   : > { %v5882_v28 = vpop.eup %5881 }
 0x41f   : > { %v3001_v15 = vmul.f32 %v5882_v28, %v2841_v23  ;;  %v2851_v21 = vpop.xlane.xlu1 %2850 }
 0x420   : > { %5885 = vrcp.f32 %v2851_v21 }
 0x421   : > { %v3065_v61 = vsub.f32 2.0, %v3001_v15 }
 0x423   : > { %v3129_v50 = vmul.f32 %v5882_v28, %v3065_v61  ;;  %v5884_v16 = vpop.eup %5883 }
 0x424   : > { %v3002_v33 = vmul.f32 %v5884_v16, %v2846_v51 }
 0x425   : > { %v3359_v57 = vmul.f32 %v11592_v20, %v3129_v50  ;;  %v3361_v27 = vmul.f32 %v11593_v4, %v3129_v50  ;;  %v3358_v60 = vmul.f32 %v11594_v43, %v3129_v50  ;;  %v3360_v6 = vmul.f32 %v11595_v17, %v3129_v50  ;;  %v4164_v40 = vpop.f32.mrb[176].mxu1  ;;  %v11601_v50 = vld [vmem:[#allocation49_spill] sm:$0xff] }
 0x426   : > { %v2856_v52 = vpop.xlane.xlu0 %2855  ;;  %v3066_v1 = vsub.f32 2.0, %v3002_v33  ;;  %v4453_v2 = vpop.f32.mrb[176].mxu0  ;;  %v11602_v33 = vld [vmem:[#allocation53_spill] sm:$0xff] }
 0x427   : > { %5887 = vrcp.f32 %v2856_v52  ;;  %3615 = vst [vmem:[%s8425_s24 + $0x6e8] sm:$0xff] %v3359_v57  ;;  %v3759_v53 = vpack.c.bf16 %v3359_v57, %v3355_v41  ;;  %3617 = vst [vmem:[%s8425_s24 + $0x6f8] sm:$0xff] %v3361_v27  ;;  %v3761_v54 = vpack.c.bf16 %v3361_v27, %v3357_v46  ;;  %v3758_v34 = vpack.c.bf16 %v3358_v60, %v3354_v49  ;;  %v4166_v3 = vpop.f32.mrb[177].mxu1  ;;  %v4455_v30 = vpop.f32.mrb[177].mxu0  ;;  %v11603_v57 = vld [vmem:[#allocation51_spill] sm:$0xff] }
 0x428   : > { %3614 = vst [vmem:[%s8425_s24 + $0x6e0] sm:$0xff] %v3358_v60  ;;  %3616 = vst [vmem:[%s8425_s24 + $0x6f0] sm:$0xff] %v3360_v6  ;;  %v3760_v23 = vpack.c.bf16 %v3360_v6, %v3356_v58  ;;  %v3130_v14 = vmul.f32 %v5884_v16, %v3066_v1  ;;  %v4167_v59 = vpop.f32.mrb[178].mxu1  ;;  %v4454_v31 = vadd.f32 %v4453_v2, %v4164_v40  ;;  %v4456_v41 = vpop.f32.mrb[178].mxu0 }
 0x429   : > { %4282 = vmatprep.mubr.bf16.mxu1 %v3759_v53  ;;  %4571 = vmatprep.mubr.bf16.mxu0 %v3761_v54  ;;  %v4457_v46 = vadd.f32 %v4456_v41, %v4167_v59  ;;  %v4169_v62 = vpop.f32.mrb[179].mxu1  ;;  %v4458_v49 = vpop.f32.mrb[179].mxu0  ;;  %v11604_v54 = vld [vmem:[#allocation159_spill] sm:$0xff] }
 0x42a   : > { %v5886_v8 = vpop.eup %5885  ;;  %4283 = vmatmul.mubr.bf16.gmra.mrb[236].mxu1 %v3758_v34  ;;  %4572 = vmatmul.mubr.bf16.gmra.mrb[236].mxu0 %v3760_v23  ;;  %v3363_v22 = vmul.f32 %v11596_v24, %v3130_v14  ;;  %v3365_v29 = vmul.f32 %v11597_v56, %v3130_v14  ;;  %v3362_v32 = vmul.f32 %v11598_v35, %v3130_v14  ;;  %v11607_v49 = vld [vmem:[#allocation174_spill] sm:$0xff] }
 0x42b   : > { %v3003_v0 = vmul.f32 %v5886_v8, %v2851_v21  ;;  %v3364_v51 = vmul.f32 %v11599_v42, %v3130_v14  ;;  %4636 = vst.msk [vmem:[%s9677_s17 + $0xc0] sm:$0xff] %vm671_vm0, %v4454_v31  ;;  %4637 = vst.msk [vmem:[%s9677_s17 + $0xc8] sm:$0xff] %vm671_vm0, %v4457_v46  ;;  %v11600_v21 = vld [vmem:[#allocation46_spill] sm:$0xff]  ;;  %v11605_v14 = vld [vmem:[#allocation55_spill] sm:$0xff] }
 0x42c   : > { %3619 = vst [vmem:[%s8425_s24 + $0x708] sm:$0xff] %v3363_v22  ;;  %3621 = vst [vmem:[%s8425_s24 + $0x718] sm:$0xff] %v3365_v29 }
 0x42d   : > { %v3067_v48 = vsub.f32 2.0, %v3003_v0  ;;  %3618 = vst [vmem:[%s8425_s24 + $0x700] sm:$0xff] %v3362_v32  ;;  %3620 = vst [vmem:[%s8425_s24 + $0x710] sm:$0xff] %v3364_v51 }
 0x42f   : > { %v2861_v10 = vpop.xlane.xlu1 %2860  ;;  %v3131_v12 = vmul.f32 %v5886_v8, %v3067_v48  ;;  %v11606_v8 = vld [vmem:[#allocation14_spill] sm:$0xff] }
 0x430   : > { %5889 = vrcp.f32 %v2861_v10 }
 0x431   : > { %v5888_v58 = vpop.eup %5887  ;;  %v3367_v61 = vmul.f32 %v11600_v21, %v3131_v12  ;;  %v3369_v16 = vmul.f32 %v11601_v50, %v3131_v12  ;;  %v3366_v20 = vmul.f32 %v11602_v33, %v3131_v12  ;;  %v3368_v4 = vmul.f32 %v11603_v57, %v3131_v12 }
 0x432   : > { %v3004_v28 = vmul.f32 %v5888_v58, %v2856_v52 }
 0x433   : > { %v2866_v15 = vpop.xlane.xlu0 %2865  ;;  %3623 = vst [vmem:[%s8425_s24 + $0x728] sm:$0xff] %v3367_v61  ;;  %v3763_v43 = vpack.c.bf16 %v3367_v61, %v3363_v22  ;;  %3625 = vst [vmem:[%s8425_s24 + $0x738] sm:$0xff] %v3369_v16  ;;  %v3765_v60 = vpack.c.bf16 %v3369_v16, %v3365_v29  ;;  %v3762_v17 = vpack.c.bf16 %v3366_v20, %v3362_v32 }
 0x434   : > { %5891 = vrcp.f32 %v2866_v15  ;;  %v3068_v27 = vsub.f32 2.0, %v3004_v28  ;;  %3622 = vst [vmem:[%s8425_s24 + $0x720] sm:$0xff] %v3366_v20  ;;  %3624 = vst [vmem:[%s8425_s24 + $0x730] sm:$0xff] %v3368_v4  ;;  %v3764_v6 = vpack.c.bf16 %v3368_v4, %v3364_v51  ;;  %v11608_v20 = vld [vmem:[#allocation179_spill] sm:$0xff] }
 0x435   : > { %4290 = vmatprep.mubr.bf16.mxu1 %v3763_v43  ;;  %4579 = vmatprep.mubr.bf16.mxu0 %v3765_v60  ;;  %v4172_v24 = vpop.f32.mrb[180].mxu1  ;;  %v4461_v56 = vpop.f32.mrb[180].mxu0 }
 0x436   : > { %v3132_v52 = vmul.f32 %v5888_v58, %v3068_v27  ;;  %4291 = vmatmul.mubr.bf16.gmra.mrb[240].mxu1 %v3762_v17  ;;  %4580 = vmatmul.mubr.bf16.gmra.mrb[240].mxu0 %v3764_v6  ;;  %v4174_v29 = vpop.f32.mrb[181].mxu1  ;;  %v4462_v35 = vadd.f32 %v4461_v56, %v4172_v24  ;;  %v4463_v32 = vpop.f32.mrb[181].mxu0  ;;  %v11609_v27 = vld [vmem:[#allocation181_spill] sm:$0xff] }
 0x437   : > { %v4464_v42 = vpop.f32.mrb[182].mxu0 }
 0x438   : > { %v2871_v1 = vpop.xlane.xlu1 %2870  ;;  %v3371_v34 = vmul.f32 %v11604_v54, %v3132_v52  ;;  %v3373_v23 = vmul.f32 %v9591_v44, %v3132_v52  ;;  %v3370_v40 = vmul.f32 %v11605_v14, %v3132_v52  ;;  %v3372_v2 = vmul.f32 %v11606_v8, %v3132_v52  ;;  %v4175_v44 = vpop.f32.mrb[182].mxu1  ;;  %4638 = vst.msk [vmem:[%s9677_s17 + $0xd0] sm:$0xff] %vm671_vm0, %v4462_v35 }
 0x439   : > { %5893 = vrcp.f32 %v2871_v1  ;;  %v4465_v31 = vadd.f32 %v4464_v42, %v4175_v44  ;;  %v4466_v41 = vpop.f32.mrb[183].mxu0 }
 0x43a   : > { %v5890_v53 = vpop.eup %5889  ;;  %3627 = vst [vmem:[%s8425_s24 + $0x748] sm:$0xff] %v3371_v34  ;;  %3629 = vst [vmem:[%s8425_s24 + $0x758] sm:$0xff] %v3373_v23 }
 0x43b   : > { %v3005_v3 = vmul.f32 %v5890_v53, %v2861_v10  ;;  %v2876_v0 = vpop.xlane.xlu0 %2875  ;;  %3626 = vst [vmem:[%s8425_s24 + $0x740] sm:$0xff] %v3370_v40  ;;  %3628 = vst [vmem:[%s8425_s24 + $0x750] sm:$0xff] %v3372_v2  ;;  %v4177_v10 = vpop.f32.mrb[183].mxu1 }
 0x43c   : > { %5895 = vrcp.f32 %v2876_v0  ;;  %4639 = vst.msk [vmem:[%s9677_s17 + $0xd8] sm:$0xff] %vm671_vm0, %v4465_v31 }
 0x43d   : > { %v3069_v22 = vsub.f32 2.0, %v3005_v3 }
 0x43e   : > { %v5892_v30 = vpop.eup %5891 }
 0x43f   : > { %v3133_v59 = vmul.f32 %v5890_v53, %v3069_v22  ;;  %v3006_v51 = vmul.f32 %v5892_v30, %v2866_v15 }
 0x441   : > { %v3375_v48 = vmul.f32 %v9631_v13, %v3133_v59  ;;  %v3377_v46 = vmul.f32 %v9646_v7, %v3133_v59  ;;  %v3374_v62 = vmul.f32 %v9628_v38, %v3133_v59  ;;  %v3376_v12 = vmul.f32 %v11607_v49, %v3133_v59 }
 0x442   : > { %v3070_v58 = vsub.f32 2.0, %v3006_v51  ;;  %v2881_v28 = vpop.xlane.xlu1 %2880 }
 0x443   : > { %v5894_v21 = vpop.eup %5893  ;;  %5897 = vrcp.f32 %v2881_v28  ;;  %3631 = vst [vmem:[%s8425_s24 + $0x768] sm:$0xff] %v3375_v48  ;;  %v3767_v15 = vpack.c.bf16 %v3375_v48, %v3371_v34  ;;  %3633 = vst [vmem:[%s8425_s24 + $0x778] sm:$0xff] %v3377_v46  ;;  %v3769_v61 = vpack.c.bf16 %v3377_v46, %v3373_v23  ;;  %v3766_v50 = vpack.c.bf16 %v3374_v62, %v3370_v40 }
 0x444   : > { %3630 = vst [vmem:[%s8425_s24 + $0x760] sm:$0xff] %v3374_v62  ;;  %3632 = vst [vmem:[%s8425_s24 + $0x770] sm:$0xff] %v3376_v12  ;;  %v3134_v13 = vmul.f32 %v5892_v30, %v3070_v58  ;;  %v3007_v7 = vmul.f32 %v5894_v21, %v2871_v1  ;;  %v3768_v38 = vpack.c.bf16 %v3376_v12, %v3372_v2  ;;  %v4180_v1 = vpop.f32.mrb[184].mxu1 }
 0x445   : > { %4298 = vmatprep.mubr.bf16.mxu1 %v3767_v15  ;;  %4587 = vmatprep.mubr.bf16.mxu0 %v3769_v61  ;;  %v4182_v23 = vpop.f32.mrb[185].mxu1 }
 0x446   : > { %v5896_v16 = vpop.eup %5895  ;;  %v3071_v33 = vsub.f32 2.0, %v3007_v7  ;;  %4299 = vmatmul.mubr.bf16.gmra.mrb[244].mxu1 %v3766_v50  ;;  %4588 = vmatmul.mubr.bf16.gmra.mrb[244].mxu0 %v3768_v38  ;;  %v3379_v57 = vmul.f32 %v11608_v20, %v3134_v13  ;;  %v3381_v4 = vmul.f32 %v9691_v36, %v3134_v13  ;;  %v3378_v43 = vmul.f32 %v11609_v27, %v3134_v13  ;;  %v4183_v2 = vpop.f32.mrb[186].mxu1 }
 0x447   : > { %v3008_v60 = vmul.f32 %v5896_v16, %v2876_v0  ;;  %v3380_v17 = vmul.f32 %v9683_v18, %v3134_v13  ;;  %v4469_v18 = vpop.f32.mrb[184].mxu0 }
 0x448   : > { %v3135_v6 = vmul.f32 %v5894_v21, %v3071_v33  ;;  %3635 = vst [vmem:[%s8425_s24 + $0x788] sm:$0xff] %v3379_v57  ;;  %3637 = vst [vmem:[%s8425_s24 + $0x798] sm:$0xff] %v3381_v4  ;;  %v4470_v40 = vadd.f32 %v4469_v18, %v4180_v1  ;;  %v4471_v8 = vpop.f32.mrb[185].mxu0 }
 0x449   : > { %3634 = vst [vmem:[%s8425_s24 + $0x780] sm:$0xff] %v3378_v43  ;;  %v3072_v52 = vsub.f32 2.0, %v3008_v60  ;;  %3636 = vst [vmem:[%s8425_s24 + $0x790] sm:$0xff] %v3380_v17 }
 0x44a   : > { %v3383_v53 = vmul.f32 %v9723_v9, %v3135_v6  ;;  %v3385_v36 = vmul.f32 %v9730_v39, %v3135_v6  ;;  %v3382_v54 = vmul.f32 %v9714_v25, %v3135_v6  ;;  %v3384_v34 = vmul.f32 %v9726_v55, %v3135_v6  ;;  %v4472_v39 = vpop.f32.mrb[186].mxu0  ;;  %v4185_v25 = vpop.f32.mrb[187].mxu1  ;;  %4640 = vst.msk [vmem:[%s9677_s17 + $0xe0] sm:$0xff] %vm671_vm0, %v4470_v40 }
 0x44b   : > { %v3136_v14 = vmul.f32 %v5896_v16, %v3072_v52  ;;  %v4474_v32 = vpop.f32.mrb[187].mxu0  ;;  %v4473_v30 = vadd.f32 %v4472_v39, %v4183_v2 }
 0x44c   : > { %3639 = vst [vmem:[%s8425_s24 + $0x7a8] sm:$0xff] %v3383_v53  ;;  %v3771_v3 = vpack.c.bf16 %v3383_v53, %v3379_v57  ;;  %3641 = vst [vmem:[%s8425_s24 + $0x7b8] sm:$0xff] %v3385_v36  ;;  %v3773_v0 = vpack.c.bf16 %v3385_v36, %v3381_v4  ;;  %v3770_v9 = vpack.c.bf16 %v3382_v54, %v3378_v43 }
 0x44d   : > { %3638 = vst [vmem:[%s8425_s24 + $0x7a0] sm:$0xff] %v3382_v54  ;;  %3640 = vst [vmem:[%s8425_s24 + $0x7b0] sm:$0xff] %v3384_v34  ;;  %v3772_v24 = vpack.c.bf16 %v3384_v34, %v3380_v17  ;;  %v5898_v55 = vpop.eup %5897  ;;  %v3387_v22 = vmul.f32 %v9751_v47, %v3136_v14  ;;  %v3389_v56 = vmul.f32 %v9768_v19, %v3136_v14 }
 0x44e   : > { %v3386_v29 = vmul.f32 %v9744_v45, %v3136_v14  ;;  %v3388_v35 = vmul.f32 %v9760_v5, %v3136_v14  ;;  %v3009_v44 = vmul.f32 %v5898_v55, %v2881_v28  ;;  %4306 = vmatprep.mubr.bf16.mxu1 %v3771_v3  ;;  %4595 = vmatprep.mubr.bf16.mxu0 %v3773_v0 }
 0x44f   : > { %4307 = vmatmul.mubr.bf16.gmra.mrb[248].mxu1 %v3770_v9  ;;  %4596 = vmatmul.mubr.bf16.gmra.mrb[248].mxu0 %v3772_v24  ;;  %3643 = vst [vmem:[%s8425_s24 + $0x7c8] sm:$0xff] %v3387_v22  ;;  %3645 = vst [vmem:[%s8425_s24 + $0x7d8] sm:$0xff] %v3389_v56 }
 0x450   : > { %3642 = vst [vmem:[%s8425_s24 + $0x7c0] sm:$0xff] %v3386_v29  ;;  %3644 = vst [vmem:[%s8425_s24 + $0x7d0] sm:$0xff] %v3388_v35  ;;  %v3073_v45 = vsub.f32 2.0, %v3009_v44 }
 0x451   : > { %4641 = vst.msk [vmem:[%s9677_s17 + $0xe8] sm:$0xff] %vm671_vm0, %v4473_v30  ;;  %v4188_v10 = vpop.f32.mrb[188].mxu1 }
 0x452   : > { %v3137_v47 = vmul.f32 %v5898_v55, %v3073_v45  ;;  %v4190_v46 = vpop.f32.mrb[189].mxu1 }
 0x453   : > { %v4477_v62 = vpop.f32.mrb[188].mxu0 }
 0x454   : > { %v3391_v5 = vmul.f32 %v9798_v26, %v3137_v47  ;;  %v3393_v19 = vmul.f32 %v9810_v37, %v3137_v47  ;;  %v3390_v59 = vmul.f32 %v9794_v11, %v3137_v47  ;;  %v3392_v42 = vmul.f32 %v9802_v63, %v3137_v47  ;;  %v4191_v26 = vpop.f32.mrb[190].mxu1  ;;  %v4479_v11 = vpop.f32.mrb[189].mxu0 }
 0x455   : > { %v4478_v37 = vadd.f32 %v4477_v62, %v4188_v10  ;;  %v4193_v63 = vpop.f32.mrb[191].mxu1  ;;  %v4480_v49 = vpop.f32.mrb[190].mxu0 }
 0x456   : > { %3647 = vst [vmem:[%s8425_s24 + $0x7e8] sm:$0xff] %v3391_v5  ;;  %v3775_v51 = vpack.c.bf16 %v3391_v5, %v3387_v22  ;;  %3649 = vst [vmem:[%s8425_s24 + $0x7f8] sm:$0xff] %v3393_v19  ;;  %v3777_v31 = vpack.c.bf16 %v3393_v19, %v3389_v56  ;;  %v3774_v41 = vpack.c.bf16 %v3390_v59, %v3386_v29  ;;  %v4482_v58 = vpop.f32.mrb[191].mxu0 }
 0x457   : > { %3646 = vst [vmem:[%s8425_s24 + $0x7e0] sm:$0xff] %v3390_v59  ;;  %3648 = vst [vmem:[%s8425_s24 + $0x7f0] sm:$0xff] %v3392_v42  ;;  %v3776_v48 = vpack.c.bf16 %v3392_v42, %v3388_v35  ;;  %v4481_v12 = vadd.f32 %v4480_v49, %v4191_v26 }
 0x458   : > { %4314 = vmatprep.mubr.bf16.mxu1 %v3775_v51  ;;  %4603 = vmatprep.mubr.bf16.mxu0 %v3777_v31  ;;  %4642 = vst.msk [vmem:[%s9677_s17 + $0xf0] sm:$0xff] %vm671_vm0, %v4478_v37 }
 0x459   : > { %4315 = vmatmul.mubr.bf16.gmra.mrb[252].mxu1 %v3774_v41  ;;  %4604 = vmatmul.mubr.bf16.gmra.mrb[252].mxu0 %v3776_v48  ;;  %4643 = vst.msk [vmem:[%s9677_s17 + $0xf8] sm:$0xff] %vm671_vm0, %v4481_v12 }
 0x460   : > { %v4196_v28 = vpop.f32.mrb[192].mxu1 }
 0x461   : > { %v4485_v21 = vpop.f32.mrb[192].mxu0  ;;  %v4198_v61 = vpop.f32.mrb[193].mxu1 }
 0x462   : > { %v4486_v15 = vadd.f32 %v4485_v21, %v4196_v28  ;;  %v4487_v50 = vpop.f32.mrb[193].mxu0  ;;  %v4199_v13 = vpop.f32.mrb[194].mxu1 }
 0x463   : > { %v4488_v7 = vpop.f32.mrb[194].mxu0  ;;  %v4201_v16 = vpop.f32.mrb[195].mxu1 }
 0x464   : > { %4644 = vst.msk [vmem:[%s9677_s17 + $0x100] sm:$0xff] %vm671_vm0, %v4486_v15  ;;  %v4489_v38 = vadd.f32 %v4488_v7, %v4199_v13  ;;  %v4490_v33 = vpop.f32.mrb[195].mxu0 }
 0x466   : > { %4645 = vst.msk [vmem:[%s9677_s17 + $0x108] sm:$0xff] %vm671_vm0, %v4489_v38 }
 0x46d   : > { %v4204_v20 = vpop.f32.mrb[196].mxu1 }
 0x46e   : > { %v4206_v57 = vpop.f32.mrb[197].mxu1 }
 0x46f   : > { %v4207_v4 = vpop.f32.mrb[198].mxu1 }
 0x470   : > { %v4493_v27 = vpop.f32.mrb[196].mxu0  ;;  %v4209_v43 = vpop.f32.mrb[199].mxu1 }
 0x471   : > { %v4494_v60 = vadd.f32 %v4493_v27, %v4204_v20  ;;  %v4495_v17 = vpop.f32.mrb[197].mxu0 }
 0x472   : > { %v4496_v6 = vpop.f32.mrb[198].mxu0 }
 0x473   : > { %4646 = vst.msk [vmem:[%s9677_s17 + $0x110] sm:$0xff] %vm671_vm0, %v4494_v60  ;;  %v4497_v52 = vadd.f32 %v4496_v6, %v4207_v4  ;;  %v4498_v1 = vpop.f32.mrb[199].mxu0 }
 0x475   : > { %4647 = vst.msk [vmem:[%s9677_s17 + $0x118] sm:$0xff] %vm671_vm0, %v4497_v52 }
 0x47b   : > { %v4212_v53 = vpop.f32.mrb[200].mxu1 }
 0x47c   : > { %v4501_v36 = vpop.f32.mrb[200].mxu0  ;;  %v4214_v54 = vpop.f32.mrb[201].mxu1 }
 0x47d   : > { %v4502_v34 = vadd.f32 %v4501_v36, %v4212_v53  ;;  %v4503_v18 = vpop.f32.mrb[201].mxu0  ;;  %v4215_v23 = vpop.f32.mrb[202].mxu1 }
 0x47e   : > { %v4504_v14 = vpop.f32.mrb[202].mxu0  ;;  %v4217_v40 = vpop.f32.mrb[203].mxu1 }
 0x47f   : > { %4648 = vst.msk [vmem:[%s9677_s17 + $0x120] sm:$0xff] %vm671_vm0, %v4502_v34  ;;  %v4505_v8 = vadd.f32 %v4504_v14, %v4215_v23  ;;  %v4506_v2 = vpop.f32.mrb[203].mxu0 }
 0x481   : > { %4649 = vst.msk [vmem:[%s9677_s17 + $0x128] sm:$0xff] %vm671_vm0, %v4505_v8 }
 0x484   : > { %v4220_v3 = vpop.f32.mrb[204].mxu1  ;;  %v4509_v0 = vpop.f32.mrb[204].mxu0 }
 0x485   : > { %v4510_v9 = vadd.f32 %v4509_v0, %v4220_v3  ;;  %v4222_v24 = vpop.f32.mrb[205].mxu1  ;;  %v4511_v39 = vpop.f32.mrb[205].mxu0 }
 0x486   : > { %v4223_v25 = vpop.f32.mrb[206].mxu1  ;;  %v4512_v55 = vpop.f32.mrb[206].mxu0 }
 0x487   : > { %4650 = vst.msk [vmem:[%s9677_s17 + $0x130] sm:$0xff] %vm671_vm0, %v4510_v9  ;;  %v4513_v22 = vadd.f32 %v4512_v55, %v4223_v25  ;;  %v4225_v56 = vpop.f32.mrb[207].mxu1  ;;  %v4514_v29 = vpop.f32.mrb[207].mxu0 }
 0x489   : > { %4651 = vst.msk [vmem:[%s9677_s17 + $0x138] sm:$0xff] %vm671_vm0, %v4513_v22 }
 0x491   : > { %v4228_v35 = vpop.f32.mrb[208].mxu1  ;;  %v4517_v32 = vpop.f32.mrb[208].mxu0 }
 0x492   : > { %v4518_v44 = vadd.f32 %v4517_v32, %v4228_v35  ;;  %v4230_v30 = vpop.f32.mrb[209].mxu1  ;;  %v4519_v45 = vpop.f32.mrb[209].mxu0 }
 0x493   : > { %v4231_v47 = vpop.f32.mrb[210].mxu1  ;;  %v4520_v5 = vpop.f32.mrb[210].mxu0 }
 0x494   : > { %4652 = vst.msk [vmem:[%s9677_s17 + $0x140] sm:$0xff] %vm671_vm0, %v4518_v44  ;;  %v4521_v19 = vadd.f32 %v4520_v5, %v4231_v47  ;;  %v4233_v59 = vpop.f32.mrb[211].mxu1  ;;  %v4522_v42 = vpop.f32.mrb[211].mxu0 }
 0x496   : > { %4653 = vst.msk [vmem:[%s9677_s17 + $0x148] sm:$0xff] %vm671_vm0, %v4521_v19 }
 0x49a   : > { %v4236_v10 = vpop.f32.mrb[212].mxu1  ;;  %v4525_v51 = vpop.f32.mrb[212].mxu0 }
 0x49b   : > { %v4526_v31 = vadd.f32 %v4525_v51, %v4236_v10  ;;  %v4238_v41 = vpop.f32.mrb[213].mxu1  ;;  %v4527_v48 = vpop.f32.mrb[213].mxu0 }
 0x49c   : > { %v4239_v46 = vpop.f32.mrb[214].mxu1  ;;  %v4528_v62 = vpop.f32.mrb[214].mxu0 }
 0x49d   : > { %4654 = vst.msk [vmem:[%s9677_s17 + $0x150] sm:$0xff] %vm671_vm0, %v4526_v31  ;;  %v4529_v26 = vadd.f32 %v4528_v62, %v4239_v46  ;;  %v4241_v37 = vpop.f32.mrb[215].mxu1  ;;  %v4530_v11 = vpop.f32.mrb[215].mxu0 }
 0x49f   : > { %4655 = vst.msk [vmem:[%s9677_s17 + $0x158] sm:$0xff] %vm671_vm0, %v4529_v26 }
 0x4a2   : > { %v4244_v63 = vpop.f32.mrb[216].mxu1  ;;  %v4533_v49 = vpop.f32.mrb[216].mxu0 }
 0x4a3   : > { %v4534_v12 = vadd.f32 %v4533_v49, %v4244_v63  ;;  %v4246_v58 = vpop.f32.mrb[217].mxu1  ;;  %v4535_v28 = vpop.f32.mrb[217].mxu0 }
 0x4a4   : > { %v4247_v21 = vpop.f32.mrb[218].mxu1  ;;  %v4536_v15 = vpop.f32.mrb[218].mxu0 }
 0x4a5   : > { %4656 = vst.msk [vmem:[%s9677_s17 + $0x160] sm:$0xff] %vm671_vm0, %v4534_v12  ;;  %v4537_v61 = vadd.f32 %v4536_v15, %v4247_v21  ;;  %v4249_v50 = vpop.f32.mrb[219].mxu1  ;;  %v4538_v13 = vpop.f32.mrb[219].mxu0 }
 0x4a7   : > { %4657 = vst.msk [vmem:[%s9677_s17 + $0x168] sm:$0xff] %vm671_vm0, %v4537_v61 }
 0x4aa   : > { %v4252_v7 = vpop.f32.mrb[220].mxu1  ;;  %v4541_v38 = vpop.f32.mrb[220].mxu0 }
 0x4ab   : > { %v4542_v16 = vadd.f32 %v4541_v38, %v4252_v7  ;;  %v4254_v33 = vpop.f32.mrb[221].mxu1  ;;  %v4543_v20 = vpop.f32.mrb[221].mxu0 }
 0x4ac   : > { %v4255_v57 = vpop.f32.mrb[222].mxu1  ;;  %v4544_v4 = vpop.f32.mrb[222].mxu0 }
 0x4ad   : > { %4658 = vst.msk [vmem:[%s9677_s17 + $0x170] sm:$0xff] %vm671_vm0, %v4542_v16  ;;  %v4545_v27 = vadd.f32 %v4544_v4, %v4255_v57  ;;  %v4257_v43 = vpop.f32.mrb[223].mxu1  ;;  %v4546_v60 = vpop.f32.mrb[223].mxu0 }
 0x4af   : > { %4659 = vst.msk [vmem:[%s9677_s17 + $0x178] sm:$0xff] %vm671_vm0, %v4545_v27 }
 0x4b0   : > { %5972 = shalt.err (!%p5969_p1)
}
 0x4b1   : > { %s5973_s27 = scalar_lea.hbm %s10095_s30, 32768  ;;  %s5977_s29 = scalar_lea.hbm %s10184_s5, 65536 }
 0x4b2   : > { %p5974_p6 = scmp.ne.s32.totalorder %s10095_s30, %s5973_s27  ;;  %p5978_p13 = scmp.lt.u32.totalorder %s10095_s30, %s10184_s5 }
 0x4b3   : > { %p5979_p3 = scmp.lt.u32.totalorder %s5977_s29, %s5973_s27  ;;  %p5981_p0 = scmp.lt.u32.totalorder %s5973_s27, %s10095_s30 }
 0x4b4   : > { %p5975_p2 = pnand %p5974_p6, %p11610_p11 }
 0x4b5   : > { %p5980_p8 = por %p5979_p3, %p5978_p13 }
 0x4b6   : > { %p5976_p5 = pneg %p5975_p2 }
 0x4b7   : > { %p5982_p4 = por %p5981_p0, %p5980_p8 }
 0x4b9   : > { %p5983_p7 = pnand %p5982_p4, %p5976_p5 }
 0x4bb   : > { %5986 = shalt.err (!%p5983_p7)
}
 0x4bc   : > { %s6053_s15 = smov 512   ;;  %s6054_s14 = smov 32  }
 0x4bd   : > { %5115 = dma.vmem_to_hbm [thread:$0]  (%p11610_p11), %s10098_s10, 32768, %s10095_s30, %s4686_s12, %s6053_s15, %s6053_s15, %s6054_s14  }
 0x4cd   : > { %v4260_v17 = vpop.f32.mrb[224].mxu1  ;;  %v4549_v6 = vpop.f32.mrb[224].mxu0 }
 0x4ce   : > { %v4550_v52 = vadd.f32 %v4549_v6, %v4260_v17  ;;  %v4262_v1 = vpop.f32.mrb[225].mxu1  ;;  %v4551_v53 = vpop.f32.mrb[225].mxu0 }
 0x4cf   : > { %v4263_v36 = vpop.f32.mrb[226].mxu1  ;;  %v4552_v54 = vpop.f32.mrb[226].mxu0 }
 0x4d0   : > { %4660 = vst.msk [vmem:[%s9677_s17 + $0x180] sm:$0xff] %vm671_vm0, %v4550_v52  ;;  %v4553_v34 = vadd.f32 %v4552_v54, %v4263_v36  ;;  %v4265_v18 = vpop.f32.mrb[227].mxu1  ;;  %v4554_v23 = vpop.f32.mrb[227].mxu0 }
 0x4d2   : > { %4661 = vst.msk [vmem:[%s9677_s17 + $0x188] sm:$0xff] %vm671_vm0, %v4553_v34 }
 0x4dd   : > { %v4268_v14 = vpop.f32.mrb[228].mxu1  ;;  %v4557_v40 = vpop.f32.mrb[228].mxu0 }
 0x4de   : > { %v4558_v8 = vadd.f32 %v4557_v40, %v4268_v14  ;;  %v4270_v2 = vpop.f32.mrb[229].mxu1  ;;  %v4559_v3 = vpop.f32.mrb[229].mxu0 }
 0x4df   : > { %v4271_v0 = vpop.f32.mrb[230].mxu1  ;;  %v4560_v9 = vpop.f32.mrb[230].mxu0 }
 0x4e0   : > { %4662 = vst.msk [vmem:[%s9677_s17 + $0x190] sm:$0xff] %vm671_vm0, %v4558_v8  ;;  %v4561_v24 = vadd.f32 %v4560_v9, %v4271_v0  ;;  %v4273_v39 = vpop.f32.mrb[231].mxu1  ;;  %v4562_v25 = vpop.f32.mrb[231].mxu0 }
 0x4e2   : > { %4663 = vst.msk [vmem:[%s9677_s17 + $0x198] sm:$0xff] %vm671_vm0, %v4561_v24 }
 0x4ee   : > { %v4276_v55 = vpop.f32.mrb[232].mxu1  ;;  %v4565_v22 = vpop.f32.mrb[232].mxu0 }
 0x4ef   : > { %v4566_v56 = vadd.f32 %v4565_v22, %v4276_v55  ;;  %v4278_v29 = vpop.f32.mrb[233].mxu1  ;;  %v4567_v35 = vpop.f32.mrb[233].mxu0 }
 0x4f0   : > { %v4279_v32 = vpop.f32.mrb[234].mxu1  ;;  %v4568_v44 = vpop.f32.mrb[234].mxu0 }
 0x4f1   : > { %4664 = vst.msk [vmem:[%s9677_s17 + $0x1a0] sm:$0xff] %vm671_vm0, %v4566_v56  ;;  %v4569_v30 = vadd.f32 %v4568_v44, %v4279_v32  ;;  %v4281_v45 = vpop.f32.mrb[235].mxu1  ;;  %v4570_v47 = vpop.f32.mrb[235].mxu0 }
 0x4f3   : > { %4665 = vst.msk [vmem:[%s9677_s17 + $0x1a8] sm:$0xff] %vm671_vm0, %v4569_v30 }
 0x4fd   : > { %v4284_v5 = vpop.f32.mrb[236].mxu1  ;;  %v4573_v19 = vpop.f32.mrb[236].mxu0 }
 0x4fe   : > { %v4574_v59 = vadd.f32 %v4573_v19, %v4284_v5  ;;  %v4286_v42 = vpop.f32.mrb[237].mxu1  ;;  %v4575_v10 = vpop.f32.mrb[237].mxu0 }
 0x4ff   : > { %v4287_v51 = vpop.f32.mrb[238].mxu1  ;;  %v4576_v31 = vpop.f32.mrb[238].mxu0 }
 0x500   : > { %4666 = vst.msk [vmem:[%s9677_s17 + $0x1b0] sm:$0xff] %vm671_vm0, %v4574_v59  ;;  %v4577_v41 = vadd.f32 %v4576_v31, %v4287_v51  ;;  %v4289_v48 = vpop.f32.mrb[239].mxu1  ;;  %v4578_v46 = vpop.f32.mrb[239].mxu0 }
 0x502   : > { %4667 = vst.msk [vmem:[%s9677_s17 + $0x1b8] sm:$0xff] %vm671_vm0, %v4577_v41 }
 0x509   : > { %v4292_v62 = vpop.f32.mrb[240].mxu1  ;;  %v4581_v26 = vpop.f32.mrb[240].mxu0 }
 0x50a   : > { %v4582_v37 = vadd.f32 %v4581_v26, %v4292_v62  ;;  %v4294_v11 = vpop.f32.mrb[241].mxu1  ;;  %v4583_v63 = vpop.f32.mrb[241].mxu0 }
 0x50b   : > { %v4295_v49 = vpop.f32.mrb[242].mxu1  ;;  %v4584_v12 = vpop.f32.mrb[242].mxu0 }
 0x50c   : > { %4668 = vst.msk [vmem:[%s9677_s17 + $0x1c0] sm:$0xff] %vm671_vm0, %v4582_v37  ;;  %v4585_v58 = vadd.f32 %v4584_v12, %v4295_v49  ;;  %v4297_v28 = vpop.f32.mrb[243].mxu1  ;;  %v4586_v21 = vpop.f32.mrb[243].mxu0 }
 0x50e   : > { %4669 = vst.msk [vmem:[%s9677_s17 + $0x1c8] sm:$0xff] %vm671_vm0, %v4585_v58 }
 0x519   : > { %v4300_v15 = vpop.f32.mrb[244].mxu1  ;;  %v4589_v61 = vpop.f32.mrb[244].mxu0 }
 0x51a   : > { %v4590_v50 = vadd.f32 %v4589_v61, %v4300_v15  ;;  %v4302_v13 = vpop.f32.mrb[245].mxu1  ;;  %v4591_v7 = vpop.f32.mrb[245].mxu0 }
 0x51b   : > { %v4303_v38 = vpop.f32.mrb[246].mxu1  ;;  %v4592_v16 = vpop.f32.mrb[246].mxu0 }
 0x51c   : > { %4670 = vst.msk [vmem:[%s9677_s17 + $0x1d0] sm:$0xff] %vm671_vm0, %v4590_v50  ;;  %v4593_v33 = vadd.f32 %v4592_v16, %v4303_v38  ;;  %v4305_v20 = vpop.f32.mrb[247].mxu1  ;;  %v4594_v57 = vpop.f32.mrb[247].mxu0 }
 0x51e   : > { %4671 = vst.msk [vmem:[%s9677_s17 + $0x1d8] sm:$0xff] %vm671_vm0, %v4593_v33 }
 0x522   : > { %v4308_v4 = vpop.f32.mrb[248].mxu1  ;;  %v4597_v27 = vpop.f32.mrb[248].mxu0 }
 0x523   : > { %v4598_v43 = vadd.f32 %v4597_v27, %v4308_v4  ;;  %v4310_v60 = vpop.f32.mrb[249].mxu1  ;;  %v4599_v17 = vpop.f32.mrb[249].mxu0 }
 0x524   : > { %v4311_v6 = vpop.f32.mrb[250].mxu1  ;;  %v4600_v52 = vpop.f32.mrb[250].mxu0 }
 0x525   : > { %4672 = vst.msk [vmem:[%s9677_s17 + $0x1e0] sm:$0xff] %vm671_vm0, %v4598_v43  ;;  %v4601_v1 = vadd.f32 %v4600_v52, %v4311_v6  ;;  %v4313_v53 = vpop.f32.mrb[251].mxu1  ;;  %v4602_v36 = vpop.f32.mrb[251].mxu0 }
 0x527   : > { %4673 = vst.msk [vmem:[%s9677_s17 + $0x1e8] sm:$0xff] %vm671_vm0, %v4601_v1 }
 0x52c   : > { %v4316_v54 = vpop.f32.mrb[252].mxu1  ;;  %v4605_v34 = vpop.f32.mrb[252].mxu0 }
 0x52d   : > { %v4606_v18 = vadd.f32 %v4605_v34, %v4316_v54  ;;  %v4318_v23 = vpop.f32.mrb[253].mxu1  ;;  %v4607_v14 = vpop.f32.mrb[253].mxu0 }
 0x52e   : > { %v4319_v40 = vpop.f32.mrb[254].mxu1  ;;  %v4608_v8 = vpop.f32.mrb[254].mxu0 }
 0x52f   : > { %4674 = vst.msk [vmem:[%s9677_s17 + $0x1f0] sm:$0xff] %vm671_vm0, %v4606_v18  ;;  %v4609_v2 = vadd.f32 %v4608_v8, %v4319_v40  ;;  %v4321_v3 = vpop.f32.mrb[255].mxu1  ;;  %v4610_v0 = vpop.f32.mrb[255].mxu0 }
 0x531   : > { %4675 = vst.msk [vmem:[%s9677_s17 + $0x1f8] sm:$0xff] %vm671_vm0, %v4609_v2 }
 0x532 PF: > { %s4733_s6 = sand.u32 1, %s6025_s18   ;;  %p11611_p11 = scmp.ne.s32.totalorder %s10643_s8, 0 }
 0x533   : > { %p11612_p10 = scmp.ge.s32.totalorder %s6045_s23, 2  ;;  %s4734_s16 = scalar_lea.sflag [#allocation4], %s4733_s6 }
 0x535   : > { %p5125_p12 = pnand %p11612_p10, %p11611_p11 }
 0x537   : > { %6020 = dma.done.wait (!%p5125_p12), %s4734_s16, 32768  }
 0x538   : > { %6022 = vsyncadd (!%p5125_p12), %s4734_s16, 4294934528  ;;  %s25_s23 = sadd.s32 1, %s6045_s23   ;;  %s11613_s18 = smov %s6029_s19 }
 0x539   : > { %p22_p9 = scmp.ge.s32.totalorder %s25_s23, 4   ;;  %s11614_s19 = smov %s6033_s20 }
 0x53a   : > { %s11615_s20 = smov %s6141_s7  ;;  %s11616_s21 = smov %s6041_s22 }
 0x53b   : > { %s11617_s22 = smov %s11619_s26  ;;  %24 = sbr.rel (!%p22_p9) target bundleno = 10 (0xa), region = 112 }
 0x542   :  { %4739 = vsyncpa [#allocation3], 1 }
 0x543   :  { %4741 = vsyncpa [#allocation3 + $0x1], 1 }
 0x544   :  { %4742 = vsyncpa [#allocation6], 1 }
 0x545   :  { %4744 = vsyncpa [#allocation6 + $0x1], 1 }
 0x546   :  { %4745 = vsyncpa [#allocation4], 1 }
 0x547   :  { %4747 = vsyncpa [#allocation4 + $0x1], 1 }

</bundles_post_ra>
